<compile_context>
chip_gen: v6e
topology: v6e:2x2x1
jax: 0.10.0
libtpu: 0.0.40
codegen_flags: <defaults>
</compile_context>

<pallas_src>
import functools

import numpy as np
import jax
import jax.numpy as jnp
from jax.experimental import pallas as pl
from jax.experimental.pallas import tpu as pltpu


# Columns of the packed per-sample parameter vector (see _prep_params).
_P_HFLIP, _P_VFLIP, _P_KY, _P_KX, _P_WY1, _P_WX1 = range(6)
_NPARAM = 8          # padded to 8 so the params lane dim is a clean size


def _round_up(x, m):
    return -(-x // m) * m


def _aug_kernel(p_ref, x_ref, o_ref, *, W):
    """One grid step = one block of `b_blk` samples.

    p_ref : VMEM (b_blk, 1, 8)   f32  [hflip, vflip, ky, kx, wy1, wx1, 0, 0]
    x_ref : VMEM (b_blk, H, CWp) f32  packed input,  [b, h, c*W + w] (lane-padded)
    o_ref : VMEM (b_blk, H, CWp) f32  packed output, same layout
    """
    f32 = jnp.float32
    H = x_ref.shape[1]
    CWp = x_ref.shape[2]
    inv_w = f32(1.0 / W)
    inv255 = f32(1.0 / 255.0)

    # -------- per-sample parameters, shaped (b_blk, 1, 1) via pure slicing ----
    p = p_ref[...]                                  # (b_blk, 1, 8)
    hflip = p[:, :, _P_HFLIP:_P_HFLIP + 1]          # {0., 1.}
    vflip = p[:, :, _P_VFLIP:_P_VFLIP + 1]          # {0., 1.}
    ky = p[:, :, _P_KY:_P_KY + 1]                   # floor(-ty), integer-valued f32
    kx = p[:, :, _P_KX:_P_KX + 1]                   # floor(-tx)
    wy1 = p[:, :, _P_WY1:_P_WY1 + 1]                # frac(-ty)
    wx1 = p[:, :, _P_WX1:_P_WX1 + 1]                # frac(-tx)
    wy0 = 1.0 - wy1
    wx0 = 1.0 - wx1

    # -------------------- row operator  L : (b_blk, H, H) --------------------
    # L[b, i, a] = weight of ORIGINAL source row a for output row i
    # (vertical flip folded into the source index; zero padding implicit —
    #  out-of-range taps simply match no source row).
    i_row = jax.lax.broadcasted_iota(jnp.int32, (1, H, H), 1).astype(f32)   # out row i
    a_row = jax.lax.broadcasted_iota(jnp.int32, (1, H, H), 2).astype(f32)   # src row a
    a_src = a_row + vflip * (f32(H - 1) - 2.0 * a_row)                      # flip(a)
    ti = i_row + ky
    L = (wy0 * (a_src == ti).astype(f32)
         + wy1 * (a_src == ti + 1.0).astype(f32))                           # (b, H, H)

    # ----------------- column operator  R : (b_blk, CWp, CWp) ----------------
    # Packed column index g = c*W + w.  R is block-diagonal over channels;
    # within a channel it is the horizontal flip + 2-tap horizontal shift.
    # Everything that does not depend on the sample is kept on thin
    # (CWp,1)/(1,CWp) vectors shared across the batch, so only ~8 cheap VPU ops
    # per sample touch the full CWp x CWp grid.
    g_p = jax.lax.broadcasted_iota(jnp.int32, (1, CWp, 1), 1).astype(f32)   # src packed col
    g_q = jax.lax.broadcasted_iota(jnp.int32, (1, 1, CWp), 2).astype(f32)   # out packed col
    c_p = jnp.floor((g_p + 0.5) * inv_w)            # channel of src col (float-floor, exact)
    c_q = jnp.floor((g_q + 0.5) * inv_w)            # channel of out col
    s_loc = g_p - c_p * f32(W)                      # (1, CWp, 1) local src col
    j_loc = g_q - c_q * f32(W)                      # (1, 1, CWp) local out col
    same_c = (c_p == c_q).astype(f32)               # (1, CWp, CWp) channel / pad mask

    s_src = s_loc + hflip * (f32(W - 1) - 2.0 * s_loc)                      # (b, CWp, 1)
    tj = j_loc + kx                                                         # (b, 1, CWp)
    R = same_c * (wx0 * (s_src == tj).astype(f32)
                  + wx1 * (s_src == tj + 1.0).astype(f32))                  # (b, CWp, CWp)

    # ---------------------------- apply + epilogue ---------------------------
    x = x_ref[...]                                                          # (b, H, CWp)
    # Precision note: Mosaic exposes only bf16 (DEFAULT) and fp32 (HIGHEST)
    # contract precisions — Precision.HIGH/bf16x3 is not available here, and
    # single-pass bf16 can flip the round() decisions, so keep fp32.
    y = jnp.einsum("bia,bac->bic", L, x,
                   preferred_element_type=f32,
                   precision=jax.lax.Precision.HIGHEST)                     # rows
    y = jnp.einsum("bic,bcd->bid", y, R,
                   preferred_element_type=f32,
                   precision=jax.lax.Precision.HIGHEST)                     # cols (per chan)
    # Denormalize (x255) -> round -> Normalize (/255); linearity lets us fold
    # the x255 into the epilogue.  torch.round / jnp.round are both
    # round-half-to-even.  Store is a full 128-lane-multiple slab -> unmasked vst.
    o_ref[...] = (jnp.round(y * 255.0) * inv255).astype(o_ref.dtype)


def sample_params(key, B, H, W):
    """Per-sample random augmentation parameters (plain-JAX glue, kornia defaults)."""
    k1, k2, k3, k4, k5 = jax.random.split(key, 5)
    hflip = jax.random.bernoulli(k1, 0.5, (B,)).astype(jnp.int32)
    vflip = jax.random.bernoulli(k2, 0.5, (B,)).astype(jnp.int32)
    apply_affine = jax.random.bernoulli(k3, 0.5, (B,)).astype(jnp.float32)
    tx = jax.random.uniform(k4, (B,), minval=-0.1 * W, maxval=0.1 * W) * apply_affine
    ty = jax.random.uniform(k5, (B,), minval=-0.1 * H, maxval=0.1 * H) * apply_affine
    return hflip, vflip, tx.astype(jnp.float32), ty.astype(jnp.float32)


def _prep_params(hflip, vflip, tx, ty):
    """Pack per-sample params into a single (B, 1, 8) f32 array (one merged block)."""
    f32 = jnp.float32
    # Bilinear shift decomposition: sampling output row i at (i - ty) hits
    # integer rows i + ky and i + ky + 1 with weights (1 - wy1, wy1),
    # where ky = floor(-ty).  Same along x.
    ky = jnp.floor(-ty)
    kx = jnp.floor(-tx)
    wy1 = (-ty - ky).astype(f32)
    wx1 = (-tx - kx).astype(f32)
    zeros = jnp.zeros_like(wy1)
    p = jnp.stack([hflip.astype(f32), vflip.astype(f32),
                   ky.astype(f32), kx.astype(f32), wy1, wx1, zeros, zeros],
                  axis=-1)                              # (B, 8)
    return p[:, None, :]                                # (B, 1, 8)


def _choose_block(b_total, H, CWp):
    """Per-grid-step batch block size (VMEM- and megacore-aware).

    Per-sample f32 words:
      4*H*CWp    in + out tiles, double-buffered by the BlockSpec pipeline
      4*CWp*CWp  batched column operator R plus ~3 live temporaries while
                 building it (Mosaic materializes elementwise intermediates)
      4*H*H      row operator L + temporaries
      3*H*CWp    matmul results + round/scale temporaries
    An 8 MiB budget keeps the total well under v5e's 16 MiB default scoped
    VMEM (v6e/v7x default 32 MiB scoped; v7x physical VMEM is only 64 MiB).
    """
    per_sample = (4 * H * CWp + 4 * CWp * CWp + 4 * H * H + 3 * H * CWp) * 4
    budget = 8 << 20
    cap = max(8, (budget // per_sample) // 8 * 8)
    b_blk = min(b_total, cap, 128)
    # Keep >= 2 grid blocks when the batch allows it: the batch-block axis is
    # "parallel", so v7x can shard the grid across its 2 TensorCores.
    if b_total >= 16:
        b_blk = min(b_blk, _round_up(b_total, 16) // 2)
    return b_blk


def clf_aug_pipeline_packed(x_packed, hflip, vflip, tx, ty, *, C, W):
    """Kernel-native (lane-dense) entry point.

    x_packed: (B, H, CWp) f32 with [b, h, c*W + w] = x[b, c, h, w], last (lane)
    axis zero-padded up to a multiple of 128.  Returns the same layout.
    """
    B, H, CWp = x_packed.shape
    assert CWp % 128 == 0 and CWp >= C * W

    params = _prep_params(hflip, vflip, tx, ty)          # (B, 1, 8)

    B8 = _round_up(B, 8)
    b_blk = _choose_block(B8, H, CWp)
    n_blk = -(-B8 // b_blk)
    Bp = n_blk * b_blk
    if Bp != B:
        # Padded samples get all-zero params (identity operators) and all-zero
        # images; they are sliced off below.
        x_packed = jnp.pad(x_packed, ((0, Bp - B), (0, 0), (0, 0)))
        params = jnp.pad(params, ((0, Bp - B), (0, 0), (0, 0)))

    grid_spec = pltpu.PrefetchScalarGridSpec(
        num_scalar_prefetch=0,
        grid=(n_blk,),
        in_specs=[pl.BlockSpec((b_blk, 1, _NPARAM), lambda i: (i, 0, 0)),
                  pl.BlockSpec((b_blk, H, CWp), lambda i: (i, 0, 0))],
        out_specs=pl.BlockSpec((b_blk, H, CWp), lambda i: (i, 0, 0)),
    )
    flops_per_sample = 2 * H * H * CWp + 2 * H * CWp * CWp
    cost = pl.CostEstimate(
        flops=int(Bp) * flops_per_sample,
        transcendentals=0,
        bytes_accessed=2 * int(Bp) * H * CWp * 4,
    )
    out = pl.pallas_call(
        functools.partial(_aug_kernel, W=W),
        out_shape=jax.ShapeDtypeStruct((Bp, H, CWp), x_packed.dtype),
        grid_spec=grid_spec,
        compiler_params=pltpu.CompilerParams(
            dimension_semantics=("parallel",)),          # blocks are independent
        cost_estimate=cost,
    )(params, x_packed)
    return out[:B]


def clf_aug_pipeline(x, hflip, vflip, tx, ty):
    """NCHW convenience wrapper around the packed-layout kernel.

    NOTE(perf): the pack/unpack transposes below are wrapper-side HBM layout
    plumbing (one extra read+write pass each around an otherwise memory-light
    kernel).  Pipelines that can carry the lane-dense (B, H, round_up(C*W,128))
    packed layout end to end should call `clf_aug_pipeline_packed` directly and
    skip them entirely.
    """
    B, C, H, W = x.shape
    CW = C * W
    CWp = _round_up(CW, 128)
    x_packed = x.transpose(0, 2, 1, 3).reshape(B, H, CW)
    if CWp != CW:
        x_packed = jnp.pad(x_packed, ((0, 0), (0, 0), (0, CWp - CW)))
    out_packed = clf_aug_pipeline_packed(x_packed, hflip, vflip, tx, ty, C=C, W=W)
    out = out_packed[:, :, :CW].reshape(B, H, C, W).transpose(0, 2, 1, 3)
    return out


def _reference(x, hflip, vflip, tx, ty):
    """Pure numpy reference: denorm -> flips -> bilinear translate -> round -> norm."""
    x = np.asarray(x, dtype=np.float64)
    hflip = np.asarray(hflip)
    vflip = np.asarray(vflip)
    tx = np.asarray(tx, dtype=np.float64)
    ty = np.asarray(ty, dtype=np.float64)
    B, C, H, W = x.shape
    out = np.zeros_like(x)
    for b in range(B):
        img = x[b] * 255.0
        if hflip[b]:
            img = img[:, :, ::-1]
        if vflip[b]:
            img = img[:, ::-1, :]
        res = np.zeros((C, H, W))
        for i in range(H):
            for j in range(W):
                y = i - ty[b]
                xx = j - tx[b]
                y0 = int(np.floor(y))
                x0 = int(np.floor(xx))
                fy = y - y0
                fx = xx - x0
                for (yy, wy) in ((y0, 1.0 - fy), (y0 + 1, fy)):
                    for (xc, wx) in ((x0, 1.0 - fx), (x0 + 1, fx)):
                        if 0 <= yy < H and 0 <= xc < W:
                            res[:, i, j] += wy * wx * img[:, yy, xc]
        out[b] = np.round(res) / 255.0
    return out


if __name__ == "__main__":
    B, C, H, W = 2, 4, 16, 16
    key = jax.random.PRNGKey(0)
    kx_key, kp_key = jax.random.split(key)
    # Input is a "normalized" image in [0, 1), like the torch module expects.
    x = jax.random.uniform(kx_key, (B, C, H, W), dtype=jnp.float32)
    hflip, vflip, tx, ty = sample_params(kp_key, B, H, W)

    fn = jax.jit(clf_aug_pipeline)
    out = jax.block_until_ready(fn(x, hflip, vflip, tx, ty))

    ref = _reference(x, hflip, vflip, tx, ty)
    np.testing.assert_allclose(np.asarray(out), ref, atol=6e-3)
    print("KERNEL_OK")
</pallas_src>

<mosaic_0001>
module attributes {stable_mosaic.version = 11 : i64} {
  func.func @_aug_kernel(%arg0: i32, %arg1: memref<8x1x8xf32, #tpu.memory_space<vmem>>, %arg2: memref<8x16x128xf32, #tpu.memory_space<vmem>>, %arg3: memref<8x16x128xf32, #tpu.memory_space<vmem>>) attributes {dimension_semantics = [#tpu.dimension_semantics<parallel>], iteration_bounds = array<i64: 1>, scalar_prefetch = 0 : i64, scratch_operands = 0 : i64, tpu.core_type = #tpu.core_type<tc>, window_params = [{transform_indices = @transform_0, window_bounds = array<i64: 8, 1, 8>}, {transform_indices = @transform_1, window_bounds = array<i64: 8, 16, 128>}, {transform_indices = @transform_2, window_bounds = array<i64: 8, 16, 128>}]} {
    %c0 = arith.constant 0 : index
    %c0_0 = arith.constant 0 : index
    %c0_1 = arith.constant 0 : index
    %0 = vector.load %arg1[%c0, %c0_0, %c0_1] : memref<8x1x8xf32, #tpu.memory_space<vmem>>, vector<8x1x8xf32>
    %1 = vector.extract_strided_slice %0 {offsets = [0, 0, 0], sizes = [8, 1, 1], strides = [1, 1, 1]} : vector<8x1x8xf32> to vector<8x1x1xf32>
    %2 = vector.extract_strided_slice %0 {offsets = [0, 0, 1], sizes = [8, 1, 1], strides = [1, 1, 1]} : vector<8x1x8xf32> to vector<8x1x1xf32>
    %3 = vector.extract_strided_slice %0 {offsets = [0, 0, 2], sizes = [8, 1, 1], strides = [1, 1, 1]} : vector<8x1x8xf32> to vector<8x1x1xf32>
    %4 = vector.extract_strided_slice %0 {offsets = [0, 0, 3], sizes = [8, 1, 1], strides = [1, 1, 1]} : vector<8x1x8xf32> to vector<8x1x1xf32>
    %5 = vector.extract_strided_slice %0 {offsets = [0, 0, 4], sizes = [8, 1, 1], strides = [1, 1, 1]} : vector<8x1x8xf32> to vector<8x1x1xf32>
    %6 = vector.extract_strided_slice %0 {offsets = [0, 0, 5], sizes = [8, 1, 1], strides = [1, 1, 1]} : vector<8x1x8xf32> to vector<8x1x1xf32>
    %cst = arith.constant 1.000000e+00 : f32
    %7 = vector.broadcast %cst : f32 to vector<8x1x1xf32>
    %8 = arith.subf %7, %5 : vector<8x1x1xf32>
    %cst_2 = arith.constant 1.000000e+00 : f32
    %9 = vector.broadcast %cst_2 : f32 to vector<8x1x1xf32>
    %10 = arith.subf %9, %6 : vector<8x1x1xf32>
    %11 = tpu.iota {dimensions = array<i32: 1>} : vector<1x16x16xi32>
    %12 = arith.sitofp %11 : vector<1x16x16xi32> to vector<1x16x16xf32>
    %13 = tpu.iota {dimensions = array<i32: 2>} : vector<1x16x16xi32>
    %14 = arith.sitofp %13 : vector<1x16x16xi32> to vector<1x16x16xf32>
    %cst_3 = arith.constant 2.000000e+00 : f32
    %15 = vector.broadcast %cst_3 : f32 to vector<1x16x16xf32>
    %16 = arith.mulf %15, %14 : vector<1x16x16xf32>
    %cst_4 = arith.constant 1.500000e+01 : f32
    %17 = vector.broadcast %cst_4 : f32 to vector<1x16x16xf32>
    %18 = arith.subf %17, %16 : vector<1x16x16xf32>
    %19 = vector.broadcast %2 : vector<8x1x1xf32> to vector<8x16x16xf32>
    %20 = vector.broadcast %18 : vector<1x16x16xf32> to vector<8x16x16xf32>
    %21 = arith.mulf %19, %20 : vector<8x16x16xf32>
    %22 = vector.broadcast %14 : vector<1x16x16xf32> to vector<8x16x16xf32>
    %23 = arith.addf %22, %21 : vector<8x16x16xf32>
    %24 = vector.broadcast %12 : vector<1x16x16xf32> to vector<8x16x16xf32>
    %25 = vector.broadcast %3 : vector<8x1x1xf32> to vector<8x16x16xf32>
    %26 = arith.addf %24, %25 : vector<8x16x16xf32>
    %27 = arith.cmpf oeq, %23, %26 : vector<8x16x16xf32>
    %28 = arith.extui %27 : vector<8x16x16xi1> to vector<8x16x16xi32>
    %29 = arith.sitofp %28 : vector<8x16x16xi32> to vector<8x16x16xf32>
    %30 = vector.broadcast %8 : vector<8x1x1xf32> to vector<8x16x16xf32>
    %31 = arith.mulf %30, %29 : vector<8x16x16xf32>
    %cst_5 = arith.constant 1.000000e+00 : f32
    %32 = vector.broadcast %cst_5 : f32 to vector<8x16x16xf32>
    %33 = arith.addf %26, %32 : vector<8x16x16xf32>
    %34 = arith.cmpf oeq, %23, %33 : vector<8x16x16xf32>
    %35 = arith.extui %34 : vector<8x16x16xi1> to vector<8x16x16xi32>
    %36 = arith.sitofp %35 : vector<8x16x16xi32> to vector<8x16x16xf32>
    %37 = vector.broadcast %5 : vector<8x1x1xf32> to vector<8x16x16xf32>
    %38 = arith.mulf %37, %36 : vector<8x16x16xf32>
    %39 = arith.addf %31, %38 : vector<8x16x16xf32>
    %40 = tpu.iota {dimensions = array<i32: 1>} : vector<1x128x1xi32>
    %41 = arith.sitofp %40 : vector<1x128x1xi32> to vector<1x128x1xf32>
    %42 = tpu.iota {dimensions = array<i32: 2>} : vector<1x1x128xi32>
    %43 = arith.sitofp %42 : vector<1x1x128xi32> to vector<1x1x128xf32>
    %cst_6 = arith.constant 5.000000e-01 : f32
    %44 = vector.broadcast %cst_6 : f32 to vector<1x128x1xf32>
    %45 = arith.addf %41, %44 : vector<1x128x1xf32>
    %cst_7 = arith.constant 6.250000e-02 : f32
    %46 = vector.broadcast %cst_7 : f32 to vector<1x128x1xf32>
    %47 = arith.mulf %45, %46 : vector<1x128x1xf32>
    %48 = math.floor %47 : vector<1x128x1xf32>
    %cst_8 = arith.constant 5.000000e-01 : f32
    %49 = vector.broadcast %cst_8 : f32 to vector<1x1x128xf32>
    %50 = arith.addf %43, %49 : vector<1x1x128xf32>
    %cst_9 = arith.constant 6.250000e-02 : f32
    %51 = vector.broadcast %cst_9 : f32 to vector<1x1x128xf32>
    %52 = arith.mulf %50, %51 : vector<1x1x128xf32>
    %53 = math.floor %52 : vector<1x1x128xf32>
    %cst_10 = arith.constant 1.600000e+01 : f32
    %54 = vector.broadcast %cst_10 : f32 to vector<1x128x1xf32>
    %55 = arith.mulf %48, %54 : vector<1x128x1xf32>
    %56 = arith.subf %41, %55 : vector<1x128x1xf32>
    %cst_11 = arith.constant 1.600000e+01 : f32
    %57 = vector.broadcast %cst_11 : f32 to vector<1x1x128xf32>
    %58 = arith.mulf %53, %57 : vector<1x1x128xf32>
    %59 = arith.subf %43, %58 : vector<1x1x128xf32>
    %60 = vector.broadcast %48 : vector<1x128x1xf32> to vector<1x128x128xf32>
    %61 = vector.broadcast %53 : vector<1x1x128xf32> to vector<1x128x128xf32>
    %62 = arith.cmpf oeq, %60, %61 : vector<1x128x128xf32>
    %63 = arith.extui %62 : vector<1x128x128xi1> to vector<1x128x128xi32>
    %64 = arith.sitofp %63 : vector<1x128x128xi32> to vector<1x128x128xf32>
    %cst_12 = arith.constant 2.000000e+00 : f32
    %65 = vector.broadcast %cst_12 : f32 to vector<1x128x1xf32>
    %66 = arith.mulf %65, %56 : vector<1x128x1xf32>
    %cst_13 = arith.constant 1.500000e+01 : f32
    %67 = vector.broadcast %cst_13 : f32 to vector<1x128x1xf32>
    %68 = arith.subf %67, %66 : vector<1x128x1xf32>
    %69 = vector.broadcast %1 : vector<8x1x1xf32> to vector<8x128x1xf32>
    %70 = vector.broadcast %68 : vector<1x128x1xf32> to vector<8x128x1xf32>
    %71 = arith.mulf %69, %70 : vector<8x128x1xf32>
    %72 = vector.broadcast %56 : vector<1x128x1xf32> to vector<8x128x1xf32>
    %73 = arith.addf %72, %71 : vector<8x128x1xf32>
    %74 = vector.broadcast %59 : vector<1x1x128xf32> to vector<8x1x128xf32>
    %75 = vector.broadcast %4 : vector<8x1x1xf32> to vector<8x1x128xf32>
    %76 = arith.addf %74, %75 : vector<8x1x128xf32>
    %77 = vector.broadcast %73 : vector<8x128x1xf32> to vector<8x128x128xf32>
    %78 = vector.broadcast %76 : vector<8x1x128xf32> to vector<8x128x128xf32>
    %79 = arith.cmpf oeq, %77, %78 : vector<8x128x128xf32>
    %80 = arith.extui %79 : vector<8x128x128xi1> to vector<8x128x128xi32>
    %81 = arith.sitofp %80 : vector<8x128x128xi32> to vector<8x128x128xf32>
    %82 = vector.broadcast %10 : vector<8x1x1xf32> to vector<8x128x128xf32>
    %83 = arith.mulf %82, %81 : vector<8x128x128xf32>
    %cst_14 = arith.constant 1.000000e+00 : f32
    %84 = vector.broadcast %cst_14 : f32 to vector<8x1x128xf32>
    %85 = arith.addf %76, %84 : vector<8x1x128xf32>
    %86 = vector.broadcast %73 : vector<8x128x1xf32> to vector<8x128x128xf32>
    %87 = vector.broadcast %85 : vector<8x1x128xf32> to vector<8x128x128xf32>
    %88 = arith.cmpf oeq, %86, %87 : vector<8x128x128xf32>
    %89 = arith.extui %88 : vector<8x128x128xi1> to vector<8x128x128xi32>
    %90 = arith.sitofp %89 : vector<8x128x128xi32> to vector<8x128x128xf32>
    %91 = vector.broadcast %6 : vector<8x1x1xf32> to vector<8x128x128xf32>
    %92 = arith.mulf %91, %90 : vector<8x128x128xf32>
    %93 = arith.addf %83, %92 : vector<8x128x128xf32>
    %94 = vector.broadcast %64 : vector<1x128x128xf32> to vector<8x128x128xf32>
    %95 = arith.mulf %94, %93 : vector<8x128x128xf32>
    %c0_15 = arith.constant 0 : index
    %c0_16 = arith.constant 0 : index
    %c0_17 = arith.constant 0 : index
    %96 = vector.load %arg2[%c0_15, %c0_16, %c0_17] : memref<8x16x128xf32, #tpu.memory_space<vmem>>, vector<8x16x128xf32>
    "tpu.trace_start"() <{level = 10 : i32, message = "bia,bac->bic"}> : () -> ()
    %cst_18 = arith.constant dense<0.000000e+00> : vector<8x16x128xf32>
    %97 = tpu.matmul %39, %96, %cst_18 {dimension_numbers = #tpu.dot_dimension_numbers<[2], [1], [1], [2], [0, 0, 0, 1, 1, 2], [0], [0]>, precision = #tpu.contract_precision<fp32>} : vector<8x16x16xf32>, vector<8x16x128xf32>, vector<8x16x128xf32> -> vector<8x16x128xf32>
    "tpu.trace_stop"() : () -> ()
    "tpu.trace_start"() <{level = 10 : i32, message = "bic,bcd->bid"}> : () -> ()
    %cst_19 = arith.constant dense<0.000000e+00> : vector<8x16x128xf32>
    %98 = tpu.matmul %97, %95, %cst_19 {dimension_numbers = #tpu.dot_dimension_numbers<[2], [1], [1], [2], [0, 0, 0, 1, 1, 2], [0], [0]>, precision = #tpu.contract_precision<fp32>} : vector<8x16x128xf32>, vector<8x128x128xf32>, vector<8x16x128xf32> -> vector<8x16x128xf32>
    "tpu.trace_stop"() : () -> ()
    %cst_20 = arith.constant 2.550000e+02 : f32
    %99 = vector.broadcast %cst_20 : f32 to vector<8x16x128xf32>
    %100 = arith.mulf %98, %99 : vector<8x16x128xf32>
    %101 = math.roundeven %100 : vector<8x16x128xf32>
    %cst_21 = arith.constant 0.00392156886 : f32
    %102 = vector.broadcast %cst_21 : f32 to vector<8x16x128xf32>
    %103 = arith.mulf %101, %102 : vector<8x16x128xf32>
    %c0_22 = arith.constant 0 : index
    %c0_23 = arith.constant 0 : index
    %c0_24 = arith.constant 0 : index
    %104 = vector.load %arg3[%c0_22, %c0_23, %c0_24] : memref<8x16x128xf32, #tpu.memory_space<vmem>>, vector<8x16x128xf32>
    tpu.vector_store %arg3[%c0_22, %c0_23, %c0_24], %103 {strides = array<i32>} : memref<8x16x128xf32, #tpu.memory_space<vmem>>, vector<8x16x128xf32>,
    return
  }
  func.func @transform_0(%arg0: i32) -> (i32, i32, i32) {
    %c0_i32 = arith.constant 0 : i32
    %c0_i32_0 = arith.constant 0 : i32
    %c0_i32_1 = arith.constant 0 : i32
    return %arg0, %c0_i32, %c0_i32_0 : i32, i32, i32
  }
  func.func @transform_1(%arg0: i32) -> (i32, i32, i32) {
    %c0_i32 = arith.constant 0 : i32
    %c0_i32_0 = arith.constant 0 : i32
    %c0_i32_1 = arith.constant 0 : i32
    return %arg0, %c0_i32, %c0_i32_0 : i32, i32, i32
  }
  func.func @transform_2(%arg0: i32) -> (i32, i32, i32) {
    %c0_i32 = arith.constant 0 : i32
    %c0_i32_0 = arith.constant 0 : i32
    %c0_i32_1 = arith.constant 0 : i32
    return %arg0, %c0_i32, %c0_i32_0 : i32, i32, i32
  }
}

</mosaic_0001>

<bundles_post_ra>
// kernel: clf_aug_pipeline.1
= control target key start
LH: loop header
LB: loop body
LE: loop exit
PB: predicated region body
PF: predicated region fallthrough
CT: control target
= control target key end

     0   :  { %v22694_v0 = vlaneseq  ;;  %v22698_v1 = vmov 4   ;;  %v16165_v2 = vmov 1   ;;  %v22701_v11 = vmov 2   ;;  %s22684_s0 = inlined_call_operand.vmem [shape: f32[8,1,8], index: 0, kind: input, shape index: {}]   ;;  %s22685_s1 = inlined_call_operand.vmem [shape: f32[8,16,128], index: 1, kind: input, shape index: {}]   ;;  %s22686_s2 = inlined_call_operand.vmem [shape: f32[8,16,128], index: 2, kind: output, shape index: {}]  }
   0x1   :  { %16092 = vset.pattern.permute.xlu1 %v22698_v1  ;;  %16090 = vset.pattern.permute.xlu0 %v16165_v2  ;;  %v16191_v3 = vld [vmem:[%s22684_s0] sm:$0x1]  ;;  %v16212_v9 = vld [vmem:[%s22684_s0 + $0x1] sm:$0x1]  ;;  %v2959_v10 = vld [vmem:[%s22685_s1 + $0x8] sm:$0xff]  ;;  %vm2974_vm4 = vcmask 130048  }
   0x2   :  { %v16194_v4 = vshrl.u32 %v22694_v0, 7  ;;  %v19_v5 = vsub.f32 1.0, %v16191_v3  ;;  %v16219_v12 = vand.u32 4294901760, %v2959_v10  ;;  %v2958_v14 = vld [vmem:[%s22685_s1] sm:$0xff]  ;;  %v20_v15 = vsub.f32 1.0, %v16212_v9 }
   0x3   :  { %v16233_v17 = vand.u32 4294901760, %v2958_v14  ;;  %v13_v20 = vld [vmem:[%s22684_s0 + $0x2] sm:$0x1]  ;;  %v14_v31 = vld [vmem:[%s22684_s0 + $0x3] sm:$0x1] }
   0x4   :  { %v16198_v6 = vsub.s32 0, %v16194_v4  ;;  %v16231_v16 = vsub.f32 %v2959_v10, %v16219_v12  ;;  %13939 = vmatprep.subr.mxu0 %v16219_v12  ;;  %v21_v22 = vsub.f32 1.0, %v13_v20  ;;  %v449_v30 = vadd.s32 112, %v16194_v4  ;;  %v15_v35 = vld [vmem:[%s22684_s0 + $0x4] sm:$0x1] }
   0x5   :  { %13940 = vmatpush3.msra.mxu0 %v16219_v12  ;;  %v16242_v19 = vsub.f32 %v2958_v14, %v16233_v17  ;;  %v448_v33 = vadd.s32 104, %v16194_v4  ;;  %v23_v36 = vsub.f32 1.0, %v15_v35  ;;  %v446_v39 = vadd.s32 88, %v16194_v4  ;;  %v16307_v46 = vld [vmem:[%s22684_s0 + $0x5] sm:$0x1] }
   0x6   :  { %23080 = vst [vmem:[#allocation2_spill] sm:$0xff] %v16198_v6  ;;  %v16202_v7 = vrot.slane %v16191_v3, %v16198_v6  ;;  %v16205_v8 = vrot.slane %v19_v5, %v16198_v6  ;;  %v16224_v13 = vrot.slane %v16212_v9, %v16198_v6  ;;  %v16239_v18 = vand.u32 4294901760, %v16231_v16  ;;  %13941 = vmatprep.subr.mxu0 %v16233_v17  ;;  %v16335_v58 = vld [vmem:[%s22684_s0 + $0x6] sm:$0x1] }
   0x7   :  { %v16251_v21 = vrot.slane %v20_v15, %v16198_v6  ;;  %v16256_v24 = vand.u32 4294901760, %v16242_v19  ;;  %13942 = vmatpush3.msra.mxu0 %v16233_v17  ;;  %v16267_v27 = vrot.slane %v21_v22, %v16198_v6  ;;  %v16270_v29 = vrot.slane %v13_v20, %v16198_v6 }
   0x8   :  { %78 = vperm.xlu0 %16090, %v16202_v7   ;;  %262 = vperm.xlu1 %16092, %v16205_v8   ;;  %v3100_v23 = vsub.f32 %v16231_v16, %v16239_v18  ;;  %v463_v32 = vcvt.s32.f32 %v449_v30  ;;  %v16282_v34 = vrot.slane %v14_v31, %v16198_v6  ;;  %v462_v38 = vcvt.s32.f32 %v448_v33 }
   0x9   :  { %13953 = vmatprep.subr.mxu0 %v16231_v16  ;;  %v3107_v26 = vsub.f32 %v16242_v19, %v16256_v24  ;;  %23081 = vst [vmem:[#allocation3_spill] sm:$0xff] %v16267_v27  ;;  %23082 = vst [vmem:[#allocation4_spill] sm:$0xff] %v16270_v29  ;;  %v16294_v40 = vrot.slane %v23_v36, %v16198_v6  ;;  %v460_v43 = vcvt.s32.f32 %v446_v39  ;;  %v16301_v44 = vadd.s32 72, %v16194_v4 }
   0xa   :  { %v3101_v25 = vand.u32 4294901760, %v3100_v23  ;;  %23083 = vst [vmem:[#allocation5_spill] sm:$0xff] %v16282_v34  ;;  %v479_v37 = vadd.f32 0.5, %v463_v32  ;;  %v478_v42 = vadd.f32 0.5, %v462_v38  ;;  %v22_v45 = vsub.f32 1.0, %v14_v31 }
   0xb   :  { %v3108_v28 = vand.u32 4294901760, %v3107_v26  ;;  %23084 = vst [vmem:[#allocation6_spill] sm:$0xff] %v16294_v40  ;;  %v476_v49 = vadd.f32 0.5, %v460_v43  ;;  %v458_v50 = vcvt.s32.f32 %v16301_v44  ;;  %v16316_v51 = vadd.s32 56, %v16194_v4 }
   0xc   :  { %16091 = vset.pattern.permute.xlu0 %v22701_v11  ;;  %374 = vperm.xlu1 %16092, %v16202_v7   ;;  %v16298_v41 = vmul.f32 0.0625, %v479_v37  ;;  %v16311_v48 = vmul.f32 0.0625, %v478_v42  ;;  %v16320_v52 = vrot.slane %v22_v45, %v16198_v6  ;;  %v16324_v53 = vrot.slane %v16307_v46, %v16198_v6 }
   0xd   :  { %126 = vperm.xlu0 %16091, %v16202_v7   ;;  %13946 = vmatprep.subr.mxu1 %v3101_v25  ;;  %v16330_v56 = vmul.f32 0.0625, %v476_v49  ;;  %v474_v57 = vadd.f32 0.5, %v458_v50  ;;  %v456_v59 = vcvt.s32.f32 %v16316_v51  ;;  %v16340_v60 = vadd.s32 40, %v16194_v4 }
   0xe   :  { %13947 = vmatpush3.msra.mxu1 %v3101_v25  ;;  %23085 = vst [vmem:[#allocation7_spill] sm:$0xff] %v16298_v41  ;;  %v22687_v47 = vfloor.f32 %v16298_v41  ;;  %23086 = vst [vmem:[#allocation8_spill] sm:$0xff] %v16320_v52  ;;  %v22692_v55 = vfloor.f32 %v16311_v48  ;;  %v25_v61 = vsub.f32 1.0, %v16335_v58  ;;  %v16346_v62 = vrot.slane %v15_v35, %v16198_v6  ;;  %v16378_v35 = vld [vmem:[%s22684_s0 + $0x7] sm:$0x1] }
   0xf   :  { %13948 = vmatprep.subr.mxu1 %v3108_v28  ;;  %23087 = vst [vmem:[#allocation9_spill] sm:$0xff] %v16324_v53  ;;  %23088 = vst [vmem:[#allocation10_spill] sm:$0xff] %v16330_v56  ;;  %v22691_v10 = vfloor.f32 %v16330_v56  ;;  %v16353_v14 = vmul.f32 0.0625, %v474_v57  ;;  %v472_v15 = vadd.f32 0.5, %v456_v59  ;;  %v454_v20 = vcvt.s32.f32 %v16340_v60 }
  0x10   :  { %16093 = vset.pattern.permute.xlu1 %v16165_v2  ;;  %13949 = vmatpush3.msra.mxu1 %v3108_v28  ;;  %v530_v54 = vmul.f32 16.0, %v22687_v47  ;;  %23089 = vst [vmem:[#allocation11_spill] sm:$0xff] %v16346_v62  ;;  %v529_v5 = vmul.f32 16.0, %v22692_v55  ;;  %v16358_v22 = vadd.s32 24, %v16194_v4  ;;  %v16362_v23 = vrot.slane %v25_v61, %v16198_v6 }
  0x11   :  { %130 = vperm.xlu0 %16091, %v16224_v13   ;;  %82 = vperm.xlu1 %16093, %v16224_v13   ;;  %23091 = vst [vmem:[#allocation13_spill] sm:$0xff] %v16353_v14  ;;  %v527_v28 = vmul.f32 16.0, %v22691_v10  ;;  %v22689_v30 = vfloor.f32 %v16353_v14  ;;  %v16372_v31 = vmul.f32 0.0625, %v472_v15  ;;  %v29_v36 = vadd.s32 8, %v16194_v4 }
  0x12   :  { %13960 = vmatprep.subr.mxu1 %v16219_v12  ;;  %v16348_v63 = vsub.f32 %v463_v32, %v530_v54  ;;  %23092 = vst [vmem:[#allocation14_spill] sm:$0xff] %v16362_v23  ;;  %v16367_v26 = vsub.f32 %v462_v38, %v529_v5  ;;  %v470_v32 = vadd.f32 0.5, %v454_v20  ;;  %v452_v33 = vcvt.s32.f32 %v16358_v22 }
  0x13   :  { %23094 = vst [vmem:[#allocation16_spill] sm:$0xff] %v16372_v31  ;;  %v16386_v39 = vsub.f32 %v460_v43, %v527_v28  ;;  %v525_v42 = vmul.f32 16.0, %v22689_v30  ;;  %v16393_v44 = vrot.slane %v16378_v35, %v16198_v6  ;;  %v22688_v45 = vfloor.f32 %v16372_v31 }
  0x14   :  { %23090 = vst [vmem:[#allocation12_spill] sm:$0xff] %v16348_v63  ;;  %v612_v25 = vmul.f32 2.0, %v16348_v63  ;;  %23093 = vst [vmem:[#allocation15_spill] sm:$0xff] %v16367_v26  ;;  %v611_v38 = vmul.f32 2.0, %v16367_v26  ;;  %v16396_v49 = vmul.f32 0.0625, %v470_v32  ;;  %v468_v51 = vadd.f32 0.5, %v452_v33 }
  0x15   :  { %16095 = vset.pattern.permute.xlu0 %v22698_v1  ;;  %16094 = vset.pattern.permute.xlu1 %v22698_v1  ;;  %23096 = vst [vmem:[#allocation18_spill] sm:$0xff] %v16386_v39  ;;  %23097 = vst [vmem:[#allocation19_spill] sm:$0xff] %v16393_v44  ;;  %v16399_v54 = vcvt.s32.f32 %v29_v36  ;;  %v609_v60 = vmul.f32 2.0, %v16386_v39  ;;  %v16407_v61 = vsub.f32 %v458_v50, %v525_v42  ;;  %v523_v5 = vmul.f32 16.0, %v22688_v45 }
  0x16   :  { %378 = vperm.xlu0 %16095, %v16224_v13   ;;  %266 = vperm.xlu1 %16094, %v16251_v21   ;;  %v16383_v37 = vsub.f32 15.0, %v612_v25  ;;  %23098 = vst [vmem:[#allocation20_spill] sm:$0xff] %v16396_v49  ;;  %v16404_v57 = vsub.f32 15.0, %v611_v38  ;;  %v22690_v15 = vfloor.f32 %v16396_v49  ;;  %v16413_v22 = vmul.f32 0.0625, %v468_v51 }
  0x17   :  { %23100 = vst [vmem:[#allocation22_spill] sm:$0xff] %v16407_v61  ;;  %v466_v25 = vadd.f32 0.5, %v16399_v54  ;;  %v24_v28 = vsub.f32 1.0, %v16307_v46  ;;  %v16419_v32 = vadd.s32 120, %v16194_v4  ;;  %v16426_v38 = vsub.f32 15.0, %v609_v60 }
  0x18   :  { %23095 = vst [vmem:[#allocation17_spill] sm:$0xff] %v16383_v37  ;;  %v652_v43 = vmul.f32 %v16383_v37, %v16202_v7  ;;  %23099 = vst [vmem:[#allocation21_spill] sm:$0xff] %v16404_v57  ;;  %v651_v36 = vmul.f32 %v16404_v57, %v16202_v7  ;;  %v607_v42 = vmul.f32 2.0, %v16407_v61  ;;  %v16429_v51 = vsub.f32 %v456_v59, %v523_v5 }
  0x19   :  { %23101 = vst [vmem:[#allocation23_spill] sm:$0xff] %v16413_v22  ;;  %23102 = vst [vmem:[#allocation24_spill] sm:$0xff] %v16426_v38  ;;  %v521_v46 = vmul.f32 16.0, %v22690_v15  ;;  %v22693_v47 = vfloor.f32 %v16413_v22  ;;  %v16434_v45 = vmul.f32 0.0625, %v466_v25  ;;  %v16440_v60 = vrot.slane %v24_v28, %v16198_v6 }
  0x1a   :  { %16096 = vset.pattern.permute.xlu1 %v16165_v2  ;;  %270 = vperm.xlu0 %16095, %v16267_v27   ;;  %v780_v50 = vadd.f32 %v652_v43, %v16348_v63  ;;  %23103 = vst [vmem:[#allocation25_spill] sm:$0xff] %v16429_v51  ;;  %v464_v43 = vcvt.s32.f32 %v16419_v32  ;;  %v22695_v30 = vmov 0   ;;  %v779_v59 = vadd.f32 %v651_v36, %v16367_v26 }
  0x1b   :  { %86 = vperm.xlu1 %16096, %v16270_v29   ;;  %23104 = vst [vmem:[#allocation26_spill] sm:$0xff] %v16434_v45  ;;  %23105 = vst [vmem:[#allocation27_spill] sm:$0xff] %v16440_v60  ;;  %v649_v5 = vmul.f32 %v16426_v38, %v16202_v7  ;;  %v16446_v15 = vsub.f32 15.0, %v607_v42  ;;  %v605_v25 = vmul.f32 2.0, %v16429_v51  ;;  %v16449_v10 = vsub.f32 %v454_v20, %v521_v46 }
  0x1c   :  { %v519_v32 = vmul.f32 16.0, %v22693_v47  ;;  %v22697_v28 = vfloor.f32 %v16434_v45  ;;  %v480_v55 = vadd.f32 0.5, %v464_v43  ;;  %v16458_v36 = vrot.slane %v16335_v58, %v16198_v6 }
  0x1d   :  { %23106 = vst [vmem:[#allocation28_spill] sm:$0xff] %v16446_v15  ;;  %23107 = vst [vmem:[#allocation29_spill] sm:$0xff] %v16449_v10  ;;  %v647_v20 = vmul.f32 %v16446_v15, %v16202_v7  ;;  %v16463_v42 = vsub.f32 15.0, %v605_v25  ;;  %v603_v46 = vmul.f32 2.0, %v16449_v10  ;;  %v16474_v58 = vadd.s32 96, %v16194_v4 }
  0x1e   :  { %16099 = vset.pattern.permute.xlu0 %v16165_v2  ;;  %23108 = vst [vmem:[#allocation30_spill] sm:$0xff] %v16458_v36  ;;  %v16466_v47 = vsub.f32 %v452_v33, %v519_v32  ;;  %v517_v0 = vmul.f32 16.0, %v22697_v28  ;;  %v445_v28 = vadd.s32 80, %v16194_v4  ;;  %v22722_v27 = vmov 3  }
  0x1f   :  { %16097 = vset.pattern.permute.xlu1 %v22701_v11  ;;  %90 = vperm.xlu0 %16099, %v16282_v34   ;;  %23109 = vst [vmem:[#allocation31_spill] sm:$0xff] %v16463_v42  ;;  %v16480_v33 = vsub.f32 15.0, %v603_v46  ;;  %v461_v32 = vcvt.s32.f32 %v16474_v58  ;;  %v23127_v22 = vmov 0   ;;  %v23135_v41 = vlaneseq }
  0x20   :  { %134 = vperm.xlu1 %16097, %v16270_v29   ;;  %23110 = vst [vmem:[#allocation32_spill] sm:$0xff] %v16466_v47  ;;  %v601_v25 = vmul.f32 2.0, %v16466_v47  ;;  %v459_v58 = vcvt.s32.f32 %v445_v28  ;;  %v26_v28 = vsub.f32 1.0, %v16378_v35 }
  0x21   :  { %23112 = vst [vmem:[#allocation34_spill] sm:$0xff] %v16480_v33  ;;  %v33_v49 = vand.u32 127, %v23135_v41 }
  0x22   :  { %v16493_v46 = vsub.f32 15.0, %v601_v25  ;;  %v16525_v35 = vrot.slane %v26_v28, %v16198_v6 }
  0x23   :  { %16102 = vset.pattern.permute.xlu0 %v22698_v1 }
  0x24   :  { %16098 = vset.pattern.permute.xlu1 %v22698_v1  ;;  %386 = vperm.xlu0 %16102, %v16282_v34   ;;  %23114 = vst [vmem:[#allocation36_spill] sm:$0xff] %v16493_v46  ;;  %23119 = vst [vmem:[#allocation39_spill] sm:$0xff] %v16525_v35 }
  0x25   :  { %382 = vperm.xlu1 %16098, %v16270_v29  }
  0x28   :  { %278 = vperm.xlu0 %16102, %v16294_v40  }
  0x29   :  { %16100 = vset.pattern.permute.xlu1 %v22701_v11 }
  0x2a   :  { %138 = vperm.xlu1 %16100, %v16282_v34  }
  0x2c   :  { %16106 = vset.pattern.permute.xlu0 %v16165_v2 }
  0x2d   :  { %98 = vperm.xlu0 %16106, %v16324_v53  }
  0x2e   :  { %16101 = vset.pattern.permute.xlu1 %v22698_v1 }
  0x2f   :  { %274 = vperm.xlu1 %16101, %v16320_v52   ;;  %v23118_v52 = vmov 2  }
  0x31   :  { %16109 = vset.pattern.permute.xlu0 %v22698_v1 }
  0x32   :  { %394 = vperm.xlu0 %16109, %v16324_v53  }
  0x33   :  { %16103 = vset.pattern.permute.xlu1 %v16165_v2 }
  0x34   :  { %94 = vperm.xlu1 %16103, %v16346_v62  }
  0x36   :  { %286 = vperm.xlu0 %16109, %v16362_v23   ;;  %v16500_v23 = vadd.s32 64, %v16194_v4 }
  0x38   :  { %16104 = vset.pattern.permute.xlu1 %v22701_v11  ;;  %v457_v40 = vcvt.s32.f32 %v16500_v23 }
  0x39   :  { %142 = vperm.xlu1 %16104, %v16346_v62  }
  0x3a   :  { %16113 = vset.pattern.permute.xlu0 %v16165_v2  ;;  %v473_v23 = vadd.f32 0.5, %v457_v40 }
  0x3b   :  { %106 = vperm.xlu0 %16113, %v16393_v44  }
  0x3d   :  { %16105 = vset.pattern.permute.xlu1 %v22698_v1 }
  0x3e   :  { %390 = vperm.xlu1 %16105, %v16346_v62  }
  0x3f   :  { %16116 = vset.pattern.permute.xlu0 %v22698_v1 }
  0x40   :  { %402 = vperm.xlu0 %16116, %v16393_v44  }
  0x42   :  { %16107 = vset.pattern.permute.xlu1 %v22701_v11 }
  0x43   :  { %146 = vperm.xlu1 %16107, %v16324_v53  }
  0x44   :  { %16119 = vset.pattern.permute.xlu0 %v22695_v30  ;;  %v16470_v30 = vmul.f32 0.0625, %v480_v55  ;;  %v16484_v55 = vsub.f32 %v16399_v54, %v517_v0 }
  0x45   :  { %1038 = vperm.xlu0 %16119, %v780_v50   ;;  %v777_v50 = vadd.f32 %v649_v5, %v16386_v39  ;;  %v775_v5 = vadd.f32 %v647_v20, %v16407_v61  ;;  %v643_v20 = vmul.f32 %v16480_v33, %v16202_v7 }
  0x46   :  { %23111 = vst [vmem:[#allocation33_spill] sm:$0xff] %v16470_v30  ;;  %23113 = vst [vmem:[#allocation35_spill] sm:$0xff] %v16484_v55 }
  0x47   :  { %16108 = vset.pattern.permute.xlu1 %v22698_v1  ;;  %v599_v1 = vmul.f32 2.0, %v16484_v55 }
  0x48   :  { %282 = vperm.xlu1 %16108, %v16440_v60   ;;  %v23116_v60 = vmov 4  }
  0x49   :  { %1033 = vperm.xlu0 %16119, %v779_v59   ;;  %v645_v59 = vmul.f32 %v16463_v42, %v16202_v7  ;;  %v16505_v25 = vsub.f32 15.0, %v599_v1 }
  0x4b   :  { %23115 = vst [vmem:[#allocation37_spill] sm:$0xff] %v16505_v25 }
  0x4c   :  { %16110 = vset.pattern.permute.xlu1 %v16165_v2  ;;  %v22705_v2 = vfloor.f32 %v16470_v30 }
  0x4d   :  { %102 = vperm.xlu1 %16110, %v16458_v36   ;;  %1023 = vperm.xlu0 %16119, %v777_v50   ;;  %v773_v50 = vadd.f32 %v645_v59, %v16429_v51  ;;  %v641_v59 = vmul.f32 %v16493_v46, %v16202_v7 }
  0x4e   :  { %v531_v0 = vmul.f32 16.0, %v22705_v2  ;;  %v475_v2 = vadd.f32 0.5, %v459_v58 }
  0x4f   :  { %v769_v1 = vadd.f32 %v641_v59, %v16466_v47  ;;  %v16532_v59 = vadd.s32 32, %v16194_v4 }
  0x50   :  { %v16509_v53 = vsub.f32 %v464_v43, %v531_v0 }
  0x51   :  { %16111 = vset.pattern.permute.xlu1 %v22701_v11  ;;  %1013 = vperm.xlu0 %16119, %v775_v5   ;;  %v477_v11 = vadd.f32 0.5, %v461_v32  ;;  %v771_v5 = vadd.f32 %v643_v20, %v16449_v10  ;;  %v639_v20 = vmul.f32 %v16505_v25, %v16202_v7 }
  0x52   :  { %150 = vperm.xlu1 %16111, %v16458_v36   ;;  %23117 = vst [vmem:[#allocation38_spill] sm:$0xff] %v16509_v53  ;;  %v613_v43 = vmul.f32 2.0, %v16509_v53 }
  0x53   :  { %v16513_v62 = vmul.f32 0.0625, %v477_v11  ;;  %v16527_v11 = vmul.f32 0.0625, %v475_v2  ;;  %v437_v2 = vadd.s32 16, %v16194_v4 }
  0x55   :  { %1003 = vperm.xlu0 %16119, %v773_v50   ;;  %v16516_v50 = vadd.s32 48, %v16194_v4  ;;  %23120 = vst [vmem:[#allocation40_spill] sm:$0xff] %v16527_v11  ;;  %v22719_v0 = vfloor.f32 %v16513_v62  ;;  %v22720_v28 = vfloor.f32 %v16527_v11 }
  0x56   :  { %16112 = vset.pattern.permute.xlu1 %v23116_v60 }
  0x57   :  { %398 = vperm.xlu1 %16112, %v16458_v36   ;;  %v16535_v36 = vsub.f32 15.0, %v613_v43 }
  0x59   :  { %993 = vperm.xlu0 %16119, %v771_v5   ;;  %v455_v5 = vcvt.s32.f32 %v16516_v50  ;;  %23121 = vst [vmem:[#allocation41_spill] sm:$0xff] %v16535_v36  ;;  %v528_v50 = vmul.f32 16.0, %v22719_v0 }
  0x5b   :  { %16114 = vset.pattern.permute.xlu1 %v23118_v52  ;;  %v767_v52 = vadd.f32 %v639_v20, %v16484_v55  ;;  %v471_v34 = vadd.f32 0.5, %v455_v5  ;;  %v653_v20 = vmul.f32 %v16535_v36, %v16202_v7 }
  0x5c   :  { %154 = vperm.xlu1 %16114, %v16393_v44   ;;  %v16539_v44 = vmul.f32 0.0625, %v473_v23  ;;  %v451_v23 = vcvt.s32.f32 %v437_v2 }
  0x5d   :  { %983 = vperm.xlu0 %16119, %v769_v1   ;;  %v453_v1 = vcvt.s32.f32 %v16532_v59  ;;  %v16554_v45 = vmul.f32 0.0625, %v471_v34  ;;  %v781_v59 = vadd.f32 %v653_v20, %v16509_v53 }
  0x5e   :  { %23122 = vst [vmem:[#allocation42_spill] sm:$0xff] %v16539_v44  ;;  %v22724_v43 = vfloor.f32 %v16539_v44 }
  0x5f   :  { %23124 = vst [vmem:[#allocation44_spill] sm:$0xff] %v16554_v45  ;;  %v469_v0 = vadd.f32 0.5, %v453_v1  ;;  %v22727_v34 = vfloor.f32 %v16554_v45 }
  0x60   :  { %16115 = vset.pattern.permute.xlu1 %v23116_v60  ;;  %v526_v60 = vmul.f32 16.0, %v22720_v28  ;;  %v524_v2 = vmul.f32 16.0, %v22724_v43  ;;  %v467_v28 = vadd.f32 0.5, %v451_v23 }
  0x61   :  { %290 = vperm.xlu1 %16115, %v16525_v35   ;;  %973 = vperm.xlu0 %16119, %v767_v52   ;;  %v16552_v35 = vsub.f32 %v461_v32, %v528_v50  ;;  %v16566_v50 = vmul.f32 0.0625, %v469_v0  ;;  %v522_v0 = vmul.f32 16.0, %v22727_v34 }
  0x62   :  { %v16560_v52 = vsub.f32 %v459_v58, %v526_v60  ;;  %v16575_v58 = vsub.f32 %v457_v40, %v524_v2  ;;  %v16577_v20 = vmul.f32 0.0625, %v467_v28 }
  0x63   :  { %23123 = vst [vmem:[#allocation43_spill] sm:$0xff] %v16552_v35  ;;  %v610_v32 = vmul.f32 2.0, %v16552_v35  ;;  %23126 = vst [vmem:[#allocation46_spill] sm:$0xff] %v16566_v50  ;;  %v22732_v43 = vfloor.f32 %v16566_v50  ;;  %v16594_v2 = vsub.f32 %v455_v5, %v522_v0 }
  0x64   :  { %23125 = vst [vmem:[#allocation45_spill] sm:$0xff] %v16560_v52  ;;  %23128 = vst [vmem:[#allocation47_spill] sm:$0xff] %v16575_v58  ;;  %v606_v40 = vmul.f32 2.0, %v16575_v58  ;;  %v22734_v28 = vfloor.f32 %v16577_v20 }
  0x65   :  { %16117 = vset.pattern.permute.xlu1 %v22722_v27  ;;  %16122 = vset.pattern.permute.xlu0 %v22722_v27  ;;  %v22725_v27 = vmov 5   ;;  %23129 = vst [vmem:[#allocation48_spill] sm:$0xff] %v16577_v20  ;;  %v16579_v60 = vsub.f32 15.0, %v610_v32  ;;  %23133 = vst [vmem:[#allocation51_spill] sm:$0xff] %v16594_v2  ;;  %v520_v32 = vmul.f32 16.0, %v22732_v43  ;;  %v604_v0 = vmul.f32 2.0, %v16594_v2 }
  0x66   :  { %895 = vperm.xlu1 %16117, %v16191_v3   ;;  %903 = vperm.xlu0 %16122, %v16212_v9   ;;  %v16571_v3 = vcvt.s32.f32 %v16194_v4  ;;  %v608_v9 = vmul.f32 2.0, %v16560_v52  ;;  %v23131_v4 = vmov 5   ;;  %v518_v30 = vmul.f32 16.0, %v22734_v28 }
  0x67   :  { %23130 = vst [vmem:[#allocation49_spill] sm:$0xff] %v16579_v60  ;;  %v16610_v50 = vsub.f32 %v453_v1, %v520_v32  ;;  %v16613_v43 = vcvt.s32.f32 %v33_v49  ;;  %v16621_v28 = vsub.f32 15.0, %v604_v0  ;;  %v666_v49 = vmul.f32 %v16579_v60, %v16224_v13 }
  0x68   :  { %v16619_v45 = vsub.f32 %v451_v23, %v518_v30 }
  0x69   :  { %23137 = vst [vmem:[#allocation54_spill] sm:$0xff] %v16610_v50  ;;  %23139 = vst [vmem:[#allocation56_spill] sm:$0xff] %v16621_v28  ;;  %v794_v32 = vadd.f32 %v666_v49, %v16552_v35  ;;  %v644_v23 = vmul.f32 %v16621_v28, %v16202_v7 }
  0x6a   :  { %16118 = vset.pattern.permute.xlu1 %v23127_v22  ;;  %16123 = vset.pattern.permute.xlu0 %v22725_v27  ;;  %v465_v27 = vadd.f32 0.5, %v16571_v3  ;;  %23138 = vst [vmem:[#allocation55_spill] sm:$0xff] %v16619_v45  ;;  %v600_v20 = vmul.f32 2.0, %v16619_v45 }
  0x6b   :  { %1043 = vperm.xlu1 %16118, %v781_v59   ;;  %1995 = vperm.xlu0 %16123, %v16251_v21   ;;  %v16588_v21 = vsub.f32 15.0, %v608_v9  ;;  %v650_v59 = vmul.f32 %v16579_v60, %v16202_v7  ;;  %v16604_v9 = vsub.f32 15.0, %v606_v40 }
  0x6c   :  { %v16598_v34 = vmul.f32 0.0625, %v465_v27 }
  0x6d   :  { %23132 = vst [vmem:[#allocation50_spill] sm:$0xff] %v16588_v21  ;;  %23136 = vst [vmem:[#allocation53_spill] sm:$0xff] %v16604_v9  ;;  %v778_v5 = vadd.f32 %v650_v59, %v16552_v35  ;;  %v646_v40 = vmul.f32 %v16604_v9, %v16202_v7  ;;  %v602_v59 = vmul.f32 2.0, %v16610_v50  ;;  %v16643_v35 = vsub.f32 15.0, %v600_v20 }
  0x6e   :  { %23134 = vst [vmem:[#allocation52_spill] sm:$0xff] %v16598_v34  ;;  %v22736_v27 = vfloor.f32 %v16598_v34 }
  0x6f   :  { %16120 = vset.pattern.permute.xlu1 %v23131_v4  ;;  %16126 = vset.pattern.permute.xlu0 %v23127_v22  ;;  %v774_v30 = vadd.f32 %v646_v40, %v16575_v58  ;;  %23142 = vst [vmem:[#allocation59_spill] sm:$0xff] %v16643_v35  ;;  %v640_v20 = vmul.f32 %v16643_v35, %v16202_v7 }
  0x70   :  { %1991 = vperm.xlu1 %16120, %v16205_v8   ;;  %v648_v8 = vmul.f32 %v16588_v21, %v16202_v7  ;;  %v516_v1 = vmul.f32 16.0, %v22736_v27  ;;  %1108 = vperm.xlu0 %16126, %v794_v32   ;;  %v663_v27 = vmul.f32 %v16446_v15, %v16224_v13  ;;  %v2961_v32 = vld [vmem:[%s22685_s1 + $0x18] sm:$0xff] }
  0x71   :  { %v16659_v15 = vand.u32 4294901760, %v2961_v32  ;;  %v768_v44 = vadd.f32 %v640_v20, %v16619_v45 }
  0x72   :  { %v776_v41 = vadd.f32 %v648_v8, %v16560_v52  ;;  %v35_v8 = vmul.f32 2.0, %v16613_v43  ;;  %v16637_v0 = vsub.f32 %v16571_v3, %v516_v1  ;;  %v791_v60 = vadd.f32 %v663_v27, %v16407_v61 }
  0x73   :  { %v661_v27 = vmul.f32 %v16463_v42, %v16224_v13  ;;  %v16674_v29 = vsub.f32 %v2961_v32, %v16659_v15  ;;  %v668_v32 = vmul.f32 %v16383_v37, %v16224_v13 }
  0x74   :  { %2543 = vperm.xlu1 %16120, %v16202_v7   ;;  %23141 = vst [vmem:[#allocation58_spill] sm:$0xff] %v16637_v0  ;;  %v16641_v49 = vsub.f32 15.0, %v35_v8  ;;  %1093 = vperm.xlu0 %16126, %v791_v60   ;;  %v2960_v60 = vld [vmem:[%s22685_s1 + $0x10] sm:$0xff] }
  0x75   :  { %v16676_v14 = vand.u32 4294901760, %v2960_v60 }
  0x78   :  { %16121 = vset.pattern.permute.xlu1 %v23127_v22 }
  0x79   :  { %1028 = vperm.xlu1 %16121, %v778_v5   ;;  %v16634_v5 = vsub.f32 15.0, %v602_v59  ;;  %v598_v59 = vmul.f32 2.0, %v16637_v0 }
  0x7b   :  { %23140 = vst [vmem:[#allocation57_spill] sm:$0xff] %v16634_v5  ;;  %v642_v40 = vmul.f32 %v16634_v5, %v16202_v7 }
  0x7d   :  { %1018 = vperm.xlu1 %16121, %v776_v41   ;;  %v772_v41 = vadd.f32 %v644_v23, %v16594_v2  ;;  %v16657_v23 = vsub.f32 15.0, %v598_v59 }
  0x7f   :  { %23143 = vst [vmem:[#allocation60_spill] sm:$0xff] %v16657_v23  ;;  %v638_v42 = vmul.f32 %v16657_v23, %v16202_v7  ;;  %v669_v7 = vmul.f32 %v16535_v36, %v16224_v13 }
  0x81   :  { %1008 = vperm.xlu1 %16121, %v774_v30   ;;  %v770_v30 = vadd.f32 %v642_v40, %v16610_v50 }
  0x83   :  { %v79_v1 = vpop.permute.xlu0 %78  ;;  %v263_v34 = vpop.permute.xlu1 %262 }
  0x84   :  { %v109_v8 = vmul.f32 %v79_v1, %v16641_v49  ;;  %v789_v1 = vadd.f32 %v661_v27, %v16429_v51  ;;  %v22769_v51 = vmov 0.0  }
  0x85   :  { %998 = vperm.xlu1 %16121, %v772_v41  }
  0x86   :  { %v117_v41 = vadd.f32 %v109_v8, %v16613_v43  ;;  %1083 = vperm.xlu0 %16126, %v789_v1   ;;  %v766_v1 = vadd.f32 %v638_v42, %v16637_v0 }
  0x87   :  { %v375_v61 = vpop.permute.xlu1 %374 }
  0x88   :  { %v127_v31 = vpop.permute.xlu0 %126 }
  0x89   :  { %v157_v40 = vadd.f32 %v127_v31, %v16571_v3  ;;  %v158_v59 = vadd.f32 %v127_v31, %v16399_v54  ;;  %988 = vperm.xlu1 %16121, %v770_v30  }
  0x8b   :  { %vm173_vm0 = vcmp.eq.f32.partialorder %v117_v41, %v157_v40  ;;  %vm174_vm1 = vcmp.eq.f32.partialorder %v117_v41, %v158_v59  ;;  %v309_v20 = vadd.f32 1.0, %v157_v40  ;;  %v310_v27 = vadd.f32 1.0, %v158_v59 }
  0x8c   :  { %v12579_v8 = vsel %vm173_vm0, 1.0, %v22769_v51  ;;  %v12580_v55 = vsel %vm174_vm1, 1.0, %v22769_v51  ;;  %v131_v31 = vpop.permute.xlu0 %130  ;;  %v83_v30 = vpop.permute.xlu1 %82 }
  0x8d   :  { %v293_v11 = vmul.f32 %v12579_v8, %v263_v34  ;;  %vm325_vm2 = vcmp.eq.f32.partialorder %v117_v41, %v309_v20  ;;  %vm326_vm3 = vcmp.eq.f32.partialorder %v117_v41, %v310_v27  ;;  %978 = vperm.xlu1 %16121, %v768_v44   ;;  %v159_v45 = vadd.f32 %v131_v31, %v16571_v3 }
  0x8e   :  { %v12595_v40 = vsel %vm325_vm2, 1.0, %v22769_v51  ;;  %v12596_v59 = vsel %vm326_vm3, 1.0, %v22769_v51  ;;  %v160_v50 = vadd.f32 %v131_v31, %v16399_v54  ;;  %v294_v56 = vmul.f32 %v12580_v55, %v263_v34 }
  0x8f   :  { %v405_v23 = vmul.f32 %v12595_v40, %v375_v61  ;;  %v406_v36 = vmul.f32 %v12596_v59, %v375_v61  ;;  %v110_v25 = vmul.f32 %v83_v30, %v16641_v49  ;;  %v311_v8 = vadd.f32 1.0, %v159_v45 }
  0x90   :  { %v312_v20 = vadd.f32 1.0, %v160_v50  ;;  %v659_v44 = vmul.f32 %v16480_v33, %v16224_v13  ;;  %v797_v51 = vadd.f32 %v669_v7, %v16509_v53  ;;  %v16695_v55 = vand.u32 4294901760, %v16674_v29 }
  0x91   :  { %v421_v42 = vadd.f32 %v405_v23, %v293_v11  ;;  %v422_v41 = vadd.f32 %v406_v36, %v294_v56  ;;  %v118_v27 = vadd.f32 %v110_v25, %v16613_v43  ;;  %968 = vperm.xlu1 %16121, %v766_v1   ;;  %v379_v37 = vpop.permute.xlu0 %378  ;;  %v267_v31 = vpop.permute.xlu1 %266  ;;  %v16698_v61 = vsub.f32 %v2960_v60, %v16676_v14 }
  0x92   :  { %v796_v34 = vadd.f32 %v668_v32, %v16348_v63  ;;  %v787_v30 = vadd.f32 %v659_v44, %v16449_v10  ;;  %v23144_v36 = vmov 0.0  }
  0x93   :  { %v2976_v11 = vsel %vm2974_vm4, %v421_v42, 0  ;;  %v2979_v56 = vsel %vm2974_vm4, %v422_v41, 0  ;;  %vm327_vm5 = vcmp.eq.f32.partialorder %v118_v27, %v311_v8  ;;  %vm328_vm6 = vcmp.eq.f32.partialorder %v118_v27, %v312_v20 }
  0x94   :  { %v12597_v25 = vsel %vm327_vm5, 1.0, %v23144_v36  ;;  %v12598_v23 = vsel %vm328_vm6, 1.0, %v23144_v36  ;;  %vm175_vm7 = vcmp.eq.f32.partialorder %v118_v27, %v159_v45  ;;  %vm176_vm8 = vcmp.eq.f32.partialorder %v118_v27, %v160_v50  ;;  %1073 = vperm.xlu0 %16126, %v787_v30  }
  0x95   :  { %v407_v7 = vmul.f32 %v12597_v25, %v379_v37  ;;  %v408_v60 = vmul.f32 %v12598_v23, %v379_v37  ;;  %v12581_v1 = vsel %vm175_vm7, 1.0, %v23144_v36  ;;  %v12582_v32 = vsel %vm176_vm8, 1.0, %v23144_v36  ;;  %1123 = vperm.xlu1 %16121, %v797_v51  }
  0x96   :  { %v295_v40 = vmul.f32 %v12581_v1, %v267_v31  ;;  %v296_v59 = vmul.f32 %v12582_v32, %v267_v31  ;;  %v16708_v44 = vand.u32 4294901760, %v2976_v11  ;;  %v16710_v8 = vand.u32 4294901760, %v2979_v56  ;;  %v87_v20 = vpop.permute.xlu1 %86 }
  0x97   :  { %v16713_v42 = vand.u32 4294901760, %v16698_v61  ;;  %v111_v45 = vmul.f32 %v87_v20, %v16641_v49  ;;  %v657_v37 = vmul.f32 %v16493_v46, %v16224_v13  ;;  %v3608_v31 = vsub.f32 %v16674_v29, %v16695_v55 }
  0x98   :  { %v423_v50 = vadd.f32 %v407_v7, %v295_v40  ;;  %v424_v41 = vadd.f32 %v408_v60, %v296_v59  ;;  %13950 = vmatprep.mubr.f32.mxu1 %v16708_v44  ;;  %v3049_v51 = vsub.f32 %v2976_v11, %v16708_v44  ;;  %v16721_v27 = vsub.f32 %v2979_v56, %v16710_v8  ;;  %v271_v60 = vpop.permute.xlu0 %270 }
  0x99   :  { %13951 = vmatmul.mubr.f32.vlgmr.msra.gmra.mxu1 %v16710_v8  ;;  %1118 = vperm.xlu1 %16121, %v796_v34   ;;  %v785_v30 = vadd.f32 %v657_v37, %v16466_v47  ;;  %v119_v11 = vadd.f32 %v111_v45, %v16613_v43  ;;  %v3615_v1 = vsub.f32 %v16698_v61, %v16713_v42  ;;  %v3609_v45 = vand.u32 4294901760, %v3608_v31  ;;  %v2963_v47 = vld [vmem:[%s22685_s1 + $0x28] sm:$0xff] }
  0x9a   :  { %v3484_v25 = vsel %vm2974_vm4, %v423_v50, 0  ;;  %13961 = vmatpush3.msra.mxu1 %v16219_v12  ;;  %v3050_v23 = vand.u32 4294901760, %v3049_v51  ;;  %v3060_v7 = vand.u32 4294901760, %v16721_v27  ;;  %v3487_v56 = vsel %vm2974_vm4, %v424_v41, 0 }
  0x9b   :  { %13962 = vmatprep.subr.mxu1 %v16233_v17  ;;  %v135_v34 = vpop.permute.xlu1 %134  ;;  %1063 = vperm.xlu0 %16126, %v785_v30   ;;  %v16737_v59 = vand.u32 4294901760, %v3484_v25  ;;  %v16748_v46 = vand.u32 4294901760, %v3487_v56 }
  0x9c   :  { %13963 = vmatpush3.msra.mxu1 %v16233_v17  ;;  %13964 = vmatprep.mubr.f32.mxu1 %v3050_v23  ;;  %v3051_v32 = vsub.f32 %v3049_v51, %v3050_v23  ;;  %v3061_v40 = vsub.f32 %v16721_v27, %v3060_v7  ;;  %v161_v20 = vadd.f32 %v135_v34, %v16571_v3  ;;  %v91_v23 = vpop.permute.xlu0 %90 }
  0x9d   :  { %13965 = vmatmul.mubr.f32.vlgmr.msra.gmra.mxu1 %v3060_v7  ;;  %13974 = vmatprep.subr.mxu1 %v16219_v12  ;;  %v162_v37 = vadd.f32 %v135_v34, %v16399_v54  ;;  %v3616_v7 = vand.u32 4294901760, %v3615_v1 }
  0x9e   :  { %13975 = vmatpush3.msra.mxu1 %v16219_v12  ;;  %13978 = vmatprep.mubr.f32.mxu1 %v16708_v44  ;;  %v3052_v50 = vand.u32 4294901760, %v3051_v32  ;;  %v3062_v41 = vand.u32 4294901760, %v3061_v40  ;;  %v313_v30 = vadd.f32 1.0, %v161_v20  ;;  %vm177_vm9 = vcmp.eq.f32.partialorder %v119_v11, %v161_v20 }
  0x9f   :  { %13976 = vmatprep.subr.mxu1 %v16233_v17  ;;  %16124 = vset.pattern.permute.xlu1 %v23131_v4  ;;  %v314_v31 = vadd.f32 1.0, %v162_v37  ;;  %vm178_vm10 = vcmp.eq.f32.partialorder %v119_v11, %v162_v37  ;;  %v16753_v12 = vsub.f32 %v3484_v25, %v16737_v59  ;;  %v12583_v34 = vsel %vm177_vm9, 1.0, %v23144_v36 }
  0xa0   :  { %13943 = vmatprep.mubr.f32.mxu0 %v3052_v50  ;;  %13977 = vmatpush3.msra.mxu1 %v16233_v17  ;;  %v12584_v32 = vsel %vm178_vm10, 1.0, %v23144_v36  ;;  %vm329_vm11 = vcmp.eq.f32.partialorder %v119_v11, %v313_v30  ;;  %v383_v40 = vpop.permute.xlu1 %382  ;;  %v297_v1 = vmul.f32 %v12583_v34, %v271_v60  ;;  %v112_v37 = vmul.f32 %v91_v23, %v16641_v49  ;;  %v2962_v30 = vld [vmem:[%s22685_s1 + $0x20] sm:$0xff] }
  0xa1   :  { %13944 = vmatmul.mubr.f32.vlgmr.msra.gmra.mxu0 %v3062_v41  ;;  %13979 = vmatmul.mubr.f32.vlgmr.msra.gmra.mxu1 %v16710_v8  ;;  %v12599_v20 = vsel %vm329_vm11, 1.0, %v23144_v36  ;;  %v16760_v50 = vand.u32 4294901760, %v2963_v47  ;;  %v298_v17 = vmul.f32 %v12584_v32, %v271_v60  ;;  %vm330_vm12 = vcmp.eq.f32.partialorder %v119_v11, %v314_v31 }
  0xa2   :  { %13954 = vmatpush3.msra.mxu0 %v16231_v16  ;;  %13988 = vmatprep.subr.mxu1 %v3609_v45  ;;  %v409_v25 = vmul.f32 %v12599_v20, %v383_v40  ;;  %v16768_v41 = vsub.f32 %v3487_v56, %v16748_v46  ;;  %v12600_v23 = vsel %vm330_vm12, 1.0, %v23144_v36  ;;  %v3558_v16 = vand.u32 4294901760, %v16753_v12 }
  0xa3   :  { %13955 = vmatprep.subr.mxu0 %v16242_v19  ;;  %13957 = vmatprep.mubr.f32.mxu0 %v3049_v51  ;;  %v410_v60 = vmul.f32 %v12600_v23, %v383_v40  ;;  %v120_v31 = vadd.f32 %v112_v37, %v16613_v43  ;;  %v16776_v51 = vsub.f32 %v2963_v47, %v16760_v50  ;;  %v16778_v56 = vand.u32 4294901760, %v2962_v30 }
  0xa4   :  { %13989 = vmatpush3.msra.mxu1 %v3609_v45  ;;  %13992 = vmatprep.mubr.f32.mxu1 %v16737_v59  ;;  %v425_v11 = vadd.f32 %v409_v25, %v297_v1  ;;  %v3559_v47 = vsub.f32 %v16753_v12, %v3558_v16 }
  0xa5   :  { %13956 = vmatpush3.msra.mxu0 %v16242_v19  ;;  %13990 = vmatprep.subr.mxu1 %v3616_v7  ;;  %v139_v34 = vpop.permute.xlu1 %138  ;;  %v426_v45 = vadd.f32 %v410_v60, %v298_v17  ;;  %v3568_v19 = vand.u32 4294901760, %v16768_v41  ;;  %v16800_v25 = vsub.f32 %v2962_v30, %v16778_v56  ;;  %v387_v60 = vpop.permute.xlu0 %386 }
  0xa6   :  { %13967 = vmatprep.subr.mxu0 %v16239_v18  ;;  %13991 = vmatpush3.msra.mxu1 %v3616_v7  ;;  %v3992_v32 = vsel %vm2974_vm4, %v425_v11, 0  ;;  %v163_v40 = vadd.f32 %v139_v34, %v16571_v3  ;;  %v164_v1 = vadd.f32 %v139_v34, %v16399_v54  ;;  %v3560_v23 = vand.u32 4294901760, %v3559_v47 }
  0xa7   :  { %13958 = vmatmul.mubr.f32.vlgmr.msra.gmra.mxu0 %v16721_v27  ;;  %13993 = vmatmul.mubr.f32.vlgmr.msra.gmra.mxu1 %v16748_v46  ;;  %v3995_v20 = vsel %vm2974_vm4, %v426_v45, 0  ;;  %v16793_v37 = vand.u32 4294901760, %v3992_v32  ;;  %v16822_v34 = vand.u32 4294901760, %v16800_v25 }
  0xa8   :  { %13968 = vmatpush3.msra.mxu0 %v16239_v18  ;;  %14002 = vmatprep.subr.mxu1 %v16659_v15  ;;  %v315_v7 = vadd.f32 1.0, %v163_v40  ;;  %v316_v27 = vadd.f32 1.0, %v164_v1  ;;  %vm179_vm13 = vcmp.eq.f32.partialorder %v120_v31, %v163_v40  ;;  %v16797_v18 = vand.u32 4294901760, %v16776_v51 }
  0xa9   :  { %13969 = vmatprep.subr.mxu0 %v16256_v24  ;;  %13971 = vmatprep.mubr.f32.mxu0 %v16708_v44  ;;  %v3569_v44 = vsub.f32 %v16768_v41, %v3568_v19  ;;  %vm180_vm15 = vcmp.eq.f32.partialorder %v120_v31, %v164_v1  ;;  %v16811_v30 = vsub.f32 %v3992_v32, %v16793_v37 }
  0xaa   :  { %14003 = vmatpush3.msra.mxu1 %v16659_v15  ;;  %14006 = vmatprep.mubr.f32.mxu1 %v3558_v16  ;;  %v275_v17 = vpop.permute.xlu1 %274  ;;  %vm331_vm14 = vcmp.eq.f32.partialorder %v120_v31, %v315_v7  ;;  %v16807_v16 = vand.u32 4294901760, %v3995_v20  ;;  %vm332_vm0 = vcmp.eq.f32.partialorder %v120_v31, %v316_v27  ;;  %v12586_v32 = vsel %vm180_vm15, 1.0, %v23144_v36 }
  0xab   :  { %13970 = vmatpush3.msra.mxu0 %v16256_v24  ;;  %14004 = vmatprep.subr.mxu1 %v16676_v14  ;;  %v12585_v24 = vsel %vm179_vm13, 1.0, %v23144_v36  ;;  %v12601_v11 = vsel %vm331_vm14, 1.0, %v23144_v36  ;;  %v3570_v45 = vand.u32 4294901760, %v3569_v44  ;;  %v4123_v27 = vsub.f32 %v16800_v25, %v16822_v34 }
  0xac   :  { %14005 = vmatpush3.msra.mxu1 %v16676_v14  ;;  %13972 = vmatmul.mubr.f32.vlgmr.msra.gmra.mxu0 %v16710_v8  ;;  %v4116_v8 = vsub.f32 %v16776_v51, %v16797_v18  ;;  %v16829_v31 = vsub.f32 %v3995_v20, %v16807_v16  ;;  %v299_v1 = vmul.f32 %v12585_v24, %v275_v17 }
  0xad   :  { %13981 = vmatprep.subr.mxu0 %v16659_v15  ;;  %14007 = vmatmul.mubr.f32.vlgmr.msra.gmra.mxu1 %v3568_v19  ;;  %v12602_v19 = vsel %vm332_vm0, 1.0, %v23144_v36  ;;  %v411_v47 = vmul.f32 %v12601_v11, %v387_v60  ;;  %v300_v20 = vmul.f32 %v12586_v32, %v275_v17  ;;  %v4124_v17 = vand.u32 4294901760, %v4123_v27 }
  0xae   :  { %14016 = vmatprep.subr.mxu1 %v16659_v15  ;;  %13982 = vmatpush3.msra.mxu0 %v16659_v15  ;;  %v4117_v7 = vand.u32 4294901760, %v4116_v8  ;;  %v412_v44 = vmul.f32 %v12602_v19, %v387_v60  ;;  %v4076_v24 = vand.u32 4294901760, %v16829_v31 }
  0xaf   :  { %13985 = vmatprep.mubr.f32.mxu0 %v3560_v23  ;;  %14017 = vmatpush3.msra.mxu1 %v16659_v15  ;;  %v95_v40 = vpop.permute.xlu1 %94  ;;  %v4066_v15 = vand.u32 4294901760, %v16811_v30  ;;  %v427_v23 = vadd.f32 %v411_v47, %v299_v1 }
  0xb0   :  { %14020 = vmatprep.mubr.f32.mxu1 %v16737_v59  ;;  %13983 = vmatprep.subr.mxu0 %v16676_v14  ;;  %v113_v8 = vmul.f32 %v95_v40, %v16641_v49  ;;  %v428_v60 = vadd.f32 %v412_v44, %v300_v20  ;;  %v2964_v40 = vld [vmem:[%s22685_s1 + $0x30] sm:$0xff] }
  0xb1   :  { %14018 = vmatprep.subr.mxu1 %v16676_v14  ;;  %13984 = vmatpush3.msra.mxu0 %v16676_v14 }
  0xb2   :  { %14019 = vmatpush3.msra.mxu1 %v16676_v14  ;;  %13986 = vmatmul.mubr.f32.vlgmr.msra.gmra.mxu0 %v3570_v45  ;;  %v2965_v14 = vld [vmem:[%s22685_s1 + $0x38] sm:$0xff]  ;;  %v121_v1 = vadd.f32 %v113_v8, %v16613_v43 }
  0xb3   :  { %13995 = vmatprep.subr.mxu0 %v16674_v29  ;;  %14021 = vmatmul.mubr.f32.vlgmr.msra.gmra.mxu1 %v16748_v46  ;;  %v16857_v32 = vand.u32 4294901760, %v2965_v14 }
  0xb4   :  { %13996 = vmatpush3.msra.mxu0 %v16674_v29  ;;  %13999 = vmatprep.mubr.f32.mxu0 %v16753_v12  ;;  %v143_v11 = vpop.permute.xlu1 %142  ;;  %v4067_v29 = vsub.f32 %v16811_v30, %v4066_v15 }
  0xb5   :  { %13997 = vmatprep.subr.mxu0 %v16698_v61  ;;  %2547 = vperm.xlu1 %16124, %v16224_v13   ;;  %v165_v12 = vadd.f32 %v143_v11, %v16571_v3  ;;  %v166_v45 = vadd.f32 %v143_v11, %v16399_v54  ;;  %v16877_v44 = vsub.f32 %v2965_v14, %v16857_v32 }
  0xb6   :  { %13998 = vmatpush3.msra.mxu0 %v16698_v61  ;;  %14030 = vmatprep.subr.mxu1 %v4117_v7  ;;  %v4077_v61 = vsub.f32 %v16829_v31, %v4076_v24  ;;  %v4068_v19 = vand.u32 4294901760, %v4067_v29 }
  0xb7   :  { %14000 = vmatmul.mubr.f32.vlgmr.msra.gmra.mxu0 %v16768_v41  ;;  %14009 = vmatprep.subr.mxu0 %v16695_v55  ;;  %v4500_v41 = vsel %vm2974_vm4, %v427_v23, 0  ;;  %v317_v47 = vadd.f32 1.0, %v165_v12  ;;  %v318_v20 = vadd.f32 1.0, %v166_v45  ;;  %vm181_vm2 = vcmp.eq.f32.partialorder %v121_v1, %v165_v12 }
  0xb8   :  { %14010 = vmatpush3.msra.mxu0 %v16695_v55  ;;  %14013 = vmatprep.mubr.f32.mxu0 %v16737_v59  ;;  %v16871_v55 = vand.u32 4294901760, %v2964_v40  ;;  %v4503_v59 = vsel %vm2974_vm4, %v428_v60, 0  ;;  %v4078_v23 = vand.u32 4294901760, %v4077_v61  ;;  %vm182_vm5 = vcmp.eq.f32.partialorder %v121_v1, %v166_v45 }
  0xb9   :  { %14011 = vmatprep.subr.mxu0 %v16713_v42  ;;  %14031 = vmatpush3.msra.mxu1 %v4117_v7  ;;  %v391_v27 = vpop.permute.xlu1 %390  ;;  %v16879_v7 = vand.u32 4294901760, %v4500_v41  ;;  %vm333_vm1 = vcmp.eq.f32.partialorder %v121_v1, %v317_v47  ;;  %vm334_vm3 = vcmp.eq.f32.partialorder %v121_v1, %v318_v20  ;;  %v16893_v14 = vand.u32 4294901760, %v16877_v44 }
  0xba   :  { %14012 = vmatpush3.msra.mxu0 %v16713_v42  ;;  %14032 = vmatprep.subr.mxu1 %v4124_v17  ;;  %v16888_v42 = vsub.f32 %v2964_v40, %v16871_v55  ;;  %v12603_v29 = vsel %vm333_vm1, 1.0, %v23144_v36  ;;  %v12587_v60 = vsel %vm181_vm2, 1.0, %v23144_v36  ;;  %v12604_v40 = vsel %vm334_vm3, 1.0, %v23144_v36 }
  0xbb   :  { %14014 = vmatmul.mubr.f32.vlgmr.msra.gmra.mxu0 %v16748_v46  ;;  %14023 = vmatprep.subr.mxu0 %v16760_v50  ;;  %v16883_v46 = vand.u32 4294901760, %v4503_v59  ;;  %v16896_v8 = vsub.f32 %v4500_v41, %v16879_v7  ;;  %v12588_v61 = vsel %vm182_vm5, 1.0, %v23144_v36  ;;  %v4624_v1 = vsub.f32 %v16877_v44, %v16893_v14 }
  0xbc   :  { %14024 = vmatpush3.msra.mxu0 %v16760_v50  ;;  %14033 = vmatpush3.msra.mxu1 %v4124_v17  ;;  %v279_v17 = vpop.permute.xlu0 %278  ;;  %v16912_v41 = vand.u32 4294901760, %v16888_v42 }
  0xbd   :  { %14025 = vmatprep.subr.mxu0 %v16778_v56  ;;  %14027 = vmatprep.mubr.f32.mxu0 %v4068_v19  ;;  %v16905_v45 = vsub.f32 %v4503_v59, %v16883_v46  ;;  %v301_v12 = vmul.f32 %v12587_v60, %v279_v17  ;;  %v4574_v19 = vand.u32 4294901760, %v16896_v8  ;;  %v302_v20 = vmul.f32 %v12588_v61, %v279_v17 }
  0xbe   :  { %14026 = vmatpush3.msra.mxu0 %v16778_v56  ;;  %14034 = vmatprep.mubr.f32.mxu1 %v16793_v37  ;;  %v147_v11 = vpop.permute.xlu1 %146 }
  0xbf   :  { %14037 = vmatprep.subr.mxu0 %v16776_v51  ;;  %14044 = vmatprep.subr.mxu1 %v16760_v50  ;;  %v167_v17 = vadd.f32 %v147_v11, %v16571_v3  ;;  %v168_v61 = vadd.f32 %v147_v11, %v16399_v54 }
  0xc0   :  { %14028 = vmatmul.mubr.f32.vlgmr.msra.gmra.mxu0 %v4078_v23  ;;  %14035 = vmatmul.mubr.f32.vlgmr.msra.gmra.mxu1 %v16807_v16  ;;  %v99_v47 = vpop.permute.xlu0 %98  ;;  %v2967_v23 = vld [vmem:[%s22685_s1 + $0x48] sm:$0xff] }
  0xc1   :  { %14038 = vmatpush3.msra.mxu0 %v16776_v51  ;;  %14045 = vmatpush3.msra.mxu1 %v16760_v50  ;;  %v413_v51 = vmul.f32 %v12603_v29, %v391_v27  ;;  %v4625_v29 = vand.u32 4294901760, %v4624_v1  ;;  %v114_v60 = vmul.f32 %v99_v47, %v16641_v49 }
  0xc2   :  { %14039 = vmatprep.subr.mxu0 %v16800_v25  ;;  %14046 = vmatprep.subr.mxu1 %v16778_v56 }
  0xc3   :  { %14040 = vmatpush3.msra.mxu0 %v16800_v25  ;;  %14047 = vmatpush3.msra.mxu1 %v16778_v56  ;;  %v16922_v59 = vpop.permute.xlu1 %282  ;;  %v414_v25 = vmul.f32 %v12604_v40, %v391_v27  ;;  %v429_v27 = vadd.f32 %v413_v51, %v301_v12  ;;  %v122_v1 = vadd.f32 %v114_v60, %v16613_v43 }
  0xc4   :  { %14041 = vmatprep.mubr.f32.mxu0 %v16811_v30  ;;  %14048 = vmatprep.mubr.f32.mxu1 %v4066_v15  ;;  %v4631_v30 = vsub.f32 %v16888_v42, %v16912_v41  ;;  %v4584_v15 = vand.u32 4294901760, %v16905_v45 }
  0xc5   :  { %14051 = vmatprep.subr.mxu0 %v16797_v18  ;;  %14058 = vmatprep.subr.mxu1 %v16760_v50  ;;  %vm183_vm6 = vcmp.eq.f32.partialorder %v122_v1, %v167_v17  ;;  %vm184_vm8 = vcmp.eq.f32.partialorder %v122_v1, %v168_v61 }
  0xc6   :  { %14042 = vmatmul.mubr.f32.vlgmr.msra.gmra.mxu0 %v16829_v31  ;;  %14049 = vmatmul.mubr.f32.vlgmr.msra.gmra.mxu1 %v4076_v24  ;;  %v4575_v31 = vsub.f32 %v16896_v8, %v4574_v19  ;;  %v16944_v24 = vand.u32 4294901760, %v2967_v23  ;;  %v4632_v40 = vand.u32 4294901760, %v4631_v30  ;;  %v4585_v51 = vsub.f32 %v16905_v45, %v4584_v15 }
  0xc7   :  { %14052 = vmatpush3.msra.mxu0 %v16797_v18  ;;  %14059 = vmatpush3.msra.mxu1 %v16760_v50  ;;  %v430_v50 = vadd.f32 %v414_v25, %v302_v20  ;;  %v2966_v18 = vld [vmem:[%s22685_s1 + $0x40] sm:$0xff]  ;;  %v320_v30 = vadd.f32 1.0, %v168_v61 }
  0xc8   :  { %14053 = vmatprep.subr.mxu0 %v16822_v34  ;;  %14060 = vmatprep.subr.mxu1 %v16778_v56  ;;  %v16957_v12 = vpop.permute.xlu1 %102  ;;  %v16965_v11 = vsub.f32 %v2967_v23, %v16944_v24  ;;  %v16967_v47 = vand.u32 4294901760, %v2966_v18 }
  0xc9   :  { %14054 = vmatpush3.msra.mxu0 %v16822_v34  ;;  %14061 = vmatpush3.msra.mxu1 %v16778_v56  ;;  %v5008_v56 = vsel %vm2974_vm4, %v429_v27, 0  ;;  %v319_v34 = vadd.f32 1.0, %v167_v17  ;;  %v5011_v25 = vsel %vm2974_vm4, %v430_v50, 0  ;;  %v4586_v27 = vand.u32 4294901760, %v4585_v51  ;;  %v395_v50 = vpop.permute.xlu0 %394 }
  0xca   :  { %14055 = vmatprep.mubr.f32.mxu0 %v16793_v37  ;;  %14062 = vmatprep.mubr.f32.mxu1 %v16793_v37  ;;  %v4576_v37 = vand.u32 4294901760, %v4575_v31  ;;  %v16971_v20 = vand.u32 4294901760, %v5008_v56  ;;  %v16979_v23 = vand.u32 4294901760, %v16965_v11  ;;  %v12589_v31 = vsel %vm183_vm6, 1.0, %v23144_v36 }
  0xcb   :  { %14065 = vmatprep.subr.mxu0 %v16857_v32  ;;  %14072 = vmatprep.subr.mxu1 %v4625_v29  ;;  %vm335_vm7 = vcmp.eq.f32.partialorder %v122_v1, %v319_v34  ;;  %vm336_vm9 = vcmp.eq.f32.partialorder %v122_v1, %v320_v30  ;;  %v303_v34 = vmul.f32 %v12589_v31, %v16922_v59 }
  0xcc   :  { %14056 = vmatmul.mubr.f32.vlgmr.msra.gmra.mxu0 %v16807_v16  ;;  %14063 = vmatmul.mubr.f32.vlgmr.msra.gmra.mxu1 %v16807_v16  ;;  %v16975_v16 = vand.u32 4294901760, %v5011_v25  ;;  %v16987_v17 = vsub.f32 %v5008_v56, %v16971_v20  ;;  %v5132_v51 = vsub.f32 %v16965_v11, %v16979_v23 }
  0xcd   :  { %14066 = vmatpush3.msra.mxu0 %v16857_v32  ;;  %14073 = vmatpush3.msra.mxu1 %v4625_v29  ;;  %v16982_v29 = vsub.f32 %v2966_v18, %v16967_v47  ;;  %v151_v60 = vpop.permute.xlu1 %150  ;;  %v12605_v18 = vsel %vm335_vm7, 1.0, %v23144_v36 }
  0xce   :  { %14067 = vmatprep.subr.mxu0 %v16871_v55  ;;  %14074 = vmatprep.subr.mxu1 %v4632_v40  ;;  %v22778_v30 = vand.u32 4294901760, %v16987_v17  ;;  %v5133_v31 = vand.u32 4294901760, %v5132_v51 }
  0xcf   :  { %14068 = vmatpush3.msra.mxu0 %v16871_v55  ;;  %14075 = vmatpush3.msra.mxu1 %v4632_v40  ;;  %v16996_v40 = vsub.f32 %v5011_v25, %v16975_v16  ;;  %v17003_v56 = vand.u32 4294901760, %v16982_v29  ;;  %v415_v25 = vmul.f32 %v12605_v18, %v395_v50 }
  0xd0   :  { %14069 = vmatprep.mubr.f32.mxu0 %v4576_v37  ;;  %14076 = vmatprep.mubr.f32.mxu1 %v16879_v7  ;;  %v12606_v37 = vsel %vm336_vm9, 1.0, %v23144_v36 }
  0xd1   :  { %14079 = vmatprep.subr.mxu0 %v16877_v44  ;;  %14086 = vmatprep.subr.mxu1 %v16857_v32  ;;  %v416_v61 = vmul.f32 %v12606_v37, %v395_v50  ;;  %v431_v1 = vadd.f32 %v415_v25, %v303_v34  ;;  %v17062_v37 = vpop.permute.xlu0 %286  ;;  %v2971_v25 = vld [vmem:[%s22685_s1 + $0x68] sm:$0xff] }
  0xd2   :  { %14070 = vmatmul.mubr.f32.vlgmr.msra.gmra.mxu0 %v4586_v27  ;;  %14077 = vmatmul.mubr.f32.vlgmr.msra.gmra.mxu1 %v16883_v46  ;;  %v17015_v27 = vpop.permute.xlu1 %398 }
  0xd3   :  { %14080 = vmatpush3.msra.mxu0 %v16877_v44  ;;  %14087 = vmatpush3.msra.mxu1 %v16857_v32  ;;  %v12590_v44 = vsel %vm184_vm8, 1.0, %v23144_v36 }
  0xd4   :  { %14081 = vmatprep.subr.mxu0 %v16888_v42  ;;  %14088 = vmatprep.subr.mxu1 %v16871_v55 }
  0xd5   :  { %14082 = vmatpush3.msra.mxu0 %v16888_v42  ;;  %14089 = vmatpush3.msra.mxu1 %v16871_v55  ;;  %v304_v42 = vmul.f32 %v12590_v44, %v16922_v59  ;;  %v2969_v59 = vld [vmem:[%s22685_s1 + $0x58] sm:$0xff] }
  0xd6   :  { %14083 = vmatprep.mubr.f32.mxu0 %v16896_v8  ;;  %14090 = vmatprep.mubr.f32.mxu1 %v4574_v19  ;;  %v5139_v8 = vsub.f32 %v16982_v29, %v17003_v56  ;;  %v22777_v19 = vand.u32 4294901760, %v16996_v40 }
  0xd7   :  { %14093 = vmatprep.subr.mxu0 %v16893_v14  ;;  %14100 = vmatprep.subr.mxu1 %v16857_v32  ;;  %v432_v50 = vadd.f32 %v416_v61, %v304_v42  ;;  %v17049_v44 = vpop.permute.xlu1 %154 }
  0xd8   :  { %14084 = vmatmul.mubr.f32.vlgmr.msra.gmra.mxu0 %v16905_v45  ;;  %14091 = vmatmul.mubr.f32.vlgmr.msra.gmra.mxu1 %v4584_v15  ;;  %v5083_v45 = vsub.f32 %v16987_v17, %v22778_v30  ;;  %v169_v15 = vadd.f32 %v151_v60, %v16571_v3  ;;  %v5140_v18 = vand.u32 4294901760, %v5139_v8  ;;  %v5093_v51 = vsub.f32 %v16996_v40, %v22777_v19 }
  0xd9   :  { %14094 = vmatpush3.msra.mxu0 %v16893_v14  ;;  %14101 = vmatpush3.msra.mxu1 %v16857_v32  ;;  %v2968_v14 = vld [vmem:[%s22685_s1 + $0x50] sm:$0xff]  ;;  %v115_v32 = vmul.f32 %v16957_v12, %v16641_v49  ;;  %v5519_v8 = vsel %vm2974_vm4, %v432_v50, 0  ;;  %v665_v30 = vmul.f32 %v16426_v38, %v16224_v13 }
  0xda   :  { %14095 = vmatprep.subr.mxu0 %v16912_v41  ;;  %14102 = vmatprep.subr.mxu1 %v16871_v55  ;;  %v17055_v12 = vand.u32 4294901760, %v2968_v14  ;;  %v5084_v34 = vand.u32 4294901760, %v5083_v45  ;;  %v321_v61 = vadd.f32 1.0, %v169_v15  ;;  %v667_v45 = vmul.f32 %v16404_v57, %v16224_v13 }
  0xdb   :  { %14096 = vmatpush3.msra.mxu0 %v16912_v41  ;;  %14103 = vmatpush3.msra.mxu1 %v16871_v55  ;;  %v17051_v41 = vand.u32 4294901760, %v2969_v59  ;;  %v5516_v55 = vsel %vm2974_vm4, %v431_v1, 0  ;;  %v123_v42 = vadd.f32 %v115_v32, %v16613_v43  ;;  %v17082_v32 = vand.u32 4294901760, %v2971_v25 }
  0xdc   :  { %14097 = vmatprep.mubr.f32.mxu0 %v16879_v7  ;;  %14104 = vmatprep.mubr.f32.mxu1 %v16879_v7  ;;  %v17060_v7 = vadd.f32 %v151_v60, %v16399_v54  ;;  %v17070_v1 = vand.u32 4294901760, %v5516_v55  ;;  %v17088_v19 = vand.u32 4294901760, %v5519_v8  ;;  %v795_v10 = vadd.f32 %v667_v45, %v16367_v26 }
  0xdd   :  { %14107 = vmatprep.subr.mxu0 %v16944_v24  ;;  %14114 = vmatprep.subr.mxu1 %v5133_v31  ;;  %v17074_v60 = vsub.f32 %v2969_v59, %v17051_v41  ;;  %v107_v59 = vpop.permute.xlu0 %106  ;;  %vm337_vm10 = vcmp.eq.f32.partialorder %v123_v42, %v321_v61  ;;  %vm185_vm11 = vcmp.eq.f32.partialorder %v123_v42, %v169_v15  ;;  %v23145_v15 = vand.u32 4294901760, %v16987_v17 }
  0xde   :  { %14098 = vmatmul.mubr.f32.vlgmr.msra.gmra.mxu0 %v16883_v46  ;;  %14105 = vmatmul.mubr.f32.vlgmr.msra.gmra.mxu1 %v16883_v46  ;;  %v5094_v46 = vand.u32 4294901760, %v5093_v51  ;;  %v322_v50 = vadd.f32 1.0, %v17060_v7  ;;  %v17086_v51 = vpop.permute.xlu1 %290  ;;  %vm186_vm13 = vcmp.eq.f32.partialorder %v123_v42, %v17060_v7  ;;  %v12591_v45 = vsel %vm185_vm11, 1.0, %v23144_v36  ;;  %v2973_v7 = vld [vmem:[%s22685_s1 + $0x78] sm:$0xff] }
  0xdf   :  { %14108 = vmatpush3.msra.mxu0 %v16944_v24  ;;  %14115 = vmatpush3.msra.mxu1 %v5133_v31  ;;  %v17080_v31 = vsub.f32 %v2968_v14, %v17055_v12  ;;  %v513_v14 = vadd.f32 0.5, %v16613_v43  ;;  %v17130_v26 = vadd.f32 %v17049_v44, %v16571_v3  ;;  %v116_v61 = vmul.f32 %v107_v59, %v16641_v49 }
  0xe0   :  { %14109 = vmatprep.subr.mxu0 %v16967_v47  ;;  %14116 = vmatprep.subr.mxu1 %v5140_v18  ;;  %vm338_vm12 = vcmp.eq.f32.partialorder %v123_v42, %v322_v50  ;;  %v17139_v4 = vadd.f32 %v665_v30, %v16386_v39  ;;  %v305_v30 = vmul.f32 %v12591_v45, %v17062_v37  ;;  %v23146_v42 = vand.u32 4294901760, %v16996_v40 }
  0xe1   :  { %14110 = vmatpush3.msra.mxu0 %v16967_v47  ;;  %14117 = vmatpush3.msra.mxu1 %v5140_v18  ;;  %v17094_v18 = vsub.f32 %v5516_v55, %v17070_v1  ;;  %v17106_v33 = vand.u32 4294901760, %v17080_v31  ;;  %v17109_v55 = vsub.f32 %v2971_v25, %v17082_v32  ;;  %v17121_v38 = vpop.permute.xlu0 %402  ;;  %v17124_v25 = vsub.f32 %v5519_v8, %v17088_v19 }
  0xe2   :  { %14111 = vmatprep.mubr.f32.mxu0 %v5084_v34  ;;  %14118 = vmatprep.mubr.f32.mxu1 %v16971_v20  ;;  %v17098_v34 = vand.u32 4294901760, %v17074_v60  ;;  %v514_v57 = vmul.f32 0.0625, %v513_v14  ;;  %v17142_v63 = vpop.permute.xlu1 %895  ;;  %v12608_v49 = vsel %vm338_vm12, 1.0, %v23144_v36  ;;  %v17159_v50 = vadd.f32 %v17049_v44, %v16399_v54 }
  0xe3   :  { %14121 = vmatprep.subr.mxu0 %v16965_v11  ;;  %14128 = vmatprep.subr.mxu1 %v16944_v24  ;;  %v5647_v14 = vsub.f32 %v17080_v31, %v17106_v33  ;;  %v323_v54 = vadd.f32 1.0, %v17130_v26  ;;  %v22798_v44 = vand.u32 4294901760, %v17124_v25  ;;  %v17177_v45 = vadd.f32 %v116_v61, %v16613_v43 }
  0xe4   :  { %14112 = vmatmul.mubr.f32.vlgmr.msra.gmra.mxu0 %v5094_v46  ;;  %14119 = vmatmul.mubr.f32.vlgmr.msra.gmra.mxu1 %v16975_v16  ;;  %v2970_v46 = vld [vmem:[%s22685_s1 + $0x60] sm:$0xff]  ;;  %v5640_v8 = vsub.f32 %v17074_v60, %v17098_v34  ;;  %v418_v39 = vmul.f32 %v12608_v49, %v17015_v27 }
  0xe5   :  { %14122 = vmatpush3.msra.mxu0 %v16965_v11  ;;  %14129 = vmatpush3.msra.mxu1 %v16944_v24  ;;  %v12607_v11 = vsel %vm337_vm10, 1.0, %v23144_v36  ;;  %v17144_v3 = vand.u32 4294901760, %v2970_v46  ;;  %vm187_vm14 = vcmp.eq.f32.partialorder %v17177_v45, %v17130_v26  ;;  %vm339_vm15 = vcmp.eq.f32.partialorder %v17177_v45, %v323_v54 }
  0xe6   :  { %14123 = vmatprep.subr.mxu0 %v16982_v29  ;;  %14130 = vmatprep.subr.mxu1 %v16967_v47  ;;  %v417_v59 = vmul.f32 %v12607_v11, %v17015_v27  ;;  %v664_v11 = vmul.f32 %v16588_v21, %v16224_v13  ;;  %v17207_v49 = vpop.permute.xlu1 %1043  ;;  %vm188_vm0 = vcmp.eq.f32.partialorder %v17177_v45, %v17159_v50 }
  0xe7   :  { %14124 = vmatpush3.msra.mxu0 %v16982_v29  ;;  %14131 = vmatpush3.msra.mxu1 %v16967_v47  ;;  %v17179_v29 = vfloor.f32 %v514_v57  ;;  %v23148_v57 = vand.u32 4294901760, %v17094_v18 }
  0xe8   :  { %14125 = vmatprep.mubr.f32.mxu0 %v16987_v17  ;;  %14132 = vmatprep.mubr.f32.mxu1 %v23145_v15  ;;  %v12592_v17 = vsel %vm186_vm13, 1.0, %v23144_v36  ;;  %v17166_v15 = vand.u32 4294901760, %v17109_v55  ;;  %v433_v61 = vadd.f32 %v417_v59, %v305_v30 }
  0xe9   :  { %14135 = vmatprep.subr.mxu0 %v16979_v23  ;;  %14142 = vmatprep.subr.mxu1 %v16944_v24  ;;  %23147 = vst [vmem:[#allocation61_spill] sm:$0xff] %v17179_v29  ;;  %v306_v21 = vmul.f32 %v12592_v17, %v17062_v37  ;;  %v5591_v27 = vsub.f32 %v17094_v18, %v23148_v57  ;;  %v2972_v37 = vld [vmem:[%s22685_s1 + $0x70] sm:$0xff] }
  0xea   :  { %16125 = vset.pattern.permute.xlu1 %v23127_v22  ;;  %14126 = vmatmul.mubr.f32.vlgmr.msra.gmra.mxu0 %v16996_v40  ;;  %v5641_v40 = vand.u32 4294901760, %v5640_v8  ;;  %v17205_v8 = vadd.f32 %v664_v11, %v16560_v52  ;;  %v6148_v59 = vsub.f32 %v17109_v55, %v17166_v15  ;;  %v660_v17 = vmul.f32 %v16621_v28, %v16224_v13  ;;  %v23201_v22 = vld [vmem:[#allocation20_spill] sm:$0xff] }
  0xeb   :  { %14133 = vmatmul.mubr.f32.vlgmr.msra.gmra.mxu1 %v23146_v42  ;;  %14136 = vmatpush3.msra.mxu0 %v16979_v23  ;;  %v17185_v42 = vsub.f32 %v2970_v46, %v17144_v3  ;;  %v17187_v23 = vpop.permute.xlu0 %1038  ;;  %v324_v46 = vadd.f32 1.0, %v17159_v50  ;;  %v434_v30 = vadd.f32 %v418_v39, %v306_v21  ;;  %v5648_v11 = vand.u32 4294901760, %v5647_v14  ;;  %v17266_v54 = vpop.permute.xlu1 %1991 }
  0xec   :  { %14143 = vmatpush3.msra.mxu1 %v16944_v24  ;;  %1113 = vperm.xlu1 %16125, %v795_v10   ;;  %v662_v10 = vmul.f32 %v16604_v9, %v16224_v13  ;;  %v17196_v24 = vand.u32 4294901760, %v2973_v7  ;;  %v6024_v28 = vsel %vm2974_vm4, %v433_v61, 0  ;;  %v12593_v21 = vsel %vm187_vm14, 1.0, %v23144_v36 }
  0xed   :  { %14137 = vmatprep.subr.mxu0 %v17003_v56  ;;  %14144 = vmatprep.subr.mxu1 %v16967_v47  ;;  %v17224_v57 = vand.u32 4294901760, %v17185_v42  ;;  %vm340_vm1 = vcmp.eq.f32.partialorder %v17177_v45, %v324_v46  ;;  %v17255_v61 = vand.u32 4294901760, %v6148_v59  ;;  %v17258_v26 = vadd.f32 %v660_v17, %v16594_v2 }
  0xee   :  { %14138 = vmatpush3.msra.mxu0 %v17003_v56  ;;  %14145 = vmatpush3.msra.mxu1 %v16967_v47  ;;  %v5601_v47 = vsub.f32 %v17124_v25, %v22798_v44  ;;  %v548_v56 = vmul.f32 16.0, %v17179_v29  ;;  %v5592_v44 = vand.u32 4294901760, %v5591_v27  ;;  %v17232_v52 = vadd.f32 %v662_v10, %v16575_v58  ;;  %v23197_v58 = vld [vmem:[#allocation33_spill] sm:$0xff] }
  0xef   :  { %14139 = vmatprep.mubr.f32.mxu0 %v16971_v20  ;;  %14146 = vmatprep.mubr.f32.mxu1 %v16971_v20  ;;  %v17226_v20 = vand.u32 4294901760, %v2972_v37  ;;  %v17235_v39 = vsub.f32 %v2973_v7, %v17196_v24  ;;  %v17248_v14 = vpop.permute.xlu0 %1033  ;;  %v6027_v27 = vsel %vm2974_vm4, %v434_v30, 0  ;;  %v17261_v10 = vand.u32 4294901760, %v6024_v28 }
  0xf0   :  { %14149 = vmatprep.subr.mxu0 %v17051_v41  ;;  %14156 = vmatprep.subr.mxu1 %v5641_v40  ;;  %v5602_v7 = vand.u32 4294901760, %v5601_v47  ;;  %v12594_v59 = vsel %vm188_vm0, 1.0, %v23144_v36  ;;  %v307_v17 = vmul.f32 %v12593_v21, %v17086_v51  ;;  %v12610_v47 = vsel %vm340_vm1, 1.0, %v23144_v36  ;;  %v23173_v21 = vld [vmem:[#allocation35_spill] sm:$0xff] }
  0xf1   :  { %14140 = vmatmul.mubr.f32.vlgmr.msra.gmra.mxu0 %v16975_v16  ;;  %14147 = vmatmul.mubr.f32.vlgmr.msra.gmra.mxu1 %v16975_v16  ;;  %v12609_v16 = vsel %vm339_vm15, 1.0, %v23144_v36  ;;  %v656_v45 = vmul.f32 %v16643_v35, %v16224_v13  ;;  %v17294_v46 = vand.u32 4294901760, %v17235_v39  ;;  %v17296_v30 = vand.u32 4294901760, %v6027_v27 }
  0xf2   :  { %14150 = vmatpush3.msra.mxu0 %v17051_v41  ;;  %14157 = vmatpush3.msra.mxu1 %v5641_v40  ;;  %v17253_v40 = vsub.f32 %v16613_v43, %v548_v56  ;;  %v17269_v43 = vsub.f32 %v2972_v37, %v17226_v20  ;;  %v419_v56 = vmul.f32 %v12609_v16, %v17121_v38  ;;  %v23150_v37 = vfloor.f32 %v16311_v48  ;;  %v23156_v16 = vld [vmem:[#allocation37_spill] sm:$0xff] }
  0xf3   :  { %1103 = vperm.xlu1 %16125, %v17139_v4   ;;  %14151 = vmatprep.subr.mxu0 %v17055_v12  ;;  %v6155_v4 = vsub.f32 %v17185_v42, %v17224_v57  ;;  %v23153_v48 = vfloor.f32 %v16513_v62  ;;  %v308_v35 = vmul.f32 %v12594_v59, %v17086_v51  ;;  %v23157_v62 = vld [vmem:[#allocation60_spill] sm:$0xff]  ;;  %v17340_v59 = vpop.permute.xlu1 %2543  ;;  %v23198_v9 = vfloor.f32 %v23197_v58 }
  0xf4   :  { %23149 = vst [vmem:[#allocation62_spill] sm:$0xff] %v17253_v40  ;;  %14158 = vmatprep.subr.mxu1 %v5648_v11  ;;  %14152 = vmatpush3.msra.mxu0 %v17055_v12  ;;  %vm17287_vm2 = vcmp.eq.f32.partialorder %v23150_v37, %v17179_v29  ;;  %v655_v37 = vmul.f32 %v23156_v16, %v16224_v13 }
  0xf5   :  { %14159 = vmatpush3.msra.mxu1 %v5648_v11  ;;  %14153 = vmatprep.mubr.f32.mxu0 %v5592_v44  ;;  %v658_v44 = vmul.f32 %v16634_v5, %v16224_v13  ;;  %v901_v11 = vrot.slane %v17142_v63, %v16198_v6  ;;  %vm17304_vm3 = vcmp.eq.f32.partialorder %v23153_v48, %v17179_v29  ;;  %v17314_v2 = vand.u32 4294901760, %v6155_v4  ;;  %v17316_v63 = vpop.permute.xlu0 %1023 }
  0xf6   :  { %14160 = vmatprep.mubr.f32.mxu1 %v17070_v1  ;;  %14163 = vmatprep.subr.mxu0 %v17074_v60  ;;  %v654_v48 = vmul.f32 %v23157_v62, %v16224_v13  ;;  %v17321_v6 = vsub.f32 %v6024_v28, %v17261_v10  ;;  %v435_v16 = vadd.f32 %v419_v56, %v307_v17  ;;  %v17333_v4 = vand.u32 4294901760, %v17269_v43  ;;  %v23163_v13 = vld [vmem:[#allocation54_spill] sm:$0xff]  ;;  %v23165_v17 = vld [vmem:[#allocation55_spill] sm:$0xff] }
  0xf7   :  { %14170 = vmatprep.subr.mxu1 %v17051_v41  ;;  %14154 = vmatmul.mubr.f32.vlgmr.msra.gmra.mxu0 %v5602_v7  ;;  %v420_v7 = vmul.f32 %v12610_v47, %v17121_v38  ;;  %v17338_v28 = vadd.f32 %v658_v44, %v23163_v13  ;;  %v17348_v47 = vadd.f32 %v656_v45, %v23165_v17  ;;  %v17363_v50 = vsel %vm17304_vm3, 1.0, %v23144_v36  ;;  %v23167_v45 = vld [vmem:[#allocation40_spill] sm:$0xff]  ;;  %v23182_v17 = vld [vmem:[#allocation42_spill] sm:$0xff] }
  0xf8   :  { %14161 = vmatmul.mubr.f32.vlgmr.msra.gmra.mxu1 %v17088_v19  ;;  %14164 = vmatpush3.msra.mxu0 %v17074_v60  ;;  %v23158_v60 = vld [vmem:[#allocation10_spill] sm:$0xff]  ;;  %v6656_v56 = vsub.f32 %v17235_v39, %v17294_v46  ;;  %v17358_v44 = vadd.f32 %v901_v11, %v17253_v40  ;;  %23166 = vst [vmem:[#allocation64_spill] sm:$0xff] %v17363_v50 }
  0xf9   :  { %14171 = vmatpush3.msra.mxu1 %v17051_v41  ;;  %1098 = vperm.xlu1 %16125, %v17205_v8   ;;  %v23159_v51 = vfloor.f32 %v23158_v60  ;;  %23162 = vst [vmem:[#allocation10_spill] sm:$0xff] %v17333_v4  ;;  %v17345_v8 = vsel %vm17287_vm2, 1.0, %v23144_v36  ;;  %v17353_v60 = vsub.f32 %v6027_v27, %v17296_v30  ;;  %v436_v27 = vadd.f32 %v420_v7, %v308_v35  ;;  %v23174_v7 = vld [vmem:[#allocation13_spill] sm:$0xff] }
  0xfa   :  { %14165 = vmatprep.subr.mxu0 %v17080_v31  ;;  %14172 = vmatprep.subr.mxu1 %v17055_v12  ;;  %23164 = vst [vmem:[#allocation63_spill] sm:$0xff] %v17345_v8  ;;  %v17381_v40 = vadd.f32 %v655_v37, %v23173_v21  ;;  %v6663_v35 = vsub.f32 %v17269_v43, %v17333_v4  ;;  %v23175_v38 = vfloor.f32 %v23174_v7  ;;  %v23181_v7 = vld [vmem:[#allocation41_spill] sm:$0xff]  ;;  %v23183_v21 = vfloor.f32 %v23182_v17  ;;  %v23190_v17 = vld [vmem:[#allocation44_spill] sm:$0xff] }
  0xfb   :  { %vm17328_vm5 = vcmp.eq.f32.partialorder %v23159_v51, %v17179_v29  ;;  %14166 = vmatpush3.msra.mxu0 %v17080_v31  ;;  %14173 = vmatpush3.msra.mxu1 %v17055_v12  ;;  %v23168_v51 = vfloor.f32 %v23167_v45  ;;  %v23171_v31 = vand.u32 4294901760, %v17094_v18  ;;  %v17384_v45 = vadd.f32 %v654_v48, %v16637_v0  ;;  %v23180_v0 = vld [vmem:[#allocation4_spill] sm:$0xff] }
  0xfc   :  { %14167 = vmatprep.mubr.f32.mxu0 %v17094_v18  ;;  %v17378_v11 = vsel %vm17328_vm5, 1.0, %v23144_v36  ;;  %14177 = vmatprep.subr.mxu0 %v17098_v34  ;;  %vm17395_vm7 = vcmp.eq.f32.partialorder %v23175_v38, %v17179_v29  ;;  %v23178_v48 = vand.u32 4294901760, %v17124_v25  ;;  %v17409_v18 = vpop.permute.xlu0 %1013  ;;  %v685_v38 = vmul.f32 %v23181_v7, %v23180_v0 }
  0xfd   :  { %vm17368_vm6 = vcmp.eq.f32.partialorder %v23168_v51, %v17179_v29  ;;  %14174 = vmatprep.mubr.f32.mxu1 %v23171_v31  ;;  %23172 = vst [vmem:[#allocation40_spill] sm:$0xff] %v17378_v11  ;;  %14184 = vmatprep.subr.mxu1 %v17051_v41  ;;  %v6532_v51 = vsel %vm2974_vm4, %v435_v16, 0  ;;  %v17402_v31 = vand.u32 4294901760, %v6656_v56  ;;  %vm17416_vm8 = vcmp.eq.f32.partialorder %v23183_v21, %v17179_v29  ;;  %v23186_v56 = vld [vmem:[#allocation16_spill] sm:$0xff] }
  0xfe   :  { %14168 = vmatmul.mubr.f32.vlgmr.msra.gmra.mxu0 %v17124_v25  ;;  %14175 = vmatmul.mubr.f32.vlgmr.msra.gmra.mxu1 %v23178_v48  ;;  %v17407_v16 = vsel %vm17368_vm6, 1.0, %v23144_v36  ;;  %v17423_v25 = vadd.f32 1.0, %v17358_v44  ;;  %v23187_v48 = vfloor.f32 %v23186_v56  ;;  %v23191_v21 = vfloor.f32 %v23190_v17  ;;  %v17445_v56 = vpop.permute.xlu1 %1028  ;;  %v23195_v17 = vld [vmem:[#allocation17_spill] sm:$0xff] }
  0xff   :  { %23179 = vst [vmem:[#allocation13_spill] sm:$0xff] %v17407_v16  ;;  %14178 = vmatpush3.msra.mxu0 %v17098_v34  ;;  %14185 = vmatpush3.msra.mxu1 %v17051_v41  ;;  %v6535_v41 = vsel %vm2974_vm4, %v436_v27, 0  ;;  %v17443_v34 = vand.u32 4294901760, %v6532_v51  ;;  %v17459_v62 = vand.u32 4294901760, %v6663_v35  ;;  %vm17464_vm4 = vcmp.eq.f32.partialorder %v23198_v9, %v17179_v29 }
 0x100   :  { %vm17429_vm9 = vcmp.eq.f32.partialorder %v23187_v48, %v17179_v29  ;;  %vm17436_vm10 = vcmp.eq.f32.partialorder %v23191_v21, %v17179_v29  ;;  %1088 = vperm.xlu1 %16125, %v17232_v52   ;;  %14179 = vmatprep.subr.mxu0 %v17106_v33  ;;  %v17450_v48 = vsel %vm17395_vm7, 1.0, %v23144_v36  ;;  %v684_v21 = vmul.f32 %v23195_v17, %v23180_v0  ;;  %v17511_v7 = vpop.permute.xlu0 %1003 }
 0x101   :  { %23194 = vst [vmem:[#allocation42_spill] sm:$0xff] %v17450_v48  ;;  %14186 = vmatprep.subr.mxu1 %v17055_v12  ;;  %14180 = vmatpush3.msra.mxu0 %v17106_v33  ;;  %v23196_v52 = vand.u32 4294901760, %v17321_v6  ;;  %v23202_v17 = vfloor.f32 %v23201_v22  ;;  %v17478_v33 = vadd.f32 %v685_v38, %v16509_v53  ;;  %v17483_v58 = vsel %vm17416_vm8, 1.0, %v23144_v36  ;;  %v23209_v38 = vld [vmem:[#allocation12_spill] sm:$0xff] }
 0x102   :  { %14187 = vmatpush3.msra.mxu1 %v17055_v12  ;;  %14181 = vmatprep.mubr.f32.mxu0 %v17070_v1  ;;  %23205 = vst [vmem:[#allocation16_spill] sm:$0xff] %v17483_v58  ;;  %v17488_v22 = vsel %vm17429_vm9, 1.0, %v23144_v36  ;;  %v17493_v9 = vsel %vm17436_vm10, 1.0, %v23144_v36  ;;  %vm1621_vm12 = vcmp.eq.f32.partialorder %v17207_v49, %v17358_v44  ;;  %vm2173_vm13 = vcmp.eq.f32.partialorder %v17207_v49, %v17423_v25 }
 0x103   :  { %v6099_v27 = vsub.f32 %v17321_v6, %v23196_v52  ;;  %vm17471_vm11 = vcmp.eq.f32.partialorder %v23202_v17, %v17179_v29  ;;  %23206 = vst [vmem:[#allocation44_spill] sm:$0xff] %v17488_v22  ;;  %23207 = vst [vmem:[#allocation33_spill] sm:$0xff] %v17493_v9  ;;  %v17499_v12 = vand.u32 4294901760, %v6535_v41  ;;  %14188 = vmatprep.mubr.f32.mxu1 %v17070_v1  ;;  %14191 = vmatprep.subr.mxu0 %v17082_v32 }
 0x104   :  { %v23208_v13 = vand.u32 4294901760, %v17353_v60  ;;  %v17507_v5 = vsub.f32 %v6532_v51, %v17443_v34  ;;  %14198 = vmatprep.subr.mxu1 %v17255_v61  ;;  %14182 = vmatmul.mubr.f32.vlgmr.msra.gmra.mxu0 %v17088_v19  ;;  %v17514_v17 = vadd.f32 %v684_v21, %v23209_v38  ;;  %v17519_v1 = vsel %vm17464_vm4, 1.0, %v23144_v36  ;;  %v17548_v21 = vpop.permute.xlu1 %1018 }
 0x105   :  { %23211 = vst [vmem:[#allocation65_spill] sm:$0xff] %v17519_v1  ;;  %v17524_v52 = vsel %vm17471_vm11, 1.0, %v23144_v36  ;;  %14189 = vmatmul.mubr.f32.vlgmr.msra.gmra.mxu1 %v17088_v19  ;;  %14192 = vmatpush3.msra.mxu0 %v17082_v32  ;;  %v6100_v51 = vand.u32 4294901760, %v6099_v27  ;;  %vm1620_vm14 = vcmp.eq.f32.partialorder %v17187_v23, %v17358_v44  ;;  %vm1619_vm15 = vcmp.eq.f32.partialorder %v17248_v14, %v17358_v44  ;;  %v23213_v27 = vld [vmem:[#allocation7_spill] sm:$0xff] }
 0x106   :  { %v6109_v35 = vsub.f32 %v17353_v60, %v23208_v13  ;;  %23210 = vst [vmem:[#allocation20_spill] sm:$0xff] %v17514_v17  ;;  %23212 = vst [vmem:[#allocation66_spill] sm:$0xff] %v17524_v52  ;;  %vm1617_vm0 = vcmp.eq.f32.partialorder %v17316_v63, %v17358_v44  ;;  %v12642_v0 = vsel %vm1621_vm12, 1.0, %v23144_v36  ;;  %v12770_v19 = vsel %vm2173_vm13, 1.0, %v23144_v36  ;;  %14199 = vmatpush3.msra.mxu1 %v17255_v61 }
 0x107   :  { %1078 = vperm.xlu1 %16125, %v17258_v26   ;;  %vm2171_vm1 = vcmp.eq.f32.partialorder %v17248_v14, %v17423_v25  ;;  %vm2169_vm2 = vcmp.eq.f32.partialorder %v17316_v63, %v17423_v25  ;;  %v23214_v37 = vfloor.f32 %v23213_v27  ;;  %v17558_v49 = vsub.f32 %v6535_v41, %v17499_v12  ;;  %14193 = vmatprep.subr.mxu0 %v17144_v3  ;;  %v23217_v26 = vld [vmem:[#allocation46_spill] sm:$0xff]  ;;  %v17616_v63 = vpop.permute.xlu0 %993 }
 0x108   :  { %14200 = vmatprep.subr.mxu1 %v17314_v2  ;;  %v6110_v61 = vand.u32 4294901760, %v6109_v35  ;;  %vm1615_vm5 = vcmp.eq.f32.partialorder %v17409_v18, %v17358_v44  ;;  %v23218_v38 = vfloor.f32 %v23217_v26  ;;  %14194 = vmatpush3.msra.mxu0 %v17144_v3  ;;  %v12641_v41 = vsel %vm1620_vm14, 1.0, %v23144_v36 }
 0x109   :  { %vm17553_vm3 = vcmp.eq.f32.partialorder %v23214_v37, %v17179_v29  ;;  %14201 = vmatpush3.msra.mxu1 %v17314_v2  ;;  %vm2172_vm7 = vcmp.eq.f32.partialorder %v17187_v23, %v17423_v25  ;;  %v12640_v35 = vsel %vm1619_vm15, 1.0, %v23144_v36  ;;  %v23221_v2 = vld [vmem:[#allocation23_spill] sm:$0xff]  ;;  %14195 = vmatprep.mubr.f32.mxu0 %v6100_v51  ;;  %v12768_v53 = vsel %vm2171_vm1, 1.0, %v23144_v36  ;;  %v23225_v51 = vld [vmem:[#allocation48_spill] sm:$0xff] }
 0x10a   :  { %vm17567_vm6 = vcmp.eq.f32.partialorder %v23218_v38, %v17179_v29  ;;  %v12638_v38 = vsel %vm1617_vm0, 1.0, %v23144_v36  ;;  %v23222_v37 = vfloor.f32 %v23221_v2  ;;  %14202 = vmatprep.mubr.f32.mxu1 %v17261_v10  ;;  %v12766_v52 = vsel %vm2169_vm2, 1.0, %v23144_v36  ;;  %14205 = vmatprep.subr.mxu0 %v17109_v55 }
 0x10b   :  { %v2037_v4 = vmul.f32 %v12642_v0, %v17266_v54  ;;  %v2589_v2 = vmul.f32 %v12770_v19, %v17340_v59  ;;  %14212 = vmatprep.subr.mxu1 %v17082_v32  ;;  %v12636_v14 = vsel %vm1615_vm5, 1.0, %v23144_v36  ;;  %vm2167_vm9 = vcmp.eq.f32.partialorder %v17409_v18, %v17423_v25  ;;  %14196 = vmatmul.mubr.f32.vlgmr.msra.gmra.mxu0 %v6110_v61 }
 0x10c   :  { %vm17590_vm8 = vcmp.eq.f32.partialorder %v23222_v37, %v17179_v29  ;;  %vm1613_vm10 = vcmp.eq.f32.partialorder %v17511_v7, %v17358_v44  ;;  %14203 = vmatmul.mubr.f32.vlgmr.msra.gmra.mxu1 %v17296_v30  ;;  %v2035_v0 = vmul.f32 %v12640_v35, %v17266_v54  ;;  %v2033_v19 = vmul.f32 %v12638_v38, %v17266_v54 }
 0x10d   :  { %v22827_v37 = vand.u32 4294901760, %v17558_v49  ;;  %vm2165_vm4 = vcmp.eq.f32.partialorder %v17511_v7, %v17423_v25  ;;  %v23226_v17 = vfloor.f32 %v23225_v51  ;;  %v12769_v61 = vsel %vm2172_vm7, 1.0, %v23144_v36  ;;  %14206 = vmatpush3.msra.mxu0 %v17109_v55  ;;  %14213 = vmatpush3.msra.mxu1 %v17082_v32 }
 0x10e   :  { %v2587_v35 = vmul.f32 %v12768_v53, %v17340_v59  ;;  %vm1618_vm12 = vcmp.eq.f32.partialorder %v17445_v56, %v17358_v44  ;;  %vm2170_vm13 = vcmp.eq.f32.partialorder %v17445_v56, %v17423_v25  ;;  %1068 = vperm.xlu1 %16125, %v17338_v28   ;;  %14207 = vmatprep.subr.mxu0 %v17185_v42  ;;  %v12764_v55 = vsel %vm2167_vm9, 1.0, %v23144_v36 }
 0x10f   :  { %vm17627_vm11 = vcmp.eq.f32.partialorder %v23226_v17, %v17179_v29  ;;  %v17642_v17 = vpop.permute.xlu1 %1008  ;;  %v2585_v23 = vmul.f32 %v12766_v52, %v17340_v59  ;;  %v2717_v53 = vadd.f32 %v2589_v2, %v2037_v4  ;;  %vm1611_vm14 = vcmp.eq.f32.partialorder %v17616_v63, %v17358_v44  ;;  %14214 = vmatprep.subr.mxu1 %v17144_v3 }
 0x110   :  { %v2036_v38 = vmul.f32 %v12641_v41, %v17266_v54  ;;  %14208 = vmatpush3.msra.mxu0 %v17185_v42  ;;  %v23229_v28 = vand.u32 4294901760, %v17507_v5  ;;  %v2031_v52 = vmul.f32 %v12636_v14, %v17266_v54  ;;  %v12634_v4 = vsel %vm1613_vm10, 1.0, %v23144_v36  ;;  %14215 = vmatpush3.msra.mxu1 %v17144_v3 }
 0x111   :  { %14209 = vmatprep.mubr.f32.mxu0 %v17321_v6  ;;  %v12639_v42 = vsel %vm1618_vm12, 1.0, %v23144_v36  ;;  %v12767_v18 = vsel %vm2170_vm13, 1.0, %v23144_v36  ;;  %v17679_v41 = vsub.f32 %v17558_v49, %v22827_v37  ;;  %v12762_v2 = vsel %vm2165_vm4, 1.0, %v23144_v36  ;;  %14219 = vmatprep.subr.mxu0 %v17166_v15 }
 0x112   :  { %v17659_v51 = vsub.f32 %v17507_v5, %v23229_v28  ;;  %v23230_v14 = vand.u32 4294901760, %v17321_v6  ;;  %v2715_v28 = vadd.f32 %v2587_v35, %v2035_v0  ;;  %v2583_v29 = vmul.f32 %v12764_v55, %v17340_v59  ;;  %14226 = vmatprep.subr.mxu1 %v17082_v32  ;;  %14210 = vmatmul.mubr.f32.vlgmr.msra.gmra.mxu0 %v17353_v60 }
 0x113   :  { %v12632_v56 = vsel %vm1611_vm14, 1.0, %v23144_v36  ;;  %v2588_v37 = vmul.f32 %v12769_v61, %v17340_v59  ;;  %v2713_v7 = vadd.f32 %v2585_v23, %v2033_v19  ;;  %vm1616_vm15 = vcmp.eq.f32.partialorder %v17548_v21, %v17358_v44  ;;  %14220 = vmatpush3.msra.mxu0 %v17166_v15  ;;  %v999_v19 = vpop.permute.xlu1 %998  ;;  %1058 = vperm.xlu1 %16125, %v17348_v47  }
 0x114   :  { %14216 = vmatprep.mubr.f32.mxu1 %v23230_v14  ;;  %v2845_v6 = vmul.f32 %v17519_v1, %v2717_v53  ;;  %v17702_v0 = vsel %vm17553_vm3, 1.0, %v23144_v36  ;;  %v23232_v35 = vand.u32 4294901760, %v17353_v60  ;;  %v2034_v61 = vmul.f32 %v12639_v42, %v17266_v54  ;;  %14221 = vmatprep.subr.mxu0 %v17224_v57 }
 0x115   :  { %23231 = vst [vmem:[#allocation7_spill] sm:$0xff] %v17702_v0  ;;  %v2586_v55 = vmul.f32 %v12767_v18, %v17340_v59  ;;  %vm2168_vm0 = vcmp.eq.f32.partialorder %v17548_v21, %v17423_v25  ;;  %v17714_v23 = vsel %vm17567_vm6, 1.0, %v23144_v36  ;;  %v2029_v60 = vmul.f32 %v12634_v4, %v17266_v54  ;;  %14222 = vmatpush3.msra.mxu0 %v17224_v57 }
 0x116   :  { %14217 = vmatmul.mubr.f32.vlgmr.msra.gmra.mxu1 %v23232_v35  ;;  %23233 = vst [vmem:[#allocation46_spill] sm:$0xff] %v17714_v23  ;;  %v2581_v15 = vmul.f32 %v12762_v2, %v17340_v59  ;;  %v17721_v13 = vmul.f32 %v12632_v56, %v17266_v54  ;;  %v17726_v53 = vsel %vm17590_vm8, 1.0, %v23144_v36  ;;  %v2711_v47 = vadd.f32 %v2583_v29, %v2031_v52 }
 0x117   :  { %14227 = vmatpush3.msra.mxu1 %v17082_v32  ;;  %23234 = vst [vmem:[#allocation23_spill] sm:$0xff] %v17726_v53  ;;  %v12637_v32 = vsel %vm1616_vm15, 1.0, %v23144_v36  ;;  %vm2163_vm1 = vcmp.eq.f32.partialorder %v17616_v63, %v17423_v25  ;;  %v2716_v27 = vadd.f32 %v2588_v37, %v2036_v38  ;;  %v12765_v26 = vsel %vm2168_vm0, 1.0, %v23144_v36  ;;  %14223 = vmatprep.mubr.f32.mxu0 %v17261_v10  ;;  %v989_v42 = vpop.permute.xlu1 %988 }
 0x118   :  { %14228 = vmatprep.subr.mxu1 %v17144_v3  ;;  %vm1614_vm2 = vcmp.eq.f32.partialorder %v17642_v17, %v17358_v44  ;;  %vm2166_vm3 = vcmp.eq.f32.partialorder %v17642_v17, %v17423_v25  ;;  %v17746_v29 = vand.u32 4294901760, %v2845_v6  ;;  %v2843_v52 = vmul.f32 %v17345_v8, %v2715_v28  ;;  %14230 = vmatprep.mubr.f32.mxu1 %v17261_v10 }
 0x119   :  { %14229 = vmatpush3.msra.mxu1 %v17144_v3  ;;  %v2714_v37 = vadd.f32 %v2586_v55, %v2034_v61  ;;  %v2841_v3 = vmul.f32 %v17378_v11, %v2713_v7  ;;  %v17755_v57 = vsel %vm17627_vm11, 1.0, %v23144_v36  ;;  %14233 = vmatprep.subr.mxu0 %v17196_v24  ;;  %v2032_v21 = vmul.f32 %v12637_v32, %v17266_v54  ;;  %v984_v61 = vpop.permute.xlu0 %983 }
 0x11a   :  { %23235 = vst [vmem:[#allocation48_spill] sm:$0xff] %v17755_v57  ;;  %14240 = vmatprep.subr.mxu1 %v17402_v31  ;;  %v6608_v38 = vand.u32 4294901760, %v17659_v51  ;;  %vm1612_vm5 = vcmp.eq.f32.partialorder %v999_v19, %v17358_v44  ;;  %vm2164_vm6 = vcmp.eq.f32.partialorder %v999_v19, %v17423_v25  ;;  %14224 = vmatmul.mubr.f32.vlgmr.msra.gmra.mxu0 %v17296_v30  ;;  %v12635_v9 = vsel %vm1614_vm2, 1.0, %v23144_v36 }
 0x11b   :  { %14231 = vmatmul.mubr.f32.vlgmr.msra.gmra.mxu1 %v17296_v30  ;;  %v2584_v10 = vmul.f32 %v12765_v26, %v17340_v59  ;;  %v12763_v51 = vsel %vm2166_vm3, 1.0, %v23144_v36  ;;  %v2844_v4 = vmul.f32 %v17702_v0, %v2716_v27  ;;  %14234 = vmatpush3.msra.mxu0 %v17196_v24  ;;  %v17778_v30 = vmul.f32 %v17450_v48, %v2711_v47  ;;  %v979_v27 = vpop.permute.xlu1 %978 }
 0x11c   :  { %14241 = vmatpush3.msra.mxu1 %v17402_v31  ;;  %v6618_v18 = vand.u32 4294901760, %v17679_v41  ;;  %v2709_v2 = vadd.f32 %v2581_v15, %v2029_v60  ;;  %v17782_v14 = vsub.f32 %v2845_v6, %v17746_v29  ;;  %v17784_v28 = vand.u32 4294901760, %v2843_v52  ;;  %1053 = vperm.xlu0 %16126, %v17381_v40  }
 0x11d   :  { %v17786_v17 = vand.u32 4294901760, %v2841_v3  ;;  %1048 = vperm.xlu1 %16125, %v17384_v45   ;;  %v12633_v31 = vsel %vm1612_vm5, 1.0, %v23144_v36  ;;  %v12761_v41 = vsel %vm2164_vm6, 1.0, %v23144_v36  ;;  %v2842_v56 = vmul.f32 %v17363_v50, %v2714_v37  ;;  %14235 = vmatprep.subr.mxu0 %v17226_v20 }
 0x11e   :  { %14242 = vmatprep.subr.mxu1 %v17459_v62  ;;  %v2030_v7 = vmul.f32 %v12635_v9, %v17266_v54  ;;  %v2582_v40 = vmul.f32 %v12763_v51, %v17340_v59  ;;  %v12760_v45 = vsel %vm2163_vm1, 1.0, %v23144_v36  ;;  %14236 = vmatpush3.msra.mxu0 %v17226_v20  ;;  %v2712_v6 = vadd.f32 %v2584_v10, %v2032_v21 }
 0x11f   :  { %14243 = vmatpush3.msra.mxu1 %v17459_v62  ;;  %v17807_v35 = vand.u32 4294901760, %v2844_v4  ;;  %vm1610_vm7 = vcmp.eq.f32.partialorder %v989_v42, %v17358_v44  ;;  %vm2162_vm8 = vcmp.eq.f32.partialorder %v989_v42, %v17423_v25  ;;  %14237 = vmatprep.mubr.f32.mxu0 %v6608_v38  ;;  %v17813_v55 = vmul.f32 %v17488_v22, %v2709_v2  ;;  %v16158_v2 = vld [vmem:[%s22684_s0 + $0x2] sm:$0x1] }
 0x120   :  { %14244 = vmatprep.mubr.f32.mxu1 %v17443_v34  ;;  %v2028_v63 = vmul.f32 %v12633_v31, %v17266_v54  ;;  %v2580_v19 = vmul.f32 %v12761_v41, %v17340_v59  ;;  %v17818_v62 = vand.u32 4294901760, %v17782_v14  ;;  %v17821_v60 = vsub.f32 %v2843_v52, %v17784_v28  ;;  %14247 = vmatprep.subr.mxu0 %v17235_v39 }
 0x121   :  { %v17824_v15 = vsub.f32 %v2841_v3, %v17786_v17  ;;  %14254 = vmatprep.subr.mxu1 %v17196_v24  ;;  %v17829_v32 = vand.u32 4294901760, %v17778_v30  ;;  %v2579_v47 = vmul.f32 %v12760_v45, %v17340_v59  ;;  %14238 = vmatmul.mubr.f32.vlgmr.msra.gmra.mxu0 %v6618_v18  ;;  %v2710_v26 = vadd.f32 %v2582_v40, %v2030_v7 }
 0x122   :  { %23236 = vst [vmem:[#allocation67_spill] sm:$0xff] %v17818_v62  ;;  %14245 = vmatmul.mubr.f32.vlgmr.msra.gmra.mxu1 %v17499_v12  ;;  %v12631_v52 = vsel %vm1610_vm7, 1.0, %v23144_v36  ;;  %v12759_v37 = vsel %vm2162_vm8, 1.0, %v23144_v36  ;;  %vm1609_vm9 = vcmp.eq.f32.partialorder %v984_v61, %v17358_v44  ;;  %v17840_v3 = vand.u32 4294901760, %v2842_v56  ;;  %14248 = vmatpush3.msra.mxu0 %v17235_v39 }
 0x123   :  { %v2840_v21 = vmul.f32 %v17407_v16, %v2712_v6  ;;  %14255 = vmatpush3.msra.mxu1 %v17196_v24  ;;  %v17846_v38 = vsub.f32 %v2844_v4, %v17807_v35  ;;  %vm2161_vm10 = vcmp.eq.f32.partialorder %v984_v61, %v17423_v25  ;;  %v23237_v10 = vmov 3   ;;  %1203 = vperm.xlu1 %16125, %v17478_v33   ;;  %v974_v33 = vpop.permute.xlu0 %973 }
 0x124   :  { %16127 = vset.pattern.permute.xlu0 %v23237_v10  ;;  %v17852_v9 = vand.u32 4294901760, %v17813_v55  ;;  %v2708_v51 = vadd.f32 %v2580_v19, %v2028_v63  ;;  %v7144_v42 = vsub.f32 %v17782_v14, %v17818_v62  ;;  %vm1608_vm4 = vcmp.eq.f32.partialorder %v979_v27, %v17358_v44  ;;  %14249 = vmatprep.subr.mxu0 %v17269_v43  ;;  %v969_v63 = vpop.permute.xlu1 %968  ;;  %v23289_v62 = vld [vmem:[#allocation47_spill] sm:$0xff] }
 0x125   :  { %14256 = vmatprep.subr.mxu1 %v17226_v20  ;;  %v2026_v39 = vmul.f32 %v12631_v52, %v17266_v54  ;;  %v2578_v4 = vmul.f32 %v12759_v37, %v17340_v59  ;;  %v17862_v18 = vand.u32 4294901760, %v17821_v60  ;;  %vm2160_vm11 = vcmp.eq.f32.partialorder %v979_v27, %v17423_v25  ;;  %911 = vperm.xlu0 %16127, %v16158_v2   ;;  %v23243_v52 = vld [vmem:[#allocation26_spill] sm:$0xff] }
 0x126   :  { %14250 = vmatpush3.msra.mxu0 %v17269_v43  ;;  %v2838_v31 = vmul.f32 %v17483_v58, %v2710_v26  ;;  %v2707_v41 = vadd.f32 %v2579_v47, %v17721_v13  ;;  %v12630_v7 = vsel %vm1609_vm9, 1.0, %v23144_v36  ;;  %v12758_v40 = vsel %vm2161_vm10, 1.0, %v23144_v36  ;;  %14257 = vmatpush3.msra.mxu1 %v17226_v20  ;;  %v23242_v26 = vld [vmem:[#allocation61_spill] sm:$0xff] }
 0x127   :  { %23238 = vst [vmem:[#allocation68_spill] sm:$0xff] %v17862_v18  ;;  %v17878_v45 = vsub.f32 %v2842_v56, %v17840_v3  ;;  %v17880_v6 = vand.u32 4294901760, %v2840_v21  ;;  %14251 = vmatprep.mubr.f32.mxu0 %v17507_v5  ;;  %v17885_v43 = vand.u32 4294901760, %v17846_v38  ;;  %v12629_v13 = vsel %vm1608_vm4, 1.0, %v23144_v36  ;;  %14261 = vmatprep.subr.mxu0 %v17294_v46  ;;  %v23241_v56 = vld [vmem:[#allocation33_spill] sm:$0xff] }
 0x128   :  { %v23240_v61 = vand.u32 4294901760, %v17507_v5  ;;  %v17894_v19 = vmul.f32 %v23241_v56, %v2708_v51  ;;  %v12757_v47 = vsel %vm2160_vm11, 1.0, %v23144_v36  ;;  %v23244_v37 = vfloor.f32 %v23243_v52  ;;  %14268 = vmatprep.subr.mxu1 %v17196_v24  ;;  %14252 = vmatmul.mubr.f32.vlgmr.msra.gmra.mxu0 %v17558_v49 }
 0x129   :  { %23239 = vst [vmem:[#allocation69_spill] sm:$0xff] %v17885_v43  ;;  %vm1607_vm13 = vcmp.eq.f32.partialorder %v974_v33, %v17358_v44  ;;  %vm2159_vm14 = vcmp.eq.f32.partialorder %v974_v33, %v17423_v25  ;;  %v7145_v5 = vand.u32 4294901760, %v7144_v42  ;;  %v2706_v51 = vadd.f32 %v2578_v4, %v2026_v39  ;;  %14262 = vmatpush3.msra.mxu0 %v17294_v46  ;;  %v23248_v42 = vld [vmem:[#allocation20_spill] sm:$0xff] }
 0x12a   :  { %14258 = vmatprep.mubr.f32.mxu1 %v23240_v61  ;;  %vm17902_vm12 = vcmp.eq.f32.partialorder %v23244_v37, %v23242_v26  ;;  %v2025_v27 = vmul.f32 %v12630_v7, %v17266_v54  ;;  %v2577_v61 = vmul.f32 %v12758_v40, %v17340_v59  ;;  %v17912_v56 = vand.u32 4294901760, %v2838_v31  ;;  %1198 = vperm.xlu1 %16125, %v23248_v42   ;;  %v23249_v40 = vld [vmem:[#allocation10_spill] sm:$0xff] }
 0x12b   :  { %v23247_v52 = vand.u32 4294901760, %v17558_v49  ;;  %v2024_v37 = vmul.f32 %v12629_v13, %v17266_v54  ;;  %vm1606_vm15 = vcmp.eq.f32.partialorder %v969_v63, %v17358_v44  ;;  %vm2158_vm0 = vcmp.eq.f32.partialorder %v969_v63, %v17423_v25  ;;  %14263 = vmatprep.subr.mxu0 %v23249_v40  ;;  %v23250_v13 = vld [vmem:[#allocation66_spill] sm:$0xff]  ;;  %14265 = vmatprep.mubr.f32.mxu0 %v17443_v34 }
 0x12c   :  { %v7151_v39 = vsub.f32 %v17846_v38, %v17885_v43  ;;  %v2576_v4 = vmul.f32 %v12757_v47, %v17340_v59  ;;  %v12628_v49 = vsel %vm1607_vm13, 1.0, %v23144_v36  ;;  %v12756_v46 = vsel %vm2159_vm14, 1.0, %v23144_v36  ;;  %14264 = vmatpush3.msra.mxu0 %v23249_v40  ;;  %v23287_v43 = vld [vmem:[#allocation25_spill] sm:$0xff] }
 0x12d   :  { %14259 = vmatmul.mubr.f32.vlgmr.msra.gmra.mxu1 %v23247_v52  ;;  %v17932_v7 = vsub.f32 %v2840_v21, %v17880_v6  ;;  %v2835_v47 = vmul.f32 %v23250_v13, %v2707_v41  ;;  %v17942_v52 = vand.u32 4294901760, %v17878_v45  ;;  %v7158_v21 = vsub.f32 %v17821_v60, %v17862_v18  ;;  %14275 = vmatprep.subr.mxu0 %v17746_v29 }
 0x12e   :  { %14269 = vmatpush3.msra.mxu1 %v17196_v24  ;;  %v17936_v24 = vsub.f32 %v17778_v30, %v17829_v32  ;;  %v2705_v33 = vadd.f32 %v2577_v61, %v2025_v27  ;;  %v12627_v30 = vsel %vm1606_vm15, 1.0, %v23144_v36  ;;  %v12755_v42 = vsel %vm2158_vm0, 1.0, %v23144_v36  ;;  %14272 = vmatprep.mubr.f32.mxu1 %v17443_v34 }
 0x12f   :  { %14270 = vmatprep.subr.mxu1 %v17226_v20  ;;  %23251 = vst [vmem:[#allocation61_spill] sm:$0xff] %v17942_v52  ;;  %v17955_v41 = vsub.f32 %v2838_v31, %v17912_v56  ;;  %v2023_v27 = vmul.f32 %v12628_v49, %v17266_v54  ;;  %v2575_v61 = vmul.f32 %v12756_v46, %v17340_v59  ;;  %v17965_v44 = vand.u32 4294901760, %v17894_v19 }
 0x130   :  { %14271 = vmatpush3.msra.mxu1 %v17226_v20  ;;  %v17960_v20 = vand.u32 4294901760, %v17824_v15  ;;  %v7152_v25 = vand.u32 4294901760, %v7151_v39  ;;  %v2834_v31 = vmul.f32 %v17714_v23, %v2706_v51  ;;  %v2704_v63 = vadd.f32 %v2576_v4, %v2024_v37  ;;  %14266 = vmatmul.mubr.f32.vlgmr.msra.gmra.mxu0 %v17499_v12  ;;  %v23254_v37 = vld [vmem:[#allocation52_spill] sm:$0xff] }
 0x131   :  { %14310 = vmatprep.subr.mxu1 %v7145_v5  ;;  %14273 = vmatmul.mubr.f32.vlgmr.msra.gmra.mxu1 %v17499_v12  ;;  %v7165_v34 = vsub.f32 %v17878_v45, %v17942_v52  ;;  %v17974_v49 = vand.u32 4294901760, %v17932_v7  ;;  %v2022_v46 = vmul.f32 %v12627_v30, %v17266_v54  ;;  %v2574_v40 = vmul.f32 %v12755_v42, %v17340_v59  ;;  %v23286_v52 = vld [vmem:[#allocation45_spill] sm:$0xff] }
 0x132   :  { %23252 = vst [vmem:[#allocation26_spill] sm:$0xff] %v17960_v20  ;;  %v17980_v39 = vsub.f32 %v17813_v55, %v17852_v9  ;;  %v17982_v51 = vand.u32 4294901760, %v2835_v47  ;;  %14276 = vmatpush3.msra.mxu0 %v17746_v29  ;;  %14311 = vmatpush3.msra.mxu1 %v7145_v5  ;;  %v2833_v12 = vmul.f32 %v17726_v53, %v2705_v33  ;;  %v23255_v4 = vfloor.f32 %v23254_v37 }
 0x133   :  { %23253 = vst [vmem:[#allocation20_spill] sm:$0xff] %v17974_v49  ;;  %v23258_v54 = vmov 5   ;;  %v7159_v59 = vand.u32 4294901760, %v7158_v21  ;;  %v7172_v55 = vsub.f32 %v17824_v15, %v17960_v20  ;;  %v2703_v30 = vadd.f32 %v2575_v61, %v2023_v27  ;;  %14277 = vmatprep.subr.mxu0 %v17807_v35  ;;  %14312 = vmatprep.subr.mxu1 %v7152_v25  ;;  %v23261_v27 = vld [vmem:[#allocation3_spill] sm:$0xff]  ;;  %v23262_v61 = vld [vmem:[#allocation4_spill] sm:$0xff]  ;;  %v23285_v20 = vld [vmem:[#allocation53_spill] sm:$0xff] }
 0x134   :  { %vm17989_vm1 = vcmp.eq.f32.partialorder %v23255_v4, %v23242_v26  ;;  %16128 = vset.pattern.permute.xlu0 %v23258_v54  ;;  %16129 = vset.pattern.permute.xlu1 %v23258_v54  ;;  %v17998_v5 = vand.u32 4294901760, %v17936_v24  ;;  %v18002_v33 = vsub.f32 %v17894_v19, %v17965_v44  ;;  %v18005_v26 = vand.u32 4294901760, %v2834_v31 }
 0x135   :  { %v2832_v42 = vmul.f32 %v17755_v57, %v2704_v63  ;;  %v18011_v21 = vsel %vm17902_vm12, 1.0, %v23144_v36  ;;  %1999 = vperm.xlu0 %16128, %v23261_v27   ;;  %2551 = vperm.xlu1 %16129, %v23262_v61   ;;  %v7166_v37 = vand.u32 4294901760, %v7165_v34  ;;  %v7179_v19 = vsub.f32 %v17932_v7, %v17974_v49  ;;  %v23284_v49 = vld [vmem:[#allocation31_spill] sm:$0xff] }
 0x136   :  { %23259 = vst [vmem:[#allocation10_spill] sm:$0xff] %v17998_v5  ;;  %23260 = vst [vmem:[#allocation52_spill] sm:$0xff] %v18011_v21  ;;  %v2702_v4 = vadd.f32 %v2574_v40, %v2022_v46  ;;  %v18018_v58 = vand.u32 4294901760, %v17955_v41  ;;  %v18021_v16 = vsub.f32 %v2835_v47, %v17982_v51  ;;  %14278 = vmatpush3.msra.mxu0 %v17807_v35  ;;  %14313 = vmatpush3.msra.mxu1 %v7152_v25 }
 0x137   :  { %v18024_v2 = vand.u32 4294901760, %v2833_v12  ;;  %v18029_v63 = vsel %vm17989_vm1, 1.0, %v23144_v36  ;;  %14279 = vmatprep.subr.mxu0 %v17784_v28  ;;  %14314 = vmatprep.subr.mxu1 %v7159_v59  ;;  %v7173_v34 = vand.u32 4294901760, %v7172_v55  ;;  %v2831_v46 = vmul.f32 %v18011_v21, %v2703_v30 }
 0x138   :  { %23263 = vst [vmem:[#allocation3_spill] sm:$0xff] %v18018_v58  ;;  %23264 = vst [vmem:[#allocation4_spill] sm:$0xff] %v18029_v63  ;;  %v7186_v47 = vsub.f32 %v17936_v24, %v17998_v5  ;;  %v18036_v40 = vand.u32 4294901760, %v17980_v39  ;;  %v18039_v25 = vsub.f32 %v2834_v31, %v18005_v26  ;;  %14280 = vmatpush3.msra.mxu0 %v17784_v28  ;;  %14315 = vmatpush3.msra.mxu1 %v7159_v59  ;;  %v23279_v5 = vld [vmem:[#allocation28_spill] sm:$0xff] }
 0x139   :  { %v18042_v23 = vand.u32 4294901760, %v2832_v42  ;;  %14281 = vmatprep.subr.mxu0 %v17840_v3  ;;  %14316 = vmatprep.subr.mxu1 %v7166_v37  ;;  %v7180_v55 = vand.u32 4294901760, %v7179_v19  ;;  %v2830_v30 = vmul.f32 %v18029_v63, %v2702_v4  ;;  %v7193_v27 = vsub.f32 %v17955_v41, %v18018_v58 }
 0x13a   :  { %23265 = vst [vmem:[#allocation70_spill] sm:$0xff] %v18036_v40  ;;  %v18049_v21 = vand.u32 4294901760, %v18002_v33  ;;  %v18052_v31 = vsub.f32 %v2833_v12, %v18024_v2  ;;  %14282 = vmatpush3.msra.mxu0 %v17840_v3  ;;  %14317 = vmatpush3.msra.mxu1 %v7166_v37  ;;  %v18056_v59 = vand.u32 4294901760, %v2831_v46  ;;  %v7187_v19 = vand.u32 4294901760, %v7186_v47 }
 0x13b   :  { %14283 = vmatprep.subr.mxu0 %v17786_v17  ;;  %14318 = vmatprep.subr.mxu1 %v7173_v34  ;;  %v7200_v4 = vsub.f32 %v17980_v39, %v18036_v40  ;;  %v18061_v63 = vand.u32 4294901760, %v18021_v16  ;;  %v18064_v57 = vsub.f32 %v2832_v42, %v18042_v23  ;;  %v18068_v12 = vand.u32 4294901760, %v2830_v30 }
 0x13c   :  { %23266 = vst [vmem:[#allocation71_spill] sm:$0xff] %v18049_v21  ;;  %14284 = vmatpush3.msra.mxu0 %v17786_v17  ;;  %14319 = vmatpush3.msra.mxu1 %v7173_v34  ;;  %v7194_v37 = vand.u32 4294901760, %v7193_v27  ;;  %v7207_v47 = vsub.f32 %v18002_v33, %v18049_v21  ;;  %v18073_v40 = vand.u32 4294901760, %v18039_v25  ;;  %v18077_v42 = vsub.f32 %v2831_v46, %v18056_v59 }
 0x13d   :  { %23267 = vst [vmem:[#allocation72_spill] sm:$0xff] %v18061_v63  ;;  %14285 = vmatprep.subr.mxu0 %v17880_v6  ;;  %14320 = vmatprep.subr.mxu1 %v7180_v55  ;;  %v7201_v34 = vand.u32 4294901760, %v7200_v4  ;;  %v7214_v58 = vsub.f32 %v18021_v16, %v18061_v63  ;;  %v18083_v27 = vand.u32 4294901760, %v18052_v31  ;;  %v18087_v21 = vsub.f32 %v2830_v30, %v18068_v12 }
 0x13e   :  { %23268 = vst [vmem:[#allocation73_spill] sm:$0xff] %v18073_v40  ;;  %14286 = vmatpush3.msra.mxu0 %v17880_v6  ;;  %14321 = vmatpush3.msra.mxu1 %v7180_v55  ;;  %v7208_v46 = vand.u32 4294901760, %v7207_v47  ;;  %v7221_v55 = vsub.f32 %v18039_v25, %v18073_v40  ;;  %v18093_v4 = vand.u32 4294901760, %v18064_v57  ;;  %v18100_v63 = vand.u32 4294901760, %v18077_v42 }
 0x13f   :  { %14287 = vmatprep.subr.mxu0 %v17829_v32  ;;  %14322 = vmatprep.subr.mxu1 %v7187_v19  ;;  %23269 = vst [vmem:[#allocation74_spill] sm:$0xff] %v18083_v27  ;;  %23270 = vst [vmem:[#allocation75_spill] sm:$0xff] %v18087_v21  ;;  %v7228_v30 = vsub.f32 %v18052_v31, %v18083_v27  ;;  %v18107_v40 = vand.u32 4294901760, %v18087_v21  ;;  %v679_v11 = vmul.f32 %v23279_v5, %v23262_v61 }
 0x140   :  { %14288 = vmatpush3.msra.mxu0 %v17829_v32  ;;  %14323 = vmatpush3.msra.mxu1 %v7187_v19  ;;  %23271 = vst [vmem:[#allocation76_spill] sm:$0xff] %v18093_v4  ;;  %v7215_v19 = vand.u32 4294901760, %v7214_v58  ;;  %23272 = vst [vmem:[#allocation77_spill] sm:$0xff] %v18100_v63  ;;  %v7222_v47 = vand.u32 4294901760, %v7221_v55  ;;  %v678_v53 = vmul.f32 %v23285_v20, %v23262_v61 }
 0x141   :  { %14289 = vmatprep.subr.mxu0 %v17912_v56  ;;  %14324 = vmatprep.subr.mxu1 %v7194_v37  ;;  %23273 = vst [vmem:[#allocation78_spill] sm:$0xff] %v18107_v40  ;;  %v7229_v58 = vand.u32 4294901760, %v7228_v30  ;;  %v23274_v30 = vld [vmem:[#allocation21_spill] sm:$0xff] }
 0x142   :  { %14290 = vmatpush3.msra.mxu0 %v17912_v56  ;;  %14325 = vmatpush3.msra.mxu1 %v7194_v37  ;;  %v7235_v37 = vsub.f32 %v18064_v57, %v18093_v4  ;;  %v7249_v4 = vsub.f32 %v18087_v21, %v18107_v40 }
 0x143   :  { %14291 = vmatprep.subr.mxu0 %v17852_v9  ;;  %14326 = vmatprep.subr.mxu1 %v7201_v34 }
 0x144   :  { %14292 = vmatpush3.msra.mxu0 %v17852_v9  ;;  %14327 = vmatpush3.msra.mxu1 %v7201_v34  ;;  %v7242_v34 = vsub.f32 %v18077_v42, %v18100_v63  ;;  %v7236_v55 = vand.u32 4294901760, %v7235_v37  ;;  %v7250_v37 = vand.u32 4294901760, %v7249_v4  ;;  %v23275_v63 = vld [vmem:[#allocation49_spill] sm:$0xff] }
 0x145   :  { %14293 = vmatprep.subr.mxu0 %v17965_v44  ;;  %14328 = vmatprep.subr.mxu1 %v7208_v46  ;;  %v682_v40 = vmul.f32 %v23275_v63, %v23262_v61 }
 0x146   :  { %14294 = vmatpush3.msra.mxu0 %v17965_v44  ;;  %14329 = vmatpush3.msra.mxu1 %v7208_v46  ;;  %v7243_v46 = vand.u32 4294901760, %v7242_v34  ;;  %v23277_v34 = vld [vmem:[#allocation24_spill] sm:$0xff] }
 0x147   :  { %14295 = vmatprep.subr.mxu0 %v17982_v51  ;;  %14330 = vmatprep.subr.mxu1 %v7215_v19  ;;  %v681_v4 = vmul.f32 %v23277_v34, %v23262_v61  ;;  %v23282_v34 = vld [vmem:[#allocation18_spill] sm:$0xff] }
 0x148   :  { %14296 = vmatpush3.msra.mxu0 %v17982_v51  ;;  %14331 = vmatpush3.msra.mxu1 %v7215_v19  ;;  %v683_v19 = vmul.f32 %v23274_v30, %v23262_v61  ;;  %v23278_v30 = vld [vmem:[#allocation43_spill] sm:$0xff] }
 0x149   :  { %14297 = vmatprep.subr.mxu0 %v18005_v26  ;;  %14332 = vmatprep.subr.mxu1 %v7222_v47  ;;  %v810_v27 = vadd.f32 %v682_v40, %v23278_v30  ;;  %v809_v40 = vadd.f32 %v681_v4, %v23282_v34  ;;  %v806_v4 = vadd.f32 %v678_v53, %v23289_v62  ;;  %v23295_v53 = vld [vmem:[#allocation32_spill] sm:$0xff] }
 0x14a   :  { %14298 = vmatpush3.msra.mxu0 %v18005_v26  ;;  %14333 = vmatpush3.msra.mxu1 %v7222_v47  ;;  %v23276_v47 = vld [vmem:[#allocation15_spill] sm:$0xff] }
 0x14b   :  { %14299 = vmatprep.subr.mxu0 %v18024_v2  ;;  %14334 = vmatprep.subr.mxu1 %v7229_v58 }
 0x14c   :  { %14300 = vmatpush3.msra.mxu0 %v18024_v2  ;;  %14335 = vmatpush3.msra.mxu1 %v7229_v58  ;;  %v811_v58 = vadd.f32 %v683_v19, %v23276_v47  ;;  %v23283_v47 = vld [vmem:[#allocation22_spill] sm:$0xff] }
 0x14d   :  { %14301 = vmatprep.subr.mxu0 %v18042_v23  ;;  %14336 = vmatprep.subr.mxu1 %v7236_v55  ;;  %v807_v5 = vadd.f32 %v679_v11, %v23283_v47  ;;  %v23290_v11 = vld [vmem:[#allocation56_spill] sm:$0xff]  ;;  %v23291_v47 = vld [vmem:[#allocation29_spill] sm:$0xff] }
 0x14e   :  { %14302 = vmatpush3.msra.mxu0 %v18042_v23  ;;  %14337 = vmatpush3.msra.mxu1 %v7236_v55  ;;  %v23280_v55 = vmov 0  }
 0x14f   :  { %14303 = vmatprep.subr.mxu0 %v18056_v59  ;;  %14338 = vmatprep.subr.mxu1 %v7243_v46 }
 0x150   :  { %14304 = vmatpush3.msra.mxu0 %v18056_v59  ;;  %14339 = vmatpush3.msra.mxu1 %v7243_v46  ;;  %v23281_v46 = vld [vmem:[#allocation50_spill] sm:$0xff] }
 0x151   :  { %14305 = vmatprep.subr.mxu0 %v18068_v12  ;;  %14340 = vmatprep.subr.mxu1 %v7250_v37  ;;  %v680_v19 = vmul.f32 %v23281_v46, %v23262_v61  ;;  %v23288_v46 = vld [vmem:[#allocation34_spill] sm:$0xff] }
 0x152   :  { %14306 = vmatpush3.msra.mxu0 %v18068_v12  ;;  %14341 = vmatpush3.msra.mxu1 %v7250_v37  ;;  %v677_v37 = vmul.f32 %v23284_v49, %v23262_v61  ;;  %v676_v49 = vmul.f32 %v23290_v11, %v23262_v61 }
 0x153   :  { %14345 = vmatprep.subr.mxu0 %v17782_v14  ;;  %14380 = vmatprep.subr.mxu1 %v17746_v29  ;;  %v808_v18 = vadd.f32 %v680_v19, %v23286_v52 }
 0x154   :  { %16130 = vset.pattern.permute.xlu1 %v23280_v55  ;;  %16131 = vset.pattern.permute.xlu0 %v23280_v55  ;;  %v805_v13 = vadd.f32 %v677_v37, %v23287_v43 }
 0x155   :  { %1193 = vperm.xlu1 %16130, %v811_v58   ;;  %1188 = vperm.xlu0 %16131, %v810_v27   ;;  %v675_v58 = vmul.f32 %v23288_v46, %v23262_v61  ;;  %v23294_v46 = vld [vmem:[#allocation51_spill] sm:$0xff] }
 0x156   :  { %v804_v52 = vadd.f32 %v676_v49, %v23294_v46  ;;  %v23300_v49 = vld [vmem:[#allocation55_spill] sm:$0xff] }
 0x157   :  { %v803_v34 = vadd.f32 %v675_v58, %v23291_v47  ;;  %v23297_v58 = vld [vmem:[#allocation54_spill] sm:$0xff] }
 0x159   :  { %1183 = vperm.xlu1 %16130, %v809_v40   ;;  %1173 = vperm.xlu0 %16131, %v807_v5   ;;  %v13952_v27 = vpop.f32.mrf.mxu1  ;;  %v23292_v40 = vld [vmem:[#allocation36_spill] sm:$0xff]  ;;  %v23293_v5 = vld [vmem:[#allocation57_spill] sm:$0xff] }
 0x15a   :  { %v673_v20 = vmul.f32 %v23292_v40, %v23262_v61  ;;  %v674_v37 = vmul.f32 %v23293_v5, %v23262_v61  ;;  %v23298_v40 = vld [vmem:[#allocation59_spill] sm:$0xff] }
 0x15b   :  { %v3145_v19 = vpop.f32.mrf.mxu1  ;;  %v672_v22 = vmul.f32 %v23298_v40, %v23262_v61  ;;  %v23299_v5 = vld [vmem:[#allocation35_spill] sm:$0xff] }
 0x15c   :  { %v802_v47 = vadd.f32 %v674_v37, %v23297_v58  ;;  %v23302_v58 = vld [vmem:[#allocation58_spill] sm:$0xff] }
 0x15d   :  { %1178 = vperm.xlu1 %16130, %v808_v18   ;;  %1163 = vperm.xlu0 %16131, %v805_v13   ;;  %v13966_v43 = vpop.f32.mrf.mxu1  ;;  %v801_v18 = vadd.f32 %v673_v20, %v23295_v53  ;;  %v23296_v13 = vld [vmem:[#allocation37_spill] sm:$0xff]  ;;  %v23301_v20 = vld [vmem:[#allocation60_spill] sm:$0xff] }
 0x15e   :  { %v671_v62 = vmul.f32 %v23296_v13, %v23262_v61  ;;  %v670_v13 = vmul.f32 %v23301_v20, %v23262_v61  ;;  %v23317_v20 = vld [vmem:[#allocation62_spill] sm:$0xff] }
 0x15f   :  { %v3309_v11 = vpop.f32.mrf.mxu1 }
 0x160   :  { %v799_v48 = vadd.f32 %v671_v62, %v23299_v5  ;;  %v798_v40 = vadd.f32 %v670_v13, %v23302_v58  ;;  %v23303_v62 = vld [vmem:[#allocation5_spill] sm:$0xff]  ;;  %v23306_v13 = vld [vmem:[#allocation38_spill] sm:$0xff] }
 0x161   :  { %1168 = vperm.xlu1 %16130, %v806_v4   ;;  %1153 = vperm.xlu0 %16131, %v803_v34   ;;  %v13945_v8 = vpop.f32.mrf.mxu0  ;;  %v13980_v4 = vpop.f32.mrf.mxu1  ;;  %v800_v34 = vadd.f32 %v672_v22, %v23300_v49  ;;  %v23304_v5 = vld [vmem:[#allocation41_spill] sm:$0xff] }
 0x162   :  { %v3152_v53 = vadd.f32 %v13952_v27, %v13945_v8  ;;  %v16159_v8 = vld [vmem:[%s22684_s0 + $0x3] sm:$0x1]  ;;  %v698_v27 = vmul.f32 %v23275_v63, %v23303_v62 }
 0x163   :  { %v3054_v21 = vpop.f32.mrf.mxu0  ;;  %v3473_v46 = vpop.f32.mrf.mxu1 }
 0x164   :  { %v3146_v0 = vadd.f32 %v3145_v19, %v3054_v21  ;;  %v18182_v19 = vpop.permute.xlu0 %903 }
 0x165   :  { %1158 = vperm.xlu1 %16130, %v804_v52   ;;  %1143 = vperm.xlu0 %16131, %v801_v18  }
 0x167   :  { %v13959_v52 = vpop.f32.mrf.mxu0  ;;  %v18175_v1 = vpop.f32.mrf.mxu1 }
 0x168   :  { %v3235_v37 = vadd.f32 %v13959_v52, %v3152_v53  ;;  %23305 = vst [vmem:[#allocation79_spill] sm:$0xff] %v18175_v1  ;;  %v23307_v52 = vld [vmem:[#allocation17_spill] sm:$0xff]  ;;  %v18192_v63 = vpop.permute.xlu0 %1995 }
 0x169   :  { %1148 = vperm.xlu1 %16130, %v802_v47   ;;  %1133 = vperm.xlu0 %16131, %v799_v48   ;;  %v3227_v18 = vpop.f32.mrf.mxu0  ;;  %v701_v47 = vmul.f32 %v23304_v5, %v23303_v62 }
 0x16a   :  { %v3228_v48 = vadd.f32 %v3227_v18, %v3146_v0  ;;  %v3318_v22 = vadd.f32 %v13966_v43, %v3235_v37  ;;  %v700_v0 = vmul.f32 %v23307_v52, %v23303_v62  ;;  %v18187_v43 = vpop.f32.mrf.mxu1 }
 0x16c   :  { %v13973_v21 = vpop.f32.mrf.mxu0  ;;  %v3310_v61 = vadd.f32 %v3309_v11, %v3228_v48  ;;  %v23308_v11 = vld [vmem:[#allocation8_spill] sm:$0xff]  ;;  %v826_v48 = vadd.f32 %v698_v27, %v23278_v30 }
 0x16d   :  { %1138 = vperm.xlu1 %16130, %v800_v34   ;;  %16132 = vset.pattern.permute.xlu0 %v23237_v10  ;;  %v3401_v53 = vadd.f32 %v13973_v21, %v3318_v22  ;;  %v829_v34 = vadd.f32 %v701_v47, %v23306_v13  ;;  %v23309_v47 = vld [vmem:[#allocation12_spill] sm:$0xff]  ;;  %v18197_v10 = vpop.f32.mrf.mxu1 }
 0x16e   :  { %919 = vperm.xlu0 %16132, %v16159_v8   ;;  %v3394_v37 = vpop.f32.mrf.mxu0  ;;  %v828_v21 = vadd.f32 %v700_v0, %v23309_v47  ;;  %23310 = vst [vmem:[#allocation8_spill] sm:$0xff] %v18197_v10  ;;  %v23314_v47 = vld [vmem:[#allocation2_spill] sm:$0xff] }
 0x16f   :  { %v3480_v18 = vadd.f32 %v13980_v4, %v3401_v53  ;;  %v3395_v8 = vadd.f32 %v3394_v37, %v3310_v61  ;;  %v18212_v53 = vpop.permute.xlu0 %1108  ;;  %v909_v5 = vrot.slane %v18182_v19, %v23314_v47 }
 0x171   :  { %1128 = vperm.xlu1 %16130, %v798_v40   ;;  %v18194_v22 = vand.u32 4294901760, %v3480_v18  ;;  %v3474_v40 = vadd.f32 %v3473_v46, %v3395_v8 }
 0x172   :  { %16133 = vset.pattern.permute.xlu0 %v23258_v54  ;;  %v18199_v52 = vpop.f32.mrf.mxu0 }
 0x173   :  { %2003 = vperm.xlu0 %16133, %v23308_v11   ;;  %v18202_v13 = vsub.f32 %v3480_v18, %v18194_v22  ;;  %v18204_v4 = vand.u32 4294901760, %v3474_v40 }
 0x174   :  { %v18207_v61 = vpop.f32.mrf.mxu0 }
 0x175   :  { %1283 = vperm.xlu1 %16130, %v829_v34   ;;  %v22891_v27 = vand.u32 4294901760, %v18202_v13  ;;  %v7121_v46 = vsub.f32 %v3474_v40, %v18204_v4  ;;  %14342 = vmatprep.mubr.f32.mxu1 %v18204_v4  ;;  %v18214_v34 = vpop.f32.mrf.mxu1 }
 0x176   :  { %14343 = vmatmul.mubr.f32.vlgmr.msra.gmra.mxu1 %v18194_v22 }
 0x177   :  { %16136 = vset.pattern.permute.xlu0 %v23280_v55  ;;  %v18217_v0 = vpop.f32.mrf.mxu0  ;;  %14381 = vmatpush3.msra.mxu1 %v17746_v29  ;;  %v7122_v37 = vand.u32 4294901760, %v7121_v46  ;;  %v7133_v18 = vsub.f32 %v18202_v13, %v22891_v27  ;;  %v18229_v40 = vpop.f32.mrf.mxu1 }
 0x178   :  { %1268 = vperm.xlu0 %16136, %v826_v48   ;;  %23311 = vst [vmem:[#allocation80_spill] sm:$0xff] %v18217_v0  ;;  %14382 = vmatprep.subr.mxu1 %v17807_v35  ;;  %v18227_v48 = vpop.permute.xlu1 %1123  ;;  %23312 = vst [vmem:[#allocation81_spill] sm:$0xff] %v18229_v40  ;;  %v18236_v27 = vpop.permute.xlu0 %1093 }
 0x179   :  { %1278 = vperm.xlu1 %16130, %v828_v21   ;;  %v18224_v8 = vpop.f32.mrf.mxu0  ;;  %14383 = vmatpush3.msra.mxu1 %v17807_v35  ;;  %v7123_v11 = vsub.f32 %v7121_v46, %v7122_v37  ;;  %v18243_v58 = vpop.f32.mrf.mxu1 }
 0x17a   :  { %14412 = vmatprep.mubr.f32.mxu1 %v7122_v37  ;;  %14384 = vmatprep.subr.mxu1 %v17784_v28  ;;  %v7134_v37 = vand.u32 4294901760, %v7133_v18 }
 0x17b   :  { %v18233_v21 = vpop.f32.mrf.mxu0  ;;  %14385 = vmatpush3.msra.mxu1 %v17784_v28  ;;  %v7124_v30 = vand.u32 4294901760, %v7123_v11 }
 0x17c   :  { %23313 = vst [vmem:[#allocation82_spill] sm:$0xff] %v18233_v21  ;;  %14386 = vmatprep.subr.mxu1 %v17840_v3  ;;  %v1119_v11 = vpop.permute.xlu1 %1118  ;;  %v18257_v19 = vpop.permute.xlu0 %1083 }
 0x17d   :  { %16134 = vset.pattern.permute.xlu1 %v23258_v54  ;;  %14387 = vmatpush3.msra.mxu1 %v17840_v3  ;;  %v18245_v54 = vpop.f32.mrf.mxu0 }
 0x17e   :  { %2555 = vperm.xlu1 %16134, %v23303_v62   ;;  %14307 = vmatprep.mubr.f32.mxu0 %v7124_v30 }
 0x17f   :  { %14388 = vmatprep.subr.mxu1 %v17786_v17  ;;  %14308 = vmatmul.mubr.f32.vlgmr.msra.gmra.mxu0 %v7134_v37  ;;  %v18260_v37 = vadd.f32 %v909_v5, %v23317_v20 }
 0x180   :  { %14346 = vmatpush3.msra.mxu0 %v17782_v14  ;;  %14389 = vmatpush3.msra.mxu1 %v17786_v17  ;;  %v18251_v18 = vpop.f32.mrf.mxu0  ;;  %v18253_v30 = vpop.f32.mrf.mxu1 }
 0x181   :  { %14347 = vmatprep.subr.mxu0 %v17846_v38  ;;  %14377 = vmatprep.mubr.f32.mxu0 %v7121_v46  ;;  %23315 = vst [vmem:[#allocation83_spill] sm:$0xff] %v18251_v18  ;;  %23316 = vst [vmem:[#allocation84_spill] sm:$0xff] %v18253_v30  ;;  %vm1637_vm2 = vcmp.eq.f32.partialorder %v18227_v48, %v18260_v37  ;;  %vm1634_vm3 = vcmp.eq.f32.partialorder %v18212_v53, %v18260_v37 }
 0x182   :  { %14390 = vmatprep.subr.mxu1 %v17880_v6  ;;  %14348 = vmatpush3.msra.mxu0 %v17846_v38  ;;  %v18264_v14 = vpop.f32.mrf.mxu0  ;;  %v18266_v46 = vpop.f32.mrf.mxu1  ;;  %v18275_v38 = vadd.f32 1.0, %v18260_v37  ;;  %vm1631_vm5 = vcmp.eq.f32.partialorder %v18236_v27, %v18260_v37  ;;  %vm1629_vm7 = vcmp.eq.f32.partialorder %v18257_v19, %v18260_v37  ;;  %vm1636_vm8 = vcmp.eq.f32.partialorder %v1119_v11, %v18260_v37 }
 0x183   :  { %14391 = vmatpush3.msra.mxu1 %v17880_v6  ;;  %14349 = vmatprep.subr.mxu0 %v17821_v60  ;;  %23318 = vst [vmem:[#allocation85_spill] sm:$0xff] %v18264_v14  ;;  %23319 = vst [vmem:[#allocation86_spill] sm:$0xff] %v18266_v46  ;;  %v12650_v14 = vsel %vm1629_vm7, 1.0, %v23144_v36 }
 0x184   :  { %14392 = vmatprep.subr.mxu1 %v17829_v32  ;;  %14350 = vmatpush3.msra.mxu0 %v17821_v60  ;;  %v18283_v60 = vpop.permute.xlu1 %2547  ;;  %vm2189_vm6 = vcmp.eq.f32.partialorder %v18227_v48, %v18275_v38  ;;  %vm2188_vm9 = vcmp.eq.f32.partialorder %v1119_v11, %v18275_v38  ;;  %vm2186_vm10 = vcmp.eq.f32.partialorder %v18212_v53, %v18275_v38  ;;  %v12657_v48 = vsel %vm1636_vm8, 1.0, %v23144_v36 }
 0x185   :  { %14393 = vmatpush3.msra.mxu1 %v17829_v32  ;;  %14351 = vmatprep.subr.mxu0 %v17878_v45  ;;  %vm2183_vm4 = vcmp.eq.f32.partialorder %v18236_v27, %v18275_v38  ;;  %vm2181_vm11 = vcmp.eq.f32.partialorder %v18257_v19, %v18275_v38  ;;  %v12783_v20 = vsel %vm2186_vm10, 1.0, %v23144_v36  ;;  %v2045_v53 = vmul.f32 %v12650_v14, %v18192_v63 }
 0x186   :  { %14394 = vmatprep.subr.mxu1 %v17912_v56  ;;  %14352 = vmatpush3.msra.mxu0 %v17878_v45  ;;  %v18279_v5 = vpop.f32.mrf.mxu0  ;;  %v18281_v30 = vpop.f32.mrf.mxu1 }
 0x187   :  { %14395 = vmatpush3.msra.mxu1 %v17912_v56  ;;  %14353 = vmatprep.subr.mxu0 %v17824_v15  ;;  %23320 = vst [vmem:[#allocation87_spill] sm:$0xff] %v18279_v5  ;;  %23321 = vst [vmem:[#allocation88_spill] sm:$0xff] %v18281_v30  ;;  %v1074_v45 = vpop.permute.xlu0 %1073  ;;  %v12658_v30 = vsel %vm1637_vm2, 1.0, %v23144_v36  ;;  %v12655_v5 = vsel %vm1634_vm3, 1.0, %v23144_v36 }
 0x188   :  { %14396 = vmatprep.subr.mxu1 %v17852_v9  ;;  %14354 = vmatpush3.msra.mxu0 %v17824_v15  ;;  %v18289_v18 = vpop.f32.mrf.mxu0  ;;  %v18299_v15 = vpop.f32.mrf.mxu1  ;;  %vm1627_vm12 = vcmp.eq.f32.partialorder %v1074_v45, %v18260_v37  ;;  %vm2179_vm13 = vcmp.eq.f32.partialorder %v1074_v45, %v18275_v38  ;;  %v2053_v14 = vmul.f32 %v12658_v30, %v18192_v63 }
 0x189   :  { %14397 = vmatpush3.msra.mxu1 %v17852_v9  ;;  %14355 = vmatprep.subr.mxu0 %v17932_v7  ;;  %23322 = vst [vmem:[#allocation89_spill] sm:$0xff] %v18289_v18  ;;  %23323 = vst [vmem:[#allocation90_spill] sm:$0xff] %v18299_v15  ;;  %v12652_v15 = vsel %vm1631_vm5, 1.0, %v23144_v36  ;;  %v12648_v27 = vsel %vm1627_vm12, 1.0, %v23144_v36  ;;  %v12776_v19 = vsel %vm2179_vm13, 1.0, %v23144_v36 }
 0x18a   :  { %14398 = vmatprep.subr.mxu1 %v17965_v44  ;;  %14356 = vmatpush3.msra.mxu0 %v17932_v7  ;;  %v18309_v7 = vpop.permute.xlu1 %1113  ;;  %v2047_v11 = vmul.f32 %v12652_v15, %v18192_v63  ;;  %v2043_v62 = vmul.f32 %v12648_v27, %v18192_v63 }
 0x18b   :  { %14399 = vmatpush3.msra.mxu1 %v17965_v44  ;;  %14357 = vmatprep.subr.mxu0 %v17936_v24  ;;  %vm1635_vm0 = vcmp.eq.f32.partialorder %v18309_v7, %v18260_v37  ;;  %vm2187_vm1 = vcmp.eq.f32.partialorder %v18309_v7, %v18275_v38  ;;  %v23328_v7 = vand.u32 4294901760, %v18202_v13 }
 0x18c   :  { %14400 = vmatprep.subr.mxu1 %v17982_v51  ;;  %14358 = vmatpush3.msra.mxu0 %v17936_v24  ;;  %v18323_v18 = vpop.f32.mrf.mxu0  ;;  %v18325_v46 = vpop.f32.mrf.mxu1  ;;  %v12786_v24 = vsel %vm2189_vm6, 1.0, %v23144_v36 }
 0x18d   :  { %14401 = vmatpush3.msra.mxu1 %v17982_v51  ;;  %14359 = vmatprep.subr.mxu0 %v17955_v41  ;;  %23324 = vst [vmem:[#allocation91_spill] sm:$0xff] %v18323_v18  ;;  %23325 = vst [vmem:[#allocation92_spill] sm:$0xff] %v18325_v46  ;;  %v12785_v46 = vsel %vm2188_vm9, 1.0, %v23144_v36  ;;  %v2050_v18 = vmul.f32 %v12655_v5, %v18192_v63  ;;  %v12780_v5 = vsel %vm2183_vm4, 1.0, %v23144_v36 }
 0x18e   :  { %14402 = vmatprep.subr.mxu1 %v18005_v26  ;;  %14360 = vmatpush3.msra.mxu0 %v17955_v41  ;;  %v1064_v41 = vpop.permute.xlu0 %1063  ;;  %v18372_v15 = vpop.f32.mrf.mxu0  ;;  %v2604_v40 = vmul.f32 %v12785_v46, %v18283_v60  ;;  %v2599_v55 = vmul.f32 %v12780_v5, %v18283_v60  ;;  %v2595_v46 = vmul.f32 %v12776_v19, %v18283_v60 }
 0x18f   :  { %14403 = vmatpush3.msra.mxu1 %v18005_v26  ;;  %14361 = vmatprep.subr.mxu0 %v17980_v39  ;;  %vm1625_vm14 = vcmp.eq.f32.partialorder %v1064_v41, %v18260_v37  ;;  %vm2177_vm15 = vcmp.eq.f32.partialorder %v1064_v41, %v18275_v38  ;;  %23326 = vst [vmem:[#allocation93_spill] sm:$0xff] %v18372_v15  ;;  %v18374_v47 = vpop.f32.mrf.mxu1  ;;  %v18376_v49 = vpop.permute.xlu1 %1103 }
 0x190   :  { %14404 = vmatprep.subr.mxu1 %v18024_v2  ;;  %14362 = vmatpush3.msra.mxu0 %v17980_v39  ;;  %v12778_v39 = vsel %vm2181_vm11, 1.0, %v23144_v36  ;;  %23327 = vst [vmem:[#allocation94_spill] sm:$0xff] %v18374_v47  ;;  %v2052_v15 = vmul.f32 %v12657_v48, %v18192_v63  ;;  %v12646_v45 = vsel %vm1625_vm14, 1.0, %v23144_v36  ;;  %v12774_v48 = vsel %vm2177_vm15, 1.0, %v23144_v36 }
 0x191   :  { %14405 = vmatpush3.msra.mxu1 %v18024_v2  ;;  %14363 = vmatprep.subr.mxu0 %v18002_v33  ;;  %v2597_v10 = vmul.f32 %v12778_v39, %v18283_v60  ;;  %v2041_v39 = vmul.f32 %v12646_v45, %v18192_v63  ;;  %v2593_v27 = vmul.f32 %v12774_v48, %v18283_v60 }
 0x192   :  { %14406 = vmatprep.subr.mxu1 %v18042_v23  ;;  %14364 = vmatpush3.msra.mxu0 %v18002_v33  ;;  %v2602_v33 = vmul.f32 %v12783_v20, %v18283_v60  ;;  %v14071_v47 = vpop.f32.mrf.mxu0  ;;  %v14078_v30 = vpop.f32.mrf.mxu1  ;;  %v2605_v20 = vmul.f32 %v12786_v24, %v18283_v60  ;;  %v12656_v24 = vsel %vm1635_vm0, 1.0, %v23144_v36  ;;  %v2732_v1 = vadd.f32 %v2604_v40, %v2052_v15 }
 0x193   :  { %14407 = vmatpush3.msra.mxu1 %v18042_v23  ;;  %14365 = vmatprep.subr.mxu0 %v18021_v16  ;;  %v4676_v21 = vadd.f32 %v14078_v30, %v14071_v47  ;;  %v12784_v47 = vsel %vm2187_vm1, 1.0, %v23144_v36  ;;  %v18425_v30 = vpop.permute.xlu1 %1098  ;;  %v2727_v45 = vadd.f32 %v2599_v55, %v2047_v11  ;;  %v2725_v48 = vadd.f32 %v2597_v10, %v2045_v53  ;;  %v23329_v10 = vld [vmem:[#allocation65_spill] sm:$0xff]  ;;  %v23330_v11 = vld [vmem:[#allocation7_spill] sm:$0xff] }
 0x194   :  { %14408 = vmatprep.subr.mxu1 %v18056_v59  ;;  %14366 = vmatpush3.msra.mxu0 %v18021_v16  ;;  %v4578_v16 = vpop.f32.mrf.mxu0  ;;  %v4669_v0 = vpop.f32.mrf.mxu1  ;;  %v2730_v5 = vadd.f32 %v2602_v33, %v2050_v18  ;;  %v2603_v18 = vmul.f32 %v12784_v47, %v18283_v60  ;;  %v18441_v40 = vadd.f32 %v2593_v27, %v2041_v39  ;;  %v23332_v47 = vld [vmem:[#allocation42_spill] sm:$0xff]  ;;  %v23334_v27 = vld [vmem:[#allocation63_spill] sm:$0xff] }
 0x195   :  { %14409 = vmatpush3.msra.mxu1 %v18056_v59  ;;  %14367 = vmatprep.subr.mxu0 %v18039_v25  ;;  %v4670_v41 = vadd.f32 %v4669_v0, %v4578_v16  ;;  %v2051_v0 = vmul.f32 %v12656_v24, %v18192_v63  ;;  %v2723_v16 = vadd.f32 %v2595_v46, %v2043_v62 }
 0x196   :  { %14410 = vmatprep.subr.mxu1 %v18068_v12  ;;  %14368 = vmatpush3.msra.mxu0 %v18039_v25  ;;  %v2733_v25 = vadd.f32 %v2605_v20, %v2053_v14  ;;  %v18437_v14 = vmul.f32 %v17363_v50, %v2730_v5  ;;  %v2860_v62 = vmul.f32 %v23330_v11, %v2732_v1  ;;  %v23331_v1 = vld [vmem:[#allocation75_spill] sm:$0xff] }
 0x197   :  { %14411 = vmatpush3.msra.mxu1 %v18068_v12  ;;  %14369 = vmatprep.subr.mxu0 %v18052_v31  ;;  %v2731_v20 = vadd.f32 %v2603_v18, %v2051_v0  ;;  %vm1633_vm2 = vcmp.eq.f32.partialorder %v18376_v49, %v18260_v37  ;;  %vm2185_vm3 = vcmp.eq.f32.partialorder %v18376_v49, %v18275_v38  ;;  %v23335_v0 = vld [vmem:[#allocation67_spill] sm:$0xff]  ;;  %v23336_v18 = vld [vmem:[#allocation66_spill] sm:$0xff] }
 0x198   :  { %14413 = vmatmul.mubr.f32.vlgmr.msra.gmra.mxu1 %v23328_v7  ;;  %14450 = vmatprep.subr.mxu1 %v17746_v29  ;;  %v14085_v19 = vpop.f32.mrf.mxu0  ;;  %v14092_v33 = vpop.f32.mrf.mxu1  ;;  %v2861_v55 = vmul.f32 %v23329_v10, %v2733_v25  ;;  %vm1632_vm5 = vcmp.eq.f32.partialorder %v18425_v30, %v18260_v37  ;;  %v18460_v46 = vmul.f32 %v23332_v47, %v2727_v45  ;;  %v12654_v25 = vsel %vm1633_vm2, 1.0, %v23144_v36 }
 0x199   :  { %14370 = vmatpush3.msra.mxu0 %v18052_v31  ;;  %14451 = vmatpush3.msra.mxu1 %v17746_v29  ;;  %v4759_v31 = vadd.f32 %v14085_v19, %v4676_v21  ;;  %v3654_v21 = vadd.f32 %v18187_v43, %v18207_v61  ;;  %vm2184_vm6 = vcmp.eq.f32.partialorder %v18425_v30, %v18275_v38  ;;  %v12653_v49 = vsel %vm1632_vm5, 1.0, %v23144_v36 }
 0x19a   :  { %14482 = vmatprep.mubr.f32.mxu1 %v18204_v4  ;;  %14371 = vmatprep.subr.mxu0 %v18064_v57  ;;  %v4751_v29 = vpop.f32.mrf.mxu0  ;;  %v4833_v15 = vpop.f32.mrf.mxu1  ;;  %v2859_v7 = vmul.f32 %v23334_v27, %v2731_v20  ;;  %v18488_v19 = vmul.f32 %v23336_v18, %v2723_v16  ;;  %v23339_v20 = vld [vmem:[#allocation68_spill] sm:$0xff] }
 0x19b   :  { %14452 = vmatprep.subr.mxu1 %v17807_v35  ;;  %14372 = vmatpush3.msra.mxu0 %v18064_v57  ;;  %v4752_v53 = vadd.f32 %v4751_v29, %v4670_v41  ;;  %v4842_v57 = vadd.f32 %v14092_v33, %v4759_v31  ;;  %v3736_v61 = vadd.f32 %v18224_v8, %v3654_v21  ;;  %v12782_v8 = vsel %vm2185_vm3, 1.0, %v23144_v36 }
 0x19c   :  { %14453 = vmatpush3.msra.mxu1 %v17807_v35  ;;  %14373 = vmatprep.subr.mxu0 %v18077_v42  ;;  %v1089_v35 = vpop.permute.xlu1 %1088  ;;  %v12781_v31 = vsel %vm2184_vm6, 1.0, %v23144_v36  ;;  %v2049_v29 = vmul.f32 %v12654_v25, %v18192_v63  ;;  %v18511_v30 = vand.u32 4294901760, %v2859_v7 }
 0x19d   :  { %14454 = vmatprep.subr.mxu1 %v17784_v28  ;;  %14374 = vmatpush3.msra.mxu0 %v18077_v42  ;;  %v4834_v24 = vadd.f32 %v4833_v15, %v4752_v53  ;;  %v23333_v42 = vld [vmem:[#allocation44_spill] sm:$0xff]  ;;  %vm1630_vm7 = vcmp.eq.f32.partialorder %v1089_v35, %v18260_v37  ;;  %vm2182_vm8 = vcmp.eq.f32.partialorder %v1089_v35, %v18275_v38 }
 0x19e   :  { %14455 = vmatpush3.msra.mxu1 %v17784_v28  ;;  %14375 = vmatprep.subr.mxu0 %v23331_v1  ;;  %v18463_v41 = vmul.f32 %v23333_v42, %v2725_v48  ;;  %v14099_v43 = vpop.f32.mrf.mxu0  ;;  %v18472_v28 = vand.u32 4294901760, %v2861_v55  ;;  %v14106_v39 = vpop.f32.mrf.mxu1  ;;  %v3818_v16 = vadd.f32 %v18214_v34, %v3736_v61  ;;  %v2601_v15 = vmul.f32 %v12782_v8, %v18283_v60  ;;  %v23341_v61 = vld [vmem:[#allocation61_spill] sm:$0xff] }
 0x19f   :  { %14456 = vmatprep.subr.mxu1 %v17840_v3  ;;  %14376 = vmatpush3.msra.mxu0 %v23331_v1  ;;  %v4925_v5 = vadd.f32 %v14099_v43, %v4842_v57  ;;  %v2600_v43 = vmul.f32 %v12781_v31, %v18283_v60  ;;  %v18555_v31 = vand.u32 4294901760, %v18460_v46 }
 0x1a0   :  { %14457 = vmatpush3.msra.mxu1 %v17840_v3  ;;  %14378 = vmatmul.mubr.f32.vlgmr.msra.gmra.mxu0 %v18202_v13  ;;  %v18485_v3 = vand.u32 4294901760, %v2860_v62  ;;  %v4918_v13 = vpop.f32.mrf.mxu0  ;;  %v4997_v48 = vpop.f32.mrf.mxu1  ;;  %v3903_v35 = vadd.f32 %v18245_v54, %v3818_v16  ;;  %v2729_v8 = vadd.f32 %v2601_v15, %v2049_v29  ;;  %v18552_v54 = vsub.f32 %v2859_v7, %v18511_v30  ;;  %v23344_v15 = vld [vmem:[#allocation20_spill] sm:$0xff] }
 0x1a1   :  { %14415 = vmatprep.subr.mxu0 %v23335_v0  ;;  %14458 = vmatprep.subr.mxu1 %v17786_v17  ;;  %v4919_v33 = vadd.f32 %v4918_v13, %v4834_v24  ;;  %v18492_v45 = vadd.f32 %v14106_v39, %v4925_v5  ;;  %v1079_v53 = vpop.permute.xlu1 %1078  ;;  %v2048_v24 = vmul.f32 %v12653_v49, %v18192_v63  ;;  %v23343_v49 = vld [vmem:[#allocation26_spill] sm:$0xff]  ;;  %v18570_v7 = vand.u32 4294901760, %v18463_v41 }
 0x1a2   :  { %14416 = vmatpush3.msra.mxu0 %v23335_v0  ;;  %14447 = vmatprep.mubr.f32.mxu0 %v18204_v4  ;;  %v23338_v4 = vld [vmem:[#allocation69_spill] sm:$0xff]  ;;  %v18519_v34 = vsub.f32 %v2860_v62, %v18485_v3  ;;  %v18534_v62 = vand.u32 4294901760, %v18437_v14  ;;  %vm1628_vm9 = vcmp.eq.f32.partialorder %v1079_v53, %v18260_v37  ;;  %vm2180_vm10 = vcmp.eq.f32.partialorder %v1079_v53, %v18275_v38 }
 0x1a3   :  { %23337 = vst [vmem:[#allocation75_spill] sm:$0xff] %v18492_v45  ;;  %14459 = vmatpush3.msra.mxu1 %v17786_v17  ;;  %14417 = vmatprep.subr.mxu0 %v23338_v4  ;;  %v18516_v17 = vsub.f32 %v2861_v55, %v18472_v28  ;;  %v18521_v57 = vadd.f32 %v4997_v48, %v4919_v33  ;;  %v12779_v55 = vsel %vm2182_vm8, 1.0, %v23144_v36  ;;  %v23342_v48 = vld [vmem:[#allocation23_spill] sm:$0xff]  ;;  %v12777_v16 = vsel %vm2180_vm10, 1.0, %v23144_v36 }
 0x1a4   :  { %14460 = vmatprep.subr.mxu1 %v17880_v6  ;;  %14418 = vmatpush3.msra.mxu0 %v23338_v4  ;;  %v14113_v21 = vpop.f32.mrf.mxu0  ;;  %v14120_v1 = vpop.f32.mrf.mxu1  ;;  %v2598_v33 = vmul.f32 %v12779_v55, %v18283_v60  ;;  %v12649_v4 = vsel %vm1628_vm9, 1.0, %v23144_v36 }
 0x1a5   :  { %14461 = vmatpush3.msra.mxu1 %v17880_v6  ;;  %14419 = vmatprep.subr.mxu0 %v23339_v20  ;;  %23340 = vst [vmem:[#allocation67_spill] sm:$0xff] %v18521_v57  ;;  %v12651_v6 = vsel %vm1630_vm7, 1.0, %v23144_v36  ;;  %v5184_v39 = vadd.f32 %v14120_v1, %v14113_v21  ;;  %v1069_v29 = vpop.permute.xlu1 %1068  ;;  %v18575_v53 = vand.u32 4294901760, %v18516_v17  ;;  %v3982_v21 = vadd.f32 %v18243_v58, %v3903_v35  ;;  %v23345_v1 = vld [vmem:[#allocation40_spill] sm:$0xff] }
 0x1a6   :  { %14462 = vmatprep.subr.mxu1 %v17829_v32  ;;  %14420 = vmatpush3.msra.mxu0 %v23339_v20  ;;  %v5086_v5 = vpop.f32.mrf.mxu0  ;;  %v5177_v25 = vpop.f32.mrf.mxu1  ;;  %v2046_v13 = vmul.f32 %v12651_v6, %v18192_v63  ;;  %v2857_v6 = vmul.f32 %v23345_v1, %v2729_v8  ;;  %v2044_v55 = vmul.f32 %v12649_v4, %v18192_v63  ;;  %v18593_v58 = vand.u32 4294901760, %v18552_v54  ;;  %v23347_v8 = vld [vmem:[#allocation13_spill] sm:$0xff] }
 0x1a7   :  { %14463 = vmatpush3.msra.mxu1 %v17829_v32  ;;  %14421 = vmatprep.subr.mxu0 %v23341_v61  ;;  %v5178_v0 = vadd.f32 %v5177_v25, %v5086_v5  ;;  %v18547_v32 = vmul.f32 %v23342_v48, %v18441_v40  ;;  %v2728_v40 = vadd.f32 %v2600_v43, %v2048_v24  ;;  %v23346_v5 = vld [vmem:[#allocation10_spill] sm:$0xff] }
 0x1a8   :  { %14464 = vmatprep.subr.mxu1 %v17912_v56  ;;  %14422 = vmatpush3.msra.mxu0 %v23341_v61  ;;  %v2596_v61 = vmul.f32 %v12777_v16, %v18283_v60  ;;  %vm1626_vm4 = vcmp.eq.f32.partialorder %v1069_v29, %v18260_v37  ;;  %vm2178_vm11 = vcmp.eq.f32.partialorder %v1069_v29, %v18275_v38  ;;  %v18605_v16 = vand.u32 4294901760, %v2857_v6 }
 0x1a9   :  { %14465 = vmatpush3.msra.mxu1 %v17912_v56  ;;  %14423 = vmatprep.subr.mxu0 %v23343_v49  ;;  %v18567_v56 = vsub.f32 %v18437_v14, %v18534_v62  ;;  %v18582_v14 = vand.u32 4294901760, %v18519_v34 }
 0x1aa   :  { %14466 = vmatprep.subr.mxu1 %v17852_v9  ;;  %14424 = vmatpush3.msra.mxu0 %v23343_v49  ;;  %v14127_v20 = vpop.f32.mrf.mxu0  ;;  %v23348_v49 = vld [vmem:[#allocation3_spill] sm:$0xff] }
 0x1ab   :  { %14467 = vmatpush3.msra.mxu1 %v17852_v9  ;;  %14425 = vmatprep.subr.mxu0 %v23344_v15  ;;  %v5267_v24 = vadd.f32 %v14127_v20, %v5184_v39  ;;  %v14134_v43 = vpop.f32.mrf.mxu1  ;;  %v2726_v9 = vadd.f32 %v2598_v33, %v2046_v13  ;;  %v2856_v13 = vmul.f32 %v23347_v8, %v2728_v40  ;;  %v18601_v33 = vand.u32 4294901760, %v18488_v19  ;;  %v1059_v20 = vpop.permute.xlu1 %1058 }
 0x1ac   :  { %14468 = vmatprep.subr.mxu1 %v17965_v44  ;;  %14426 = vmatpush3.msra.mxu0 %v23344_v15  ;;  %v5259_v39 = vpop.f32.mrf.mxu0  ;;  %v18609_v15 = vsub.f32 %v18463_v41, %v18570_v7  ;;  %v12775_v41 = vsel %vm2178_vm11, 1.0, %v23144_v36  ;;  %v18633_v45 = vand.u32 4294901760, %v18567_v56  ;;  %vm1624_vm12 = vcmp.eq.f32.partialorder %v1059_v20, %v18260_v37 }
 0x1ad   :  { %14469 = vmatpush3.msra.mxu1 %v17965_v44  ;;  %14427 = vmatprep.subr.mxu0 %v23346_v5  ;;  %v5350_v25 = vadd.f32 %v14134_v43, %v5267_v24  ;;  %v5341_v35 = vpop.f32.mrf.mxu1  ;;  %v18598_v44 = vsub.f32 %v18460_v46, %v18555_v31  ;;  %v5260_v4 = vadd.f32 %v5259_v39, %v5178_v0  ;;  %v12647_v0 = vsel %vm1626_vm4, 1.0, %v23144_v36  ;;  %v23349_v24 = vld [vmem:[#allocation70_spill] sm:$0xff] }
 0x1ae   :  { %14470 = vmatprep.subr.mxu1 %v17982_v51  ;;  %14428 = vmatpush3.msra.mxu0 %v23346_v5  ;;  %v7828_v46 = vsub.f32 %v18516_v17, %v18575_v53  ;;  %v23350_v5 = vld [vmem:[#allocation16_spill] sm:$0xff]  ;;  %23351 = vst [vmem:[#allocation69_spill] sm:$0xff] %v18633_v45  ;;  %v18635_v48 = vand.u32 4294901760, %v2856_v13  ;;  %vm2176_vm13 = vcmp.eq.f32.partialorder %v1059_v20, %v18275_v38  ;;  %v23357_v20 = vld [vmem:[#allocation73_spill] sm:$0xff] }
 0x1af   :  { %14471 = vmatpush3.msra.mxu1 %v17982_v51  ;;  %14429 = vmatprep.subr.mxu0 %v23348_v49  ;;  %v18617_v51 = vand.u32 4294901760, %v3982_v21  ;;  %v5342_v43 = vadd.f32 %v5341_v35, %v5260_v4  ;;  %v2854_v39 = vmul.f32 %v23350_v5, %v2726_v9  ;;  %v2594_v35 = vmul.f32 %v12775_v41, %v18283_v60 }
 0x1b0   :  { %14472 = vmatprep.subr.mxu1 %v18005_v26  ;;  %14430 = vmatpush3.msra.mxu0 %v23348_v49  ;;  %v2724_v49 = vadd.f32 %v2596_v61, %v2044_v55  ;;  %v18642_v55 = vsub.f32 %v2857_v6, %v18605_v16  ;;  %v2042_v61 = vmul.f32 %v12647_v0, %v18192_v63  ;;  %v18649_v4 = vand.u32 4294901760, %v18598_v44  ;;  %v23354_v6 = vld [vmem:[#allocation72_spill] sm:$0xff] }
 0x1b1   :  { %14473 = vmatpush3.msra.mxu1 %v18005_v26  ;;  %14431 = vmatprep.subr.mxu0 %v23349_v24  ;;  %v14141_v29 = vpop.f32.mrf.mxu0  ;;  %v14148_v57 = vpop.f32.mrf.mxu1  ;;  %v23352_v26 = vld [vmem:[#allocation71_spill] sm:$0xff]  ;;  %v7829_v0 = vand.u32 4294901760, %v7828_v46  ;;  %v12773_v18 = vsel %vm2176_vm13, 1.0, %v23144_v36 }
 0x1b2   :  { %14474 = vmatprep.subr.mxu1 %v18024_v2  ;;  %14432 = vmatpush3.msra.mxu0 %v23349_v24  ;;  %v5433_v9 = vadd.f32 %v14141_v29, %v5350_v25  ;;  %23353 = vst [vmem:[#allocation68_spill] sm:$0xff] %v18649_v4  ;;  %v1054_v25 = vpop.permute.xlu0 %1053 }
 0x1b3   :  { %14475 = vmatpush3.msra.mxu1 %v18024_v2  ;;  %14433 = vmatprep.subr.mxu0 %v23352_v26  ;;  %v5426_v24 = vpop.f32.mrf.mxu0  ;;  %v5505_v40 = vpop.f32.mrf.mxu1  ;;  %v18652_v2 = vsub.f32 %v3982_v21, %v18617_v51  ;;  %vm1623_vm14 = vcmp.eq.f32.partialorder %v1054_v25, %v18260_v37  ;;  %vm2175_vm15 = vcmp.eq.f32.partialorder %v1054_v25, %v18275_v38  ;;  %v23356_v21 = vld [vmem:[#allocation33_spill] sm:$0xff] }
 0x1b4   :  { %14476 = vmatprep.subr.mxu1 %v18042_v23  ;;  %14434 = vmatpush3.msra.mxu0 %v23352_v26  ;;  %v5427_v29 = vadd.f32 %v5426_v24, %v5342_v43  ;;  %v18656_v41 = vadd.f32 %v14148_v57, %v5433_v9  ;;  %v12645_v26 = vsel %vm1624_vm12, 1.0, %v23144_v36  ;;  %v18671_v57 = vand.u32 4294901760, %v2854_v39  ;;  %v1049_v43 = vpop.permute.xlu1 %1048 }
 0x1b5   :  { %14477 = vmatpush3.msra.mxu1 %v18042_v23  ;;  %14435 = vmatprep.subr.mxu0 %v23354_v6  ;;  %v18669_v23 = vsub.f32 %v2856_v13, %v18635_v48  ;;  %v2852_v46 = vmul.f32 %v23356_v21, %v2724_v49  ;;  %v2722_v24 = vadd.f32 %v2594_v35, %v2042_v61  ;;  %v18683_v13 = vand.u32 4294901760, %v18642_v55  ;;  %v23360_v35 = vld [vmem:[#allocation74_spill] sm:$0xff] }
 0x1b6   :  { %23355 = vst [vmem:[#allocation61_spill] sm:$0xff] %v18656_v41  ;;  %14478 = vmatprep.subr.mxu1 %v18056_v59  ;;  %14436 = vmatpush3.msra.mxu0 %v23354_v6  ;;  %v18676_v9 = vadd.f32 %v5505_v40, %v5427_v29  ;;  %vm1622_vm0 = vcmp.eq.f32.partialorder %v1049_v43, %v18260_v37  ;;  %v12644_v40 = vsel %vm1623_vm14, 1.0, %v23144_v36  ;;  %v12772_v61 = vsel %vm2175_vm15, 1.0, %v23144_v36  ;;  %v23363_v37 = vld [vmem:[#allocation76_spill] sm:$0xff] }
 0x1b7   :  { %14479 = vmatpush3.msra.mxu1 %v18056_v59  ;;  %14437 = vmatprep.subr.mxu0 %v23357_v20  ;;  %vm2174_vm1 = vcmp.eq.f32.partialorder %v1049_v43, %v18275_v38  ;;  %23359 = vst [vmem:[#allocation20_spill] sm:$0xff] %v18683_v13  ;;  %v14155_v49 = vpop.f32.mrf.mxu0  ;;  %v2040_v6 = vmul.f32 %v12645_v26, %v18192_v63  ;;  %v23364_v43 = vld [vmem:[#allocation46_spill] sm:$0xff] }
 0x1b8   :  { %23358 = vst [vmem:[#allocation26_spill] sm:$0xff] %v18676_v9  ;;  %14480 = vmatprep.subr.mxu1 %v18068_v12  ;;  %14438 = vmatpush3.msra.mxu0 %v23357_v20  ;;  %v2592_v59 = vmul.f32 %v12773_v18, %v18283_v60  ;;  %v14162_v29 = vpop.f32.mrf.mxu1  ;;  %v23361_v26 = vsub.f32 %v18519_v34, %v18582_v14  ;;  %v12771_v21 = vsel %vm2174_vm1, 1.0, %v23144_v36 }
 0x1b9   :  { %14481 = vmatpush3.msra.mxu1 %v18068_v12  ;;  %14439 = vmatprep.subr.mxu0 %v23360_v35  ;;  %v7849_v20 = vsub.f32 %v18567_v56, %v18633_v45  ;;  %v5692_v9 = vadd.f32 %v14162_v29, %v14155_v49  ;;  %v18703_v25 = vsub.f32 %v2854_v39, %v18671_v57  ;;  %v12643_v12 = vsel %vm1622_vm0, 1.0, %v23144_v36  ;;  %v5594_v42 = vpop.f32.mrf.mxu0 }
 0x1ba   :  { %14483 = vmatmul.mubr.f32.vlgmr.msra.gmra.mxu1 %v18194_v22  ;;  %14520 = vmatprep.subr.mxu1 %v7829_v0  ;;  %v7836_v18 = vand.u32 4294901760, %v23361_v26  ;;  %v18713_v26 = vand.u32 4294901760, %v18669_v23  ;;  %v5685_v41 = vpop.f32.mrf.mxu1  ;;  %v18715_v49 = vand.u32 4294901760, %v2852_v46  ;;  %v2039_v39 = vmul.f32 %v12644_v40, %v18192_v63 }
 0x1bb   :  { %14440 = vmatpush3.msra.mxu0 %v23360_v35  ;;  %14521 = vmatpush3.msra.mxu1 %v7829_v0  ;;  %v2591_v29 = vmul.f32 %v12772_v61, %v18283_v60  ;;  %v5686_v38 = vadd.f32 %v5685_v41, %v5594_v42  ;;  %v2850_v5 = vmul.f32 %v23364_v43, %v2722_v24  ;;  %v18729_v61 = vand.u32 4294901760, %v18547_v32  ;;  %v23366_v41 = vld [vmem:[#allocation77_spill] sm:$0xff]  ;;  %v23371_v43 = vld [vmem:[#allocation48_spill] sm:$0xff] }
 0x1bc   :  { %23362 = vst [vmem:[#allocation10_spill] sm:$0xff] %v18713_v26  ;;  %14552 = vmatprep.mubr.f32.mxu1 %v18617_v51  ;;  %14441 = vmatprep.subr.mxu0 %v23363_v37  ;;  %v2720_v35 = vadd.f32 %v2592_v59, %v2040_v6  ;;  %v23365_v0 = vsub.f32 %v18552_v54, %v18593_v58  ;;  %v23367_v24 = vand.u32 4294901760, %v18652_v2 }
 0x1bd   :  { %14522 = vmatprep.subr.mxu1 %v7836_v18  ;;  %14442 = vmatpush3.msra.mxu0 %v23363_v37  ;;  %v7856_v40 = vsub.f32 %v18642_v55, %v18683_v13  ;;  %v2038_v8 = vmul.f32 %v12643_v12, %v18192_v63  ;;  %v2590_v42 = vmul.f32 %v12771_v21, %v18283_v60  ;;  %v7850_v37 = vand.u32 4294901760, %v7849_v20 }
 0x1be   :  { %v7843_v47 = vand.u32 4294901760, %v23365_v0  ;;  %14523 = vmatpush3.msra.mxu1 %v7836_v18  ;;  %14443 = vmatprep.subr.mxu0 %v23366_v41  ;;  %v7807_v6 = vsub.f32 %v18652_v2, %v23367_v24  ;;  %v18739_v59 = vsub.f32 %v18488_v19, %v18601_v33  ;;  %v7863_v63 = vsub.f32 %v18669_v23, %v18713_v26  ;;  %v14169_v21 = vpop.f32.mrf.mxu0  ;;  %v14176_v18 = vpop.f32.mrf.mxu1  ;;  %v23369_v24 = vld [vmem:[#allocation78_spill] sm:$0xff] }
 0x1bf   :  { %14444 = vmatpush3.msra.mxu0 %v23366_v41  ;;  %v18745_v60 = vand.u32 4294901760, %v18703_v25  ;;  %v18748_v12 = vsub.f32 %v2852_v46, %v18715_v49  ;;  %v2719_v0 = vadd.f32 %v2591_v29, %v2039_v39  ;;  %v18752_v19 = vand.u32 4294901760, %v18609_v15 }
 0x1c0   :  { %14524 = vmatprep.subr.mxu1 %v7843_v47  ;;  %14445 = vmatprep.subr.mxu0 %v23369_v24  ;;  %v5775_v41 = vadd.f32 %v14169_v21, %v5692_v9  ;;  %v18754_v20 = vand.u32 4294901760, %v2850_v5  ;;  %v2848_v26 = vmul.f32 %v23371_v43, %v2720_v35  ;;  %v7857_v1 = vand.u32 4294901760, %v7856_v40  ;;  %v5767_v13 = vpop.f32.mrf.mxu0  ;;  %v5849_v39 = vpop.f32.mrf.mxu1  ;;  %v23372_v40 = vld [vmem:[#allocation52_spill] sm:$0xff] }
 0x1c1   :  { %23368 = vst [vmem:[#allocation3_spill] sm:$0xff] %v18745_v60  ;;  %14525 = vmatpush3.msra.mxu1 %v7843_v47  ;;  %23370 = vst [vmem:[#allocation70_spill] sm:$0xff] %v18752_v19  ;;  %14446 = vmatpush3.msra.mxu0 %v23369_v24  ;;  %v7870_v46 = vsub.f32 %v18598_v44, %v18649_v4  ;;  %v2718_v47 = vadd.f32 %v2590_v42, %v2038_v8  ;;  %v7808_v29 = vand.u32 4294901760, %v7807_v6 }
 0x1c2   :  { %14526 = vmatprep.subr.mxu1 %v7850_v37  ;;  %14448 = vmatmul.mubr.f32.vlgmr.msra.gmra.mxu0 %v18194_v22  ;;  %v5768_v50 = vadd.f32 %v5767_v13, %v5686_v38  ;;  %v5858_v9 = vadd.f32 %v14176_v18, %v5775_v41  ;;  %v18763_v21 = vsub.f32 %v18547_v32, %v18729_v61  ;;  %v7864_v8 = vand.u32 4294901760, %v7863_v63  ;;  %v23374_v38 = vld [vmem:[#allocation79_spill] sm:$0xff]  ;;  %v23376_v63 = vld [vmem:[#allocation4_spill] sm:$0xff] }
 0x1c3   :  { %14527 = vmatpush3.msra.mxu1 %v7850_v37  ;;  %14485 = vmatprep.subr.mxu0 %v18472_v28  ;;  %v7877_v35 = vsub.f32 %v18703_v25, %v18745_v60  ;;  %v2847_v24 = vmul.f32 %v23372_v40, %v2719_v0  ;;  %v18771_v22 = vand.u32 4294901760, %v18748_v12  ;;  %v3660_v32 = vadd.f32 %v23374_v38, %v18199_v52  ;;  %v23378_v38 = vld [vmem:[#allocation5_spill] sm:$0xff] }
 0x1c4   :  { %14528 = vmatprep.subr.mxu1 %v7857_v1  ;;  %14486 = vmatpush3.msra.mxu0 %v18472_v28  ;;  %v5850_v13 = vadd.f32 %v5849_v39, %v5768_v50  ;;  %v18776_v42 = vsub.f32 %v2850_v5, %v18754_v20  ;;  %v18778_v6 = vand.u32 4294901760, %v2848_v26  ;;  %v18782_v37 = vand.u32 4294901760, %v18739_v59  ;;  %v14183_v18 = vpop.f32.mrf.mxu0  ;;  %v23377_v39 = vld [vmem:[#allocation80_spill] sm:$0xff]  ;;  %v23379_v40 = vld [vmem:[#allocation21_spill] sm:$0xff] }
 0x1c5   :  { %14517 = vmatprep.mubr.f32.mxu0 %v7808_v29  ;;  %23373 = vst [vmem:[#allocation71_spill] sm:$0xff] %v18771_v22  ;;  %14529 = vmatpush3.msra.mxu1 %v7857_v1  ;;  %v2846_v0 = vmul.f32 %v23376_v63, %v2718_v47  ;;  %v7871_v50 = vand.u32 4294901760, %v7870_v46  ;;  %v7884_v52 = vsub.f32 %v18609_v15, %v18752_v19  ;;  %v14190_v41 = vpop.f32.mrf.mxu1  ;;  %v7878_v1 = vand.u32 4294901760, %v7877_v35 }
 0x1c6   :  { %14487 = vmatprep.subr.mxu0 %v18485_v3  ;;  %23375 = vst [vmem:[#allocation72_spill] sm:$0xff] %v18782_v37  ;;  %14530 = vmatprep.subr.mxu1 %v7864_v8  ;;  %v5941_v5 = vadd.f32 %v14183_v18, %v5858_v9  ;;  %v3743_v29 = vadd.f32 %v23377_v39, %v3660_v32  ;;  %v5934_v60 = vpop.f32.mrf.mxu0  ;;  %v18792_v47 = vand.u32 4294901760, %v2847_v24  ;;  %v18804_v35 = vand.u32 4294901760, %v18776_v42 }
 0x1c7   :  { %14488 = vmatpush3.msra.mxu0 %v18485_v3  ;;  %14531 = vmatpush3.msra.mxu1 %v7864_v8  ;;  %v699_v43 = vmul.f32 %v23379_v40, %v23378_v38  ;;  %v7891_v46 = vsub.f32 %v18748_v12, %v18771_v22  ;;  %v5935_v9 = vadd.f32 %v5934_v60, %v5850_v13  ;;  %v6013_v32 = vpop.f32.mrf.mxu1  ;;  %v18807_v39 = vand.u32 4294901760, %v18763_v21  ;;  %v23386_v40 = vld [vmem:[#allocation24_spill] sm:$0xff] }
 0x1c8   :  { %14489 = vmatprep.subr.mxu0 %v18511_v30  ;;  %14532 = vmatprep.subr.mxu1 %v7871_v50  ;;  %v18797_v18 = vadd.f32 %v14190_v41, %v5941_v5  ;;  %v18800_v8 = vsub.f32 %v2848_v26, %v18778_v6  ;;  %23381 = vst [vmem:[#allocation74_spill] sm:$0xff] %v18804_v35  ;;  %v18809_v63 = vand.u32 4294901760, %v2846_v0  ;;  %v7885_v60 = vand.u32 4294901760, %v7884_v52  ;;  %v23385_v41 = vld [vmem:[#allocation15_spill] sm:$0xff] }
 0x1c9   :  { %14490 = vmatpush3.msra.mxu0 %v18511_v30  ;;  %14533 = vmatpush3.msra.mxu1 %v7871_v50  ;;  %23382 = vst [vmem:[#allocation76_spill] sm:$0xff] %v18807_v39  ;;  %v7898_v13 = vsub.f32 %v18739_v59, %v18782_v37  ;;  %v18814_v26 = vadd.f32 %v6013_v32, %v5935_v9  ;;  %v23384_v50 = vld [vmem:[#allocation8_spill] sm:$0xff]  ;;  %v7892_v52 = vand.u32 4294901760, %v7891_v46  ;;  %v23387_v32 = vmov 0  }
 0x1ca   :  { %23380 = vst [vmem:[#allocation73_spill] sm:$0xff] %v18797_v18  ;;  %14491 = vmatprep.subr.mxu0 %v18534_v62  ;;  %14534 = vmatprep.subr.mxu1 %v7878_v1  ;;  %v3826_v5 = vadd.f32 %v23384_v50, %v3743_v29  ;;  %v827_v18 = vadd.f32 %v699_v43, %v23385_v41  ;;  %v18829_v43 = vand.u32 4294901760, %v18800_v8  ;;  %v23390_v41 = vld [vmem:[#allocation18_spill] sm:$0xff] }
 0x1cb   :  { %14492 = vmatpush3.msra.mxu0 %v18534_v62  ;;  %23383 = vst [vmem:[#allocation77_spill] sm:$0xff] %v18814_v26  ;;  %14535 = vmatpush3.msra.mxu1 %v7878_v1  ;;  %v697_v22 = vmul.f32 %v23386_v40, %v23378_v38  ;;  %v18822_v19 = vsub.f32 %v2847_v24, %v18792_v47  ;;  %v14197_v37 = vpop.f32.mrf.mxu0  ;;  %v23389_v26 = vld [vmem:[#allocation82_spill] sm:$0xff]  ;;  %v7899_v40 = vand.u32 4294901760, %v7898_v13 }
 0x1cc   :  { %14493 = vmatprep.subr.mxu0 %v18605_v16  ;;  %14536 = vmatprep.subr.mxu1 %v7885_v60  ;;  %v14204_v9 = vpop.f32.mrf.mxu1  ;;  %v7905_v29 = vsub.f32 %v18776_v42, %v18804_v35  ;;  %23388 = vst [vmem:[#allocation78_spill] sm:$0xff] %v18829_v43  ;;  %v18832_v50 = vsub.f32 %v2846_v0, %v18809_v63  ;;  %v23391_v0 = vld [vmem:[#allocation50_spill] sm:$0xff] }
 0x1cd   :  { %14494 = vmatpush3.msra.mxu0 %v18605_v16  ;;  %14537 = vmatpush3.msra.mxu1 %v7885_v60  ;;  %v6200_v1 = vadd.f32 %v14204_v9, %v14197_v37  ;;  %v7912_v24 = vsub.f32 %v18763_v21, %v18807_v39  ;;  %v6102_v46 = vpop.f32.mrf.mxu0  ;;  %v825_v35 = vadd.f32 %v697_v22, %v23390_v41  ;;  %v18844_v4 = vand.u32 4294901760, %v18822_v19 }
 0x1ce   :  { %16135 = vset.pattern.permute.xlu1 %v23387_v32  ;;  %14495 = vmatprep.subr.mxu0 %v18635_v48  ;;  %v6193_v60 = vpop.f32.mrf.mxu1  ;;  %v3909_v32 = vadd.f32 %v23389_v26, %v3826_v5  ;;  %v696_v9 = vmul.f32 %v23391_v0, %v23378_v38  ;;  %v7906_v26 = vand.u32 4294901760, %v7905_v29  ;;  %v18851_v22 = vand.u32 4294901760, %v18832_v50  ;;  %v23393_v5 = vld [vmem:[#allocation81_spill] sm:$0xff] }
 0x1cf   :  { %14538 = vmatprep.subr.mxu1 %v7892_v52  ;;  %1273 = vperm.xlu1 %16135, %v827_v18   ;;  %v6194_v37 = vadd.f32 %v6193_v60, %v6102_v46  ;;  %v7919_v18 = vsub.f32 %v18800_v8, %v18829_v43  ;;  %v7913_v46 = vand.u32 4294901760, %v7912_v24  ;;  %v23394_v29 = vld [vmem:[#allocation45_spill] sm:$0xff]  ;;  %v23395_v43 = vld [vmem:[#allocation28_spill] sm:$0xff] }
 0x1d0   :  { %14496 = vmatpush3.msra.mxu0 %v18635_v48  ;;  %14539 = vmatpush3.msra.mxu1 %v7892_v52  ;;  %23392 = vst [vmem:[#allocation79_spill] sm:$0xff] %v18851_v22  ;;  %v3988_v52 = vadd.f32 %v23393_v5, %v3909_v32  ;;  %v824_v41 = vadd.f32 %v696_v9, %v23394_v29 }
 0x1d1   :  { %14497 = vmatprep.subr.mxu0 %v18555_v31  ;;  %14540 = vmatprep.subr.mxu1 %v7899_v40  ;;  %v695_v39 = vmul.f32 %v23395_v43, %v23378_v38  ;;  %v7920_v32 = vand.u32 4294901760, %v7919_v18  ;;  %v7933_v9 = vsub.f32 %v18832_v50, %v18851_v22  ;;  %v23399_v22 = vld [vmem:[#allocation31_spill] sm:$0xff] }
 0x1d2   :  { %14498 = vmatpush3.msra.mxu0 %v18555_v31  ;;  %14541 = vmatpush3.msra.mxu1 %v7899_v40  ;;  %v14211_v13 = vpop.f32.mrf.mxu0  ;;  %v7926_v40 = vsub.f32 %v18822_v19, %v18844_v4 }
 0x1d3   :  { %14499 = vmatprep.subr.mxu0 %v18671_v57  ;;  %14542 = vmatprep.subr.mxu1 %v7906_v26  ;;  %v6283_v60 = vadd.f32 %v14211_v13, %v6200_v1  ;;  %v7934_v29 = vand.u32 4294901760, %v7933_v9 }
 0x1d4   :  { %1263 = vperm.xlu1 %16135, %v825_v35   ;;  %14500 = vmatpush3.msra.mxu0 %v18671_v57  ;;  %v6275_v45 = vpop.f32.mrf.mxu0  ;;  %v23396_v35 = vld [vmem:[#allocation53_spill] sm:$0xff]  ;;  %v7927_v18 = vand.u32 4294901760, %v7926_v40 }
 0x1d5   :  { %14543 = vmatpush3.msra.mxu1 %v7906_v26  ;;  %14501 = vmatprep.subr.mxu0 %v18570_v7  ;;  %v694_v1 = vmul.f32 %v23396_v35, %v23378_v38  ;;  %v6276_v24 = vadd.f32 %v6275_v45, %v6194_v37  ;;  %v18866_v26 = vand.u32 4294901760, %v3988_v52  ;;  %v23397_v35 = vld [vmem:[#allocation22_spill] sm:$0xff]  ;;  %v23398_v37 = vld [vmem:[#allocation47_spill] sm:$0xff] }
 0x1d6   :  { %v14218_v0 = vpop.f32.mrf.mxu1  ;;  %14544 = vmatprep.subr.mxu1 %v7913_v46  ;;  %14502 = vmatpush3.msra.mxu0 %v18570_v7  ;;  %v823_v45 = vadd.f32 %v695_v39, %v23397_v35  ;;  %v23400_v39 = vld [vmem:[#allocation56_spill] sm:$0xff] }
 0x1d7   :  { %v6366_v13 = vadd.f32 %v14218_v0, %v6283_v60  ;;  %14545 = vmatpush3.msra.mxu1 %v7913_v46  ;;  %14503 = vmatprep.subr.mxu0 %v18715_v49  ;;  %v822_v0 = vadd.f32 %v694_v1, %v23398_v37  ;;  %v692_v40 = vmul.f32 %v23400_v39, %v23378_v38 }
 0x1d8   :  { %v6357_v5 = vpop.f32.mrf.mxu1  ;;  %14546 = vmatprep.subr.mxu1 %v7920_v32  ;;  %1258 = vperm.xlu1 %16135, %v824_v41  }
 0x1d9   :  { %v6358_v43 = vadd.f32 %v6357_v5, %v6276_v24  ;;  %14504 = vmatpush3.msra.mxu0 %v18715_v49  ;;  %14547 = vmatpush3.msra.mxu1 %v7920_v32  ;;  %v693_v24 = vmul.f32 %v23399_v22, %v23378_v38  ;;  %v18877_v5 = vsub.f32 %v3988_v52, %v18866_v26  ;;  %v23402_v52 = vld [vmem:[#allocation25_spill] sm:$0xff] }
 0x1da   :  { %14505 = vmatprep.subr.mxu0 %v18601_v33  ;;  %v14225_v46 = vpop.f32.mrf.mxu0  ;;  %14548 = vmatprep.subr.mxu1 %v7927_v18 }
 0x1db   :  { %v14232_v60 = vpop.f32.mrf.mxu1  ;;  %14506 = vmatpush3.msra.mxu0 %v18601_v33  ;;  %v6449_v41 = vadd.f32 %v14225_v46, %v6366_v13  ;;  %14549 = vmatpush3.msra.mxu1 %v7927_v18  ;;  %v821_v13 = vadd.f32 %v693_v24, %v23402_v52  ;;  %v22929_v18 = vand.u32 4294901760, %v18877_v5  ;;  %v23405_v46 = vld [vmem:[#allocation34_spill] sm:$0xff]  ;;  %v23413_v52 = vld [vmem:[#allocation55_spill] sm:$0xff] }
 0x1dc   :  { %14507 = vmatprep.subr.mxu0 %v18754_v20  ;;  %v6442_v32 = vpop.f32.mrf.mxu0  ;;  %14550 = vmatprep.subr.mxu1 %v7934_v29 }
 0x1dd   :  { %v6521_v1 = vpop.f32.mrf.mxu1  ;;  %1253 = vperm.xlu0 %16136, %v823_v45   ;;  %v6443_v37 = vadd.f32 %v6442_v32, %v6358_v43  ;;  %v18882_v35 = vadd.f32 %v14232_v60, %v6449_v41  ;;  %1248 = vperm.xlu1 %16135, %v822_v0   ;;  %v23404_v45 = vld [vmem:[#allocation51_spill] sm:$0xff]  ;;  %v691_v0 = vmul.f32 %v23405_v46, %v23378_v38  ;;  %v23407_v41 = vand.u32 4294901760, %v18652_v2 }
 0x1de   :  { %14508 = vmatpush3.msra.mxu0 %v18754_v20  ;;  %14551 = vmatpush3.msra.mxu1 %v7934_v29  ;;  %v820_v43 = vadd.f32 %v692_v40, %v23404_v45  ;;  %v23406_v29 = vld [vmem:[#allocation57_spill] sm:$0xff] }
 0x1df   :  { %23401 = vst [vmem:[#allocation80_spill] sm:$0xff] %v18882_v35  ;;  %14509 = vmatprep.subr.mxu0 %v18729_v61  ;;  %v18887_v9 = vadd.f32 %v6521_v1, %v6443_v37  ;;  %14553 = vmatmul.mubr.f32.vlgmr.msra.gmra.mxu1 %v18866_v26  ;;  %v690_v60 = vmul.f32 %v23406_v29, %v23378_v38  ;;  %v23408_v40 = vld [vmem:[#allocation29_spill] sm:$0xff] }
 0x1e0   :  { %14590 = vmatprep.subr.mxu1 %v18472_v28  ;;  %14510 = vmatpush3.msra.mxu0 %v18729_v61  ;;  %v819_v1 = vadd.f32 %v691_v0, %v23408_v40  ;;  %v7817_v35 = vsub.f32 %v18877_v5, %v22929_v18  ;;  %v23411_v0 = vld [vmem:[#allocation59_spill] sm:$0xff] }
 0x1e1   :  { %23403 = vst [vmem:[#allocation5_spill] sm:$0xff] %v18887_v9  ;;  %14591 = vmatpush3.msra.mxu1 %v18472_v28  ;;  %v14239_v37 = vpop.f32.mrf.mxu0  ;;  %14622 = vmatprep.mubr.f32.mxu1 %v23407_v41  ;;  %v23409_v41 = vld [vmem:[#allocation54_spill] sm:$0xff] }
 0x1e2   :  { %v14246_v24 = vpop.f32.mrf.mxu1  ;;  %14511 = vmatprep.subr.mxu0 %v18778_v6  ;;  %14592 = vmatprep.subr.mxu1 %v18485_v3  ;;  %v7818_v40 = vand.u32 4294901760, %v7817_v35  ;;  %v23414_v35 = vld [vmem:[#allocation37_spill] sm:$0xff] }
 0x1e3   :  { %v6708_v32 = vadd.f32 %v14246_v24, %v14239_v37  ;;  %1243 = vperm.xlu0 %16136, %v821_v13   ;;  %1238 = vperm.xlu1 %16135, %v820_v43   ;;  %v6610_v9 = vpop.f32.mrf.mxu0  ;;  %v818_v37 = vadd.f32 %v690_v60, %v23409_v41  ;;  %v23410_v13 = vld [vmem:[#allocation36_spill] sm:$0xff]  ;;  %v688_v24 = vmul.f32 %v23411_v0, %v23378_v38  ;;  %v912_v41 = vpop.permute.xlu0 %911 }
 0x1e4   :  { %14512 = vmatpush3.msra.mxu0 %v18778_v6  ;;  %v6701_v29 = vpop.f32.mrf.mxu1  ;;  %14593 = vmatpush3.msra.mxu1 %v18485_v3  ;;  %v689_v43 = vmul.f32 %v23410_v13, %v23378_v38  ;;  %v23412_v0 = vld [vmem:[#allocation32_spill] sm:$0xff] }
 0x1e5   :  { %14513 = vmatprep.subr.mxu0 %v18792_v47  ;;  %14594 = vmatprep.subr.mxu1 %v18511_v30  ;;  %v6702_v18 = vadd.f32 %v6701_v29, %v6610_v9  ;;  %v816_v39 = vadd.f32 %v688_v24, %v23413_v52  ;;  %v687_v9 = vmul.f32 %v23414_v35, %v23378_v38 }
 0x1e6   :  { %14514 = vmatpush3.msra.mxu0 %v18792_v47  ;;  %14595 = vmatpush3.msra.mxu1 %v18511_v30  ;;  %v817_v13 = vadd.f32 %v689_v43, %v23412_v0 }
 0x1e7   :  { %14515 = vmatprep.subr.mxu0 %v18809_v63  ;;  %14596 = vmatprep.subr.mxu1 %v18534_v62 }
 0x1e8   :  { %1233 = vperm.xlu0 %16136, %v819_v1   ;;  %v14253_v60 = vpop.f32.mrf.mxu0  ;;  %1228 = vperm.xlu1 %16135, %v818_v37  }
 0x1e9   :  { %14516 = vmatpush3.msra.mxu0 %v18809_v63  ;;  %v6791_v46 = vadd.f32 %v14253_v60, %v6708_v32  ;;  %14597 = vmatpush3.msra.mxu1 %v18534_v62  ;;  %v23415_v32 = vld [vmem:[#allocation2_spill] sm:$0xff] }
 0x1ea   :  { %14518 = vmatmul.mubr.f32.vlgmr.msra.gmra.mxu0 %v7818_v40  ;;  %v6783_v22 = vpop.f32.mrf.mxu0  ;;  %14555 = vmatprep.subr.mxu0 %v18516_v17  ;;  %v917_v60 = vrot.slane %v912_v41, %v23415_v32  ;;  %v23416_v40 = vld [vmem:[#allocation60_spill] sm:$0xff] }
 0x1eb   :  { %14598 = vmatprep.subr.mxu1 %v18605_v16  ;;  %v6784_v29 = vadd.f32 %v6783_v22, %v6702_v18  ;;  %14556 = vmatpush3.msra.mxu0 %v18516_v17  ;;  %v686_v43 = vmul.f32 %v23416_v40, %v23378_v38  ;;  %v1204_v22 = vpop.permute.xlu1 %1203  ;;  %v23418_v18 = vld [vmem:[#allocation35_spill] sm:$0xff]  ;;  %v23420_v38 = vld [vmem:[#allocation58_spill] sm:$0xff] }
 0x1ec   :  { %14587 = vmatprep.mubr.f32.mxu0 %v18652_v2  ;;  %14599 = vmatpush3.msra.mxu1 %v18605_v16  ;;  %v815_v17 = vadd.f32 %v687_v9, %v23418_v18  ;;  %v23419_v2 = vld [vmem:[#allocation62_spill] sm:$0xff] }
 0x1ed   :  { %v14260_v45 = vpop.f32.mrf.mxu1  ;;  %14557 = vmatprep.subr.mxu0 %v18519_v34  ;;  %14600 = vmatprep.subr.mxu1 %v18635_v48  ;;  %v814_v41 = vadd.f32 %v686_v43, %v23420_v38  ;;  %v23425_v43 = vld [vmem:[#allocation86_spill] sm:$0xff] }
 0x1ee   :  { %v6874_v1 = vadd.f32 %v14260_v45, %v6791_v46  ;;  %1223 = vperm.xlu0 %16136, %v817_v13   ;;  %1218 = vperm.xlu1 %16135, %v816_v39   ;;  %v18941_v46 = vadd.f32 %v917_v60, %v23419_v2  ;;  %v23421_v39 = vld [vmem:[#allocation11_spill] sm:$0xff]  ;;  %v23422_v13 = vld [vmem:[#allocation41_spill] sm:$0xff] }
 0x1ef   :  { %v6865_v37 = vpop.f32.mrf.mxu1  ;;  %14558 = vmatpush3.msra.mxu0 %v18519_v34  ;;  %14601 = vmatpush3.msra.mxu1 %v18635_v48  ;;  %v717_v34 = vmul.f32 %v23422_v13, %v23421_v39 }
 0x1f0   :  { %v18935_v24 = vadd.f32 %v6865_v37, %v6784_v29  ;;  %v14267_v45 = vpop.f32.mrf.mxu0  ;;  %14559 = vmatprep.subr.mxu0 %v18552_v54  ;;  %14602 = vmatprep.subr.mxu1 %v18555_v31  ;;  %v18956_v60 = vadd.f32 1.0, %v18941_v46  ;;  %vm1653_vm2 = vcmp.eq.f32.partialorder %v1204_v22, %v18941_v46 }
 0x1f1   :  { %v6957_v29 = vadd.f32 %v14267_v45, %v6874_v1  ;;  %14560 = vmatpush3.msra.mxu0 %v18552_v54  ;;  %14603 = vmatpush3.msra.mxu1 %v18555_v31  ;;  %v14274_v9 = vpop.f32.mrf.mxu1  ;;  %v23424_v1 = vld [vmem:[#allocation85_spill] sm:$0xff]  ;;  %v1199_v54 = vpop.permute.xlu1 %1198 }
 0x1f2   :  { %23417 = vst [vmem:[#allocation8_spill] sm:$0xff] %v18935_v24  ;;  %14561 = vmatprep.subr.mxu0 %v18567_v56  ;;  %14604 = vmatprep.subr.mxu1 %v18671_v57  ;;  %v4162_v45 = vadd.f32 %v23425_v43, %v23424_v1  ;;  %v23426_v24 = vld [vmem:[#allocation38_spill] sm:$0xff]  ;;  %vm2205_vm3 = vcmp.eq.f32.partialorder %v1204_v22, %v18956_v60  ;;  %v23430_v22 = vld [vmem:[#allocation12_spill] sm:$0xff]  ;;  %v12674_v1 = vsel %vm1653_vm2, 1.0, %v23144_v36 }
 0x1f3   :  { %1213 = vperm.xlu0 %16136, %v815_v17   ;;  %v18953_v37 = vadd.f32 %v14274_v9, %v6957_v29  ;;  %1208 = vperm.xlu1 %16135, %v814_v41   ;;  %v845_v13 = vadd.f32 %v717_v34, %v23426_v24  ;;  %v23427_v17 = vld [vmem:[#allocation17_spill] sm:$0xff]  ;;  %v23429_v34 = vmov 3   ;;  %vm1652_vm5 = vcmp.eq.f32.partialorder %v1199_v54, %v18941_v46 }
 0x1f4   :  { %14562 = vmatpush3.msra.mxu0 %v18567_v56  ;;  %14605 = vmatpush3.msra.mxu1 %v18671_v57  ;;  %v716_v29 = vmul.f32 %v23427_v17, %v23421_v39  ;;  %v23428_v56 = vld [vmem:[#allocation89_spill] sm:$0xff]  ;;  %vm2204_vm6 = vcmp.eq.f32.partialorder %v1199_v54, %v18956_v60  ;;  %v12802_v43 = vsel %vm2205_vm3, 1.0, %v23144_v36 }
 0x1f5   :  { %23423 = vst [vmem:[#allocation82_spill] sm:$0xff] %v18953_v37  ;;  %14563 = vmatprep.subr.mxu0 %v18642_v55  ;;  %14606 = vmatprep.subr.mxu1 %v18570_v7  ;;  %v4244_v41 = vadd.f32 %v23428_v56, %v4162_v45  ;;  %v23431_v45 = vld [vmem:[#allocation90_spill] sm:$0xff]  ;;  %v12801_v56 = vsel %vm2204_vm6, 1.0, %v23144_v36 }
 0x1f6   :  { %14564 = vmatpush3.msra.mxu0 %v18642_v55  ;;  %14607 = vmatpush3.msra.mxu1 %v18570_v7  ;;  %v16160_v55 = vld [vmem:[%s22684_s0 + $0x4] sm:$0x1]  ;;  %v844_v9 = vadd.f32 %v716_v29, %v23430_v22  ;;  %v12673_v29 = vsel %vm1652_vm5, 1.0, %v23144_v36 }
 0x1f7   :  { %14565 = vmatprep.subr.mxu0 %v18669_v23  ;;  %14608 = vmatprep.subr.mxu1 %v18715_v49  ;;  %v4326_v54 = vadd.f32 %v23431_v45, %v4244_v41 }
 0x1f8   :  { %16137 = vset.pattern.permute.xlu0 %v23429_v34  ;;  %1363 = vperm.xlu1 %16135, %v845_v13   ;;  %v18985_v13 = vpop.permute.xlu0 %1999 }
 0x1f9   :  { %14566 = vmatpush3.msra.mxu0 %v18669_v23  ;;  %14609 = vmatpush3.msra.mxu1 %v18715_v49  ;;  %v18987_v23 = vpop.permute.xlu1 %2551  ;;  %v2068_v22 = vmul.f32 %v12673_v29, %v18985_v13 }
 0x1fa   :  { %927 = vperm.xlu0 %16137, %v16160_v55   ;;  %14567 = vmatprep.subr.mxu0 %v18598_v44  ;;  %v2069_v55 = vmul.f32 %v12674_v1, %v18985_v13  ;;  %v2621_v37 = vmul.f32 %v12802_v43, %v18987_v23  ;;  %v23434_v43 = vld [vmem:[#allocation94_spill] sm:$0xff] }
 0x1fb   :  { %14610 = vmatprep.subr.mxu1 %v18601_v33  ;;  %14568 = vmatpush3.msra.mxu0 %v18598_v44  ;;  %v23432_v44 = vld [vmem:[#allocation93_spill] sm:$0xff] }
 0x1fc   :  { %14611 = vmatpush3.msra.mxu1 %v18601_v33  ;;  %14569 = vmatprep.subr.mxu0 %v18703_v25  ;;  %v4411_v41 = vadd.f32 %v23432_v44, %v4326_v54  ;;  %v2749_v1 = vadd.f32 %v2621_v37, %v2069_v55 }
 0x1fd   :  { %14612 = vmatprep.subr.mxu1 %v18754_v20  ;;  %1358 = vperm.xlu1 %16135, %v844_v9   ;;  %v1194_v45 = vpop.permute.xlu1 %1193  ;;  %v2620_v9 = vmul.f32 %v12801_v56, %v18987_v23 }
 0x1fe   :  { %14570 = vmatpush3.msra.mxu0 %v18703_v25  ;;  %14613 = vmatpush3.msra.mxu1 %v18754_v20  ;;  %v23433_v25 = vmov 5   ;;  %v4490_v54 = vadd.f32 %v23434_v43, %v4411_v41  ;;  %vm1651_vm7 = vcmp.eq.f32.partialorder %v1194_v45, %v18941_v46  ;;  %vm2203_vm8 = vcmp.eq.f32.partialorder %v1194_v45, %v18956_v60 }
 0x1ff   :  { %14571 = vmatprep.subr.mxu0 %v18609_v15  ;;  %14614 = vmatprep.subr.mxu1 %v18729_v61  ;;  %v2748_v29 = vadd.f32 %v2620_v9, %v2068_v22  ;;  %v1189_v22 = vpop.permute.xlu0 %1188  ;;  %v12672_v44 = vsel %vm1651_vm7, 1.0, %v23144_v36  ;;  %v23437_v41 = vand.u32 4294901760, %v18877_v5 }
 0x200   :  { %14572 = vmatpush3.msra.mxu0 %v18609_v15  ;;  %14615 = vmatpush3.msra.mxu1 %v18729_v61  ;;  %v23435_v15 = vld [vmem:[#allocation6_spill] sm:$0xff]  ;;  %v19026_v37 = vand.u32 4294901760, %v4490_v54  ;;  %vm1650_vm9 = vcmp.eq.f32.partialorder %v1189_v22, %v18941_v46  ;;  %v2067_v9 = vmul.f32 %v12672_v44, %v18985_v13  ;;  %vm2202_vm10 = vcmp.eq.f32.partialorder %v1189_v22, %v18956_v60 }
 0x201   :  { %14573 = vmatprep.subr.mxu0 %v18748_v12  ;;  %14616 = vmatprep.subr.mxu1 %v18778_v6  ;;  %v1184_v56 = vpop.permute.xlu1 %1183  ;;  %v2876_v55 = vmul.f32 %v23330_v11, %v2748_v29  ;;  %v12799_v29 = vsel %vm2202_vm10, 1.0, %v23144_v36 }
 0x202   :  { %16138 = vset.pattern.permute.xlu0 %v23433_v25  ;;  %16139 = vset.pattern.permute.xlu1 %v23433_v25  ;;  %23436 = vst [vmem:[#allocation81_spill] sm:$0xff] %v19026_v37  ;;  %vm1649_vm4 = vcmp.eq.f32.partialorder %v1184_v56, %v18941_v46  ;;  %vm2201_vm11 = vcmp.eq.f32.partialorder %v1184_v56, %v18956_v60 }
 0x203   :  { %14574 = vmatpush3.msra.mxu0 %v18748_v12  ;;  %14617 = vmatpush3.msra.mxu1 %v18778_v6  ;;  %v2877_v12 = vmul.f32 %v23329_v10, %v2749_v1  ;;  %v19050_v43 = vand.u32 4294901760, %v2876_v55  ;;  %v12798_v56 = vsel %vm2201_vm11, 1.0, %v23144_v36 }
 0x204   :  { %2007 = vperm.xlu0 %16138, %v23435_v15   ;;  %2559 = vperm.xlu1 %16139, %v23421_v39  }
 0x205   :  { %14575 = vmatprep.subr.mxu0 %v18739_v59  ;;  %14618 = vmatprep.subr.mxu1 %v18792_v47  ;;  %v19038_v45 = vand.u32 4294901760, %v2877_v12  ;;  %v1179_v1 = vpop.permute.xlu1 %1178 }
 0x206   :  { %14576 = vmatpush3.msra.mxu0 %v18739_v59  ;;  %14619 = vmatpush3.msra.mxu1 %v18792_v47  ;;  %v12800_v59 = vsel %vm2203_vm8, 1.0, %v23144_v36  ;;  %vm1648_vm12 = vcmp.eq.f32.partialorder %v1179_v1, %v18941_v46  ;;  %vm2200_vm13 = vcmp.eq.f32.partialorder %v1179_v1, %v18956_v60  ;;  %v2617_v1 = vmul.f32 %v12798_v56, %v18987_v23 }
 0x207   :  { %14577 = vmatprep.subr.mxu0 %v18776_v42  ;;  %14620 = vmatprep.subr.mxu1 %v18809_v63  ;;  %v2619_v15 = vmul.f32 %v12800_v59, %v18987_v23  ;;  %v12797_v59 = vsel %vm2200_vm13, 1.0, %v23144_v36 }
 0x208   :  { %14578 = vmatpush3.msra.mxu0 %v18776_v42  ;;  %14621 = vmatpush3.msra.mxu1 %v18809_v63  ;;  %v19044_v42 = vsub.f32 %v4490_v54, %v19026_v37  ;;  %v19063_v54 = vsub.f32 %v2877_v12, %v19038_v45 }
 0x209   :  { %14579 = vmatprep.subr.mxu0 %v18763_v21  ;;  %14623 = vmatmul.mubr.f32.vlgmr.msra.gmra.mxu1 %v23437_v41  ;;  %v2747_v44 = vadd.f32 %v2619_v15, %v2067_v9  ;;  %v2616_v15 = vmul.f32 %v12797_v59, %v18987_v23 }
 0x20a   :  { %14660 = vmatprep.subr.mxu1 %v18472_v28  ;;  %14580 = vmatpush3.msra.mxu0 %v18763_v21  ;;  %v1174_v21 = vpop.permute.xlu0 %1173  ;;  %v22931_v12 = vand.u32 4294901760, %v19044_v42  ;;  %v19093_v41 = vand.u32 4294901760, %v19063_v54 }
 0x20b   :  { %14661 = vmatpush3.msra.mxu1 %v18472_v28  ;;  %14692 = vmatprep.mubr.f32.mxu1 %v18617_v51  ;;  %v12671_v28 = vsel %vm1650_vm9, 1.0, %v23144_v36  ;;  %vm1647_vm14 = vcmp.eq.f32.partialorder %v1174_v21, %v18941_v46  ;;  %vm2199_vm15 = vcmp.eq.f32.partialorder %v1174_v21, %v18956_v60  ;;  %v2875_v21 = vmul.f32 %v23334_v27, %v2747_v44 }
 0x20c   :  { %14581 = vmatprep.subr.mxu0 %v18800_v8  ;;  %14662 = vmatprep.subr.mxu1 %v18485_v3  ;;  %v2066_v22 = vmul.f32 %v12671_v28, %v18985_v13  ;;  %23438 = vst [vmem:[#allocation11_spill] sm:$0xff] %v19093_v41  ;;  %v12796_v28 = vsel %vm2199_vm15, 1.0, %v23144_v36 }
 0x20d   :  { %14582 = vmatpush3.msra.mxu0 %v18800_v8  ;;  %14663 = vmatpush3.msra.mxu1 %v18485_v3  ;;  %v12670_v8 = vsel %vm1649_vm4, 1.0, %v23144_v36  ;;  %v19075_v3 = vsub.f32 %v2876_v55, %v19050_v43  ;;  %v1169_v55 = vpop.permute.xlu1 %1168  ;;  %v2615_v59 = vmul.f32 %v12796_v28, %v18987_v23 }
 0x20e   :  { %14583 = vmatprep.subr.mxu0 %v18822_v19  ;;  %14664 = vmatprep.subr.mxu1 %v18511_v30  ;;  %v2065_v9 = vmul.f32 %v12670_v8, %v18985_v13  ;;  %vm1646_vm0 = vcmp.eq.f32.partialorder %v1169_v55, %v18941_v46  ;;  %vm2198_vm1 = vcmp.eq.f32.partialorder %v1169_v55, %v18956_v60  ;;  %v23441_v55 = vld [vmem:[#allocation64_spill] sm:$0xff] }
 0x20f   :  { %14584 = vmatpush3.msra.mxu0 %v18822_v19  ;;  %14665 = vmatpush3.msra.mxu1 %v18511_v30  ;;  %v12669_v19 = vsel %vm1648_vm12, 1.0, %v23144_v36  ;;  %v2618_v30 = vmul.f32 %v12799_v29, %v18987_v23  ;;  %v12667_v29 = vsel %vm1646_vm0, 1.0, %v23144_v36  ;;  %v12795_v56 = vsel %vm2198_vm1, 1.0, %v23144_v36 }
 0x210   :  { %14585 = vmatprep.subr.mxu0 %v18832_v50  ;;  %14666 = vmatprep.subr.mxu1 %v18534_v62  ;;  %v2745_v8 = vadd.f32 %v2617_v1, %v2065_v9  ;;  %v19134_v44 = vand.u32 4294901760, %v19075_v3  ;;  %v23443_v1 = vld [vmem:[#allocation40_spill] sm:$0xff] }
 0x211   :  { %14586 = vmatpush3.msra.mxu0 %v18832_v50  ;;  %14667 = vmatpush3.msra.mxu1 %v18534_v62  ;;  %v2064_v50 = vmul.f32 %v12669_v19, %v18985_v13  ;;  %v1164_v62 = vpop.permute.xlu0 %1163 }
 0x212   :  { %14588 = vmatmul.mubr.f32.vlgmr.msra.gmra.mxu0 %v18877_v5  ;;  %14625 = vmatprep.subr.mxu0 %v18575_v53  ;;  %v12668_v5 = vsel %vm1647_vm14, 1.0, %v23144_v36  ;;  %23439 = vst [vmem:[#allocation85_spill] sm:$0xff] %v19134_v44  ;;  %vm1645_vm2 = vcmp.eq.f32.partialorder %v1164_v62, %v18941_v46  ;;  %vm2197_vm3 = vcmp.eq.f32.partialorder %v1164_v62, %v18956_v60 }
 0x213   :  { %14668 = vmatprep.subr.mxu1 %v18605_v16  ;;  %14626 = vmatpush3.msra.mxu0 %v18575_v53  ;;  %v2063_v19 = vmul.f32 %v12668_v5, %v18985_v13  ;;  %v1159_v53 = vpop.permute.xlu1 %1158  ;;  %v12794_v5 = vsel %vm2197_vm3, 1.0, %v23144_v36  ;;  %v8519_v28 = vsub.f32 %v19075_v3, %v19134_v44 }
 0x214   :  { %14657 = vmatprep.mubr.f32.mxu0 %v18617_v51  ;;  %14669 = vmatpush3.msra.mxu1 %v18605_v16  ;;  %v19121_v51 = vsub.f32 %v19044_v42, %v22931_v12  ;;  %v2746_v16 = vadd.f32 %v2618_v30, %v2066_v22  ;;  %v2062_v22 = vmul.f32 %v12667_v29, %v18985_v13  ;;  %v23444_v29 = vld [vmem:[#allocation13_spill] sm:$0xff] }
 0x215   :  { %14627 = vmatprep.subr.mxu0 %v18582_v14  ;;  %14670 = vmatprep.subr.mxu1 %v18635_v48  ;;  %v2614_v30 = vmul.f32 %v12795_v56, %v18987_v23  ;;  %vm1644_vm5 = vcmp.eq.f32.partialorder %v1159_v53, %v18941_v46  ;;  %vm2196_vm6 = vcmp.eq.f32.partialorder %v1159_v53, %v18956_v60  ;;  %v23445_v56 = vld [vmem:[#allocation10_spill] sm:$0xff] }
 0x216   :  { %14628 = vmatpush3.msra.mxu0 %v18582_v14  ;;  %14671 = vmatpush3.msra.mxu1 %v18635_v48  ;;  %v2744_v14 = vadd.f32 %v2616_v15, %v2064_v50  ;;  %v23440_v48 = vld [vmem:[#allocation69_spill] sm:$0xff]  ;;  %v2874_v9 = vmul.f32 %v23441_v55, %v2746_v16  ;;  %v2873_v50 = vmul.f32 %v23443_v1, %v2745_v8  ;;  %v12666_v15 = vsel %vm1645_vm2, 1.0, %v23144_v36  ;;  %v23449_v1 = vld [vmem:[#allocation42_spill] sm:$0xff] }
 0x217   :  { %14629 = vmatprep.subr.mxu0 %v18593_v58  ;;  %14672 = vmatprep.subr.mxu1 %v18555_v31  ;;  %v12665_v8 = vsel %vm1644_vm5, 1.0, %v23144_v36  ;;  %v12793_v62 = vsel %vm2196_vm6, 1.0, %v23144_v36  ;;  %v1149_v44 = vpop.permute.xlu1 %1148 }
 0x218   :  { %14630 = vmatpush3.msra.mxu0 %v18593_v58  ;;  %14673 = vmatpush3.msra.mxu1 %v18555_v31  ;;  %v1154_v58 = vpop.permute.xlu0 %1153  ;;  %v23442_v31 = vld [vmem:[#allocation20_spill] sm:$0xff]  ;;  %v2872_v16 = vmul.f32 %v23444_v29, %v2744_v14  ;;  %v19181_v53 = vand.u32 4294901760, %v2874_v9  ;;  %vm1642_vm9 = vcmp.eq.f32.partialorder %v1149_v44, %v18941_v46  ;;  %vm2194_vm10 = vcmp.eq.f32.partialorder %v1149_v44, %v18956_v60  ;;  %v23447_v29 = vld [vmem:[#allocation3_spill] sm:$0xff] }
 0x219   :  { %14631 = vmatprep.subr.mxu0 %v23440_v48  ;;  %14674 = vmatprep.subr.mxu1 %v18671_v57  ;;  %vm1643_vm7 = vcmp.eq.f32.partialorder %v1154_v58, %v18941_v46  ;;  %vm2195_vm8 = vcmp.eq.f32.partialorder %v1154_v58, %v18956_v60  ;;  %v2612_v58 = vmul.f32 %v12793_v62, %v18987_v23 }
 0x21a   :  { %14632 = vmatpush3.msra.mxu0 %v23440_v48  ;;  %14675 = vmatpush3.msra.mxu1 %v18671_v57  ;;  %v19162_v57 = vand.u32 4294901760, %v2875_v21  ;;  %v2743_v48 = vadd.f32 %v2615_v59, %v2063_v19  ;;  %v12664_v12 = vsel %vm1643_vm7, 1.0, %v23144_v36  ;;  %v12792_v14 = vsel %vm2195_vm8, 1.0, %v23144_v36  ;;  %v23446_v59 = vld [vmem:[#allocation68_spill] sm:$0xff] }
 0x21b   :  { %14633 = vmatprep.subr.mxu0 %v23442_v31  ;;  %14676 = vmatprep.subr.mxu1 %v18570_v7  ;;  %v2613_v19 = vmul.f32 %v12794_v5, %v18987_v23  ;;  %v2059_v5 = vmul.f32 %v12664_v12, %v18985_v13  ;;  %v19218_v12 = vand.u32 4294901760, %v2872_v16  ;;  %v1139_v11 = vpop.permute.xlu1 %1138 }
 0x21c   :  { %14634 = vmatpush3.msra.mxu0 %v23442_v31  ;;  %14677 = vmatpush3.msra.mxu1 %v18570_v7  ;;  %v2742_v31 = vadd.f32 %v2614_v30, %v2062_v22  ;;  %v2061_v7 = vmul.f32 %v12666_v15, %v18985_v13  ;;  %v19188_v22 = vand.u32 4294901760, %v2873_v50  ;;  %v2060_v30 = vmul.f32 %v12665_v8, %v18985_v13 }
 0x21d   :  { %14635 = vmatprep.subr.mxu0 %v23445_v56  ;;  %14678 = vmatprep.subr.mxu1 %v18715_v49  ;;  %v19196_v15 = vsub.f32 %v2875_v21, %v19162_v57  ;;  %v23448_v8 = vsub.f32 %v19063_v54, %v19093_v41  ;;  %v2871_v27 = vmul.f32 %v23449_v1, %v2743_v48  ;;  %v12663_v21 = vsel %vm1642_vm9, 1.0, %v23144_v36  ;;  %v23451_v1 = vld [vmem:[#allocation16_spill] sm:$0xff] }
 0x21e   :  { %14636 = vmatpush3.msra.mxu0 %v23445_v56  ;;  %14679 = vmatpush3.msra.mxu1 %v18715_v49  ;;  %v2611_v49 = vmul.f32 %v12792_v14, %v18987_v23  ;;  %v1144_v56 = vpop.permute.xlu0 %1143  ;;  %v2741_v14 = vadd.f32 %v2613_v19, %v2061_v7  ;;  %v12791_v48 = vsel %vm2194_vm10, 1.0, %v23144_v36  ;;  %v2870_v41 = vmul.f32 %v23451_v1, %v2742_v31  ;;  %v23452_v31 = vld [vmem:[#allocation71_spill] sm:$0xff] }
 0x21f   :  { %14637 = vmatprep.subr.mxu0 %v23446_v59  ;;  %14680 = vmatprep.subr.mxu1 %v18601_v33  ;;  %v19205_v62 = vand.u32 4294901760, %v23448_v8  ;;  %vm1641_vm4 = vcmp.eq.f32.partialorder %v1144_v56, %v18941_v46  ;;  %vm2193_vm11 = vcmp.eq.f32.partialorder %v1144_v56, %v18956_v60  ;;  %v19226_v8 = vsub.f32 %v2873_v50, %v19188_v22 }
 0x220   :  { %14638 = vmatpush3.msra.mxu0 %v23446_v59  ;;  %14681 = vmatpush3.msra.mxu1 %v18601_v33  ;;  %v19216_v33 = vsub.f32 %v2874_v9, %v19181_v53  ;;  %v23450_v59 = vld [vmem:[#allocation70_spill] sm:$0xff]  ;;  %v19231_v9 = vand.u32 4294901760, %v8519_v28  ;;  %v2739_v7 = vadd.f32 %v2611_v49, %v2059_v5  ;;  %v2058_v44 = vmul.f32 %v12663_v21, %v18985_v13 }
 0x221   :  { %14639 = vmatprep.subr.mxu0 %v23447_v29  ;;  %14682 = vmatprep.subr.mxu1 %v18754_v20  ;;  %v12790_v50 = vsel %vm2193_vm11, 1.0, %v23144_v36  ;;  %v19242_v19 = vand.u32 4294901760, %v2871_v27  ;;  %v2610_v28 = vmul.f32 %v12791_v48, %v18987_v23  ;;  %vm1640_vm12 = vcmp.eq.f32.partialorder %v1139_v11, %v18941_v46  ;;  %v23457_v48 = vld [vmem:[#allocation33_spill] sm:$0xff] }
 0x222   :  { %14640 = vmatpush3.msra.mxu0 %v23447_v29  ;;  %14683 = vmatpush3.msra.mxu1 %v18754_v20  ;;  %v2740_v29 = vadd.f32 %v2612_v58, %v2060_v30  ;;  %v12662_v20 = vsel %vm1641_vm4, 1.0, %v23144_v36  ;;  %vm2192_vm13 = vcmp.eq.f32.partialorder %v1139_v11, %v18956_v60  ;;  %v19250_v30 = vsub.f32 %v2872_v16, %v19218_v12  ;;  %v23453_v58 = vld [vmem:[#allocation44_spill] sm:$0xff]  ;;  %v1134_v1 = vpop.permute.xlu0 %1133 }
 0x223   :  { %14641 = vmatprep.subr.mxu0 %v23450_v59  ;;  %14684 = vmatprep.subr.mxu1 %v18729_v61  ;;  %v2869_v5 = vmul.f32 %v23453_v58, %v2741_v14  ;;  %v19256_v49 = vand.u32 4294901760, %v19196_v15  ;;  %v19259_v56 = vand.u32 4294901760, %v19216_v33  ;;  %v19261_v21 = vand.u32 4294901760, %v2870_v41  ;;  %v1129_v58 = vpop.permute.xlu1 %1128 }
 0x224   :  { %14642 = vmatpush3.msra.mxu0 %v23450_v59  ;;  %14685 = vmatpush3.msra.mxu1 %v18729_v61  ;;  %v23454_v61 = vld [vmem:[#allocation72_spill] sm:$0xff]  ;;  %v2868_v59 = vmul.f32 %v23457_v48, %v2740_v29  ;;  %v2609_v16 = vmul.f32 %v12790_v50, %v18987_v23  ;;  %v12789_v14 = vsel %vm2192_vm13, 1.0, %v23144_v36  ;;  %vm1639_vm14 = vcmp.eq.f32.partialorder %v1134_v1, %v18941_v46  ;;  %v23458_v29 = vld [vmem:[#allocation74_spill] sm:$0xff] }
 0x225   :  { %14643 = vmatprep.subr.mxu0 %v23452_v31  ;;  %14686 = vmatprep.subr.mxu1 %v18778_v6  ;;  %23455 = vst [vmem:[#allocation86_spill] sm:$0xff] %v19256_v49  ;;  %23456 = vst [vmem:[#allocation89_spill] sm:$0xff] %v19259_v56  ;;  %vm2191_vm15 = vcmp.eq.f32.partialorder %v1134_v1, %v18956_v60  ;;  %v23459_v50 = vld [vmem:[#allocation66_spill] sm:$0xff]  ;;  %v2738_v48 = vadd.f32 %v2610_v28, %v2058_v44  ;;  %v19287_v11 = vand.u32 4294901760, %v19226_v8 }
 0x226   :  { %14644 = vmatpush3.msra.mxu0 %v23452_v31  ;;  %14687 = vmatpush3.msra.mxu1 %v18778_v6  ;;  %v2057_v31 = vmul.f32 %v12662_v20, %v18985_v13  ;;  %v12661_v6 = vsel %vm1640_vm12, 1.0, %v23144_v36  ;;  %v19279_v20 = vsub.f32 %v2871_v27, %v19242_v19  ;;  %v19289_v25 = vand.u32 4294901760, %v2869_v5  ;;  %v23461_v27 = vld [vmem:[#allocation76_spill] sm:$0xff] }
 0x227   :  { %14645 = vmatprep.subr.mxu0 %v23454_v61  ;;  %14688 = vmatprep.subr.mxu1 %v18792_v47  ;;  %23460 = vst [vmem:[#allocation90_spill] sm:$0xff] %v19287_v11  ;;  %vm1638_vm0 = vcmp.eq.f32.partialorder %v1129_v58, %v18941_v46  ;;  %vm2190_vm1 = vcmp.eq.f32.partialorder %v1129_v58, %v18956_v60  ;;  %v12660_v28 = vsel %vm1639_vm14, 1.0, %v23144_v36 }
 0x228   :  { %14646 = vmatpush3.msra.mxu0 %v23454_v61  ;;  %14689 = vmatpush3.msra.mxu1 %v18792_v47  ;;  %v19282_v61 = vmul.f32 %v23459_v50, %v2739_v7  ;;  %v8526_v47 = vsub.f32 %v19196_v15, %v19256_v49  ;;  %v2056_v7 = vmul.f32 %v12661_v6, %v18985_v13  ;;  %v19310_v50 = vand.u32 4294901760, %v2868_v59  ;;  %v23462_v49 = vld [vmem:[#allocation46_spill] sm:$0xff] }
 0x229   :  { %14647 = vmatprep.subr.mxu0 %v23458_v29  ;;  %14690 = vmatprep.subr.mxu1 %v18809_v63  ;;  %v2608_v44 = vmul.f32 %v12789_v14, %v18987_v23  ;;  %v2737_v6 = vadd.f32 %v2609_v16, %v2057_v31  ;;  %v8533_v14 = vsub.f32 %v19216_v33, %v19259_v56  ;;  %v12659_v55 = vsel %vm1638_vm0, 1.0, %v23144_v36  ;;  %v23463_v31 = vld [vmem:[#allocation78_spill] sm:$0xff] }
 0x22a   :  { %14648 = vmatpush3.msra.mxu0 %v23458_v29  ;;  %14691 = vmatpush3.msra.mxu1 %v18809_v63  ;;  %v12788_v29 = vsel %vm2191_vm15, 1.0, %v23144_v36  ;;  %v19308_v63 = vsub.f32 %v2870_v41, %v19261_v21  ;;  %v2866_v1 = vmul.f32 %v23462_v49, %v2738_v48  ;;  %v12787_v41 = vsel %vm2190_vm1, 1.0, %v23144_v36 }
 0x22b   :  { %14649 = vmatprep.subr.mxu0 %v23461_v27  ;;  %14693 = vmatmul.mubr.f32.vlgmr.msra.gmra.mxu1 %v18866_v26  ;;  %v19326_v16 = vand.u32 4294901760, %v19250_v30  ;;  %v8527_v46 = vand.u32 4294901760, %v8526_v47  ;;  %v8540_v60 = vsub.f32 %v19226_v8, %v19287_v11  ;;  %v19335_v58 = vsub.f32 %v2869_v5, %v19289_v25 }
 0x22c   :  { %14730 = vmatprep.subr.mxu1 %v19205_v62  ;;  %14650 = vmatpush3.msra.mxu0 %v23461_v27  ;;  %v2607_v27 = vmul.f32 %v12788_v29, %v18987_v23  ;;  %v19338_v48 = vand.u32 4294901760, %v19282_v61  ;;  %v2736_v49 = vadd.f32 %v2608_v44, %v2056_v7  ;;  %v23466_v29 = vld [vmem:[#allocation23_spill] sm:$0xff]  ;;  %v2054_v47 = vmul.f32 %v12659_v55, %v18985_v13 }
 0x22d   :  { %14731 = vmatpush3.msra.mxu1 %v19205_v62  ;;  %14762 = vmatprep.mubr.f32.mxu1 %v19026_v37  ;;  %23464 = vst [vmem:[#allocation93_spill] sm:$0xff] %v19326_v16  ;;  %v2055_v62 = vmul.f32 %v12660_v28, %v18985_v13  ;;  %v19343_v28 = vand.u32 4294901760, %v19279_v20  ;;  %v2606_v11 = vmul.f32 %v12787_v41, %v18987_v23  ;;  %v8534_v5 = vand.u32 4294901760, %v8533_v14  ;;  %v23469_v23 = vld [vmem:[#allocation48_spill] sm:$0xff]  ;;  %v23489_v37 = vld [vmem:[#allocation49_spill] sm:$0xff] }
 0x22e   :  { %14651 = vmatprep.subr.mxu0 %v23463_v31  ;;  %14732 = vmatprep.subr.mxu1 %v19231_v9  ;;  %v19350_v56 = vsub.f32 %v2868_v59, %v19310_v50  ;;  %v8547_v7 = vsub.f32 %v19250_v30, %v19326_v16  ;;  %v19356_v44 = vand.u32 4294901760, %v19308_v63  ;;  %v2864_v55 = vmul.f32 %v23469_v23, %v2736_v49  ;;  %v23471_v49 = vld [vmem:[#allocation83_spill] sm:$0xff] }
 0x22f   :  { %14652 = vmatpush3.msra.mxu0 %v23463_v31  ;;  %14733 = vmatpush3.msra.mxu1 %v19231_v9  ;;  %23465 = vst [vmem:[#allocation94_spill] sm:$0xff] %v19343_v28  ;;  %v2865_v31 = vmul.f32 %v23466_v29, %v2737_v6  ;;  %v23467_v9 = vld [vmem:[#allocation79_spill] sm:$0xff]  ;;  %v19358_v6 = vand.u32 4294901760, %v2866_v1  ;;  %v2735_v13 = vadd.f32 %v2607_v27, %v2055_v62  ;;  %v8492_v59 = vand.u32 4294901760, %v19121_v51  ;;  %v23477_v29 = vld [vmem:[#allocation4_spill] sm:$0xff] }
 0x230   :  { %14653 = vmatprep.subr.mxu0 %v18844_v4  ;;  %14734 = vmatprep.subr.mxu1 %v8527_v46  ;;  %23468 = vst [vmem:[#allocation6_spill] sm:$0xff] %v19356_v44  ;;  %v8554_v14 = vsub.f32 %v19279_v20, %v19343_v28  ;;  %v19367_v41 = vand.u32 4294901760, %v19335_v58  ;;  %v19371_v62 = vsub.f32 %v19282_v61, %v19338_v48  ;;  %v8548_v51 = vand.u32 4294901760, %v8547_v7  ;;  %v23484_v28 = vld [vmem:[#allocation88_spill] sm:$0xff] }
 0x231   :  { %14654 = vmatpush3.msra.mxu0 %v18844_v4  ;;  %14735 = vmatpush3.msra.mxu1 %v8527_v46  ;;  %v8541_v4 = vand.u32 4294901760, %v8540_v60  ;;  %v19373_v27 = vand.u32 4294901760, %v2865_v31  ;;  %v2734_v46 = vadd.f32 %v2606_v11, %v2054_v47  ;;  %v19385_v61 = vsub.f32 %v2866_v1, %v19358_v6  ;;  %v23475_v11 = vld [vmem:[#allocation52_spill] sm:$0xff] }
 0x232   :  { %14655 = vmatprep.subr.mxu0 %v23467_v9  ;;  %14736 = vmatprep.subr.mxu1 %v8534_v5  ;;  %23470 = vst [vmem:[#allocation69_spill] sm:$0xff] %v19367_v41  ;;  %v2863_v47 = vmul.f32 %v23475_v11, %v2735_v13  ;;  %v19389_v23 = vand.u32 4294901760, %v2864_v55  ;;  %v8555_v7 = vand.u32 4294901760, %v8554_v14  ;;  %v23479_v11 = vld [vmem:[#allocation87_spill] sm:$0xff] }
 0x233   :  { %14656 = vmatpush3.msra.mxu0 %v23467_v9  ;;  %14737 = vmatpush3.msra.mxu1 %v8534_v5  ;;  %v8561_v5 = vsub.f32 %v19308_v63, %v19356_v44  ;;  %v19382_v9 = vand.u32 4294901760, %v19350_v56  ;;  %23474 = vst [vmem:[#allocation10_spill] sm:$0xff] %v19385_v61  ;;  %v19397_v1 = vsub.f32 %v2865_v31, %v19373_v27  ;;  %v19412_v31 = vand.u32 4294901760, %v19385_v61 }
 0x234   :  { %14658 = vmatmul.mubr.f32.vlgmr.msra.gmra.mxu0 %v18866_v26  ;;  %14695 = vmatprep.subr.mxu0 %v19038_v45  ;;  %v23472_v26 = vld [vmem:[#allocation84_spill] sm:$0xff]  ;;  %v2862_v13 = vmul.f32 %v23477_v29, %v2734_v46  ;;  %v19415_v46 = vsub.f32 %v2864_v55, %v19389_v23 }
 0x235   :  { %14738 = vmatprep.subr.mxu1 %v8541_v4  ;;  %v4168_v60 = vadd.f32 %v23472_v26, %v23471_v49  ;;  %14696 = vmatpush3.msra.mxu0 %v19038_v45  ;;  %23473 = vst [vmem:[#allocation20_spill] sm:$0xff] %v19382_v9  ;;  %v23476_v49 = vld [vmem:[#allocation21_spill] sm:$0xff]  ;;  %v8562_v14 = vand.u32 4294901760, %v8561_v5  ;;  %23480 = vst [vmem:[#allocation3_spill] sm:$0xff] %v19412_v31  ;;  %v23482_v29 = vld [vmem:[#allocation24_spill] sm:$0xff]  ;;  %v19427_v55 = vand.u32 4294901760, %v19397_v1 }
 0x236   :  { %14727 = vmatprep.mubr.f32.mxu0 %v8492_v59  ;;  %14739 = vmatpush3.msra.mxu1 %v8541_v4  ;;  %v8568_v59 = vsub.f32 %v19335_v58, %v19367_v41  ;;  %v715_v26 = vmul.f32 %v23476_v49, %v23421_v39  ;;  %v19402_v4 = vand.u32 4294901760, %v19371_v62  ;;  %v8575_v49 = vsub.f32 %v19350_v56, %v19382_v9 }
 0x237   :  { %14697 = vmatprep.subr.mxu0 %v19050_v43  ;;  %14740 = vmatprep.subr.mxu1 %v8548_v51  ;;  %v4251_v44 = vadd.f32 %v23479_v11, %v4168_v60  ;;  %v19408_v41 = vand.u32 4294901760, %v2863_v47  ;;  %v19419_v11 = vand.u32 4294901760, %v2862_v13  ;;  %v713_v9 = vmul.f32 %v23482_v29, %v23421_v39  ;;  %23483 = vst [vmem:[#allocation70_spill] sm:$0xff] %v19427_v55 }
 0x238   :  { %14698 = vmatpush3.msra.mxu0 %v19050_v43  ;;  %14741 = vmatpush3.msra.mxu1 %v8548_v51  ;;  %23478 = vst [vmem:[#allocation68_spill] sm:$0xff] %v19402_v4  ;;  %v8569_v60 = vand.u32 4294901760, %v8568_v59  ;;  %v23481_v51 = vld [vmem:[#allocation15_spill] sm:$0xff]  ;;  %v8576_v59 = vand.u32 4294901760, %v8575_v49  ;;  %v19439_v29 = vand.u32 4294901760, %v19415_v46 }
 0x239   :  { %14699 = vmatprep.subr.mxu0 %v19162_v57  ;;  %14742 = vmatprep.subr.mxu1 %v8555_v7  ;;  %v843_v5 = vadd.f32 %v715_v26, %v23481_v51  ;;  %v4334_v16 = vadd.f32 %v23484_v28, %v4251_v44  ;;  %v19432_v26 = vsub.f32 %v2863_v47, %v19408_v41  ;;  %v23487_v47 = vld [vmem:[#allocation18_spill] sm:$0xff] }
 0x23a   :  { %14700 = vmatpush3.msra.mxu0 %v19162_v57  ;;  %14743 = vmatpush3.msra.mxu1 %v8555_v7  ;;  %v8582_v7 = vsub.f32 %v19371_v62, %v19402_v4  ;;  %v8589_v51 = vsub.f32 %v19385_v61, %v19412_v31  ;;  %23486 = vst [vmem:[#allocation71_spill] sm:$0xff] %v19439_v29  ;;  %v23488_v4 = vld [vmem:[#allocation91_spill] sm:$0xff] }
 0x23b   :  { %14701 = vmatprep.subr.mxu0 %v19181_v53  ;;  %14744 = vmatprep.subr.mxu1 %v8562_v14  ;;  %v19442_v28 = vsub.f32 %v2862_v13, %v19419_v11  ;;  %v841_v49 = vadd.f32 %v713_v9, %v23487_v47  ;;  %v4417_v31 = vadd.f32 %v23488_v4, %v4334_v16  ;;  %v19456_v9 = vand.u32 4294901760, %v19432_v26 }
 0x23c   :  { %14702 = vmatpush3.msra.mxu0 %v19181_v53  ;;  %14745 = vmatpush3.msra.mxu1 %v8562_v14  ;;  %v23485_v14 = vmov 0   ;;  %v8583_v44 = vand.u32 4294901760, %v8582_v7  ;;  %v714_v61 = vmul.f32 %v23489_v37, %v23421_v39  ;;  %v8590_v13 = vand.u32 4294901760, %v8589_v51  ;;  %v23492_v37 = vld [vmem:[#allocation92_spill] sm:$0xff] }
 0x23d   :  { %14703 = vmatprep.subr.mxu0 %v19188_v22  ;;  %14746 = vmatprep.subr.mxu1 %v8569_v60  ;;  %v8603_v16 = vsub.f32 %v19415_v46, %v19439_v29  ;;  %v4496_v51 = vadd.f32 %v23492_v37, %v4417_v31  ;;  %v8610_v29 = vsub.f32 %v19432_v26, %v19456_v9  ;;  %v23496_v31 = vld [vmem:[#allocation53_spill] sm:$0xff] }
 0x23e   :  { %14704 = vmatpush3.msra.mxu0 %v19188_v22  ;;  %14747 = vmatpush3.msra.mxu1 %v8569_v60  ;;  %v8596_v60 = vsub.f32 %v19397_v1, %v19427_v55 }
 0x23f   :  { %16140 = vset.pattern.permute.xlu1 %v23485_v14  ;;  %14705 = vmatprep.subr.mxu0 %v19218_v12  ;;  %v8604_v37 = vand.u32 4294901760, %v8603_v16 }
 0x240   :  { %14748 = vmatprep.subr.mxu1 %v8576_v59  ;;  %1353 = vperm.xlu1 %16140, %v843_v5   ;;  %v23490_v5 = vld [vmem:[#allocation50_spill] sm:$0xff]  ;;  %v8597_v4 = vand.u32 4294901760, %v8596_v60 }
 0x241   :  { %14706 = vmatpush3.msra.mxu0 %v19218_v12  ;;  %14749 = vmatpush3.msra.mxu1 %v8576_v59  ;;  %v712_v7 = vmul.f32 %v23490_v5, %v23421_v39  ;;  %v19462_v59 = vand.u32 4294901760, %v19442_v28  ;;  %v23493_v5 = vld [vmem:[#allocation43_spill] sm:$0xff] }
 0x242   :  { %14707 = vmatprep.subr.mxu0 %v19242_v19  ;;  %14750 = vmatprep.subr.mxu1 %v8583_v44  ;;  %v842_v47 = vadd.f32 %v714_v61, %v23493_v5 }
 0x243   :  { %14708 = vmatpush3.msra.mxu0 %v19242_v19  ;;  %14751 = vmatpush3.msra.mxu1 %v8583_v44  ;;  %23491 = vst [vmem:[#allocation72_spill] sm:$0xff] %v19462_v59  ;;  %v23494_v44 = vld [vmem:[#allocation45_spill] sm:$0xff]  ;;  %v8617_v61 = vsub.f32 %v19442_v28, %v19462_v59 }
 0x244   :  { %14709 = vmatprep.subr.mxu0 %v19261_v21  ;;  %14752 = vmatprep.subr.mxu1 %v8590_v13  ;;  %v840_v55 = vadd.f32 %v712_v7, %v23494_v44  ;;  %v19480_v7 = vand.u32 4294901760, %v4496_v51 }
 0x245   :  { %1343 = vperm.xlu1 %16140, %v841_v49   ;;  %14710 = vmatpush3.msra.mxu0 %v19261_v21  ;;  %v23495_v49 = vld [vmem:[#allocation28_spill] sm:$0xff]  ;;  %v8618_v5 = vand.u32 4294901760, %v8617_v61  ;;  %v23503_v61 = vld [vmem:[#allocation34_spill] sm:$0xff] }
 0x246   :  { %14753 = vmatpush3.msra.mxu1 %v8590_v13  ;;  %14711 = vmatprep.subr.mxu0 %v19289_v25  ;;  %v711_v60 = vmul.f32 %v23495_v49, %v23421_v39  ;;  %v710_v13 = vmul.f32 %v23496_v31, %v23421_v39  ;;  %v8611_v49 = vand.u32 4294901760, %v8610_v29  ;;  %v23498_v31 = vld [vmem:[#allocation47_spill] sm:$0xff]  ;;  %v23500_v29 = vld [vmem:[#allocation56_spill] sm:$0xff] }
 0x247   :  { %14754 = vmatprep.subr.mxu1 %v8597_v4  ;;  %14712 = vmatpush3.msra.mxu0 %v19289_v25 }
 0x248   :  { %14755 = vmatpush3.msra.mxu1 %v8597_v4  ;;  %16141 = vset.pattern.permute.xlu0 %v23485_v14  ;;  %v23497_v4 = vld [vmem:[#allocation22_spill] sm:$0xff]  ;;  %v838_v44 = vadd.f32 %v710_v13, %v23498_v31  ;;  %v23499_v14 = vld [vmem:[#allocation31_spill] sm:$0xff] }
 0x249   :  { %14713 = vmatprep.subr.mxu0 %v19310_v50  ;;  %14756 = vmatprep.subr.mxu1 %v8604_v37  ;;  %v839_v16 = vadd.f32 %v711_v60, %v23497_v4  ;;  %v709_v59 = vmul.f32 %v23499_v14, %v23421_v39  ;;  %v23501_v60 = vld [vmem:[#allocation25_spill] sm:$0xff] }
 0x24a   :  { %1348 = vperm.xlu0 %16141, %v842_v47   ;;  %1338 = vperm.xlu1 %16140, %v840_v55   ;;  %v19490_v47 = vsub.f32 %v4496_v51, %v19480_v7  ;;  %v708_v55 = vmul.f32 %v23500_v29, %v23421_v39  ;;  %v23502_v51 = vld [vmem:[#allocation51_spill] sm:$0xff]  ;;  %v707_v29 = vmul.f32 %v23503_v61, %v23421_v39  ;;  %v23506_v61 = vld [vmem:[#allocation29_spill] sm:$0xff] }
 0x24b   :  { %14714 = vmatpush3.msra.mxu0 %v19310_v50  ;;  %14757 = vmatpush3.msra.mxu1 %v8604_v37  ;;  %v837_v37 = vadd.f32 %v709_v59, %v23501_v60  ;;  %v23505_v59 = vand.u32 4294901760, %v19044_v42 }
 0x24c   :  { %14715 = vmatprep.subr.mxu0 %v19338_v48  ;;  %14758 = vmatprep.subr.mxu1 %v8611_v49  ;;  %v22970_v13 = vand.u32 4294901760, %v19490_v47 }
 0x24d   :  { %14716 = vmatpush3.msra.mxu0 %v19338_v48  ;;  %14759 = vmatpush3.msra.mxu1 %v8611_v49  ;;  %v836_v49 = vadd.f32 %v708_v55, %v23502_v51  ;;  %v920_v55 = vpop.permute.xlu0 %919  ;;  %v835_v51 = vadd.f32 %v707_v29, %v23506_v61  ;;  %v23509_v29 = vld [vmem:[#allocation59_spill] sm:$0xff] }
 0x24e   :  { %14717 = vmatprep.subr.mxu0 %v19358_v6  ;;  %14760 = vmatprep.subr.mxu1 %v8618_v5 }
 0x24f   :  { %1333 = vperm.xlu0 %16141, %v839_v16   ;;  %1328 = vperm.xlu1 %16140, %v838_v44   ;;  %v8501_v16 = vsub.f32 %v19490_v47, %v22970_v13  ;;  %v925_v13 = vrot.slane %v920_v55, %v23415_v32 }
 0x250   :  { %14718 = vmatpush3.msra.mxu0 %v19358_v6  ;;  %14761 = vmatpush3.msra.mxu1 %v8618_v5  ;;  %v23504_v5 = vld [vmem:[#allocation57_spill] sm:$0xff] }
 0x251   :  { %14719 = vmatprep.subr.mxu0 %v19373_v27  ;;  %14763 = vmatmul.mubr.f32.vlgmr.msra.gmra.mxu1 %v19480_v7  ;;  %v706_v44 = vmul.f32 %v23504_v5, %v23421_v39  ;;  %v19534_v32 = vadd.f32 %v925_v13, %v23419_v2 }
 0x252   :  { %14800 = vmatprep.subr.mxu1 %v19038_v45  ;;  %14720 = vmatpush3.msra.mxu0 %v19373_v27 }
 0x253   :  { %14801 = vmatpush3.msra.mxu1 %v19038_v45  ;;  %14832 = vmatprep.mubr.f32.mxu1 %v23505_v59  ;;  %v23507_v59 = vld [vmem:[#allocation54_spill] sm:$0xff]  ;;  %v19551_v13 = vadd.f32 1.0, %v19534_v32 }
 0x254   :  { %14721 = vmatprep.subr.mxu0 %v19389_v23  ;;  %14802 = vmatprep.subr.mxu1 %v19050_v43  ;;  %v834_v5 = vadd.f32 %v706_v44, %v23507_v59  ;;  %v8502_v44 = vand.u32 4294901760, %v8501_v16  ;;  %v1284_v59 = vpop.permute.xlu1 %1283 }
 0x255   :  { %1323 = vperm.xlu0 %16141, %v837_v37   ;;  %1318 = vperm.xlu1 %16140, %v836_v49   ;;  %v23508_v37 = vld [vmem:[#allocation36_spill] sm:$0xff]  ;;  %v704_v49 = vmul.f32 %v23509_v29, %v23421_v39  ;;  %vm1669_vm3 = vcmp.eq.f32.partialorder %v1284_v59, %v19534_v32  ;;  %vm2221_vm5 = vcmp.eq.f32.partialorder %v1284_v59, %v19551_v13 }
 0x256   :  { %14722 = vmatpush3.msra.mxu0 %v19389_v23  ;;  %14803 = vmatpush3.msra.mxu1 %v19050_v43  ;;  %v705_v60 = vmul.f32 %v23508_v37, %v23421_v39 }
 0x257   :  { %14723 = vmatprep.subr.mxu0 %v19408_v41  ;;  %14804 = vmatprep.subr.mxu1 %v19162_v57  ;;  %v832_v29 = vadd.f32 %v704_v49, %v23413_v52  ;;  %v23511_v49 = vld [vmem:[#allocation41_spill] sm:$0xff] }
 0x258   :  { %14724 = vmatpush3.msra.mxu0 %v19408_v41  ;;  %14805 = vmatpush3.msra.mxu1 %v19162_v57  ;;  %v833_v55 = vadd.f32 %v705_v60, %v23412_v0  ;;  %v19545_v60 = vpop.permute.xlu0 %2003  ;;  %v1279_v16 = vpop.permute.xlu1 %1278  ;;  %v23522_v52 = vld [vmem:[#allocation81_spill] sm:$0xff] }
 0x259   :  { %14725 = vmatprep.subr.mxu0 %v19419_v11  ;;  %14806 = vmatprep.subr.mxu1 %v19181_v53  ;;  %vm1668_vm7 = vcmp.eq.f32.partialorder %v1279_v16, %v19534_v32  ;;  %vm2220_vm8 = vcmp.eq.f32.partialorder %v1279_v16, %v19551_v13 }
 0x25a   :  { %1313 = vperm.xlu0 %16141, %v835_v51   ;;  %1308 = vperm.xlu1 %16140, %v834_v5   ;;  %v703_v51 = vmul.f32 %v23414_v35, %v23421_v39  ;;  %v702_v5 = vmul.f32 %v23416_v40, %v23421_v39  ;;  %v12689_v16 = vsel %vm1668_vm7, 1.0, %v23144_v36 }
 0x25b   :  { %14726 = vmatpush3.msra.mxu0 %v19419_v11  ;;  %14807 = vmatpush3.msra.mxu1 %v19181_v53 }
 0x25c   :  { %14728 = vmatmul.mubr.f32.vlgmr.msra.gmra.mxu0 %v8502_v44  ;;  %14765 = vmatprep.subr.mxu0 %v19063_v54  ;;  %v830_v39 = vadd.f32 %v702_v5, %v23420_v38  ;;  %v23521_v38 = vand.u32 4294901760, %v19490_v47 }
 0x25d   :  { %14808 = vmatprep.subr.mxu1 %v19188_v22  ;;  %14766 = vmatpush3.msra.mxu0 %v19063_v54  ;;  %v23510_v54 = vld [vmem:[#allocation9_spill] sm:$0xff] }
 0x25e   :  { %14797 = vmatprep.mubr.f32.mxu0 %v19044_v42  ;;  %14809 = vmatpush3.msra.mxu1 %v19188_v22  ;;  %v831_v42 = vadd.f32 %v703_v51, %v23418_v18  ;;  %v733_v44 = vmul.f32 %v23511_v49, %v23510_v54  ;;  %v12818_v51 = vsel %vm2221_vm5, 1.0, %v23144_v36  ;;  %v732_v5 = vmul.f32 %v23427_v17, %v23510_v54 }
 0x25f   :  { %14767 = vmatprep.subr.mxu0 %v19075_v3  ;;  %14810 = vmatprep.subr.mxu1 %v19218_v12 }
 0x260   :  { %1303 = vperm.xlu0 %16141, %v833_v55   ;;  %1298 = vperm.xlu1 %16140, %v832_v29   ;;  %v1269_v55 = vpop.permute.xlu0 %1268  ;;  %v12690_v29 = vsel %vm1669_vm3, 1.0, %v23144_v36 }
 0x261   :  { %14768 = vmatpush3.msra.mxu0 %v19075_v3  ;;  %14811 = vmatpush3.msra.mxu1 %v19218_v12  ;;  %vm1666_vm2 = vcmp.eq.f32.partialorder %v1269_v55, %v19534_v32  ;;  %vm2218_vm6 = vcmp.eq.f32.partialorder %v1269_v55, %v19551_v13  ;;  %v19572_v3 = vpop.permute.xlu1 %2555  ;;  %v2085_v55 = vmul.f32 %v12690_v29, %v19545_v60 }
 0x262   :  { %14769 = vmatprep.subr.mxu0 %v19196_v15  ;;  %14812 = vmatprep.subr.mxu1 %v19242_v19  ;;  %v12687_v59 = vsel %vm1666_vm2, 1.0, %v23144_v36  ;;  %v2637_v17 = vmul.f32 %v12818_v51, %v19572_v3  ;;  %v19610_v51 = vpop.f32.mrf.mxu0 }
 0x263   :  { %14770 = vmatpush3.msra.mxu0 %v19196_v15  ;;  %14813 = vmatpush3.msra.mxu1 %v19242_v19  ;;  %v861_v15 = vadd.f32 %v733_v44, %v23426_v24  ;;  %v16161_v24 = vld [vmem:[%s22684_s0 + $0x5] sm:$0x1]  ;;  %23513 = vst [vmem:[#allocation74_spill] sm:$0xff] %v19610_v51 }
 0x264   :  { %14771 = vmatprep.subr.mxu0 %v19216_v33  ;;  %14814 = vmatprep.subr.mxu1 %v19261_v21  ;;  %v1254_v35 = vpop.permute.xlu0 %1253 }
 0x265   :  { %1293 = vperm.xlu0 %16141, %v831_v42   ;;  %1288 = vperm.xlu1 %16140, %v830_v39   ;;  %v12817_v42 = vsel %vm2220_vm8, 1.0, %v23144_v36  ;;  %v2082_v39 = vmul.f32 %v12687_v59, %v19545_v60  ;;  %v2084_v59 = vmul.f32 %v12689_v16, %v19545_v60  ;;  %v23516_v16 = vld [vmem:[#allocation64_spill] sm:$0xff]  ;;  %vm1663_vm14 = vcmp.eq.f32.partialorder %v1254_v35, %v19534_v32 }
 0x266   :  { %14772 = vmatpush3.msra.mxu0 %v19216_v33  ;;  %14815 = vmatpush3.msra.mxu1 %v19261_v21  ;;  %v12815_v33 = vsel %vm2218_vm6, 1.0, %v23144_v36  ;;  %vm2215_vm15 = vcmp.eq.f32.partialorder %v1254_v35, %v19551_v13 }
 0x267   :  { %14773 = vmatprep.subr.mxu0 %v19226_v8  ;;  %14816 = vmatprep.subr.mxu1 %v19289_v25  ;;  %v2634_v44 = vmul.f32 %v12815_v33, %v19572_v3 }
 0x268   :  { %14774 = vmatpush3.msra.mxu0 %v19226_v8  ;;  %14817 = vmatpush3.msra.mxu1 %v19289_v25  ;;  %v1274_v8 = vpop.permute.xlu1 %1273 }
 0x269   :  { %14775 = vmatprep.subr.mxu0 %v19250_v30  ;;  %14818 = vmatprep.subr.mxu1 %v19310_v50  ;;  %vm1667_vm9 = vcmp.eq.f32.partialorder %v1274_v8, %v19534_v32  ;;  %vm2219_vm10 = vcmp.eq.f32.partialorder %v1274_v8, %v19551_v13 }
 0x26a   :  { %16142 = vset.pattern.permute.xlu0 %v23429_v34  ;;  %1443 = vperm.xlu1 %16140, %v861_v15   ;;  %v23512_v34 = vld [vmem:[#allocation12_spill] sm:$0xff]  ;;  %v2636_v15 = vmul.f32 %v12817_v42, %v19572_v3 }
 0x26b   :  { %14776 = vmatpush3.msra.mxu0 %v19250_v30  ;;  %14819 = vmatpush3.msra.mxu1 %v19310_v50  ;;  %v860_v49 = vadd.f32 %v732_v5, %v23512_v34  ;;  %v2765_v30 = vadd.f32 %v2637_v17, %v2085_v55  ;;  %v14309_v17 = vpop.f32.mrf.mxu0  ;;  %v12688_v55 = vsel %vm1667_vm9, 1.0, %v23144_v36 }
 0x26c   :  { %935 = vperm.xlu0 %16142, %v16161_v24   ;;  %14777 = vmatprep.subr.mxu0 %v19279_v20  ;;  %v2762_v24 = vadd.f32 %v2634_v44, %v2082_v39  ;;  %v2764_v29 = vadd.f32 %v2636_v15, %v2084_v59  ;;  %v1264_v33 = vpop.permute.xlu1 %1263  ;;  %v23518_v39 = vld [vmem:[#allocation7_spill] sm:$0xff]  ;;  %v12816_v59 = vsel %vm2219_vm10, 1.0, %v23144_v36 }
 0x26d   :  { %14820 = vmatprep.subr.mxu1 %v19338_v48  ;;  %14778 = vmatpush3.msra.mxu0 %v19279_v20  ;;  %v23514_v20 = vld [vmem:[#allocation67_spill] sm:$0xff]  ;;  %vm1665_vm4 = vcmp.eq.f32.partialorder %v1264_v33, %v19534_v32  ;;  %vm2217_vm11 = vcmp.eq.f32.partialorder %v1264_v33, %v19551_v13  ;;  %v2635_v51 = vmul.f32 %v12816_v59, %v19572_v3 }
 0x26e   :  { %14821 = vmatpush3.msra.mxu1 %v19338_v48  ;;  %14779 = vmatprep.subr.mxu0 %v19308_v63  ;;  %v19617_v5 = vand.u32 4294901760, %v23514_v20  ;;  %v2890_v42 = vmul.f32 %v23516_v16, %v2762_v24  ;;  %v2892_v44 = vmul.f32 %v23518_v39, %v2764_v29  ;;  %v23519_v15 = vld [vmem:[#allocation27_spill] sm:$0xff]  ;;  %v7126_v24 = vpop.f32.mrf.mxu0  ;;  %v23520_v16 = vld [vmem:[#allocation10_spill] sm:$0xff] }
 0x26f   :  { %14822 = vmatprep.subr.mxu1 %v19358_v6  ;;  %1438 = vperm.xlu1 %16140, %v860_v49   ;;  %v19624_v49 = vpop.f32.mrf.mxu1 }
 0x270   :  { %14780 = vmatpush3.msra.mxu0 %v19308_v63  ;;  %14823 = vmatpush3.msra.mxu1 %v19358_v6  ;;  %v2893_v63 = vmul.f32 %v23329_v10, %v2765_v30  ;;  %23515 = vst [vmem:[#allocation76_spill] sm:$0xff] %v19624_v49  ;;  %v19638_v30 = vsub.f32 %v23514_v20, %v19617_v5  ;;  %v1259_v29 = vpop.permute.xlu1 %1258  ;;  %v19646_v49 = vand.u32 4294901760, %v2890_v42  ;;  %v19651_v20 = vand.u32 4294901760, %v2892_v44  ;;  %v14379_v39 = vpop.f32.mrf.mxu0 }
 0x271   :  { %14781 = vmatprep.subr.mxu0 %v19335_v58  ;;  %14824 = vmatprep.subr.mxu1 %v19373_v27  ;;  %v14344_v8 = vpop.f32.mrf.mxu1  ;;  %vm1664_vm12 = vcmp.eq.f32.partialorder %v1259_v29, %v19534_v32  ;;  %vm2216_vm13 = vcmp.eq.f32.partialorder %v1259_v29, %v19551_v13  ;;  %v12686_v10 = vsel %vm1665_vm4, 1.0, %v23144_v36 }
 0x272   :  { %14782 = vmatpush3.msra.mxu0 %v19335_v58  ;;  %14825 = vmatpush3.msra.mxu1 %v19373_v27  ;;  %v23517_v58 = vmov 5   ;;  %v12685_v59 = vsel %vm1664_vm12, 1.0, %v23144_v36  ;;  %v19673_v34 = vsub.f32 %v2890_v42, %v19646_v49  ;;  %v19680_v33 = vsub.f32 %v2892_v44, %v19651_v20  ;;  %v23523_v44 = vld [vmem:[#allocation63_spill] sm:$0xff] }
 0x273   :  { %14783 = vmatprep.subr.mxu0 %v19350_v56  ;;  %14826 = vmatprep.subr.mxu1 %v19389_v23  ;;  %v2081_v40 = vmul.f32 %v12686_v10, %v19545_v60  ;;  %v22983_v42 = vand.u32 4294901760, %v19638_v30 }
 0x274   :  { %16143 = vset.pattern.permute.xlu0 %v23517_v58  ;;  %16144 = vset.pattern.permute.xlu1 %v23517_v58  ;;  %v7294_v58 = vadd.f32 %v14344_v8, %v14309_v17  ;;  %v7397_v17 = vpop.f32.mrf.mxu0 }
 0x275   :  { %14784 = vmatpush3.msra.mxu0 %v19350_v56  ;;  %14827 = vmatpush3.msra.mxu1 %v19389_v23  ;;  %v19643_v56 = vand.u32 4294901760, %v2893_v63  ;;  %v19706_v35 = vsub.f32 %v19638_v30, %v22983_v42 }
 0x276   :  { %2011 = vperm.xlu0 %16143, %v23519_v15   ;;  %2563 = vperm.xlu1 %16144, %v23510_v54   ;;  %v2083_v15 = vmul.f32 %v12688_v55, %v19545_v60  ;;  %v12814_v55 = vsel %vm2217_vm11, 1.0, %v23144_v36 }
 0x277   :  { %14785 = vmatprep.subr.mxu0 %v19371_v62  ;;  %14828 = vmatprep.subr.mxu1 %v19408_v41  ;;  %v19670_v29 = vsub.f32 %v2893_v63, %v19643_v56  ;;  %v2633_v8 = vmul.f32 %v12814_v55, %v19572_v3 }
 0x278   :  { %14786 = vmatpush3.msra.mxu0 %v19371_v62  ;;  %14829 = vmatpush3.msra.mxu1 %v19408_v41  ;;  %v7287_v62 = vpop.f32.mrf.mxu1  ;;  %v2763_v2 = vadd.f32 %v2635_v51, %v2083_v15  ;;  %v7405_v51 = vadd.f32 %v14379_v39, %v7294_v58 }
 0x279   :  { %14787 = vmatprep.subr.mxu0 %v23520_v16  ;;  %14830 = vmatprep.subr.mxu1 %v19419_v11  ;;  %v7288_v18 = vadd.f32 %v7287_v62, %v7126_v24  ;;  %v12812_v24 = vsel %vm2215_vm15, 1.0, %v23144_v36  ;;  %v2761_v15 = vadd.f32 %v2633_v8, %v2081_v40  ;;  %v23524_v8 = vld [vmem:[#allocation11_spill] sm:$0xff] }
 0x27a   :  { %14788 = vmatpush3.msra.mxu0 %v23520_v16  ;;  %14831 = vmatpush3.msra.mxu1 %v19419_v11  ;;  %v12813_v16 = vsel %vm2216_vm13, 1.0, %v23144_v36  ;;  %v14414_v63 = vpop.f32.mrf.mxu1  ;;  %v2891_v58 = vmul.f32 %v23523_v44, %v2763_v2 }
 0x27b   :  { %14789 = vmatprep.subr.mxu0 %v19397_v1  ;;  %14833 = vmatmul.mubr.f32.vlgmr.msra.gmra.mxu1 %v23521_v38  ;;  %v2080_v38 = vmul.f32 %v12685_v59, %v19545_v60  ;;  %v2632_v10 = vmul.f32 %v12813_v16, %v19572_v3  ;;  %v7502_v2 = vadd.f32 %v14414_v63, %v7405_v51  ;;  %v19720_v59 = vand.u32 4294901760, %v19680_v33 }
 0x27c   :  { %14870 = vmatprep.subr.mxu1 %v19038_v45  ;;  %14790 = vmatpush3.msra.mxu0 %v19397_v1  ;;  %v7398_v1 = vadd.f32 %v7397_v17, %v7288_v18  ;;  %v7493_v39 = vpop.f32.mrf.mxu1  ;;  %v19713_v18 = vand.u32 4294901760, %v19673_v34  ;;  %v19725_v63 = vand.u32 4294901760, %v2891_v58  ;;  %v2631_v17 = vmul.f32 %v12812_v24, %v19572_v3  ;;  %v1244_v24 = vpop.permute.xlu0 %1243 }
 0x27d   :  { %14871 = vmatpush3.msra.mxu1 %v19038_v45  ;;  %14902 = vmatprep.mubr.f32.mxu1 %v23522_v52  ;;  %v19696_v45 = vand.u32 4294901760, %v19670_v29  ;;  %vm1661_vm2 = vcmp.eq.f32.partialorder %v1244_v24, %v19534_v32  ;;  %vm2213_vm3 = vcmp.eq.f32.partialorder %v1244_v24, %v19551_v13 }
 0x27e   :  { %14791 = vmatprep.subr.mxu0 %v19415_v46  ;;  %14872 = vmatprep.subr.mxu1 %v19050_v43  ;;  %v14484_v62 = vpop.f32.mrf.mxu1  ;;  %v7494_v16 = vadd.f32 %v7493_v39, %v7398_v1  ;;  %v23526_v39 = vld [vmem:[#allocation13_spill] sm:$0xff] }
 0x27f   :  { %14792 = vmatpush3.msra.mxu0 %v19415_v46  ;;  %14873 = vmatpush3.msra.mxu1 %v19050_v43  ;;  %v12684_v46 = vsel %vm1663_vm14, 1.0, %v23144_v36  ;;  %v1249_v43 = vpop.permute.xlu1 %1248 }
 0x280   :  { %14793 = vmatprep.subr.mxu0 %v19432_v26  ;;  %14874 = vmatprep.subr.mxu1 %v19162_v57  ;;  %vm1662_vm0 = vcmp.eq.f32.partialorder %v1249_v43, %v19534_v32  ;;  %vm2214_vm1 = vcmp.eq.f32.partialorder %v1249_v43, %v19551_v13  ;;  %v1234_v42 = vpop.permute.xlu0 %1233 }
 0x281   :  { %14794 = vmatpush3.msra.mxu0 %v19432_v26  ;;  %14875 = vmatpush3.msra.mxu1 %v19162_v57  ;;  %v2760_v26 = vadd.f32 %v2632_v10, %v2080_v38  ;;  %v23525_v10 = vld [vmem:[#allocation40_spill] sm:$0xff]  ;;  %vm1659_vm7 = vcmp.eq.f32.partialorder %v1234_v42, %v19534_v32  ;;  %vm2211_vm8 = vcmp.eq.f32.partialorder %v1234_v42, %v19551_v13 }
 0x282   :  { %14795 = vmatprep.subr.mxu0 %v19442_v28  ;;  %14876 = vmatprep.subr.mxu1 %v19181_v53  ;;  %v14449_v57 = vpop.f32.mrf.mxu0  ;;  %v19737_v1 = vmul.f32 %v23525_v10, %v2761_v15  ;;  %v12811_v15 = vsel %vm2214_vm1, 1.0, %v23144_v36  ;;  %v12680_v10 = vsel %vm1659_vm7, 1.0, %v23144_v36  ;;  %v23535_v42 = vsub.f32 %v19670_v29, %v19696_v45 }
 0x283   :  { %14796 = vmatpush3.msra.mxu0 %v19442_v28  ;;  %14877 = vmatpush3.msra.mxu1 %v19181_v53  ;;  %v7627_v40 = vadd.f32 %v14449_v57, %v7502_v2  ;;  %v2079_v28 = vmul.f32 %v12684_v46, %v19545_v60  ;;  %v19740_v46 = vmul.f32 %v23526_v39, %v2760_v26  ;;  %v23527_v2 = vld [vmem:[#allocation85_spill] sm:$0xff]  ;;  %v7713_v57 = vpop.f32.mrf.mxu1  ;;  %v23531_v53 = vld [vmem:[#allocation90_spill] sm:$0xff] }
 0x284   :  { %14798 = vmatmul.mubr.f32.vlgmr.msra.gmra.mxu0 %v19490_v47  ;;  %14835 = vmatprep.subr.mxu0 %v23524_v8  ;;  %v7620_v38 = vpop.f32.mrf.mxu0 }
 0x285   :  { %14878 = vmatprep.subr.mxu1 %v19188_v22  ;;  %14836 = vmatpush3.msra.mxu0 %v23524_v8  ;;  %v7720_v47 = vadd.f32 %v14484_v62, %v7627_v40  ;;  %v7621_v51 = vadd.f32 %v7620_v38, %v7494_v16  ;;  %v12683_v62 = vsel %vm1662_vm0, 1.0, %v23144_v36  ;;  %v19757_v40 = vsub.f32 %v2891_v58, %v19725_v63  ;;  %v1239_v8 = vpop.permute.xlu1 %1238  ;;  %v23528_v38 = vld [vmem:[#allocation86_spill] sm:$0xff] }
 0x286   :  { %14867 = vmatprep.mubr.f32.mxu0 %v23522_v52  ;;  %14879 = vmatpush3.msra.mxu1 %v19188_v22  ;;  %v2759_v16 = vadd.f32 %v2631_v17, %v2079_v28  ;;  %vm1660_vm5 = vcmp.eq.f32.partialorder %v1239_v8, %v19534_v32  ;;  %v19770_v28 = vand.u32 4294901760, %v19737_v1  ;;  %v2078_v17 = vmul.f32 %v12683_v62, %v19545_v60 }
 0x287   :  { %14837 = vmatprep.subr.mxu0 %v23527_v2  ;;  %14880 = vmatprep.subr.mxu1 %v19218_v12  ;;  %v19754_v26 = vmul.f32 255.0, %v7720_v47  ;;  %v7714_v22 = vadd.f32 %v7713_v57, %v7621_v51  ;;  %vm2212_vm6 = vcmp.eq.f32.partialorder %v1239_v8, %v19551_v13  ;;  %v23529_v47 = vld [vmem:[#allocation89_spill] sm:$0xff]  ;;  %v19778_v51 = vand.u32 4294901760, %v19740_v46 }
 0x288   :  { %14838 = vmatpush3.msra.mxu0 %v23527_v2  ;;  %14881 = vmatpush3.msra.mxu1 %v19218_v12  ;;  %v2630_v12 = vmul.f32 %v12811_v15, %v19572_v3  ;;  %v12682_v2 = vsel %vm1661_vm2, 1.0, %v23144_v36  ;;  %v23530_v15 = vld [vmem:[#allocation42_spill] sm:$0xff] }
 0x289   :  { %14839 = vmatprep.subr.mxu0 %v23528_v38  ;;  %14882 = vmatprep.subr.mxu1 %v19242_v19  ;;  %v15965_v43 = vcvt.f32.s32 %v19754_v26  ;;  %v19767_v58 = vmul.f32 255.0, %v7714_v22  ;;  %v19787_v22 = vmul.f32 %v23530_v15, %v2759_v16  ;;  %v12809_v16 = vsel %vm2212_vm6, 1.0, %v23144_v36  ;;  %v1229_v39 = vpop.permute.xlu1 %1228 }
 0x28a   :  { %14840 = vmatpush3.msra.mxu0 %v23528_v38  ;;  %14883 = vmatpush3.msra.mxu1 %v19242_v19  ;;  %v12810_v19 = vsel %vm2213_vm3, 1.0, %v23144_v36  ;;  %v12681_v38 = vsel %vm1660_vm5, 1.0, %v23144_v36  ;;  %v2758_v55 = vadd.f32 %v2630_v12, %v2078_v17  ;;  %v2077_v15 = vmul.f32 %v12682_v2, %v19545_v60 }
 0x28b   :  { %14841 = vmatprep.subr.mxu0 %v23529_v47  ;;  %14884 = vmatprep.subr.mxu1 %v19261_v21  ;;  %v15966_v57 = vcvt.s32.f32 %v15965_v43  ;;  %v15957_v62 = vcvt.f32.s32 %v19767_v58  ;;  %v15963_v43 = vand.u32 2147483647, %v19754_v26  ;;  %v15955_v8 = vand.u32 2147483647, %v19767_v58 }
 0x28c   :  { %14842 = vmatpush3.msra.mxu0 %v23529_v47  ;;  %14885 = vmatpush3.msra.mxu1 %v19261_v21  ;;  %v15968_v47 = vand.u32 2147483648, %v19754_v26  ;;  %v23532_v21 = vld [vmem:[#allocation93_spill] sm:$0xff]  ;;  %v15960_v17 = vand.u32 2147483648, %v19767_v58  ;;  %v2629_v12 = vmul.f32 %v12810_v19, %v19572_v3  ;;  %v2076_v2 = vmul.f32 %v12681_v38, %v19545_v60  ;;  %v1224_v38 = vpop.permute.xlu0 %1223 }
 0x28d   :  { %14843 = vmatprep.subr.mxu0 %v23531_v53  ;;  %14886 = vmatprep.subr.mxu1 %v19289_v25  ;;  %v15967_v24 = vand.u32 2147483647, %v15966_v57  ;;  %v15958_v52 = vcvt.s32.f32 %v15957_v62  ;;  %v23533_v62 = vld [vmem:[#allocation94_spill] sm:$0xff]  ;;  %vm15964_vm9 = vcmp.lt.f32.partialorder %v15963_v43, 8388608.0  ;;  %vm1658_vm10 = vcmp.eq.f32.partialorder %v1229_v39, %v19534_v32 }
 0x28e   :  { %14844 = vmatpush3.msra.mxu0 %v23531_v53  ;;  %14887 = vmatpush3.msra.mxu1 %v19289_v25  ;;  %v2628_v25 = vmul.f32 %v12809_v16, %v19572_v3  ;;  %vm2210_vm4 = vcmp.eq.f32.partialorder %v1229_v39, %v19551_v13  ;;  %v23534_v43 = vld [vmem:[#allocation6_spill] sm:$0xff]  ;;  %vm15956_vm11 = vcmp.lt.f32.partialorder %v15955_v8, 8388608.0  ;;  %vm1657_vm12 = vcmp.eq.f32.partialorder %v1224_v38, %v19534_v32 }
 0x28f   :  { %14845 = vmatprep.subr.mxu0 %v23532_v21  ;;  %14888 = vmatprep.subr.mxu1 %v19310_v50  ;;  %v15969_v53 = vor.u32 %v15968_v47, %v15967_v24  ;;  %v15959_v57 = vand.u32 2147483647, %v15958_v52  ;;  %vm2209_vm13 = vcmp.eq.f32.partialorder %v1224_v38, %v19551_v13  ;;  %v2757_v47 = vadd.f32 %v2629_v12, %v2077_v15  ;;  %v1219_v15 = vpop.permute.xlu1 %1218 }
 0x290   :  { %14846 = vmatpush3.msra.mxu0 %v23532_v21  ;;  %14889 = vmatpush3.msra.mxu1 %v19310_v50  ;;  %v12808_v50 = vsel %vm2211_vm8, 1.0, %v23144_v36  ;;  %v23536_v21 = vld [vmem:[#allocation69_spill] sm:$0xff]  ;;  %v19848_v8 = vand.u32 4294901760, %v19757_v40  ;;  %v12806_v39 = vsel %vm2209_vm13, 1.0, %v23144_v36  ;;  %vm1656_vm14 = vcmp.eq.f32.partialorder %v1219_v15, %v19534_v32 }
 0x291   :  { %14847 = vmatprep.subr.mxu0 %v23533_v62  ;;  %14890 = vmatprep.subr.mxu1 %v19338_v48  ;;  %v15970_v52 = vsel %vm15964_vm9, %v15969_v53, %v19754_v26  ;;  %v15961_v19 = vor.u32 %v15960_v17, %v15959_v57  ;;  %v19838_v26 = vand.u32 4294901760, %v23535_v42  ;;  %v2075_v57 = vmul.f32 %v12680_v10, %v19545_v60  ;;  %v23537_v10 = vld [vmem:[#allocation16_spill] sm:$0xff] }
 0x292   :  { %14848 = vmatpush3.msra.mxu0 %v23533_v62  ;;  %14891 = vmatpush3.msra.mxu1 %v19338_v48  ;;  %v12544_v16 = vmul.f32 0.003921569, %v15970_v52  ;;  %v19843_v48 = vsub.f32 %v19737_v1, %v19770_v28  ;;  %v12679_v1 = vsel %vm1658_vm10, 1.0, %v23144_v36  ;;  %v19865_v17 = vsub.f32 %v19740_v46, %v19778_v51  ;;  %v23538_v52 = vld [vmem:[#allocation20_spill] sm:$0xff] }
 0x293   :  { %14849 = vmatprep.subr.mxu0 %v23534_v43  ;;  %14892 = vmatprep.subr.mxu1 %v19358_v6  ;;  %v15962_v24 = vsel %vm15956_vm11, %v15961_v19, %v19767_v58  ;;  %v2627_v58 = vmul.f32 %v12808_v50, %v19572_v3  ;;  %v2886_v12 = vmul.f32 %v23537_v10, %v2758_v55  ;;  %v12678_v62 = vsel %vm1657_vm12, 1.0, %v23144_v36  ;;  %v23539_v19 = vld [vmem:[#allocation44_spill] sm:$0xff] }
 0x294   :  { %14850 = vmatpush3.msra.mxu0 %v23534_v43  ;;  %14893 = vmatpush3.msra.mxu1 %v19358_v6  ;;  %12560 = vst [vmem:[%s22686_s2 + $0x8] sm:$0xff] %v12544_v16  ;;  %v12543_v53 = vmul.f32 0.003921569, %v15962_v24  ;;  %v12807_v6 = vsel %vm2210_vm4, 1.0, %v23144_v36  ;;  %v19880_v46 = vand.u32 4294901760, %v19787_v22  ;;  %v2756_v55 = vadd.f32 %v2628_v25, %v2076_v2  ;;  %v23540_v43 = vld [vmem:[#allocation68_spill] sm:$0xff] }
 0x295   :  { %14851 = vmatprep.subr.mxu0 %v23536_v21  ;;  %14894 = vmatprep.subr.mxu1 %v19373_v27  ;;  %vm2208_vm15 = vcmp.eq.f32.partialorder %v1219_v15, %v19551_v13  ;;  %v2074_v50 = vmul.f32 %v12679_v1, %v19545_v60  ;;  %v2626_v38 = vmul.f32 %v12807_v6, %v19572_v3  ;;  %v19915_v1 = vand.u32 4294901760, %v2886_v12  ;;  %v23544_v6 = vld [vmem:[#allocation33_spill] sm:$0xff] }
 0x296   :  { %14852 = vmatpush3.msra.mxu0 %v23536_v21  ;;  %14895 = vmatpush3.msra.mxu1 %v19373_v27  ;;  %12559 = vst [vmem:[%s22686_s2] sm:$0xff] %v12543_v53  ;;  %v2885_v27 = vmul.f32 %v23539_v19, %v2757_v47  ;;  %v23541_v2 = vsub.f32 %v19680_v33, %v19720_v59  ;;  %v1214_v21 = vpop.permute.xlu0 %1213  ;;  %v19899_v47 = vand.u32 4294901760, %v19843_v48  ;;  %v12805_v53 = vsel %vm2208_vm15, 1.0, %v23144_v36 }
 0x297   :  { %14853 = vmatprep.subr.mxu0 %v23538_v52  ;;  %14896 = vmatprep.subr.mxu1 %v19389_v23  ;;  %v2755_v16 = vadd.f32 %v2627_v58, %v2075_v57  ;;  %v2073_v42 = vmul.f32 %v12678_v62, %v19545_v60  ;;  %v2625_v24 = vmul.f32 %v12806_v39, %v19572_v3  ;;  %v23543_v57 = vld [vmem:[#allocation3_spill] sm:$0xff]  ;;  %v1209_v39 = vpop.permute.xlu1 %1208 }
 0x298   :  { %14854 = vmatpush3.msra.mxu0 %v23538_v52  ;;  %14897 = vmatpush3.msra.mxu1 %v19389_v23  ;;  %v9204_v25 = vand.u32 4294901760, %v23541_v2  ;;  %23542 = vst [vmem:[#allocation78_spill] sm:$0xff] %v19899_v47  ;;  %v12677_v23 = vsel %vm1656_vm14, 1.0, %v23144_v36  ;;  %vm1655_vm0 = vcmp.eq.f32.partialorder %v1214_v21, %v19534_v32  ;;  %vm2207_vm1 = vcmp.eq.f32.partialorder %v1214_v21, %v19551_v13 }
 0x299   :  { %14855 = vmatprep.subr.mxu0 %v23540_v43  ;;  %14898 = vmatprep.subr.mxu1 %v19408_v41  ;;  %v19913_v58 = vsub.f32 %v19787_v22, %v19880_v46  ;;  %v2884_v62 = vmul.f32 %v23544_v6, %v2756_v55  ;;  %v9210_v15 = vsub.f32 %v19757_v40, %v19848_v8  ;;  %v19922_v52 = vand.u32 4294901760, %v2885_v27  ;;  %v23545_v22 = vld [vmem:[#allocation70_spill] sm:$0xff] }
 0x29a   :  { %14856 = vmatpush3.msra.mxu0 %v23540_v43  ;;  %14899 = vmatpush3.msra.mxu1 %v19408_v41  ;;  %v2754_v41 = vadd.f32 %v2626_v38, %v2074_v50  ;;  %vm1654_vm2 = vcmp.eq.f32.partialorder %v1209_v39, %v19534_v32  ;;  %vm2206_vm3 = vcmp.eq.f32.partialorder %v1209_v39, %v19551_v13  ;;  %v12676_v2 = vsel %vm1655_vm0, 1.0, %v23144_v36  ;;  %v23546_v38 = vld [vmem:[#allocation66_spill] sm:$0xff] }
 0x29b   :  { %14857 = vmatprep.subr.mxu0 %v23543_v57  ;;  %14900 = vmatprep.subr.mxu1 %v19419_v11  ;;  %v2072_v55 = vmul.f32 %v12677_v23, %v19545_v60  ;;  %v2624_v43 = vmul.f32 %v12805_v53, %v19572_v3  ;;  %v12804_v50 = vsel %vm2207_vm1, 1.0, %v23144_v36  ;;  %v9224_v23 = vsub.f32 %v19843_v48, %v19899_v47  ;;  %v23574_v47 = vld [vmem:[#allocation53_spill] sm:$0xff] }
 0x29c   :  { %14858 = vmatpush3.msra.mxu0 %v23543_v57  ;;  %14901 = vmatpush3.msra.mxu1 %v19419_v11  ;;  %v2883_v11 = vmul.f32 %v23546_v38, %v2755_v16  ;;  %v2753_v57 = vadd.f32 %v2625_v24, %v2073_v42  ;;  %v19944_v53 = vand.u32 4294901760, %v19865_v17  ;;  %v19947_v21 = vsub.f32 %v2886_v12, %v19915_v1  ;;  %v23549_v24 = vld [vmem:[#allocation46_spill] sm:$0xff] }
 0x29d   :  { %14859 = vmatprep.subr.mxu0 %v23545_v22  ;;  %14903 = vmatmul.mubr.f32.vlgmr.msra.gmra.mxu1 %v19480_v7  ;;  %v19949_v6 = vand.u32 4294901760, %v2884_v62  ;;  %v12675_v16 = vsel %vm1654_vm2, 1.0, %v23144_v36  ;;  %v12803_v42 = vsel %vm2206_vm3, 1.0, %v23144_v36  ;;  %v2071_v38 = vmul.f32 %v12676_v2, %v19545_v60 }
 0x29e   :  { %14940 = vmatprep.subr.mxu1 %v19838_v26  ;;  %14860 = vmatpush3.msra.mxu0 %v23545_v22  ;;  %23547 = vst [vmem:[#allocation79_spill] sm:$0xff] %v19944_v53  ;;  %v2882_v22 = vmul.f32 %v23549_v24, %v2754_v41  ;;  %v2623_v12 = vmul.f32 %v12804_v50, %v19572_v3  ;;  %v9211_v19 = vand.u32 4294901760, %v9210_v15  ;;  %v19971_v41 = vand.u32 4294901760, %v19913_v58  ;;  %v23552_v50 = vld [vmem:[#allocation23_spill] sm:$0xff] }
 0x29f   :  { %14941 = vmatpush3.msra.mxu1 %v19838_v26  ;;  %14972 = vmatprep.mubr.f32.mxu1 %v19617_v5  ;;  %v23548_v26 = vld [vmem:[#allocation71_spill] sm:$0xff]  ;;  %v19964_v32 = vsub.f32 %v2885_v27, %v19922_v52  ;;  %v2752_v10 = vadd.f32 %v2624_v43, %v2072_v55  ;;  %v23550_v13 = vsub.f32 %v19673_v34, %v19713_v18  ;;  %v19973_v2 = vand.u32 4294901760, %v2883_v11  ;;  %v23553_v55 = vld [vmem:[#allocation72_spill] sm:$0xff] }
 0x2a0   :  { %14861 = vmatprep.subr.mxu0 %v23548_v26  ;;  %14942 = vmatprep.subr.mxu1 %v9204_v25  ;;  %23551 = vst [vmem:[#allocation83_spill] sm:$0xff] %v19971_v41  ;;  %v2881_v24 = vmul.f32 %v23552_v50, %v2753_v57  ;;  %v2070_v15 = vmul.f32 %v12675_v16, %v19545_v60  ;;  %v19988_v57 = vand.u32 4294901760, %v2882_v22 }
 0x2a1   :  { %14862 = vmatpush3.msra.mxu0 %v23548_v26  ;;  %14943 = vmatpush3.msra.mxu1 %v9204_v25  ;;  %v9218_v39 = vand.u32 4294901760, %v23550_v13  ;;  %v2622_v27 = vmul.f32 %v12803_v42, %v19572_v3  ;;  %v19980_v25 = vsub.f32 %v2884_v62, %v19949_v6  ;;  %v9231_v43 = vsub.f32 %v19865_v17, %v19944_v53 }
 0x2a2   :  { %14863 = vmatprep.subr.mxu0 %v19456_v9  ;;  %14944 = vmatprep.subr.mxu1 %v9211_v19  ;;  %v19986_v26 = vand.u32 4294901760, %v19947_v21  ;;  %v2751_v60 = vadd.f32 %v2623_v12, %v2071_v38  ;;  %v9225_v3 = vand.u32 4294901760, %v9224_v23  ;;  %v9238_v62 = vsub.f32 %v19913_v58, %v19971_v41 }
 0x2a3   :  { %14864 = vmatpush3.msra.mxu0 %v19456_v9  ;;  %14945 = vmatpush3.msra.mxu1 %v9211_v19  ;;  %v23555_v9 = vld [vmem:[#allocation48_spill] sm:$0xff]  ;;  %v9176_v19 = vand.u32 4294901760, %v19706_v35  ;;  %v19997_v42 = vand.u32 4294901760, %v19964_v32  ;;  %v20000_v13 = vsub.f32 %v2883_v11, %v19973_v2  ;;  %v20002_v38 = vand.u32 4294901760, %v2881_v24 }
 0x2a4   :  { %14865 = vmatprep.subr.mxu0 %v23553_v55  ;;  %23554 = vst [vmem:[#allocation84_spill] sm:$0xff] %v19986_v26  ;;  %14946 = vmatprep.subr.mxu1 %v9218_v39  ;;  %v2880_v16 = vmul.f32 %v23555_v9, %v2752_v10  ;;  %v2750_v12 = vadd.f32 %v2622_v27, %v2070_v15  ;;  %v20009_v10 = vand.u32 4294901760, %v19980_v25  ;;  %v23558_v11 = vld [vmem:[#allocation52_spill] sm:$0xff]  ;;  %v9239_v27 = vand.u32 4294901760, %v9238_v62 }
 0x2a5   :  { %14866 = vmatpush3.msra.mxu0 %v23553_v55  ;;  %14947 = vmatpush3.msra.mxu1 %v9218_v39  ;;  %23556 = vst [vmem:[#allocation87_spill] sm:$0xff] %v19997_v42  ;;  %v9245_v35 = vsub.f32 %v19947_v21, %v19986_v26  ;;  %v20012_v23 = vsub.f32 %v2882_v22, %v19988_v57  ;;  %v23560_v9 = vld [vmem:[#allocation4_spill] sm:$0xff] }
 0x2a6   :  { %14868 = vmatmul.mubr.f32.vlgmr.msra.gmra.mxu0 %v19480_v7  ;;  %14905 = vmatprep.subr.mxu0 %v19643_v56  ;;  %v9232_v7 = vand.u32 4294901760, %v9231_v43  ;;  %23557 = vst [vmem:[#allocation88_spill] sm:$0xff] %v20009_v10  ;;  %v2879_v39 = vmul.f32 %v23558_v11, %v2751_v60  ;;  %v20016_v15 = vand.u32 4294901760, %v2880_v16  ;;  %v9252_v55 = vsub.f32 %v19964_v32, %v19997_v42  ;;  %v23559_v43 = vld [vmem:[#allocation21_spill] sm:$0xff] }
 0x2a7   :  { %14948 = vmatprep.subr.mxu1 %v9225_v3  ;;  %14906 = vmatpush3.msra.mxu0 %v19643_v56  ;;  %v20024_v22 = vsub.f32 %v2881_v24, %v20002_v38  ;;  %v2878_v60 = vmul.f32 %v23560_v9, %v2750_v12  ;;  %v9246_v62 = vand.u32 4294901760, %v9245_v35  ;;  %v9259_v11 = vsub.f32 %v19980_v25, %v20009_v10  ;;  %v23563_v9 = vld [vmem:[#allocation15_spill] sm:$0xff]  ;;  %v23564_v10 = vld [vmem:[#allocation24_spill] sm:$0xff] }
 0x2a8   :  { %14937 = vmatprep.mubr.f32.mxu0 %v9176_v19  ;;  %14949 = vmatpush3.msra.mxu1 %v9225_v3  ;;  %v731_v19 = vmul.f32 %v23559_v43, %v23510_v54  ;;  %v20029_v3 = vand.u32 4294901760, %v20000_v13  ;;  %v20034_v50 = vand.u32 4294901760, %v2879_v39  ;;  %v20038_v24 = vand.u32 4294901760, %v20012_v23 }
 0x2a9   :  { %14907 = vmatprep.subr.mxu0 %v19651_v20  ;;  %14950 = vmatprep.subr.mxu1 %v9232_v7  ;;  %v20041_v12 = vsub.f32 %v2880_v16, %v20016_v15  ;;  %v20045_v43 = vand.u32 4294901760, %v2878_v60  ;;  %v729_v42 = vmul.f32 %v23564_v10, %v23510_v54  ;;  %v20053_v16 = vand.u32 4294901760, %v20024_v22 }
 0x2aa   :  { %14908 = vmatpush3.msra.mxu0 %v19651_v20  ;;  %14951 = vmatpush3.msra.mxu1 %v9232_v7  ;;  %23561 = vst [vmem:[#allocation91_spill] sm:$0xff] %v20029_v3  ;;  %23562 = vst [vmem:[#allocation92_spill] sm:$0xff] %v20038_v24  ;;  %v9253_v7 = vand.u32 4294901760, %v9252_v55  ;;  %v859_v35 = vadd.f32 %v731_v19, %v23563_v9  ;;  %v9260_v55 = vand.u32 4294901760, %v9259_v11 }
 0x2ab   :  { %14909 = vmatprep.subr.mxu0 %v19725_v63  ;;  %14952 = vmatprep.subr.mxu1 %v9239_v27  ;;  %23565 = vst [vmem:[#allocation9_spill] sm:$0xff] %v20053_v16  ;;  %v20057_v19 = vsub.f32 %v2879_v39, %v20034_v50  ;;  %v9273_v9 = vsub.f32 %v20012_v23, %v20038_v24  ;;  %v20064_v10 = vand.u32 4294901760, %v20041_v12  ;;  %v23568_v39 = vld [vmem:[#allocation18_spill] sm:$0xff]  ;;  %v23569_v24 = vld [vmem:[#allocation49_spill] sm:$0xff] }
 0x2ac   :  { %14910 = vmatpush3.msra.mxu0 %v19725_v63  ;;  %14953 = vmatpush3.msra.mxu1 %v9239_v27  ;;  %v9266_v27 = vsub.f32 %v20000_v13, %v20029_v3  ;;  %v20067_v3 = vsub.f32 %v2878_v60, %v20045_v43  ;;  %v9280_v26 = vsub.f32 %v20024_v22, %v20053_v16 }
 0x2ad   :  { %14911 = vmatprep.subr.mxu0 %v19646_v49  ;;  %14954 = vmatprep.subr.mxu1 %v9246_v62  ;;  %23567 = vst [vmem:[#allocation67_spill] sm:$0xff] %v20064_v10  ;;  %v730_v41 = vmul.f32 %v23569_v24, %v23510_v54  ;;  %v9274_v60 = vand.u32 4294901760, %v9273_v9  ;;  %v23571_v9 = vld [vmem:[#allocation43_spill] sm:$0xff] }
 0x2ae   :  { %14912 = vmatpush3.msra.mxu0 %v19646_v49  ;;  %14955 = vmatpush3.msra.mxu1 %v9246_v62  ;;  %v23566_v62 = vmov 0   ;;  %v9267_v11 = vand.u32 4294901760, %v9266_v27  ;;  %v20080_v27 = vand.u32 4294901760, %v20057_v19  ;;  %v20086_v24 = vand.u32 4294901760, %v20067_v3 }
 0x2af   :  { %14913 = vmatprep.subr.mxu0 %v19770_v28  ;;  %14956 = vmatprep.subr.mxu1 %v9253_v7 }
 0x2b0   :  { %14914 = vmatpush3.msra.mxu0 %v19770_v28  ;;  %14957 = vmatpush3.msra.mxu1 %v9253_v7  ;;  %v857_v7 = vadd.f32 %v729_v42, %v23568_v39  ;;  %v9287_v42 = vsub.f32 %v20041_v12, %v20064_v10  ;;  %v9294_v16 = vsub.f32 %v20057_v19, %v20080_v27  ;;  %v23573_v10 = vld [vmem:[#allocation28_spill] sm:$0xff] }
 0x2b1   :  { %16145 = vset.pattern.permute.xlu1 %v23566_v62  ;;  %14915 = vmatprep.subr.mxu0 %v19778_v51 }
 0x2b2   :  { %14958 = vmatprep.subr.mxu1 %v9260_v55  ;;  %1433 = vperm.xlu1 %16145, %v859_v35   ;;  %v23570_v35 = vld [vmem:[#allocation50_spill] sm:$0xff] }
 0x2b3   :  { %14916 = vmatpush3.msra.mxu0 %v19778_v51  ;;  %14959 = vmatpush3.msra.mxu1 %v9260_v55  ;;  %v728_v53 = vmul.f32 %v23570_v35, %v23510_v54  ;;  %v9281_v55 = vand.u32 4294901760, %v9280_v26  ;;  %v858_v35 = vadd.f32 %v730_v41, %v23571_v9  ;;  %v9288_v26 = vand.u32 4294901760, %v9287_v42  ;;  %v23575_v41 = vld [vmem:[#allocation75_spill] sm:$0xff] }
 0x2b4   :  { %14917 = vmatprep.subr.mxu0 %v19880_v46  ;;  %14960 = vmatprep.subr.mxu1 %v9267_v11  ;;  %v725_v9 = vmul.f32 %v23499_v14, %v23510_v54 }
 0x2b5   :  { %14918 = vmatpush3.msra.mxu0 %v19880_v46  ;;  %14961 = vmatpush3.msra.mxu1 %v9267_v11  ;;  %v23572_v11 = vld [vmem:[#allocation45_spill] sm:$0xff] }
 0x2b6   :  { %14919 = vmatprep.subr.mxu0 %v19915_v1  ;;  %14962 = vmatprep.subr.mxu1 %v9274_v60  ;;  %v856_v39 = vadd.f32 %v728_v53, %v23572_v11  ;;  %v9301_v53 = vsub.f32 %v20067_v3, %v20086_v24  ;;  %v20104_v11 = vand.u32 4294901760, %v23575_v41 }
 0x2b7   :  { %1423 = vperm.xlu1 %16145, %v857_v7   ;;  %14920 = vmatpush3.msra.mxu0 %v19915_v1  ;;  %v727_v7 = vmul.f32 %v23573_v10, %v23510_v54 }
 0x2b8   :  { %14963 = vmatpush3.msra.mxu1 %v9274_v60  ;;  %14921 = vmatprep.subr.mxu0 %v19922_v52  ;;  %v726_v60 = vmul.f32 %v23574_v47, %v23510_v54  ;;  %v9302_v10 = vand.u32 4294901760, %v9301_v53  ;;  %v23578_v53 = vld [vmem:[#allocation51_spill] sm:$0xff] }
 0x2b9   :  { %14964 = vmatprep.subr.mxu1 %v9281_v55  ;;  %14922 = vmatpush3.msra.mxu0 %v19922_v52  ;;  %v855_v42 = vadd.f32 %v727_v7, %v23497_v4  ;;  %v23577_v7 = vld [vmem:[#allocation25_spill] sm:$0xff] }
 0x2ba   :  { %14965 = vmatpush3.msra.mxu1 %v9281_v55  ;;  %16146 = vset.pattern.permute.xlu0 %v23566_v62  ;;  %v9295_v55 = vand.u32 4294901760, %v9294_v16  ;;  %v854_v47 = vadd.f32 %v726_v60, %v23498_v31  ;;  %v23576_v16 = vld [vmem:[#allocation56_spill] sm:$0xff] }
 0x2bb   :  { %14923 = vmatprep.subr.mxu0 %v19949_v6  ;;  %14966 = vmatprep.subr.mxu1 %v9288_v26 }
 0x2bc   :  { %1428 = vperm.xlu0 %16146, %v858_v35   ;;  %1418 = vperm.xlu1 %16145, %v856_v39   ;;  %v20115_v39 = vsub.f32 %v23575_v41, %v20104_v11  ;;  %v724_v35 = vmul.f32 %v23576_v16, %v23510_v54 }
 0x2bd   :  { %14924 = vmatpush3.msra.mxu0 %v19949_v6  ;;  %14967 = vmatpush3.msra.mxu1 %v9288_v26  ;;  %v853_v26 = vadd.f32 %v725_v9, %v23577_v7  ;;  %v23581_v9 = vand.u32 4294901760, %v19638_v30  ;;  %v23586_v7 = vld [vmem:[#allocation37_spill] sm:$0xff] }
 0x2be   :  { %14925 = vmatprep.subr.mxu0 %v19973_v2  ;;  %14968 = vmatprep.subr.mxu1 %v9295_v55  ;;  %v23004_v60 = vand.u32 4294901760, %v20115_v39  ;;  %v852_v41 = vadd.f32 %v724_v35, %v23578_v53 }
 0x2bf   :  { %14926 = vmatpush3.msra.mxu0 %v19973_v2  ;;  %14969 = vmatpush3.msra.mxu1 %v9295_v55  ;;  %v23579_v55 = vld [vmem:[#allocation34_spill] sm:$0xff] }
 0x2c0   :  { %14927 = vmatprep.subr.mxu0 %v19988_v57  ;;  %14970 = vmatprep.subr.mxu1 %v9302_v10  ;;  %v723_v16 = vmul.f32 %v23579_v55, %v23510_v54  ;;  %v928_v55 = vpop.permute.xlu0 %927 }
 0x2c1   :  { %1413 = vperm.xlu0 %16146, %v855_v42   ;;  %1408 = vperm.xlu1 %16145, %v854_v47   ;;  %v23580_v47 = vld [vmem:[#allocation57_spill] sm:$0xff]  ;;  %v9185_v42 = vsub.f32 %v20115_v39, %v23004_v60  ;;  %v1364_v60 = vpop.permute.xlu1 %1363 }
 0x2c2   :  { %14928 = vmatpush3.msra.mxu0 %v19988_v57  ;;  %14971 = vmatpush3.msra.mxu1 %v9302_v10  ;;  %v722_v10 = vmul.f32 %v23580_v47, %v23510_v54  ;;  %v851_v35 = vadd.f32 %v723_v16, %v23506_v61  ;;  %v23582_v47 = vld [vmem:[#allocation54_spill] sm:$0xff]  ;;  %v23583_v16 = vld [vmem:[#allocation59_spill] sm:$0xff] }
 0x2c3   :  { %14929 = vmatprep.subr.mxu0 %v20002_v38  ;;  %14973 = vmatmul.mubr.f32.vlgmr.msra.gmra.mxu1 %v20104_v11 }
 0x2c4   :  { %15010 = vmatprep.subr.mxu1 %v19643_v56  ;;  %14930 = vmatpush3.msra.mxu0 %v20002_v38 }
 0x2c5   :  { %15011 = vmatpush3.msra.mxu1 %v19643_v56  ;;  %15042 = vmatprep.mubr.f32.mxu1 %v23581_v9  ;;  %v850_v9 = vadd.f32 %v722_v10, %v23582_v47  ;;  %v9186_v10 = vand.u32 4294901760, %v9185_v42  ;;  %v23584_v47 = vld [vmem:[#allocation2_spill] sm:$0xff] }
 0x2c6   :  { %14931 = vmatprep.subr.mxu0 %v20016_v15  ;;  %15012 = vmatprep.subr.mxu1 %v19651_v20  ;;  %v933_v61 = vrot.slane %v928_v55, %v23584_v47  ;;  %v23587_v55 = vld [vmem:[#allocation60_spill] sm:$0xff] }
 0x2c7   :  { %1403 = vperm.xlu0 %16146, %v853_v26   ;;  %1398 = vperm.xlu1 %16145, %v852_v41   ;;  %v721_v26 = vmul.f32 %v23508_v37, %v23510_v54  ;;  %v720_v41 = vmul.f32 %v23583_v16, %v23510_v54  ;;  %v23585_v16 = vld [vmem:[#allocation55_spill] sm:$0xff]  ;;  %v718_v42 = vmul.f32 %v23587_v55, %v23510_v54  ;;  %v23592_v55 = vld [vmem:[#allocation41_spill] sm:$0xff] }
 0x2c8   :  { %14932 = vmatpush3.msra.mxu0 %v20016_v15  ;;  %15013 = vmatpush3.msra.mxu1 %v19651_v20 }
 0x2c9   :  { %14933 = vmatprep.subr.mxu0 %v20034_v50  ;;  %15014 = vmatprep.subr.mxu1 %v19725_v63  ;;  %v849_v37 = vadd.f32 %v721_v26, %v23412_v0  ;;  %v848_v53 = vadd.f32 %v720_v41, %v23585_v16 }
 0x2ca   :  { %14934 = vmatpush3.msra.mxu0 %v20034_v50  ;;  %15015 = vmatpush3.msra.mxu1 %v19725_v63 }
 0x2cb   :  { %14935 = vmatprep.subr.mxu0 %v20045_v43  ;;  %15016 = vmatprep.subr.mxu1 %v19646_v49 }
 0x2cc   :  { %1393 = vperm.xlu0 %16146, %v851_v35   ;;  %1388 = vperm.xlu1 %16145, %v850_v9   ;;  %v719_v35 = vmul.f32 %v23586_v7, %v23510_v54  ;;  %v23588_v9 = vld [vmem:[#allocation62_spill] sm:$0xff] }
 0x2cd   :  { %14936 = vmatpush3.msra.mxu0 %v20045_v43  ;;  %15017 = vmatpush3.msra.mxu1 %v19646_v49  ;;  %v20170_v26 = vadd.f32 %v933_v61, %v23588_v9  ;;  %v23590_v54 = vld [vmem:[#allocation58_spill] sm:$0xff] }
 0x2ce   :  { %14938 = vmatmul.mubr.f32.vlgmr.msra.gmra.mxu0 %v9186_v10  ;;  %14975 = vmatprep.subr.mxu0 %v19670_v29  ;;  %v1359_v10 = vpop.permute.xlu1 %1358  ;;  %v23591_v61 = vld [vmem:[#allocation30_spill] sm:$0xff] }
 0x2cf   :  { %15018 = vmatprep.subr.mxu1 %v19770_v28  ;;  %14976 = vmatpush3.msra.mxu0 %v19670_v29  ;;  %v23589_v29 = vld [vmem:[#allocation35_spill] sm:$0xff]  ;;  %v749_v7 = vmul.f32 %v23592_v55, %v23591_v61  ;;  %vm1685_vm5 = vcmp.eq.f32.partialorder %v1364_v60, %v20170_v26  ;;  %vm1684_vm7 = vcmp.eq.f32.partialorder %v1359_v10, %v20170_v26 }
 0x2d0   :  { %15007 = vmatprep.mubr.f32.mxu0 %v19638_v30  ;;  %15019 = vmatpush3.msra.mxu1 %v19770_v28  ;;  %v847_v41 = vadd.f32 %v719_v35, %v23589_v29  ;;  %v846_v30 = vadd.f32 %v718_v42, %v23590_v54  ;;  %v23594_v35 = vld [vmem:[#allocation17_spill] sm:$0xff] }
 0x2d1   :  { %14977 = vmatprep.subr.mxu0 %v19680_v33  ;;  %15020 = vmatprep.subr.mxu1 %v19778_v51  ;;  %v748_v42 = vmul.f32 %v23594_v35, %v23591_v61  ;;  %v23599_v54 = vld [vmem:[#allocation65_spill] sm:$0xff] }
 0x2d2   :  { %1383 = vperm.xlu0 %16146, %v849_v37   ;;  %1378 = vperm.xlu1 %16145, %v848_v53   ;;  %v20183_v37 = vadd.f32 1.0, %v20170_v26 }
 0x2d3   :  { %14978 = vmatpush3.msra.mxu0 %v19680_v33  ;;  %15021 = vmatpush3.msra.mxu1 %v19778_v51  ;;  %v20188_v33 = vpop.permute.xlu1 %2559 }
 0x2d4   :  { %14979 = vmatprep.subr.mxu0 %v19757_v40  ;;  %15022 = vmatprep.subr.mxu1 %v19880_v46  ;;  %vm2237_vm6 = vcmp.eq.f32.partialorder %v1364_v60, %v20183_v37  ;;  %vm2236_vm8 = vcmp.eq.f32.partialorder %v1359_v10, %v20183_v37  ;;  %v12706_v60 = vsel %vm1685_vm5, 1.0, %v23144_v36 }
 0x2d5   :  { %14980 = vmatpush3.msra.mxu0 %v19757_v40  ;;  %15023 = vmatpush3.msra.mxu1 %v19880_v46  ;;  %v23593_v40 = vld [vmem:[#allocation38_spill] sm:$0xff] }
 0x2d6   :  { %14981 = vmatprep.subr.mxu0 %v19673_v34  ;;  %15024 = vmatprep.subr.mxu1 %v19915_v1  ;;  %v877_v53 = vadd.f32 %v749_v7, %v23593_v40  ;;  %v23595_v7 = vmov 3   ;;  %v12705_v40 = vsel %vm1684_vm7, 1.0, %v23144_v36 }
 0x2d7   :  { %1373 = vperm.xlu0 %16146, %v847_v41   ;;  %1368 = vperm.xlu1 %16145, %v846_v30   ;;  %v20208_v41 = vpop.permute.xlu0 %2007  ;;  %v16162_v30 = vld [vmem:[%s22684_s0 + $0x6] sm:$0x1] }
 0x2d8   :  { %14982 = vmatpush3.msra.mxu0 %v19673_v34  ;;  %15025 = vmatpush3.msra.mxu1 %v19915_v1  ;;  %v1354_v34 = vpop.permute.xlu1 %1353 }
 0x2d9   :  { %14983 = vmatprep.subr.mxu0 %v19843_v48  ;;  %15026 = vmatprep.subr.mxu1 %v19922_v52  ;;  %vm1683_vm9 = vcmp.eq.f32.partialorder %v1354_v34, %v20170_v26  ;;  %vm2235_vm10 = vcmp.eq.f32.partialorder %v1354_v34, %v20183_v37 }
 0x2da   :  { %14984 = vmatpush3.msra.mxu0 %v19843_v48  ;;  %15027 = vmatpush3.msra.mxu1 %v19922_v52  ;;  %v12834_v48 = vsel %vm2237_vm6, 1.0, %v23144_v36  ;;  %v12704_v34 = vsel %vm1683_vm9, 1.0, %v23144_v36 }
 0x2db   :  { %14985 = vmatprep.subr.mxu0 %v19865_v17  ;;  %15028 = vmatprep.subr.mxu1 %v19949_v6 }
 0x2dc   :  { %16147 = vset.pattern.permute.xlu0 %v23595_v7  ;;  %1523 = vperm.xlu1 %16145, %v877_v53   ;;  %v23596_v7 = vld [vmem:[#allocation12_spill] sm:$0xff]  ;;  %v2101_v53 = vmul.f32 %v12706_v60, %v20208_v41  ;;  %v1344_v10 = vpop.permute.xlu1 %1343  ;;  %v14519_v60 = vpop.f32.mrf.mxu0 }
 0x2dd   :  { %14986 = vmatpush3.msra.mxu0 %v19865_v17  ;;  %15029 = vmatpush3.msra.mxu1 %v19949_v6  ;;  %v876_v35 = vadd.f32 %v748_v42, %v23596_v7  ;;  %v12833_v17 = vsel %vm2236_vm8, 1.0, %v23144_v36  ;;  %v2653_v42 = vmul.f32 %v12834_v48, %v20188_v33  ;;  %vm1681_vm4 = vcmp.eq.f32.partialorder %v1344_v10, %v20170_v26 }
 0x2de   :  { %943 = vperm.xlu0 %16147, %v16162_v30   ;;  %14987 = vmatprep.subr.mxu0 %v19913_v58  ;;  %v12832_v30 = vsel %vm2235_vm10, 1.0, %v23144_v36  ;;  %v2652_v7 = vmul.f32 %v12833_v17, %v20188_v33  ;;  %vm2233_vm11 = vcmp.eq.f32.partialorder %v1344_v10, %v20183_v37  ;;  %v2099_v48 = vmul.f32 %v12704_v34, %v20208_v41  ;;  %v14554_v10 = vpop.f32.mrf.mxu1 }
 0x2df   :  { %15030 = vmatprep.subr.mxu1 %v19973_v2  ;;  %14988 = vmatpush3.msra.mxu0 %v19913_v58  ;;  %v2100_v58 = vmul.f32 %v12705_v40, %v20208_v41  ;;  %v2651_v55 = vmul.f32 %v12832_v30, %v20188_v33  ;;  %v12702_v40 = vsel %vm1681_vm4, 1.0, %v23144_v36  ;;  %v23597_v17 = vmov 5   ;;  %v1349_v30 = vpop.permute.xlu0 %1348 }
 0x2e0   :  { %15031 = vmatpush3.msra.mxu1 %v19973_v2  ;;  %14989 = vmatprep.subr.mxu0 %v19947_v21  ;;  %vm1682_vm12 = vcmp.eq.f32.partialorder %v1349_v30, %v20170_v26  ;;  %v2097_v16 = vmul.f32 %v12702_v40, %v20208_v41  ;;  %vm2234_vm13 = vcmp.eq.f32.partialorder %v1349_v30, %v20183_v37  ;;  %v23601_v40 = vld [vmem:[#allocation26_spill] sm:$0xff] }
 0x2e1   :  { %15032 = vmatprep.subr.mxu1 %v19988_v57  ;;  %1518 = vperm.xlu1 %16145, %v876_v35   ;;  %v12830_v35 = vsel %vm2233_vm11, 1.0, %v23144_v36  ;;  %v2780_v34 = vadd.f32 %v2652_v7, %v2100_v58  ;;  %v7978_v30 = vadd.f32 %v14554_v10, %v14519_v60 }
 0x2e2   :  { %14990 = vmatpush3.msra.mxu0 %v19947_v21  ;;  %15033 = vmatpush3.msra.mxu1 %v19988_v57  ;;  %v2781_v21 = vadd.f32 %v2653_v42, %v2101_v53  ;;  %v2779_v53 = vadd.f32 %v2651_v55, %v2099_v48  ;;  %v23598_v42 = vld [vmem:[#allocation14_spill] sm:$0xff]  ;;  %v2649_v7 = vmul.f32 %v12830_v35, %v20188_v33  ;;  %v23600_v55 = vld [vmem:[#allocation7_spill] sm:$0xff]  ;;  %v7971_v48 = vpop.f32.mrf.mxu1  ;;  %v20269_v35 = vand.u32 4294901760, %v23601_v40 }
 0x2e3   :  { %14991 = vmatprep.subr.mxu0 %v19964_v32  ;;  %15034 = vmatprep.subr.mxu1 %v20002_v38  ;;  %v2908_v58 = vmul.f32 %v23600_v55, %v2780_v34  ;;  %v1334_v55 = vpop.permute.xlu0 %1333 }
 0x2e4   :  { %14992 = vmatpush3.msra.mxu0 %v19964_v32  ;;  %15035 = vmatpush3.msra.mxu1 %v20002_v38  ;;  %v7810_v32 = vpop.f32.mrf.mxu0  ;;  %v2909_v29 = vmul.f32 %v23599_v54, %v2781_v21  ;;  %v12703_v21 = vsel %vm1682_vm12, 1.0, %v23144_v36  ;;  %v1339_v54 = vpop.permute.xlu1 %1338  ;;  %v2777_v34 = vadd.f32 %v2649_v7, %v2097_v16  ;;  %vm1679_vm0 = vcmp.eq.f32.partialorder %v1334_v55, %v20170_v26 }
 0x2e5   :  { %14993 = vmatprep.subr.mxu0 %v19980_v25  ;;  %15036 = vmatprep.subr.mxu1 %v20016_v15  ;;  %vm1680_vm14 = vcmp.eq.f32.partialorder %v1339_v54, %v20170_v26  ;;  %v2098_v60 = vmul.f32 %v12703_v21, %v20208_v41  ;;  %vm2232_vm15 = vcmp.eq.f32.partialorder %v1339_v54, %v20183_v37  ;;  %v14624_v10 = vpop.f32.mrf.mxu1 }
 0x2e6   :  { %16148 = vset.pattern.permute.xlu0 %v23597_v17  ;;  %16149 = vset.pattern.permute.xlu1 %v23597_v17  ;;  %v12831_v17 = vsel %vm2234_vm13, 1.0, %v23144_v36  ;;  %v20278_v9 = vand.u32 4294901760, %v2909_v29  ;;  %vm2231_vm1 = vcmp.eq.f32.partialorder %v1334_v55, %v20183_v37  ;;  %v12701_v21 = vsel %vm1680_vm14, 1.0, %v23144_v36 }
 0x2e7   :  { %14994 = vmatpush3.msra.mxu0 %v19980_v25  ;;  %15037 = vmatpush3.msra.mxu1 %v20016_v15  ;;  %v14589_v25 = vpop.f32.mrf.mxu0  ;;  %v12828_v54 = vsel %vm2231_vm1, 1.0, %v23144_v36 }
 0x2e8   :  { %2015 = vperm.xlu0 %16148, %v23598_v42   ;;  %2567 = vperm.xlu1 %16149, %v23591_v61   ;;  %v7972_v42 = vadd.f32 %v7971_v48, %v7810_v32  ;;  %v20286_v32 = vand.u32 4294901760, %v2908_v58  ;;  %v8089_v7 = vadd.f32 %v14589_v25, %v7978_v30  ;;  %v20294_v48 = vsub.f32 %v23601_v40, %v20269_v35  ;;  %v23603_v30 = vld [vmem:[#allocation40_spill] sm:$0xff] }
 0x2e9   :  { %14995 = vmatprep.subr.mxu0 %v20000_v13  ;;  %15038 = vmatprep.subr.mxu1 %v20034_v50  ;;  %v8081_v16 = vpop.f32.mrf.mxu0  ;;  %v20310_v25 = vsub.f32 %v2909_v29, %v20278_v9  ;;  %v2096_v29 = vmul.f32 %v12701_v21, %v20208_v41 }
 0x2ea   :  { %14996 = vmatpush3.msra.mxu0 %v20000_v13  ;;  %15039 = vmatpush3.msra.mxu1 %v20034_v50  ;;  %v2907_v13 = vmul.f32 %v23523_v44, %v2779_v53  ;;  %v2650_v53 = vmul.f32 %v12831_v17, %v20188_v33  ;;  %v12829_v17 = vsel %vm2232_vm15, 1.0, %v23144_v36  ;;  %v8177_v44 = vpop.f32.mrf.mxu1  ;;  %v20321_v0 = vsub.f32 %v2908_v58, %v20286_v32 }
 0x2eb   :  { %14997 = vmatprep.subr.mxu0 %v20012_v23  ;;  %15040 = vmatprep.subr.mxu1 %v20045_v43  ;;  %v2648_v55 = vmul.f32 %v12829_v17, %v20188_v33 }
 0x2ec   :  { %14998 = vmatpush3.msra.mxu0 %v20012_v23  ;;  %15041 = vmatpush3.msra.mxu1 %v20045_v43  ;;  %v23602_v23 = vand.u32 4294901760, %v20115_v39  ;;  %v20312_v40 = vand.u32 4294901760, %v2907_v13  ;;  %v20345_v21 = vand.u32 4294901760, %v20321_v0 }
 0x2ed   :  { %14999 = vmatprep.subr.mxu0 %v20024_v22  ;;  %15080 = vmatprep.subr.mxu1 %v19643_v56 }
 0x2ee   :  { %15043 = vmatmul.mubr.f32.vlgmr.msra.gmra.mxu1 %v23602_v23  ;;  %15000 = vmatpush3.msra.mxu0 %v20024_v22  ;;  %v8082_v22 = vadd.f32 %v8081_v16, %v7972_v42  ;;  %v2905_v23 = vmul.f32 %v23603_v30, %v2777_v34  ;;  %v1329_v42 = vpop.permute.xlu1 %1328  ;;  %v8186_v34 = vadd.f32 %v14624_v10, %v8089_v7  ;;  %v23010_v10 = vand.u32 4294901760, %v20294_v48 }
 0x2ef   :  { %15081 = vmatpush3.msra.mxu1 %v19643_v56  ;;  %15112 = vmatprep.mubr.f32.mxu1 %v19617_v5  ;;  %v12700_v56 = vsel %vm1679_vm0, 1.0, %v23144_v36  ;;  %vm1678_vm2 = vcmp.eq.f32.partialorder %v1329_v42, %v20170_v26  ;;  %v20336_v7 = vsub.f32 %v2907_v13, %v20312_v40  ;;  %vm2230_vm3 = vcmp.eq.f32.partialorder %v1329_v42, %v20183_v37 }
 0x2f0   :  { %15001 = vmatprep.subr.mxu0 %v20041_v12  ;;  %15082 = vmatprep.subr.mxu1 %v19651_v20  ;;  %v2095_v16 = vmul.f32 %v12700_v56, %v20208_v41  ;;  %v20349_v17 = vand.u32 4294901760, %v2905_v23  ;;  %v23604_v56 = vld [vmem:[#allocation64_spill] sm:$0xff] }
 0x2f1   :  { %15002 = vmatpush3.msra.mxu0 %v20041_v12  ;;  %15083 = vmatpush3.msra.mxu1 %v19651_v20  ;;  %v2778_v12 = vadd.f32 %v2650_v53, %v2098_v60  ;;  %v14694_v20 = vpop.f32.mrf.mxu1  ;;  %v2647_v60 = vmul.f32 %v12828_v54, %v20188_v33  ;;  %v8178_v53 = vadd.f32 %v8177_v44, %v8082_v22  ;;  %v20373_v42 = vand.u32 4294901760, %v20336_v7 }
 0x2f2   :  { %15003 = vmatprep.subr.mxu0 %v20057_v19  ;;  %15084 = vmatprep.subr.mxu1 %v19725_v63 }
 0x2f3   :  { %15004 = vmatpush3.msra.mxu0 %v20057_v19  ;;  %15085 = vmatpush3.msra.mxu1 %v19725_v63  ;;  %v20342_v63 = vand.u32 4294901760, %v20310_v25  ;;  %v20352_v22 = vmul.f32 %v23604_v56, %v2778_v12  ;;  %v8397_v54 = vpop.f32.mrf.mxu1 }
 0x2f4   :  { %15005 = vmatprep.subr.mxu0 %v20067_v3  ;;  %v14659_v58 = vpop.f32.mrf.mxu0  ;;  %15086 = vmatprep.subr.mxu1 %v19646_v49 }
 0x2f5   :  { %15006 = vmatpush3.msra.mxu0 %v20067_v3  ;;  %v8311_v19 = vadd.f32 %v14659_v58, %v8186_v34  ;;  %15087 = vmatpush3.msra.mxu1 %v19646_v49  ;;  %v2776_v49 = vadd.f32 %v2648_v55, %v2096_v29  ;;  %v2775_v34 = vadd.f32 %v2647_v60, %v2095_v16  ;;  %v1324_v58 = vpop.permute.xlu0 %1323  ;;  %v20391_v60 = vand.u32 4294901760, %v20352_v22 }
 0x2f6   :  { %15008 = vmatmul.mubr.f32.vlgmr.msra.gmra.mxu0 %v20115_v39  ;;  %v8304_v3 = vpop.f32.mrf.mxu0  ;;  %15045 = vmatprep.subr.mxu0 %v19696_v45  ;;  %v12699_v39 = vsel %vm1678_vm2, 1.0, %v23144_v36  ;;  %vm1677_vm5 = vcmp.eq.f32.partialorder %v1324_v58, %v20170_v26  ;;  %vm2229_vm6 = vcmp.eq.f32.partialorder %v1324_v58, %v20183_v37  ;;  %v20388_v16 = vsub.f32 %v2905_v23, %v20349_v17 }
 0x2f7   :  { %15088 = vmatprep.subr.mxu1 %v19770_v28  ;;  %v8404_v44 = vadd.f32 %v14694_v20, %v8311_v19  ;;  %v8305_v13 = vadd.f32 %v8304_v3, %v8178_v53  ;;  %15046 = vmatpush3.msra.mxu0 %v19696_v45  ;;  %v12827_v20 = vsel %vm2230_vm3, 1.0, %v23144_v36  ;;  %v2094_v19 = vmul.f32 %v12699_v39, %v20208_v41  ;;  %v1319_v3 = vpop.permute.xlu1 %1318 }
 0x2f8   :  { %15077 = vmatprep.mubr.f32.mxu0 %v19617_v5  ;;  %15089 = vmatpush3.msra.mxu1 %v19770_v28  ;;  %v20378_v28 = vsub.f32 %v20294_v48, %v23010_v10  ;;  %v2646_v53 = vmul.f32 %v12827_v20, %v20188_v33  ;;  %v12698_v20 = vsel %vm1677_vm5, 1.0, %v23144_v36  ;;  %vm1676_vm7 = vcmp.eq.f32.partialorder %v1319_v3, %v20170_v26 }
 0x2f9   :  { %15047 = vmatprep.subr.mxu0 %v19720_v59  ;;  %v20364_v12 = vmul.f32 255.0, %v8404_v44  ;;  %v8398_v29 = vadd.f32 %v8397_v54, %v8305_v13  ;;  %15090 = vmatprep.subr.mxu1 %v19778_v51  ;;  %v23606_v13 = vld [vmem:[#allocation42_spill] sm:$0xff]  ;;  %vm2228_vm8 = vcmp.eq.f32.partialorder %v1319_v3, %v20183_v37  ;;  %v2093_v45 = vmul.f32 %v12698_v20, %v20208_v41 }
 0x2fa   :  { %15048 = vmatpush3.msra.mxu0 %v19720_v59  ;;  %15091 = vmatpush3.msra.mxu1 %v19778_v51  ;;  %v23605_v51 = vld [vmem:[#allocation13_spill] sm:$0xff]  ;;  %v20401_v54 = vmul.f32 %v23606_v13, %v2775_v34  ;;  %v23607_v34 = vld [vmem:[#allocation78_spill] sm:$0xff]  ;;  %v2774_v10 = vadd.f32 %v2646_v53, %v2094_v19 }
 0x2fb   :  { %15049 = vmatprep.subr.mxu0 %v19848_v8  ;;  %v15981_v59 = vcvt.f32.s32 %v20364_v12  ;;  %v20385_v55 = vmul.f32 255.0, %v8398_v29  ;;  %15092 = vmatprep.subr.mxu1 %v19880_v46  ;;  %v20398_v44 = vmul.f32 %v23605_v51, %v2776_v49  ;;  %v1314_v49 = vpop.permute.xlu0 %1313  ;;  %v1309_v13 = vpop.permute.xlu1 %1308 }
 0x2fc   :  { %15050 = vmatpush3.msra.mxu0 %v19848_v8  ;;  %15093 = vmatpush3.msra.mxu1 %v19880_v46  ;;  %v12826_v8 = vsel %vm2229_vm6, 1.0, %v23144_v36  ;;  %v15979_v46 = vand.u32 2147483647, %v20364_v12  ;;  %vm1675_vm9 = vcmp.eq.f32.partialorder %v1314_v49, %v20170_v26  ;;  %vm2227_vm10 = vcmp.eq.f32.partialorder %v1314_v49, %v20183_v37 }
 0x2fd   :  { %15051 = vmatprep.subr.mxu0 %v19713_v18  ;;  %v15982_v23 = vcvt.s32.f32 %v15981_v59  ;;  %v15973_v39 = vcvt.f32.s32 %v20385_v55  ;;  %15094 = vmatprep.subr.mxu1 %v19915_v1  ;;  %v15984_v59 = vand.u32 2147483648, %v20364_v12  ;;  %v15976_v19 = vand.u32 2147483648, %v20385_v55 }
 0x2fe   :  { %15052 = vmatpush3.msra.mxu0 %v19713_v18  ;;  %15095 = vmatpush3.msra.mxu1 %v19915_v1  ;;  %v15971_v18 = vand.u32 2147483647, %v20385_v55  ;;  %v23608_v1 = vld [vmem:[#allocation79_spill] sm:$0xff]  ;;  %v2645_v53 = vmul.f32 %v12826_v8, %v20188_v33  ;;  %vm15980_vm4 = vcmp.lt.f32.partialorder %v15979_v46, 8388608.0  ;;  %v12824_v20 = vsel %vm2227_vm10, 1.0, %v23144_v36 }
 0x2ff   :  { %15053 = vmatprep.subr.mxu0 %v23607_v34  ;;  %v15983_v29 = vand.u32 2147483647, %v15982_v23  ;;  %v15974_v58 = vcvt.s32.f32 %v15973_v39  ;;  %15096 = vmatprep.subr.mxu1 %v19922_v52  ;;  %v12697_v39 = vsel %vm1676_vm7, 1.0, %v23144_v36  ;;  %v23609_v8 = vld [vmem:[#allocation83_spill] sm:$0xff]  ;;  %vm1674_vm11 = vcmp.eq.f32.partialorder %v1309_v13, %v20170_v26 }
 0x300   :  { %15054 = vmatpush3.msra.mxu0 %v23607_v34  ;;  %15097 = vmatpush3.msra.mxu1 %v19922_v52  ;;  %v12825_v34 = vsel %vm2228_vm8, 1.0, %v23144_v36  ;;  %v12696_v52 = vsel %vm1675_vm9, 1.0, %v23144_v36  ;;  %vm2226_vm12 = vcmp.eq.f32.partialorder %v1309_v13, %v20183_v37  ;;  %vm15972_vm13 = vcmp.lt.f32.partialorder %v15971_v18, 8388608.0 }
 0x301   :  { %15055 = vmatprep.subr.mxu0 %v23608_v1  ;;  %v15985_v23 = vor.u32 %v15984_v59, %v15983_v29  ;;  %v15975_v5 = vand.u32 2147483647, %v15974_v58  ;;  %15098 = vmatprep.subr.mxu1 %v19949_v6  ;;  %v20452_v49 = vand.u32 4294901760, %v20398_v44  ;;  %v2644_v59 = vmul.f32 %v12825_v34, %v20188_v33  ;;  %v1304_v58 = vpop.permute.xlu0 %1303 }
 0x302   :  { %15056 = vmatpush3.msra.mxu0 %v23608_v1  ;;  %15099 = vmatpush3.msra.mxu1 %v19949_v6  ;;  %v2092_v6 = vmul.f32 %v12697_v39, %v20208_v41  ;;  %v2773_v1 = vadd.f32 %v2645_v53, %v2093_v45  ;;  %vm1673_vm14 = vcmp.eq.f32.partialorder %v1304_v58, %v20170_v26  ;;  %v12823_v45 = vsel %vm2226_vm12, 1.0, %v23144_v36  ;;  %v23612_v39 = vld [vmem:[#allocation16_spill] sm:$0xff] }
 0x303   :  { %15057 = vmatprep.subr.mxu0 %v23609_v8  ;;  %v15986_v3 = vsel %vm15980_vm4, %v15985_v23, %v20364_v12  ;;  %v15977_v29 = vor.u32 %v15976_v19, %v15975_v5  ;;  %15100 = vmatprep.subr.mxu1 %v19973_v2  ;;  %v23610_v12 = vld [vmem:[#allocation84_spill] sm:$0xff]  ;;  %v2091_v23 = vmul.f32 %v12696_v52, %v20208_v41  ;;  %v23611_v19 = vld [vmem:[#allocation87_spill] sm:$0xff]  ;;  %v1299_v52 = vpop.permute.xlu1 %1298 }
 0x304   :  { %15058 = vmatpush3.msra.mxu0 %v23609_v8  ;;  %v12546_v46 = vmul.f32 0.003921569, %v15986_v3  ;;  %15101 = vmatpush3.msra.mxu1 %v19973_v2  ;;  %v2643_v2 = vmul.f32 %v12824_v20, %v20188_v33  ;;  %vm2225_vm15 = vcmp.eq.f32.partialorder %v1304_v58, %v20183_v37  ;;  %v20478_v53 = vsub.f32 %v20352_v22, %v20391_v60  ;;  %v23614_v3 = vld [vmem:[#allocation88_spill] sm:$0xff] }
 0x305   :  { %15059 = vmatprep.subr.mxu0 %v23610_v12  ;;  %v15978_v5 = vsel %vm15972_vm13, %v15977_v29, %v20385_v55  ;;  %15102 = vmatprep.subr.mxu1 %v19988_v57  ;;  %v12695_v55 = vsel %vm1674_vm11, 1.0, %v23144_v36  ;;  %v2902_v34 = vmul.f32 %v23612_v39, %v2774_v10  ;;  %v23613_v13 = vsub.f32 %v20310_v25, %v20342_v63 }
 0x306   :  { %15060 = vmatpush3.msra.mxu0 %v23610_v12  ;;  %12562 = vst [vmem:[%s22686_s2 + $0x18] sm:$0xff] %v12546_v46  ;;  %v12545_v18 = vmul.f32 0.003921569, %v15978_v5  ;;  %15103 = vmatpush3.msra.mxu1 %v19988_v57  ;;  %v20492_v22 = vand.u32 4294901760, %v20401_v54  ;;  %v2772_v10 = vadd.f32 %v2644_v59, %v2092_v6  ;;  %v12694_v8 = vsel %vm1673_vm14, 1.0, %v23144_v36 }
 0x307   :  { %15061 = vmatprep.subr.mxu0 %v23611_v19  ;;  %15104 = vmatprep.subr.mxu1 %v20002_v38  ;;  %v9881_v20 = vand.u32 4294901760, %v23613_v13  ;;  %vm1672_vm0 = vcmp.eq.f32.partialorder %v1299_v52, %v20170_v26  ;;  %v2090_v29 = vmul.f32 %v12695_v55, %v20208_v41  ;;  %v2642_v46 = vmul.f32 %v12823_v45, %v20188_v33  ;;  %v1294_v13 = vpop.permute.xlu0 %1293 }
 0x308   :  { %15062 = vmatpush3.msra.mxu0 %v23611_v19  ;;  %12561 = vst [vmem:[%s22686_s2 + $0x10] sm:$0xff] %v12545_v18  ;;  %15105 = vmatpush3.msra.mxu1 %v20002_v38  ;;  %v12822_v12 = vsel %vm2225_vm15, 1.0, %v23144_v36  ;;  %vm2224_vm1 = vcmp.eq.f32.partialorder %v1299_v52, %v20183_v37  ;;  %v20510_v6 = vsub.f32 %v20398_v44, %v20452_v49  ;;  %v23615_v38 = vld [vmem:[#allocation44_spill] sm:$0xff]  ;;  %v23616_v18 = vld [vmem:[#allocation91_spill] sm:$0xff]  ;;  %v20518_v45 = vand.u32 4294901760, %v2902_v34 }
 0x309   :  { %15063 = vmatprep.subr.mxu0 %v23614_v3  ;;  %15106 = vmatprep.subr.mxu1 %v20016_v15  ;;  %v2901_v59 = vmul.f32 %v23615_v38, %v2773_v1  ;;  %v2771_v5 = vadd.f32 %v2643_v2, %v2091_v23  ;;  %v23617_v58 = vsub.f32 %v20321_v0, %v20345_v21  ;;  %v12693_v44 = vsel %vm1672_vm0, 1.0, %v23144_v36  ;;  %v23619_v2 = vld [vmem:[#allocation92_spill] sm:$0xff] }
 0x30a   :  { %15064 = vmatpush3.msra.mxu0 %v23614_v3  ;;  %15107 = vmatpush3.msra.mxu1 %v20016_v15  ;;  %v2089_v19 = vmul.f32 %v12694_v8, %v20208_v41  ;;  %v20527_v15 = vand.u32 4294901760, %v20478_v53  ;;  %v2641_v1 = vmul.f32 %v12822_v12, %v20188_v33  ;;  %v12821_v23 = vsel %vm2224_vm1, 1.0, %v23144_v36  ;;  %v23620_v3 = vld [vmem:[#allocation33_spill] sm:$0xff]  ;;  %v1289_v12 = vpop.permute.xlu1 %1288 }
 0x30b   :  { %15065 = vmatprep.subr.mxu0 %v23616_v18  ;;  %v9888_v55 = vand.u32 4294901760, %v23617_v58  ;;  %15108 = vmatprep.subr.mxu1 %v20034_v50  ;;  %vm1671_vm2 = vcmp.eq.f32.partialorder %v1294_v13, %v20170_v26  ;;  %vm2223_vm3 = vcmp.eq.f32.partialorder %v1294_v13, %v20183_v37  ;;  %v20539_v8 = vsub.f32 %v20401_v54, %v20492_v22  ;;  %v23623_v54 = vld [vmem:[#allocation9_spill] sm:$0xff]  ;;  %v23624_v13 = vld [vmem:[#allocation46_spill] sm:$0xff] }
 0x30c   :  { %15066 = vmatpush3.msra.mxu0 %v23616_v18  ;;  %23618 = vst [vmem:[#allocation27_spill] sm:$0xff] %v20527_v15  ;;  %15109 = vmatpush3.msra.mxu1 %v20034_v50  ;;  %v2900_v18 = vmul.f32 %v23620_v3, %v2772_v10  ;;  %v2770_v58 = vadd.f32 %v2642_v46, %v2090_v29  ;;  %v20545_v52 = vand.u32 4294901760, %v20388_v16  ;;  %v20547_v57 = vand.u32 4294901760, %v2901_v59  ;;  %v23622_v50 = vld [vmem:[#allocation66_spill] sm:$0xff] }
 0x30d   :  { %15067 = vmatprep.subr.mxu0 %v23619_v2  ;;  %15110 = vmatprep.subr.mxu1 %v20045_v43  ;;  %v2899_v38 = vmul.f32 %v23622_v50, %v2771_v5  ;;  %vm1670_vm5 = vcmp.eq.f32.partialorder %v1289_v12, %v20170_v26  ;;  %vm2222_vm6 = vcmp.eq.f32.partialorder %v1289_v12, %v20183_v37  ;;  %v12692_v46 = vsel %vm1671_vm2, 1.0, %v23144_v36 }
 0x30e   :  { %15068 = vmatpush3.msra.mxu0 %v23619_v2  ;;  %23621 = vst [vmem:[#allocation10_spill] sm:$0xff] %v20545_v52  ;;  %15111 = vmatpush3.msra.mxu1 %v20045_v43  ;;  %v2088_v10 = vmul.f32 %v12693_v44, %v20208_v41  ;;  %v2640_v29 = vmul.f32 %v12821_v23, %v20188_v33  ;;  %v12820_v5 = vsel %vm2223_vm3, 1.0, %v23144_v36  ;;  %v20570_v23 = vand.u32 4294901760, %v20510_v6 }
 0x30f   :  { %15069 = vmatprep.subr.mxu0 %v23623_v54  ;;  %15113 = vmatmul.mubr.f32.vlgmr.msra.gmra.mxu1 %v20104_v11  ;;  %v20564_v2 = vsub.f32 %v2902_v34, %v20518_v45  ;;  %v2769_v43 = vadd.f32 %v2641_v1, %v2089_v19  ;;  %v9901_v44 = vsub.f32 %v20478_v53, %v20527_v15  ;;  %v20572_v50 = vand.u32 4294901760, %v2900_v18 }
 0x310   :  { %15150 = vmatprep.subr.mxu1 %v9881_v20  ;;  %15070 = vmatpush3.msra.mxu0 %v23623_v54  ;;  %v2898_v3 = vmul.f32 %v23624_v13, %v2770_v58  ;;  %v12691_v39 = vsel %vm1670_vm5, 1.0, %v23144_v36  ;;  %v12819_v34 = vsel %vm2222_vm6, 1.0, %v23144_v36  ;;  %v2087_v19 = vmul.f32 %v12692_v46, %v20208_v41 }
 0x311   :  { %15151 = vmatpush3.msra.mxu1 %v9881_v20  ;;  %15182 = vmatprep.mubr.f32.mxu1 %v20269_v35  ;;  %v23625_v20 = vld [vmem:[#allocation67_spill] sm:$0xff]  ;;  %v2639_v1 = vmul.f32 %v12820_v5, %v20188_v33  ;;  %v23626_v58 = vsub.f32 %v20336_v7, %v20373_v42  ;;  %v9908_v54 = vsub.f32 %v20388_v16, %v20545_v52  ;;  %v20594_v12 = vand.u32 4294901760, %v2899_v38 }
 0x312   :  { %15071 = vmatprep.subr.mxu0 %v23625_v20  ;;  %15152 = vmatprep.subr.mxu1 %v9888_v55  ;;  %v20592_v37 = vsub.f32 %v2901_v59, %v20547_v57  ;;  %v2768_v13 = vadd.f32 %v2640_v29, %v2088_v10  ;;  %v20598_v46 = vand.u32 4294901760, %v20539_v8  ;;  %v23628_v5 = vld [vmem:[#allocation23_spill] sm:$0xff]  ;;  %v2086_v15 = vmul.f32 %v12691_v39, %v20208_v41 }
 0x313   :  { %15072 = vmatpush3.msra.mxu0 %v23625_v20  ;;  %v9895_v26 = vand.u32 4294901760, %v23626_v58  ;;  %15153 = vmatpush3.msra.mxu1 %v9888_v55  ;;  %v2897_v20 = vmul.f32 %v23628_v5, %v2769_v43  ;;  %v2638_v58 = vmul.f32 %v12819_v34, %v20188_v33  ;;  %v9902_v59 = vand.u32 4294901760, %v9901_v44  ;;  %v23630_v33 = vld [vmem:[#allocation48_spill] sm:$0xff] }
 0x314   :  { %15073 = vmatprep.subr.mxu0 %v20080_v27  ;;  %23627 = vst [vmem:[#allocation81_spill] sm:$0xff] %v20598_v46  ;;  %v20605_v52 = vsub.f32 %v2900_v18, %v20572_v50  ;;  %v9915_v55 = vsub.f32 %v20510_v6, %v20570_v23  ;;  %v20611_v10 = vand.u32 4294901760, %v20564_v2  ;;  %v20613_v29 = vand.u32 4294901760, %v2898_v3  ;;  %v23639_v5 = vld [vmem:[#allocation24_spill] sm:$0xff]  ;;  %16150 = vset.pattern.permute.xlu1 %v23566_v62 }
 0x315   :  { %15154 = vmatprep.subr.mxu1 %v9895_v26  ;;  %15074 = vmatpush3.msra.mxu0 %v20080_v27  ;;  %v2767_v41 = vadd.f32 %v2639_v1, %v2087_v19  ;;  %v9909_v27 = vand.u32 4294901760, %v9908_v54  ;;  %v2896_v39 = vmul.f32 %v23630_v33, %v2768_v13  ;;  %v9860_v18 = vand.u32 4294901760, %v20378_v28 }
 0x316   :  { %15155 = vmatpush3.msra.mxu1 %v9895_v26  ;;  %15075 = vmatprep.subr.mxu0 %v20086_v24  ;;  %23629 = vst [vmem:[#allocation11_spill] sm:$0xff] %v20611_v10  ;;  %v9922_v43 = vsub.f32 %v20539_v8, %v20598_v46  ;;  %v20622_v44 = vand.u32 4294901760, %v20592_v37  ;;  %v20625_v34 = vsub.f32 %v2899_v38, %v20594_v12  ;;  %v20627_v19 = vand.u32 4294901760, %v2897_v20  ;;  %v23633_v38 = vld [vmem:[#allocation52_spill] sm:$0xff]  ;;  %v23648_v46 = vld [vmem:[#allocation53_spill] sm:$0xff] }
 0x317   :  { %15156 = vmatprep.subr.mxu1 %v9902_v59  ;;  %15076 = vmatpush3.msra.mxu0 %v20086_v24  ;;  %v2766_v24 = vadd.f32 %v2638_v58, %v2086_v15  ;;  %v9929_v28 = vsub.f32 %v20564_v2, %v20611_v10  ;;  %v20634_v13 = vand.u32 4294901760, %v20605_v52  ;;  %v20637_v1 = vsub.f32 %v2898_v3, %v20613_v29 }
 0x318   :  { %15157 = vmatpush3.msra.mxu1 %v9902_v59  ;;  %15078 = vmatmul.mubr.f32.vlgmr.msra.gmra.mxu0 %v20104_v11  ;;  %23631 = vst [vmem:[#allocation85_spill] sm:$0xff] %v20622_v44  ;;  %v9916_v11 = vand.u32 4294901760, %v9915_v55  ;;  %v2895_v26 = vmul.f32 %v23633_v38, %v2767_v41  ;;  %v20641_v15 = vand.u32 4294901760, %v2896_v39  ;;  %v9923_v54 = vand.u32 4294901760, %v9922_v43  ;;  %v23634_v59 = vld [vmem:[#allocation21_spill] sm:$0xff] }
 0x319   :  { %15115 = vmatprep.subr.mxu0 %v20278_v9  ;;  %15158 = vmatprep.subr.mxu1 %v9909_v27  ;;  %23632 = vst [vmem:[#allocation86_spill] sm:$0xff] %v20634_v13  ;;  %v9936_v58 = vsub.f32 %v20592_v37, %v20622_v44  ;;  %v747_v55 = vmul.f32 %v23634_v59, %v23591_v61  ;;  %v9930_v43 = vand.u32 4294901760, %v9929_v28  ;;  %v23638_v59 = vld [vmem:[#allocation15_spill] sm:$0xff] }
 0x31a   :  { %15116 = vmatpush3.msra.mxu0 %v20278_v9  ;;  %15147 = vmatprep.mubr.f32.mxu0 %v9860_v18  ;;  %v20649_v3 = vsub.f32 %v2897_v20, %v20627_v19  ;;  %v23635_v18 = vld [vmem:[#allocation4_spill] sm:$0xff]  ;;  %v9943_v38 = vsub.f32 %v20605_v52, %v20634_v13  ;;  %v20659_v33 = vand.u32 4294901760, %v2895_v26  ;;  %v20663_v20 = vand.u32 4294901760, %v20637_v1 }
 0x31b   :  { %15159 = vmatpush3.msra.mxu1 %v9909_v27  ;;  %15117 = vmatprep.subr.mxu0 %v20286_v32  ;;  %v2894_v41 = vmul.f32 %v23635_v18, %v2766_v24  ;;  %v20654_v27 = vand.u32 4294901760, %v20625_v34  ;;  %v20666_v24 = vsub.f32 %v2896_v39, %v20641_v15  ;;  %v875_v28 = vadd.f32 %v747_v55, %v23638_v59 }
 0x31c   :  { %15160 = vmatprep.subr.mxu1 %v9916_v11  ;;  %15118 = vmatpush3.msra.mxu0 %v20286_v32  ;;  %23637 = vst [vmem:[#allocation90_spill] sm:$0xff] %v20663_v20  ;;  %v745_v13 = vmul.f32 %v23639_v5, %v23591_v61  ;;  %v20678_v39 = vand.u32 4294901760, %v20649_v3  ;;  %v20682_v55 = vsub.f32 %v2895_v26, %v20659_v33  ;;  %v23642_v26 = vld [vmem:[#allocation18_spill] sm:$0xff] }
 0x31d   :  { %15161 = vmatpush3.msra.mxu1 %v9916_v11  ;;  %15119 = vmatprep.subr.mxu0 %v20312_v40  ;;  %23636 = vst [vmem:[#allocation89_spill] sm:$0xff] %v20654_v27  ;;  %v9937_v11 = vand.u32 4294901760, %v9936_v58  ;;  %v20670_v18 = vand.u32 4294901760, %v2894_v41  ;;  %v9944_v58 = vand.u32 4294901760, %v9943_v38  ;;  %v20689_v5 = vand.u32 4294901760, %v20666_v24 }
 0x31e   :  { %15162 = vmatprep.subr.mxu1 %v9923_v54  ;;  %15120 = vmatpush3.msra.mxu0 %v20312_v40  ;;  %23640 = vst [vmem:[#allocation93_spill] sm:$0xff] %v20678_v39 }
 0x31f   :  { %15163 = vmatpush3.msra.mxu1 %v9923_v54  ;;  %15121 = vmatprep.subr.mxu0 %v20391_v60  ;;  %v9950_v54 = vsub.f32 %v20625_v34, %v20654_v27  ;;  %23641 = vst [vmem:[#allocation94_spill] sm:$0xff] %v20689_v5  ;;  %v20692_v59 = vsub.f32 %v2894_v41, %v20670_v18 }
 0x320   :  { %15164 = vmatprep.subr.mxu1 %v9930_v43  ;;  %15122 = vmatpush3.msra.mxu0 %v20391_v60  ;;  %v9964_v27 = vsub.f32 %v20649_v3, %v20678_v39 }
 0x321   :  { %15165 = vmatpush3.msra.mxu1 %v9930_v43  ;;  %15123 = vmatprep.subr.mxu0 %v20349_v17  ;;  %v9957_v43 = vsub.f32 %v20637_v1, %v20663_v20  ;;  %v9951_v38 = vand.u32 4294901760, %v9950_v54  ;;  %v23643_v20 = vld [vmem:[#allocation49_spill] sm:$0xff]  ;;  %v20705_v54 = vand.u32 4294901760, %v20682_v55 }
 0x322   :  { %15166 = vmatprep.subr.mxu1 %v9937_v11  ;;  %15124 = vmatpush3.msra.mxu0 %v20349_v17  ;;  %v746_v44 = vmul.f32 %v23643_v20, %v23591_v61  ;;  %v20711_v20 = vand.u32 4294901760, %v20692_v59 }
 0x323   :  { %15167 = vmatpush3.msra.mxu1 %v9937_v11  ;;  %15125 = vmatprep.subr.mxu0 %v20452_v49  ;;  %v873_v11 = vadd.f32 %v745_v13, %v23642_v26  ;;  %v9958_v41 = vand.u32 4294901760, %v9957_v43  ;;  %v9971_v13 = vsub.f32 %v20666_v24, %v20689_v5  ;;  %v23645_v43 = vld [vmem:[#allocation43_spill] sm:$0xff]  ;;  %v9978_v39 = vsub.f32 %v20682_v55, %v20705_v54  ;;  %v23647_v5 = vld [vmem:[#allocation28_spill] sm:$0xff] }
 0x324   :  { %15168 = vmatprep.subr.mxu1 %v9944_v58  ;;  %1513 = vperm.xlu1 %16150, %v875_v28   ;;  %v23644_v28 = vld [vmem:[#allocation50_spill] sm:$0xff] }
 0x325   :  { %15126 = vmatpush3.msra.mxu0 %v20452_v49  ;;  %15169 = vmatpush3.msra.mxu1 %v9944_v58  ;;  %v744_v10 = vmul.f32 %v23644_v28, %v23591_v61  ;;  %v9965_v58 = vand.u32 4294901760, %v9964_v27  ;;  %v874_v28 = vadd.f32 %v746_v44, %v23645_v43  ;;  %v9972_v27 = vand.u32 4294901760, %v9971_v13  ;;  %v23649_v44 = vld [vmem:[#allocation61_spill] sm:$0xff] }
 0x326   :  { %15127 = vmatprep.subr.mxu0 %v20492_v22  ;;  %15170 = vmatprep.subr.mxu1 %v9951_v38  ;;  %v741_v43 = vmul.f32 %v23499_v14, %v23591_v61 }
 0x327   :  { %15128 = vmatpush3.msra.mxu0 %v20492_v22  ;;  %15171 = vmatpush3.msra.mxu1 %v9951_v38  ;;  %v23646_v38 = vld [vmem:[#allocation45_spill] sm:$0xff] }
 0x328   :  { %15129 = vmatprep.subr.mxu0 %v20518_v45  ;;  %15172 = vmatprep.subr.mxu1 %v9958_v41  ;;  %v872_v26 = vadd.f32 %v744_v10, %v23646_v38  ;;  %v9985_v10 = vsub.f32 %v20692_v59, %v20711_v20  ;;  %v20729_v38 = vand.u32 4294901760, %v23649_v44 }
 0x329   :  { %1503 = vperm.xlu1 %16150, %v873_v11   ;;  %15130 = vmatpush3.msra.mxu0 %v20518_v45  ;;  %v743_v11 = vmul.f32 %v23647_v5, %v23591_v61 }
 0x32a   :  { %15173 = vmatpush3.msra.mxu1 %v9958_v41  ;;  %15131 = vmatprep.subr.mxu0 %v20547_v57  ;;  %v742_v41 = vmul.f32 %v23648_v46, %v23591_v61  ;;  %v9986_v5 = vand.u32 4294901760, %v9985_v10  ;;  %v23652_v10 = vld [vmem:[#allocation51_spill] sm:$0xff] }
 0x32b   :  { %15174 = vmatprep.subr.mxu1 %v9965_v58  ;;  %15132 = vmatpush3.msra.mxu0 %v20547_v57  ;;  %v871_v13 = vadd.f32 %v743_v11, %v23497_v4  ;;  %v23651_v11 = vld [vmem:[#allocation25_spill] sm:$0xff] }
 0x32c   :  { %15175 = vmatpush3.msra.mxu1 %v9965_v58  ;;  %16151 = vset.pattern.permute.xlu0 %v23566_v62  ;;  %v9979_v58 = vand.u32 4294901760, %v9978_v39  ;;  %v870_v46 = vadd.f32 %v742_v41, %v23498_v31  ;;  %v23650_v39 = vld [vmem:[#allocation56_spill] sm:$0xff] }
 0x32d   :  { %15133 = vmatprep.subr.mxu0 %v20572_v50  ;;  %15176 = vmatprep.subr.mxu1 %v9972_v27 }
 0x32e   :  { %1508 = vperm.xlu0 %16151, %v874_v28   ;;  %1498 = vperm.xlu1 %16150, %v872_v26   ;;  %v20740_v26 = vsub.f32 %v23649_v44, %v20729_v38  ;;  %v740_v28 = vmul.f32 %v23650_v39, %v23591_v61 }
 0x32f   :  { %15134 = vmatpush3.msra.mxu0 %v20572_v50  ;;  %15177 = vmatpush3.msra.mxu1 %v9972_v27  ;;  %v869_v27 = vadd.f32 %v741_v43, %v23651_v11  ;;  %v23655_v43 = vand.u32 4294901760, %v20294_v48 }
 0x330   :  { %15135 = vmatprep.subr.mxu0 %v20594_v12  ;;  %15178 = vmatprep.subr.mxu1 %v9979_v58  ;;  %v23031_v41 = vand.u32 4294901760, %v20740_v26  ;;  %v868_v44 = vadd.f32 %v740_v28, %v23652_v10  ;;  %v936_v28 = vpop.permute.xlu0 %935 }
 0x331   :  { %15136 = vmatpush3.msra.mxu0 %v20594_v12  ;;  %15179 = vmatpush3.msra.mxu1 %v9979_v58  ;;  %v23653_v58 = vld [vmem:[#allocation34_spill] sm:$0xff] }
 0x332   :  { %15137 = vmatprep.subr.mxu0 %v20613_v29  ;;  %15180 = vmatprep.subr.mxu1 %v9986_v5  ;;  %v739_v39 = vmul.f32 %v23653_v58, %v23591_v61  ;;  %v23656_v58 = vld [vmem:[#allocation29_spill] sm:$0xff] }
 0x333   :  { %1493 = vperm.xlu0 %16151, %v871_v13   ;;  %1488 = vperm.xlu1 %16150, %v870_v46   ;;  %v23654_v46 = vld [vmem:[#allocation57_spill] sm:$0xff]  ;;  %v9869_v13 = vsub.f32 %v20740_v26, %v23031_v41  ;;  %v941_v41 = vrot.slane %v936_v28, %v23584_v47 }
 0x334   :  { %15138 = vmatpush3.msra.mxu0 %v20613_v29  ;;  %15181 = vmatpush3.msra.mxu1 %v9986_v5  ;;  %v738_v5 = vmul.f32 %v23654_v46, %v23591_v61  ;;  %v867_v10 = vadd.f32 %v739_v39, %v23656_v58  ;;  %v23659_v39 = vld [vmem:[#allocation59_spill] sm:$0xff]  ;;  %v23661_v58 = vld [vmem:[#allocation62_spill] sm:$0xff] }
 0x335   :  { %15139 = vmatprep.subr.mxu0 %v20627_v19  ;;  %15183 = vmatmul.mubr.f32.vlgmr.msra.gmra.mxu1 %v20729_v38  ;;  %v20784_v47 = vadd.f32 %v941_v41, %v23661_v58 }
 0x336   :  { %15220 = vmatprep.subr.mxu1 %v20278_v9  ;;  %15140 = vmatpush3.msra.mxu0 %v20627_v19 }
 0x337   :  { %15221 = vmatpush3.msra.mxu1 %v20278_v9  ;;  %15252 = vmatprep.mubr.f32.mxu1 %v23655_v43  ;;  %v23657_v43 = vld [vmem:[#allocation54_spill] sm:$0xff] }
 0x338   :  { %15141 = vmatprep.subr.mxu0 %v20641_v15  ;;  %15222 = vmatprep.subr.mxu1 %v20286_v32  ;;  %v866_v46 = vadd.f32 %v738_v5, %v23657_v43  ;;  %v9870_v5 = vand.u32 4294901760, %v9869_v13  ;;  %v1444_v43 = vpop.permute.xlu1 %1443 }
 0x339   :  { %1483 = vperm.xlu0 %16151, %v869_v27   ;;  %1478 = vperm.xlu1 %16150, %v868_v44   ;;  %v23658_v27 = vld [vmem:[#allocation36_spill] sm:$0xff]  ;;  %v736_v44 = vmul.f32 %v23659_v39, %v23591_v61  ;;  %v23662_v39 = vld [vmem:[#allocation55_spill] sm:$0xff]  ;;  %vm1701_vm7 = vcmp.eq.f32.partialorder %v1444_v43, %v20784_v47 }
 0x33a   :  { %15142 = vmatpush3.msra.mxu0 %v20641_v15  ;;  %15223 = vmatpush3.msra.mxu1 %v20286_v32  ;;  %v737_v11 = vmul.f32 %v23658_v27, %v23591_v61  ;;  %v23660_v27 = vld [vmem:[#allocation32_spill] sm:$0xff] }
 0x33b   :  { %15143 = vmatprep.subr.mxu0 %v20659_v33  ;;  %15224 = vmatprep.subr.mxu1 %v20312_v40  ;;  %v864_v14 = vadd.f32 %v736_v44, %v23662_v39 }
 0x33c   :  { %15144 = vmatpush3.msra.mxu0 %v20659_v33  ;;  %15225 = vmatpush3.msra.mxu1 %v20312_v40  ;;  %v865_v28 = vadd.f32 %v737_v11, %v23660_v27  ;;  %v20799_v11 = vadd.f32 1.0, %v20784_v47  ;;  %v1439_v41 = vpop.permute.xlu1 %1438 }
 0x33d   :  { %15145 = vmatprep.subr.mxu0 %v20670_v18  ;;  %15226 = vmatprep.subr.mxu1 %v20391_v60  ;;  %vm1700_vm9 = vcmp.eq.f32.partialorder %v1439_v41, %v20784_v47 }
 0x33e   :  { %1473 = vperm.xlu0 %16151, %v867_v10   ;;  %1468 = vperm.xlu1 %16150, %v866_v46   ;;  %v23663_v10 = vld [vmem:[#allocation37_spill] sm:$0xff]  ;;  %v23664_v46 = vld [vmem:[#allocation60_spill] sm:$0xff]  ;;  %vm2253_vm8 = vcmp.eq.f32.partialorder %v1444_v43, %v20799_v11  ;;  %vm2252_vm10 = vcmp.eq.f32.partialorder %v1439_v41, %v20799_v11  ;;  %v12722_v43 = vsel %vm1701_vm7, 1.0, %v23144_v36  ;;  %v12721_v41 = vsel %vm1700_vm9, 1.0, %v23144_v36 }
 0x33f   :  { %15146 = vmatpush3.msra.mxu0 %v20670_v18  ;;  %15227 = vmatpush3.msra.mxu1 %v20391_v60  ;;  %v735_v13 = vmul.f32 %v23663_v10, %v23591_v61 }
 0x340   :  { %15148 = vmatmul.mubr.f32.vlgmr.msra.gmra.mxu0 %v9870_v5  ;;  %15185 = vmatprep.subr.mxu0 %v20310_v25  ;;  %v734_v5 = vmul.f32 %v23664_v46, %v23591_v61  ;;  %v23666_v61 = vld [vmem:[#allocation58_spill] sm:$0xff]  ;;  %v23668_v46 = vld [vmem:[#allocation41_spill] sm:$0xff] }
 0x341   :  { %15228 = vmatprep.subr.mxu1 %v20349_v17  ;;  %15186 = vmatpush3.msra.mxu0 %v20310_v25  ;;  %v23665_v25 = vld [vmem:[#allocation35_spill] sm:$0xff] }
 0x342   :  { %15217 = vmatprep.mubr.f32.mxu0 %v20294_v48  ;;  %15229 = vmatpush3.msra.mxu1 %v20349_v17  ;;  %v863_v44 = vadd.f32 %v735_v13, %v23665_v25  ;;  %v862_v48 = vadd.f32 %v734_v5, %v23666_v61  ;;  %v12850_v13 = vsel %vm2253_vm8, 1.0, %v23144_v36  ;;  %v23672_v61 = vld [vmem:[#allocation12_spill] sm:$0xff] }
 0x343   :  { %15187 = vmatprep.subr.mxu0 %v20321_v0  ;;  %15230 = vmatprep.subr.mxu1 %v20452_v49 }
 0x344   :  { %1463 = vperm.xlu0 %16151, %v865_v28   ;;  %1458 = vperm.xlu1 %16150, %v864_v14   ;;  %v23667_v28 = vld [vmem:[#allocation19_spill] sm:$0xff]  ;;  %v23669_v14 = vld [vmem:[#allocation38_spill] sm:$0xff] }
 0x345   :  { %15188 = vmatpush3.msra.mxu0 %v20321_v0  ;;  %15231 = vmatpush3.msra.mxu1 %v20452_v49  ;;  %v765_v10 = vmul.f32 %v23668_v46, %v23667_v28  ;;  %v20818_v0 = vpop.permute.xlu1 %2563  ;;  %v20825_v46 = vpop.permute.xlu0 %2011 }
 0x346   :  { %15189 = vmatprep.subr.mxu0 %v20336_v7  ;;  %15232 = vmatprep.subr.mxu1 %v20492_v22  ;;  %v2116_v39 = vmul.f32 %v12721_v41, %v20825_v46 }
 0x347   :  { %15190 = vmatpush3.msra.mxu0 %v20336_v7  ;;  %15233 = vmatpush3.msra.mxu1 %v20492_v22  ;;  %v893_v7 = vadd.f32 %v765_v10, %v23669_v14  ;;  %v23671_v10 = vmov 3   ;;  %v2669_v14 = vmul.f32 %v12850_v13, %v20818_v0 }
 0x348   :  { %15191 = vmatprep.subr.mxu0 %v20478_v53  ;;  %15234 = vmatprep.subr.mxu1 %v20518_v45 }
 0x349   :  { %1453 = vperm.xlu0 %16151, %v863_v44   ;;  %1448 = vperm.xlu1 %16150, %v862_v48   ;;  %v12849_v44 = vsel %vm2252_vm10, 1.0, %v23144_v36  ;;  %v1434_v48 = vpop.permute.xlu1 %1433 }
 0x34a   :  { %15192 = vmatpush3.msra.mxu0 %v20478_v53  ;;  %15235 = vmatpush3.msra.mxu1 %v20518_v45  ;;  %v23670_v53 = vld [vmem:[#allocation17_spill] sm:$0xff]  ;;  %vm1699_vm4 = vcmp.eq.f32.partialorder %v1434_v48, %v20784_v47  ;;  %vm2251_vm11 = vcmp.eq.f32.partialorder %v1434_v48, %v20799_v11  ;;  %v23676_v48 = vld [vmem:[#allocation7_spill] sm:$0xff] }
 0x34b   :  { %15193 = vmatprep.subr.mxu0 %v20388_v16  ;;  %15236 = vmatprep.subr.mxu1 %v20547_v57  ;;  %v764_v5 = vmul.f32 %v23670_v53, %v23667_v28  ;;  %v16163_v53 = vld [vmem:[%s22684_s0 + $0x7] sm:$0x1]  ;;  %v12848_v13 = vsel %vm2251_vm11, 1.0, %v23144_v36 }
 0x34c   :  { %15194 = vmatpush3.msra.mxu0 %v20388_v16  ;;  %15237 = vmatpush3.msra.mxu1 %v20547_v57  ;;  %v2117_v16 = vmul.f32 %v12722_v43, %v20825_v46  ;;  %v12720_v43 = vsel %vm1699_vm4, 1.0, %v23144_v36 }
 0x34d   :  { %15195 = vmatprep.subr.mxu0 %v20510_v6  ;;  %15238 = vmatprep.subr.mxu1 %v20572_v50  ;;  %v892_v25 = vadd.f32 %v764_v5, %v23672_v61  ;;  %v1429_v5 = vpop.permute.xlu0 %1428 }
 0x34e   :  { %16152 = vset.pattern.permute.xlu0 %v23671_v10  ;;  %1603 = vperm.xlu1 %16150, %v893_v7   ;;  %v2668_v10 = vmul.f32 %v12849_v44, %v20818_v0  ;;  %v1424_v7 = vpop.permute.xlu1 %1423  ;;  %vm1698_vm14 = vcmp.eq.f32.partialorder %v1429_v5, %v20784_v47  ;;  %vm2250_vm15 = vcmp.eq.f32.partialorder %v1429_v5, %v20799_v11  ;;  %v23675_v44 = vmov 5  }
 0x34f   :  { %15196 = vmatpush3.msra.mxu0 %v20510_v6  ;;  %15239 = vmatpush3.msra.mxu1 %v20572_v50  ;;  %v2797_v6 = vadd.f32 %v2669_v14, %v2117_v16  ;;  %vm1697_vm12 = vcmp.eq.f32.partialorder %v1424_v7, %v20784_v47  ;;  %vm2249_vm13 = vcmp.eq.f32.partialorder %v1424_v7, %v20799_v11  ;;  %v12847_v7 = vsel %vm2250_vm15, 1.0, %v23144_v36 }
 0x350   :  { %951 = vperm.xlu0 %16152, %v16163_v53   ;;  %15197 = vmatprep.subr.mxu0 %v20539_v8  ;;  %v2796_v61 = vadd.f32 %v2668_v10, %v2116_v39  ;;  %v2667_v14 = vmul.f32 %v12848_v13, %v20818_v0  ;;  %v12718_v53 = vsel %vm1697_vm12, 1.0, %v23144_v36  ;;  %v12846_v10 = vsel %vm2249_vm13, 1.0, %v23144_v36 }
 0x351   :  { %15240 = vmatprep.subr.mxu1 %v20594_v12  ;;  %15198 = vmatpush3.msra.mxu0 %v20539_v8  ;;  %v14729_v8 = vpop.f32.mrf.mxu0 }
 0x352   :  { %15241 = vmatpush3.msra.mxu1 %v20594_v12  ;;  %15199 = vmatprep.subr.mxu0 %v20564_v2  ;;  %v2924_v16 = vmul.f32 %v23676_v48, %v2796_v61  ;;  %v12719_v61 = vsel %vm1698_vm14, 1.0, %v23144_v36  ;;  %v2665_v48 = vmul.f32 %v12846_v10, %v20818_v0  ;;  %v1419_v58 = vpop.permute.xlu1 %1418 }
 0x353   :  { %15242 = vmatprep.subr.mxu1 %v20613_v29  ;;  %1598 = vperm.xlu1 %16150, %v892_v25   ;;  %v23674_v25 = vld [vmem:[#allocation65_spill] sm:$0xff]  ;;  %v2114_v5 = vmul.f32 %v12719_v61, %v20825_v46  ;;  %vm1696_vm0 = vcmp.eq.f32.partialorder %v1419_v58, %v20784_v47  ;;  %vm2248_vm1 = vcmp.eq.f32.partialorder %v1419_v58, %v20799_v11 }
 0x354   :  { %15200 = vmatpush3.msra.mxu0 %v20564_v2  ;;  %15243 = vmatpush3.msra.mxu1 %v20613_v29  ;;  %v23673_v2 = vld [vmem:[#allocation77_spill] sm:$0xff]  ;;  %v2925_v41 = vmul.f32 %v23674_v25, %v2797_v6  ;;  %v14764_v6 = vpop.f32.mrf.mxu1  ;;  %v8494_v25 = vpop.f32.mrf.mxu0 }
 0x355   :  { %15201 = vmatprep.subr.mxu0 %v20592_v37  ;;  %15244 = vmatprep.subr.mxu1 %v20627_v19  ;;  %v20865_v39 = vand.u32 4294901760, %v23673_v2 }
 0x356   :  { %15202 = vmatpush3.msra.mxu0 %v20592_v37  ;;  %15245 = vmatpush3.msra.mxu1 %v20627_v19  ;;  %v2115_v37 = vmul.f32 %v12720_v43, %v20825_v46  ;;  %v23677_v43 = vld [vmem:[#allocation39_spill] sm:$0xff]  ;;  %v8655_v31 = vpop.f32.mrf.mxu1 }
 0x357   :  { %15203 = vmatprep.subr.mxu0 %v20605_v52  ;;  %15246 = vmatprep.subr.mxu1 %v20641_v15  ;;  %v20892_v13 = vsub.f32 %v23673_v2, %v20865_v39  ;;  %v14799_v2 = vpop.f32.mrf.mxu0 }
 0x358   :  { %16153 = vset.pattern.permute.xlu0 %v23675_v44  ;;  %16154 = vset.pattern.permute.xlu1 %v23675_v44  ;;  %v2113_v44 = vmul.f32 %v12718_v53, %v20825_v46  ;;  %v2795_v27 = vadd.f32 %v2667_v14, %v2115_v37  ;;  %v2666_v53 = vmul.f32 %v12847_v7, %v20818_v0  ;;  %v14834_v61 = vpop.f32.mrf.mxu1  ;;  %v23678_v7 = vand.u32 4294901760, %v20740_v26 }
 0x359   :  { %15204 = vmatpush3.msra.mxu0 %v20605_v52  ;;  %15247 = vmatpush3.msra.mxu1 %v20641_v15  ;;  %v20899_v52 = vand.u32 4294901760, %v2925_v41  ;;  %v8765_v4 = vpop.f32.mrf.mxu0 }
 0x35a   :  { %2019 = vperm.xlu0 %16153, %v23677_v43   ;;  %2571 = vperm.xlu1 %16154, %v23667_v28   ;;  %v20905_v43 = vand.u32 4294901760, %v2924_v16  ;;  %v2793_v10 = vadd.f32 %v2665_v48, %v2113_v44  ;;  %v23679_v48 = vld [vmem:[#allocation63_spill] sm:$0xff]  ;;  %v2794_v14 = vadd.f32 %v2666_v53, %v2114_v5  ;;  %v8861_v5 = vpop.f32.mrf.mxu1 }
 0x35b   :  { %15205 = vmatprep.subr.mxu0 %v20625_v34  ;;  %15248 = vmatprep.subr.mxu1 %v20659_v33  ;;  %v20918_v37 = vsub.f32 %v2925_v41, %v20899_v52  ;;  %v12845_v41 = vsel %vm2248_vm1, 1.0, %v23144_v36 }
 0x35c   :  { %15206 = vmatpush3.msra.mxu0 %v20625_v34  ;;  %15249 = vmatpush3.msra.mxu1 %v20659_v33  ;;  %v8662_v34 = vadd.f32 %v14764_v6, %v14729_v8  ;;  %v8656_v8 = vadd.f32 %v8655_v31, %v8494_v25  ;;  %v12717_v6 = vsel %vm1696_vm0, 1.0, %v23144_v36  ;;  %v1414_v31 = vpop.permute.xlu0 %1413 }
 0x35d   :  { %15207 = vmatprep.subr.mxu0 %v20637_v1  ;;  %15250 = vmatprep.subr.mxu1 %v20670_v18  ;;  %v20941_v58 = vand.u32 4294901760, %v20918_v37  ;;  %vm1695_vm2 = vcmp.eq.f32.partialorder %v1414_v31, %v20784_v47  ;;  %vm2247_vm3 = vcmp.eq.f32.partialorder %v1414_v31, %v20799_v11 }
 0x35e   :  { %15208 = vmatpush3.msra.mxu0 %v20637_v1  ;;  %15251 = vmatpush3.msra.mxu1 %v20670_v18  ;;  %v20925_v1 = vsub.f32 %v2924_v16, %v20905_v43  ;;  %v8773_v44 = vadd.f32 %v14799_v2, %v8662_v34  ;;  %v8766_v25 = vadd.f32 %v8765_v4, %v8656_v8 }
 0x35f   :  { %15209 = vmatprep.subr.mxu0 %v20649_v3  ;;  %15253 = vmatmul.mubr.f32.vlgmr.msra.gmra.mxu1 %v23678_v7  ;;  %v2923_v7 = vmul.f32 %v23679_v48, %v2795_v27  ;;  %v2921_v27 = vmul.f32 %v23603_v30, %v2793_v10  ;;  %v2112_v16 = vmul.f32 %v12717_v6, %v20825_v46 }
 0x360   :  { %15290 = vmatprep.subr.mxu1 %v20278_v9  ;;  %15210 = vmatpush3.msra.mxu0 %v20649_v3  ;;  %v23680_v3 = vand.u32 4294901760, %v20892_v13  ;;  %v2664_v2 = vmul.f32 %v12845_v41, %v20818_v0  ;;  %v20954_v4 = vand.u32 4294901760, %v20925_v1  ;;  %v8870_v53 = vadd.f32 %v14834_v61, %v8773_v44 }
 0x361   :  { %15291 = vmatpush3.msra.mxu1 %v20278_v9  ;;  %15322 = vmatprep.mubr.f32.mxu1 %v20269_v35  ;;  %v20960_v34 = vand.u32 4294901760, %v2923_v7  ;;  %v2922_v10 = vmul.f32 %v23604_v56, %v2794_v14  ;;  %v8862_v6 = vadd.f32 %v8861_v5, %v8766_v25  ;;  %v20971_v14 = vand.u32 4294901760, %v2921_v27  ;;  %v1404_v5 = vpop.permute.xlu0 %1403 }
 0x362   :  { %15211 = vmatprep.subr.mxu0 %v20666_v24  ;;  %15292 = vmatprep.subr.mxu1 %v20286_v32  ;;  %v20946_v9 = vsub.f32 %v20892_v13, %v23680_v3  ;;  %v12716_v41 = vsel %vm1695_vm2, 1.0, %v23144_v36  ;;  %vm1693_vm7 = vcmp.eq.f32.partialorder %v1404_v5, %v20784_v47  ;;  %vm2245_vm8 = vcmp.eq.f32.partialorder %v1404_v5, %v20799_v11 }
 0x363   :  { %15212 = vmatpush3.msra.mxu0 %v20666_v24  ;;  %15293 = vmatpush3.msra.mxu1 %v20286_v32  ;;  %v1409_v24 = vpop.permute.xlu1 %1408  ;;  %v14904_v32 = vpop.f32.mrf.mxu1 }
 0x364   :  { %15213 = vmatprep.subr.mxu0 %v20682_v55  ;;  %15294 = vmatprep.subr.mxu1 %v20312_v40  ;;  %vm1694_vm5 = vcmp.eq.f32.partialorder %v1409_v24, %v20784_v47  ;;  %vm2246_vm6 = vcmp.eq.f32.partialorder %v1409_v24, %v20799_v11 }
 0x365   :  { %15214 = vmatpush3.msra.mxu0 %v20682_v55  ;;  %15295 = vmatpush3.msra.mxu1 %v20312_v40  ;;  %v12844_v40 = vsel %vm2247_vm3, 1.0, %v23144_v36  ;;  %v12715_v25 = vsel %vm1694_vm5, 1.0, %v23144_v36  ;;  %v12843_v3 = vsel %vm2246_vm6, 1.0, %v23144_v36  ;;  %v9081_v24 = vpop.f32.mrf.mxu1  ;;  %v1394_v5 = vpop.permute.xlu0 %1393 }
 0x366   :  { %15215 = vmatprep.subr.mxu0 %v20692_v59  ;;  %v14869_v8 = vpop.f32.mrf.mxu0  ;;  %15296 = vmatprep.subr.mxu1 %v20391_v60  ;;  %v2663_v55 = vmul.f32 %v12844_v40, %v20818_v0  ;;  %vm1691_vm4 = vcmp.eq.f32.partialorder %v1394_v5, %v20784_v47  ;;  %vm2243_vm11 = vcmp.eq.f32.partialorder %v1394_v5, %v20799_v11  ;;  %v23685_v5 = vld [vmem:[#allocation11_spill] sm:$0xff] }
 0x367   :  { %15216 = vmatpush3.msra.mxu0 %v20692_v59  ;;  %v8995_v61 = vadd.f32 %v14869_v8, %v8870_v53  ;;  %15297 = vmatpush3.msra.mxu1 %v20391_v60  ;;  %v20994_v53 = vand.u32 4294901760, %v2922_v10  ;;  %v2792_v8 = vadd.f32 %v2664_v2, %v2112_v16  ;;  %v2111_v59 = vmul.f32 %v12716_v41, %v20825_v46 }
 0x368   :  { %15218 = vmatmul.mubr.f32.vlgmr.msra.gmra.mxu0 %v20740_v26  ;;  %v8988_v44 = vpop.f32.mrf.mxu0  ;;  %15255 = vmatprep.subr.mxu0 %v20342_v63  ;;  %v20992_v26 = vsub.f32 %v2923_v7, %v20960_v34  ;;  %v2110_v16 = vmul.f32 %v12715_v25, %v20825_v46  ;;  %v2662_v2 = vmul.f32 %v12843_v3, %v20818_v0 }
 0x369   :  { %15298 = vmatprep.subr.mxu1 %v20349_v17  ;;  %v9088_v60 = vadd.f32 %v14904_v32, %v8995_v61  ;;  %v8989_v31 = vadd.f32 %v8988_v44, %v8862_v6  ;;  %15256 = vmatpush3.msra.mxu0 %v20342_v63  ;;  %v12714_v63 = vsel %vm1693_vm7, 1.0, %v23144_v36  ;;  %v21022_v41 = vsub.f32 %v2922_v10, %v20994_v53 }
 0x36a   :  { %15287 = vmatprep.mubr.f32.mxu0 %v20269_v35  ;;  %15299 = vmatpush3.msra.mxu1 %v20349_v17  ;;  %v21011_v35 = vsub.f32 %v2921_v27, %v20971_v14  ;;  %v1399_v17 = vpop.permute.xlu1 %1398  ;;  %v23681_v27 = vld [vmem:[#allocation27_spill] sm:$0xff]  ;;  %v2791_v44 = vadd.f32 %v2663_v55, %v2111_v59  ;;  %v2790_v25 = vadd.f32 %v2662_v2, %v2110_v16 }
 0x36b   :  { %15257 = vmatprep.subr.mxu0 %v20345_v21  ;;  %v21003_v7 = vmul.f32 255.0, %v9088_v60  ;;  %v9082_v32 = vadd.f32 %v9081_v24, %v8989_v31  ;;  %15300 = vmatprep.subr.mxu1 %v20452_v49  ;;  %vm1692_vm9 = vcmp.eq.f32.partialorder %v1399_v17, %v20784_v47  ;;  %vm2244_vm10 = vcmp.eq.f32.partialorder %v1399_v17, %v20799_v11  ;;  %v23682_v60 = vld [vmem:[#allocation10_spill] sm:$0xff] }
 0x36c   :  { %15258 = vmatpush3.msra.mxu0 %v20345_v21  ;;  %15301 = vmatpush3.msra.mxu1 %v20452_v49  ;;  %v21025_v21 = vmul.f32 %v23605_v51, %v2792_v8  ;;  %v12842_v49 = vsel %vm2245_vm8, 1.0, %v23144_v36  ;;  %v2109_v3 = vmul.f32 %v12714_v63, %v20825_v46  ;;  %v12841_v24 = vsel %vm2244_vm10, 1.0, %v23144_v36 }
 0x36d   :  { %15259 = vmatprep.subr.mxu0 %v20373_v42  ;;  %v15997_v61 = vcvt.f32.s32 %v21003_v7  ;;  %v21019_v6 = vmul.f32 255.0, %v9082_v32  ;;  %15302 = vmatprep.subr.mxu1 %v20492_v22  ;;  %v16000_v55 = vand.u32 2147483648, %v21003_v7  ;;  %v2661_v8 = vmul.f32 %v12842_v49, %v20818_v0 }
 0x36e   :  { %15260 = vmatpush3.msra.mxu0 %v20373_v42  ;;  %15303 = vmatpush3.msra.mxu1 %v20492_v22  ;;  %v15995_v42 = vand.u32 2147483647, %v21003_v7  ;;  %v12713_v22 = vsel %vm1692_vm9, 1.0, %v23144_v36  ;;  %v1389_v32 = vpop.permute.xlu1 %1388  ;;  %v21066_v49 = vand.u32 4294901760, %v20992_v26 }
 0x36f   :  { %15261 = vmatprep.subr.mxu0 %v23681_v27  ;;  %v15998_v40 = vcvt.s32.f32 %v15997_v61  ;;  %v15989_v10 = vcvt.f32.s32 %v21019_v6  ;;  %15304 = vmatprep.subr.mxu1 %v20518_v45  ;;  %v15992_v63 = vand.u32 2147483648, %v21019_v6  ;;  %v2108_v17 = vmul.f32 %v12713_v22, %v20825_v46  ;;  %v23684_v22 = vld [vmem:[#allocation42_spill] sm:$0xff] }
 0x370   :  { %15262 = vmatpush3.msra.mxu0 %v23681_v27  ;;  %15305 = vmatpush3.msra.mxu1 %v20518_v45  ;;  %v15987_v45 = vand.u32 2147483647, %v21019_v6  ;;  %vm1690_vm12 = vcmp.eq.f32.partialorder %v1389_v32, %v20784_v47  ;;  %vm2242_vm13 = vcmp.eq.f32.partialorder %v1389_v32, %v20799_v11  ;;  %vm15996_vm14 = vcmp.lt.f32.partialorder %v15995_v42, 8388608.0  ;;  %v1384_v42 = vpop.permute.xlu0 %1383 }
 0x371   :  { %15263 = vmatprep.subr.mxu0 %v23682_v60  ;;  %v15999_v31 = vand.u32 2147483647, %v15998_v40  ;;  %v15990_v59 = vcvt.s32.f32 %v15989_v10  ;;  %15306 = vmatprep.subr.mxu1 %v20547_v57  ;;  %v2660_v61 = vmul.f32 %v12841_v24, %v20818_v0  ;;  %v12712_v10 = vsel %vm1691_vm4, 1.0, %v23144_v36  ;;  %v23686_v24 = vld [vmem:[#allocation16_spill] sm:$0xff] }
 0x372   :  { %15264 = vmatpush3.msra.mxu0 %v23682_v60  ;;  %15307 = vmatpush3.msra.mxu1 %v20547_v57  ;;  %v23683_v57 = vld [vmem:[#allocation81_spill] sm:$0xff]  ;;  %vm15988_vm15 = vcmp.lt.f32.partialorder %v15987_v45, 8388608.0  ;;  %v21078_v60 = vmul.f32 %v23684_v22, %v2791_v44  ;;  %vm1689_vm0 = vcmp.eq.f32.partialorder %v1384_v42, %v20784_v47  ;;  %vm2241_vm1 = vcmp.eq.f32.partialorder %v1384_v42, %v20799_v11 }
 0x373   :  { %15265 = vmatprep.subr.mxu0 %v20570_v23  ;;  %v16001_v16 = vor.u32 %v16000_v55, %v15999_v31  ;;  %v15991_v2 = vand.u32 2147483647, %v15990_v59  ;;  %15308 = vmatprep.subr.mxu1 %v20572_v50  ;;  %v12839_v31 = vsel %vm2242_vm13, 1.0, %v23144_v36  ;;  %v2789_v59 = vadd.f32 %v2661_v8, %v2109_v3  ;;  %v1379_v3 = vpop.permute.xlu1 %1378  ;;  %v23687_v8 = vld [vmem:[#allocation85_spill] sm:$0xff] }
 0x374   :  { %15266 = vmatpush3.msra.mxu0 %v20570_v23  ;;  %15309 = vmatpush3.msra.mxu1 %v20572_v50  ;;  %v12840_v23 = vsel %vm2243_vm11, 1.0, %v23144_v36  ;;  %v2107_v45 = vmul.f32 %v12712_v10, %v20825_v46  ;;  %v23688_v32 = vsub.f32 %v20918_v37, %v20941_v58  ;;  %vm1688_vm2 = vcmp.eq.f32.partialorder %v1379_v3, %v20784_v47  ;;  %v1374_v10 = vpop.permute.xlu0 %1373 }
 0x375   :  { %15267 = vmatprep.subr.mxu0 %v23683_v57  ;;  %v16002_v27 = vsel %vm15996_vm14, %v16001_v16, %v21003_v7  ;;  %v15993_v40 = vor.u32 %v15992_v63, %v15991_v2  ;;  %15310 = vmatprep.subr.mxu1 %v20594_v12  ;;  %v12711_v7 = vsel %vm1690_vm12, 1.0, %v23144_v36  ;;  %v21107_v2 = vand.u32 4294901760, %v21025_v21 }
 0x376   :  { %15268 = vmatpush3.msra.mxu0 %v23683_v57  ;;  %v12548_v50 = vmul.f32 0.003921569, %v16002_v27  ;;  %15311 = vmatpush3.msra.mxu1 %v20594_v12  ;;  %v21097_v12 = vmul.f32 %v23686_v24, %v2790_v25  ;;  %v10565_v16 = vand.u32 4294901760, %v23688_v32  ;;  %v2788_v63 = vadd.f32 %v2660_v61, %v2108_v17  ;;  %v23689_v61 = vld [vmem:[#allocation86_spill] sm:$0xff]  ;;  %v23690_v27 = vld [vmem:[#allocation44_spill] sm:$0xff] }
 0x377   :  { %15269 = vmatprep.subr.mxu0 %v23685_v5  ;;  %v15994_v55 = vsel %vm15988_vm15, %v15993_v40, %v21019_v6  ;;  %15312 = vmatprep.subr.mxu1 %v20613_v29  ;;  %v2659_v6 = vmul.f32 %v12840_v23, %v20818_v0  ;;  %v2106_v25 = vmul.f32 %v12711_v7, %v20825_v46  ;;  %v12838_v17 = vsel %vm2241_vm1, 1.0, %v23144_v36 }
 0x378   :  { %15270 = vmatpush3.msra.mxu0 %v23685_v5  ;;  %12564 = vst [vmem:[%s22686_s2 + $0x28] sm:$0xff] %v12548_v50  ;;  %v12547_v44 = vmul.f32 0.003921569, %v15994_v55  ;;  %15313 = vmatpush3.msra.mxu1 %v20613_v29  ;;  %v2658_v57 = vmul.f32 %v12839_v31, %v20818_v0  ;;  %v12710_v29 = vsel %vm1689_vm0, 1.0, %v23144_v36  ;;  %vm2240_vm3 = vcmp.eq.f32.partialorder %v1379_v3, %v20799_v11  ;;  %v23691_v31 = vld [vmem:[#allocation89_spill] sm:$0xff] }
 0x379   :  { %15271 = vmatprep.subr.mxu0 %v23687_v8  ;;  %15314 = vmatprep.subr.mxu1 %v20627_v19  ;;  %v2917_v40 = vmul.f32 %v23690_v27, %v2789_v59  ;;  %v10578_v23 = vsub.f32 %v20992_v26, %v21066_v49  ;;  %v21132_v42 = vand.u32 4294901760, %v21022_v41  ;;  %v21135_v50 = vand.u32 4294901760, %v21011_v35 }
 0x37a   :  { %15272 = vmatpush3.msra.mxu0 %v23687_v8  ;;  %12563 = vst [vmem:[%s22686_s2 + $0x20] sm:$0xff] %v12547_v44  ;;  %15315 = vmatpush3.msra.mxu1 %v20627_v19  ;;  %v21138_v19 = vand.u32 4294901760, %v21078_v60  ;;  %v2787_v7 = vadd.f32 %v2659_v6, %v2107_v45  ;;  %vm1687_vm5 = vcmp.eq.f32.partialorder %v1374_v10, %v20784_v47  ;;  %v12709_v59 = vsel %vm1688_vm2, 1.0, %v23144_v36  ;;  %v23692_v6 = vld [vmem:[#allocation33_spill] sm:$0xff] }
 0x37b   :  { %15273 = vmatprep.subr.mxu0 %v23689_v61  ;;  %15316 = vmatprep.subr.mxu1 %v20641_v15  ;;  %vm2239_vm6 = vcmp.eq.f32.partialorder %v1374_v10, %v20799_v11  ;;  %v2105_v5 = vmul.f32 %v12710_v29, %v20825_v46  ;;  %v2657_v55 = vmul.f32 %v12838_v17, %v20818_v0  ;;  %v12837_v44 = vsel %vm2240_vm3, 1.0, %v23144_v36  ;;  %v1369_v29 = vpop.permute.xlu1 %1368  ;;  %v23693_v17 = vld [vmem:[#allocation90_spill] sm:$0xff] }
 0x37c   :  { %15274 = vmatpush3.msra.mxu0 %v23689_v61  ;;  %15317 = vmatpush3.msra.mxu1 %v20641_v15  ;;  %v21156_v15 = vsub.f32 %v21025_v21, %v21107_v2  ;;  %v21159_v45 = vand.u32 4294901760, %v21097_v12  ;;  %v2916_v8 = vmul.f32 %v23692_v6, %v2788_v63  ;;  %v2786_v32 = vadd.f32 %v2658_v57, %v2106_v25  ;;  %v23694_v61 = vld [vmem:[#allocation93_spill] sm:$0xff]  ;;  %v23695_v10 = vld [vmem:[#allocation66_spill] sm:$0xff] }
 0x37d   :  { %15275 = vmatprep.subr.mxu0 %v23691_v31  ;;  %15318 = vmatprep.subr.mxu1 %v20659_v33  ;;  %v12708_v3 = vsel %vm1687_vm5, 1.0, %v23144_v36  ;;  %v12836_v21 = vsel %vm2239_vm6, 1.0, %v23144_v36  ;;  %vm1686_vm7 = vcmp.eq.f32.partialorder %v1369_v29, %v20784_v47  ;;  %vm2238_vm8 = vcmp.eq.f32.partialorder %v1369_v29, %v20799_v11 }
 0x37e   :  { %15276 = vmatpush3.msra.mxu0 %v23691_v31  ;;  %15319 = vmatpush3.msra.mxu1 %v20659_v33  ;;  %v21176_v33 = vsub.f32 %v21078_v60, %v21138_v19  ;;  %v21178_v63 = vand.u32 4294901760, %v2917_v40  ;;  %v2104_v25 = vmul.f32 %v12709_v59, %v20825_v46  ;;  %v2656_v57 = vmul.f32 %v12837_v44, %v20818_v0 }
 0x37f   :  { %15277 = vmatprep.subr.mxu0 %v23693_v17  ;;  %15320 = vmatprep.subr.mxu1 %v20670_v18  ;;  %v2915_v31 = vmul.f32 %v23695_v10, %v2787_v7  ;;  %v2785_v6 = vadd.f32 %v2657_v55, %v2105_v5  ;;  %v23696_v60 = vsub.f32 %v20925_v1, %v20954_v4  ;;  %v12835_v7 = vsel %vm2238_vm8, 1.0, %v23144_v36 }
 0x380   :  { %15278 = vmatpush3.msra.mxu0 %v23693_v17  ;;  %15321 = vmatpush3.msra.mxu1 %v20670_v18  ;;  %v10585_v27 = vsub.f32 %v21022_v41, %v21132_v42  ;;  %v2103_v59 = vmul.f32 %v12708_v3, %v20825_v46  ;;  %v2655_v44 = vmul.f32 %v12836_v21, %v20818_v0  ;;  %v12707_v18 = vsel %vm1686_vm7, 1.0, %v23144_v36  ;;  %v23697_v3 = vld [vmem:[#allocation46_spill] sm:$0xff] }
 0x381   :  { %15279 = vmatprep.subr.mxu0 %v23694_v61  ;;  %15323 = vmatmul.mubr.f32.vlgmr.msra.gmra.mxu1 %v20729_v38  ;;  %v10572_v17 = vand.u32 4294901760, %v23696_v60  ;;  %v21202_v5 = vsub.f32 %v21097_v12, %v21159_v45  ;;  %v21204_v55 = vand.u32 4294901760, %v2916_v8  ;;  %v2914_v60 = vmul.f32 %v23697_v3, %v2786_v32  ;;  %v23698_v21 = vld [vmem:[#allocation94_spill] sm:$0xff] }
 0x382   :  { %15360 = vmatprep.subr.mxu1 %v10565_v16  ;;  %15280 = vmatpush3.msra.mxu0 %v23694_v61  ;;  %v21210_v47 = vand.u32 4294901760, %v21156_v15  ;;  %v21213_v11 = vsub.f32 %v2917_v40, %v21178_v63  ;;  %v2784_v29 = vadd.f32 %v2656_v57, %v2104_v25  ;;  %v10579_v12 = vand.u32 4294901760, %v10578_v23  ;;  %v23700_v25 = vld [vmem:[#allocation23_spill] sm:$0xff] }
 0x383   :  { %15361 = vmatpush3.msra.mxu1 %v10565_v16  ;;  %15392 = vmatprep.mubr.f32.mxu1 %v20865_v39  ;;  %v10592_v16 = vsub.f32 %v21011_v35, %v21135_v50  ;;  %v21218_v61 = vand.u32 4294901760, %v2915_v31  ;;  %v2102_v32 = vmul.f32 %v12707_v18, %v20825_v46  ;;  %v2654_v3 = vmul.f32 %v12835_v7, %v20818_v0 }
 0x384   :  { %15281 = vmatprep.subr.mxu0 %v23698_v21  ;;  %15362 = vmatprep.subr.mxu1 %v10572_v17  ;;  %v21224_v40 = vand.u32 4294901760, %v21176_v33  ;;  %v2913_v57 = vmul.f32 %v23700_v25, %v2785_v6  ;;  %v2783_v10 = vadd.f32 %v2655_v44, %v2103_v59  ;;  %v10586_v23 = vand.u32 4294901760, %v10585_v27  ;;  %v23702_v6 = vld [vmem:[#allocation48_spill] sm:$0xff] }
 0x385   :  { %15282 = vmatpush3.msra.mxu0 %v23698_v21  ;;  %15363 = vmatpush3.msra.mxu1 %v10572_v17  ;;  %v21229_v21 = vsub.f32 %v2916_v8, %v21204_v55  ;;  %v21231_v24 = vand.u32 4294901760, %v2914_v60  ;;  %v10599_v0 = vsub.f32 %v21156_v15, %v21210_v47  ;;  %v21237_v46 = vand.u32 4294901760, %v21202_v5 }
 0x386   :  { %15283 = vmatprep.subr.mxu0 %v20705_v54  ;;  %23699 = vst [vmem:[#allocation6_spill] sm:$0xff] %v21224_v40  ;;  %15364 = vmatprep.subr.mxu1 %v10579_v12  ;;  %v2912_v17 = vmul.f32 %v23702_v6, %v2784_v29  ;;  %v10544_v27 = vand.u32 4294901760, %v20946_v9  ;;  %v21243_v8 = vsub.f32 %v2915_v31, %v21218_v61  ;;  %v21249_v18 = vand.u32 4294901760, %v21213_v11  ;;  %v23704_v29 = vld [vmem:[#allocation52_spill] sm:$0xff] }
 0x387   :  { %15284 = vmatpush3.msra.mxu0 %v20705_v54  ;;  %15365 = vmatpush3.msra.mxu1 %v10579_v12  ;;  %23701 = vst [vmem:[#allocation69_spill] sm:$0xff] %v21237_v46  ;;  %v10593_v54 = vand.u32 4294901760, %v10592_v16  ;;  %v2782_v59 = vadd.f32 %v2654_v3, %v2102_v32  ;;  %v10606_v44 = vsub.f32 %v21176_v33, %v21224_v40  ;;  %v21251_v7 = vand.u32 4294901760, %v2913_v57 }
 0x388   :  { %15285 = vmatprep.subr.mxu0 %v20711_v20  ;;  %15366 = vmatprep.subr.mxu1 %v10586_v23  ;;  %23703 = vst [vmem:[#allocation20_spill] sm:$0xff] %v21249_v18  ;;  %v21256_v9 = vsub.f32 %v2914_v60, %v21231_v24  ;;  %v10613_v31 = vsub.f32 %v21202_v5, %v21237_v46  ;;  %v21262_v3 = vand.u32 4294901760, %v21229_v21  ;;  %v21264_v12 = vand.u32 4294901760, %v2912_v17 }
 0x389   :  { %15286 = vmatpush3.msra.mxu0 %v20711_v20  ;;  %15367 = vmatpush3.msra.mxu1 %v10586_v23  ;;  %v2911_v20 = vmul.f32 %v23704_v29, %v2783_v10  ;;  %v23706_v10 = vld [vmem:[#allocation4_spill] sm:$0xff]  ;;  %v10607_v60 = vand.u32 4294901760, %v10606_v44  ;;  %v10620_v32 = vsub.f32 %v21213_v11, %v21249_v18  ;;  %v21272_v23 = vand.u32 4294901760, %v21243_v8 }
 0x38a   :  { %15288 = vmatmul.mubr.f32.vlgmr.msra.gmra.mxu0 %v20729_v38  ;;  %15325 = vmatprep.subr.mxu0 %v20899_v52  ;;  %v10600_v38 = vand.u32 4294901760, %v10599_v0  ;;  %23705 = vst [vmem:[#allocation68_spill] sm:$0xff] %v21262_v3  ;;  %v2910_v16 = vmul.f32 %v23706_v10, %v2782_v59  ;;  %v21275_v0 = vsub.f32 %v2913_v57, %v21251_v7  ;;  %v21284_v44 = vand.u32 4294901760, %v21256_v9 }
 0x38b   :  { %15368 = vmatprep.subr.mxu1 %v10593_v54  ;;  %15326 = vmatpush3.msra.mxu0 %v20899_v52  ;;  %23707 = vst [vmem:[#allocation3_spill] sm:$0xff] %v21272_v23  ;;  %v10627_v59 = vsub.f32 %v21229_v21, %v21262_v3  ;;  %v21287_v10 = vsub.f32 %v2912_v17, %v21264_v12  ;;  %v23709_v17 = vld [vmem:[#allocation21_spill] sm:$0xff] }
 0x38c   :  { %15357 = vmatprep.mubr.f32.mxu0 %v10544_v27  ;;  %15369 = vmatpush3.msra.mxu1 %v10593_v54  ;;  %v21277_v27 = vand.u32 4294901760, %v2911_v20  ;;  %v10614_v54 = vand.u32 4294901760, %v10613_v31  ;;  %23708 = vst [vmem:[#allocation70_spill] sm:$0xff] %v21284_v44  ;;  %v21290_v57 = vand.u32 4294901760, %v2910_v16  ;;  %v10634_v31 = vsub.f32 %v21243_v8, %v21272_v23 }
 0x38d   :  { %15327 = vmatprep.subr.mxu0 %v20905_v43  ;;  %15370 = vmatprep.subr.mxu1 %v10600_v38  ;;  %v21302_v6 = vand.u32 4294901760, %v21275_v0  ;;  %v10628_v25 = vand.u32 4294901760, %v10627_v59  ;;  %v23712_v59 = vld [vmem:[#allocation15_spill] sm:$0xff] }
 0x38e   :  { %15328 = vmatpush3.msra.mxu0 %v20905_v43  ;;  %15371 = vmatpush3.msra.mxu1 %v10600_v38  ;;  %v10621_v38 = vand.u32 4294901760, %v10620_v32  ;;  %v21296_v29 = vsub.f32 %v2911_v20, %v21277_v27  ;;  %v10641_v32 = vsub.f32 %v21256_v9, %v21284_v44  ;;  %v21309_v20 = vand.u32 4294901760, %v21287_v10  ;;  %v23713_v44 = vld [vmem:[#allocation24_spill] sm:$0xff] }
 0x38f   :  { %15329 = vmatprep.subr.mxu0 %v20960_v34  ;;  %15372 = vmatprep.subr.mxu1 %v10607_v60  ;;  %23710 = vst [vmem:[#allocation71_spill] sm:$0xff] %v21302_v6  ;;  %v761_v3 = vmul.f32 %v23713_v44, %v23667_v28 }
 0x390   :  { %15330 = vmatpush3.msra.mxu0 %v20960_v34  ;;  %15373 = vmatpush3.msra.mxu1 %v10607_v60  ;;  %v763_v60 = vmul.f32 %v23709_v17, %v23667_v28  ;;  %23711 = vst [vmem:[#allocation72_spill] sm:$0xff] %v21309_v20  ;;  %v10635_v17 = vand.u32 4294901760, %v10634_v31  ;;  %v21322_v18 = vand.u32 4294901760, %v21296_v29 }
 0x391   :  { %15331 = vmatprep.subr.mxu0 %v20994_v53  ;;  %15374 = vmatprep.subr.mxu1 %v10614_v54 }
 0x392   :  { %15332 = vmatpush3.msra.mxu0 %v20994_v53  ;;  %15375 = vmatpush3.msra.mxu1 %v10614_v54  ;;  %v21312_v54 = vsub.f32 %v2910_v16, %v21290_v57  ;;  %v891_v23 = vadd.f32 %v763_v60, %v23712_v59  ;;  %23714 = vst [vmem:[#allocation75_spill] sm:$0xff] %v21322_v18  ;;  %v10642_v16 = vand.u32 4294901760, %v10641_v32  ;;  %v23716_v60 = vld [vmem:[#allocation18_spill] sm:$0xff] }
 0x393   :  { %15333 = vmatprep.subr.mxu0 %v20971_v14  ;;  %15376 = vmatprep.subr.mxu1 %v10621_v38  ;;  %v889_v59 = vadd.f32 %v761_v3, %v23716_v60  ;;  %v10662_v32 = vsub.f32 %v21296_v29, %v21322_v18  ;;  %v23722_v18 = vld [vmem:[#allocation28_spill] sm:$0xff] }
 0x394   :  { %15334 = vmatpush3.msra.mxu0 %v20971_v14  ;;  %15377 = vmatpush3.msra.mxu1 %v10621_v38  ;;  %v10648_v38 = vsub.f32 %v21275_v0, %v21302_v6  ;;  %v21330_v31 = vand.u32 4294901760, %v21312_v54  ;;  %v759_v40 = vmul.f32 %v23722_v18, %v23667_v28 }
 0x395   :  { %15335 = vmatprep.subr.mxu0 %v21107_v2  ;;  %15378 = vmatprep.subr.mxu1 %v10628_v25  ;;  %v10663_v60 = vand.u32 4294901760, %v10662_v32 }
 0x396   :  { %15336 = vmatpush3.msra.mxu0 %v21107_v2  ;;  %15379 = vmatpush3.msra.mxu1 %v10628_v25  ;;  %v10655_v25 = vsub.f32 %v21287_v10, %v21309_v20  ;;  %23715 = vst [vmem:[#allocation30_spill] sm:$0xff] %v21330_v31  ;;  %v10649_v44 = vand.u32 4294901760, %v10648_v38  ;;  %v10669_v3 = vsub.f32 %v21312_v54, %v21330_v31  ;;  %v23719_v38 = vld [vmem:[#allocation73_spill] sm:$0xff] }
 0x397   :  { %15337 = vmatprep.subr.mxu0 %v21138_v19  ;;  %15380 = vmatprep.subr.mxu1 %v10635_v17 }
 0x398   :  { %15338 = vmatpush3.msra.mxu0 %v21138_v19  ;;  %15381 = vmatpush3.msra.mxu1 %v10635_v17  ;;  %v23717_v17 = vld [vmem:[#allocation49_spill] sm:$0xff]  ;;  %v10656_v6 = vand.u32 4294901760, %v10655_v25  ;;  %v10670_v31 = vand.u32 4294901760, %v10669_v3  ;;  %v944_v3 = vpop.permute.xlu0 %943 }
 0x399   :  { %16155 = vset.pattern.permute.xlu1 %v23566_v62  ;;  %15339 = vmatprep.subr.mxu0 %v21159_v45  ;;  %v762_v20 = vmul.f32 %v23717_v17, %v23667_v28  ;;  %v23720_v17 = vld [vmem:[#allocation43_spill] sm:$0xff] }
 0x39a   :  { %15382 = vmatprep.subr.mxu1 %v10642_v16  ;;  %1593 = vperm.xlu1 %16155, %v891_v23   ;;  %v23718_v23 = vld [vmem:[#allocation50_spill] sm:$0xff] }
 0x39b   :  { %15340 = vmatpush3.msra.mxu0 %v21159_v45  ;;  %15383 = vmatpush3.msra.mxu1 %v10642_v16  ;;  %v760_v46 = vmul.f32 %v23718_v23, %v23667_v28  ;;  %v21346_v16 = vand.u32 4294901760, %v23719_v38  ;;  %v890_v25 = vadd.f32 %v762_v20, %v23720_v17 }
 0x39c   :  { %15341 = vmatprep.subr.mxu0 %v21178_v63  ;;  %15384 = vmatprep.subr.mxu1 %v10649_v44 }
 0x39d   :  { %15342 = vmatpush3.msra.mxu0 %v21178_v63  ;;  %15385 = vmatpush3.msra.mxu1 %v10649_v44  ;;  %v23721_v44 = vld [vmem:[#allocation45_spill] sm:$0xff] }
 0x39e   :  { %15343 = vmatprep.subr.mxu0 %v21204_v55  ;;  %15386 = vmatprep.subr.mxu1 %v10656_v6  ;;  %v888_v23 = vadd.f32 %v760_v46, %v23721_v44  ;;  %v23724_v46 = vld [vmem:[#allocation22_spill] sm:$0xff] }
 0x39f   :  { %1583 = vperm.xlu1 %16155, %v889_v59   ;;  %15344 = vmatpush3.msra.mxu0 %v21204_v55  ;;  %v21357_v59 = vsub.f32 %v23719_v38, %v21346_v16  ;;  %v887_v18 = vadd.f32 %v759_v40, %v23724_v46  ;;  %v23728_v40 = vand.u32 4294901760, %v20892_v13  ;;  %v23729_v44 = vld [vmem:[#allocation2_spill] sm:$0xff]  ;;  %v23730_v46 = vld [vmem:[#allocation25_spill] sm:$0xff] }
 0x3a0   :  { %15387 = vmatpush3.msra.mxu1 %v10656_v6  ;;  %15345 = vmatprep.subr.mxu0 %v21218_v61  ;;  %v23723_v6 = vld [vmem:[#allocation53_spill] sm:$0xff] }
 0x3a1   :  { %15388 = vmatprep.subr.mxu1 %v10663_v60  ;;  %15346 = vmatpush3.msra.mxu0 %v21218_v61  ;;  %v758_v20 = vmul.f32 %v23723_v6, %v23667_v28  ;;  %v23057_v32 = vand.u32 4294901760, %v21357_v59  ;;  %v1524_v6 = vpop.permute.xlu1 %1523 }
 0x3a2   :  { %15389 = vmatpush3.msra.mxu1 %v10663_v60  ;;  %16156 = vset.pattern.permute.xlu0 %v23566_v62  ;;  %v23725_v62 = vld [vmem:[#allocation47_spill] sm:$0xff] }
 0x3a3   :  { %15347 = vmatprep.subr.mxu0 %v21231_v24  ;;  %15390 = vmatprep.subr.mxu1 %v10670_v31  ;;  %v886_v38 = vadd.f32 %v758_v20, %v23725_v62  ;;  %v23726_v60 = vld [vmem:[#allocation31_spill] sm:$0xff]  ;;  %v10553_v20 = vsub.f32 %v21357_v59, %v23057_v32 }
 0x3a4   :  { %1588 = vperm.xlu0 %16156, %v890_v25   ;;  %1578 = vperm.xlu1 %16155, %v888_v23   ;;  %v757_v17 = vmul.f32 %v23726_v60, %v23667_v28  ;;  %v949_v23 = vrot.slane %v944_v3, %v23729_v44  ;;  %v23731_v60 = vld [vmem:[#allocation51_spill] sm:$0xff] }
 0x3a5   :  { %15348 = vmatpush3.msra.mxu0 %v21231_v24  ;;  %15391 = vmatpush3.msra.mxu1 %v10670_v31  ;;  %v23727_v31 = vld [vmem:[#allocation56_spill] sm:$0xff] }
 0x3a6   :  { %15349 = vmatprep.subr.mxu0 %v21251_v7  ;;  %15393 = vmatmul.mubr.f32.vlgmr.msra.gmra.mxu1 %v21346_v16  ;;  %v756_v25 = vmul.f32 %v23727_v31, %v23667_v28  ;;  %v885_v62 = vadd.f32 %v757_v17, %v23730_v46  ;;  %v1519_v46 = vpop.permute.xlu1 %1518 }
 0x3a7   :  { %15430 = vmatprep.subr.mxu1 %v20899_v52  ;;  %15350 = vmatpush3.msra.mxu0 %v21251_v7 }
 0x3a8   :  { %15431 = vmatpush3.msra.mxu1 %v20899_v52  ;;  %15462 = vmatprep.mubr.f32.mxu1 %v23728_v40  ;;  %v884_v31 = vadd.f32 %v756_v25, %v23731_v60  ;;  %v23733_v40 = vld [vmem:[#allocation62_spill] sm:$0xff]  ;;  %v10554_v25 = vand.u32 4294901760, %v10553_v20 }
 0x3a9   :  { %15351 = vmatprep.subr.mxu0 %v21264_v12  ;;  %15432 = vmatprep.subr.mxu1 %v20905_v43  ;;  %v21394_v32 = vadd.f32 %v949_v23, %v23733_v40  ;;  %v23735_v23 = vld [vmem:[#allocation29_spill] sm:$0xff]  ;;  %v23737_v20 = vld [vmem:[#allocation54_spill] sm:$0xff] }
 0x3aa   :  { %1573 = vperm.xlu0 %16156, %v887_v18   ;;  %1568 = vperm.xlu1 %16155, %v886_v38   ;;  %v23732_v18 = vld [vmem:[#allocation34_spill] sm:$0xff]  ;;  %v23734_v38 = vld [vmem:[#allocation57_spill] sm:$0xff] }
 0x3ab   :  { %15352 = vmatpush3.msra.mxu0 %v21264_v12  ;;  %15433 = vmatpush3.msra.mxu1 %v20905_v43  ;;  %v755_v3 = vmul.f32 %v23732_v18, %v23667_v28  ;;  %v754_v17 = vmul.f32 %v23734_v38, %v23667_v28  ;;  %v23736_v18 = vld [vmem:[#allocation36_spill] sm:$0xff]  ;;  %v21407_v44 = vadd.f32 1.0, %v21394_v32  ;;  %vm1717_vm9 = vcmp.eq.f32.partialorder %v1524_v6, %v21394_v32 }
 0x3ac   :  { %15353 = vmatprep.subr.mxu0 %v21277_v27  ;;  %15434 = vmatprep.subr.mxu1 %v20960_v34  ;;  %v753_v40 = vmul.f32 %v23736_v18, %v23667_v28  ;;  %vm1716_vm4 = vcmp.eq.f32.partialorder %v1519_v46, %v21394_v32 }
 0x3ad   :  { %15354 = vmatpush3.msra.mxu0 %v21277_v27  ;;  %15435 = vmatpush3.msra.mxu1 %v20960_v34  ;;  %v883_v60 = vadd.f32 %v755_v3, %v23735_v23  ;;  %v23739_v3 = vld [vmem:[#allocation32_spill] sm:$0xff]  ;;  %vm2269_vm10 = vcmp.eq.f32.partialorder %v1524_v6, %v21407_v44  ;;  %vm2268_vm11 = vcmp.eq.f32.partialorder %v1519_v46, %v21407_v44  ;;  %v23744_v6 = vld [vmem:[#allocation58_spill] sm:$0xff] }
 0x3ae   :  { %15355 = vmatprep.subr.mxu0 %v21290_v57  ;;  %15436 = vmatprep.subr.mxu1 %v20994_v53 }
 0x3af   :  { %1563 = vperm.xlu0 %16156, %v885_v62   ;;  %1558 = vperm.xlu1 %16155, %v884_v31   ;;  %v882_v62 = vadd.f32 %v754_v17, %v23737_v20  ;;  %v23738_v31 = vld [vmem:[#allocation59_spill] sm:$0xff]  ;;  %v21437_v20 = vpop.permute.xlu0 %2015 }
 0x3b0   :  { %15356 = vmatpush3.msra.mxu0 %v21290_v57  ;;  %15437 = vmatpush3.msra.mxu1 %v20994_v53  ;;  %v752_v38 = vmul.f32 %v23738_v31, %v23667_v28  ;;  %v12737_v31 = vsel %vm1716_vm4, 1.0, %v23144_v36 }
 0x3b1   :  { %15358 = vmatmul.mubr.f32.vlgmr.msra.gmra.mxu0 %v10554_v25  ;;  %15395 = vmatprep.subr.mxu0 %v20918_v37  ;;  %v881_v25 = vadd.f32 %v753_v40, %v23739_v3  ;;  %v23741_v40 = vld [vmem:[#allocation37_spill] sm:$0xff] }
 0x3b2   :  { %15438 = vmatprep.subr.mxu1 %v20971_v14  ;;  %15396 = vmatpush3.msra.mxu0 %v20918_v37  ;;  %v21423_v37 = vpop.permute.xlu1 %2567  ;;  %v751_v23 = vmul.f32 %v23741_v40, %v23667_v28 }
 0x3b3   :  { %15427 = vmatprep.mubr.f32.mxu0 %v20892_v13  ;;  %15439 = vmatpush3.msra.mxu1 %v20971_v14  ;;  %v23740_v13 = vld [vmem:[#allocation55_spill] sm:$0xff] }
 0x3b4   :  { %15397 = vmatprep.subr.mxu0 %v20925_v1  ;;  %15440 = vmatprep.subr.mxu1 %v21107_v2  ;;  %v880_v17 = vadd.f32 %v752_v38, %v23740_v13  ;;  %v23743_v38 = vld [vmem:[#allocation35_spill] sm:$0xff] }
 0x3b5   :  { %1553 = vperm.xlu0 %16156, %v883_v60   ;;  %1548 = vperm.xlu1 %16155, %v882_v62   ;;  %v23742_v60 = vld [vmem:[#allocation60_spill] sm:$0xff]  ;;  %v12866_v62 = vsel %vm2269_vm10, 1.0, %v23144_v36  ;;  %v879_v3 = vadd.f32 %v751_v23, %v23743_v38  ;;  %v14939_v38 = vpop.f32.mrf.mxu0 }
 0x3b6   :  { %15398 = vmatpush3.msra.mxu0 %v20925_v1  ;;  %15441 = vmatpush3.msra.mxu1 %v21107_v2  ;;  %v750_v18 = vmul.f32 %v23742_v60, %v23667_v28  ;;  %v12738_v1 = vsel %vm1717_vm9, 1.0, %v23144_v36  ;;  %v1514_v28 = vpop.permute.xlu1 %1513 }
 0x3b7   :  { %15399 = vmatprep.subr.mxu0 %v20992_v26  ;;  %15442 = vmatprep.subr.mxu1 %v21138_v19  ;;  %v2133_v46 = vmul.f32 %v12738_v1, %v21437_v20  ;;  %vm1715_vm12 = vcmp.eq.f32.partialorder %v1514_v28, %v21394_v32  ;;  %vm2267_vm13 = vcmp.eq.f32.partialorder %v1514_v28, %v21407_v44 }
 0x3b8   :  { %15400 = vmatpush3.msra.mxu0 %v20992_v26  ;;  %15443 = vmatpush3.msra.mxu1 %v21138_v19  ;;  %v12865_v26 = vsel %vm2268_vm11, 1.0, %v23144_v36  ;;  %v878_v13 = vadd.f32 %v750_v18, %v23744_v6  ;;  %v23746_v18 = vld [vmem:[#allocation7_spill] sm:$0xff] }
 0x3b9   :  { %15401 = vmatprep.subr.mxu0 %v21022_v41  ;;  %15444 = vmatprep.subr.mxu1 %v21159_v45 }
 0x3ba   :  { %1543 = vperm.xlu0 %16156, %v881_v25   ;;  %1538 = vperm.xlu1 %16155, %v880_v17   ;;  %v2685_v25 = vmul.f32 %v12866_v62, %v21423_v37  ;;  %v2132_v17 = vmul.f32 %v12737_v31, %v21437_v20  ;;  %v1504_v40 = vpop.permute.xlu1 %1503  ;;  %v12736_v62 = vsel %vm1715_vm12, 1.0, %v23144_v36  ;;  %v12864_v31 = vsel %vm2267_vm13, 1.0, %v23144_v36 }
 0x3bb   :  { %15402 = vmatpush3.msra.mxu0 %v21022_v41  ;;  %15445 = vmatpush3.msra.mxu1 %v21159_v45  ;;  %v2684_v41 = vmul.f32 %v12865_v26, %v21423_v37  ;;  %vm1713_vm14 = vcmp.eq.f32.partialorder %v1504_v40, %v21394_v32  ;;  %vm2265_vm15 = vcmp.eq.f32.partialorder %v1504_v40, %v21407_v44 }
 0x3bc   :  { %15403 = vmatprep.subr.mxu0 %v21011_v35  ;;  %15446 = vmatprep.subr.mxu1 %v21178_v63  ;;  %v12862_v28 = vsel %vm2265_vm15, 1.0, %v23144_v36 }
 0x3bd   :  { %15404 = vmatpush3.msra.mxu0 %v21011_v35  ;;  %15447 = vmatpush3.msra.mxu1 %v21178_v63  ;;  %v2813_v35 = vadd.f32 %v2685_v25, %v2133_v46  ;;  %v2812_v23 = vadd.f32 %v2684_v41, %v2132_v17 }
 0x3be   :  { %15405 = vmatprep.subr.mxu0 %v21156_v15  ;;  %15448 = vmatprep.subr.mxu1 %v21204_v55  ;;  %v1499_v26 = vpop.permute.xlu1 %1498 }
 0x3bf   :  { %1533 = vperm.xlu0 %16156, %v879_v3   ;;  %1528 = vperm.xlu1 %16155, %v878_v13   ;;  %v2940_v1 = vmul.f32 %v23746_v18, %v2812_v23  ;;  %vm1712_vm2 = vcmp.eq.f32.partialorder %v1499_v26, %v21394_v32  ;;  %vm2264_vm3 = vcmp.eq.f32.partialorder %v1499_v26, %v21407_v44  ;;  %v9178_v23 = vpop.f32.mrf.mxu0 }
 0x3c0   :  { %15406 = vmatpush3.msra.mxu0 %v21156_v15  ;;  %15449 = vmatpush3.msra.mxu1 %v21204_v55  ;;  %v1509_v15 = vpop.permute.xlu0 %1508  ;;  %v2683_v3 = vmul.f32 %v12864_v31, %v21423_v37  ;;  %v12733_v25 = vsel %vm1712_vm2, 1.0, %v23144_v36  ;;  %v12861_v17 = vsel %vm2264_vm3, 1.0, %v23144_v36 }
 0x3c1   :  { %15407 = vmatprep.subr.mxu0 %v21176_v33  ;;  %15450 = vmatprep.subr.mxu1 %v21218_v61  ;;  %vm1714_vm0 = vcmp.eq.f32.partialorder %v1509_v15, %v21394_v32  ;;  %vm2266_vm1 = vcmp.eq.f32.partialorder %v1509_v15, %v21407_v44  ;;  %v21518_v40 = vand.u32 4294901760, %v2940_v1  ;;  %v2680_v26 = vmul.f32 %v12861_v17, %v21423_v37 }
 0x3c2   :  { %15408 = vmatpush3.msra.mxu0 %v21176_v33  ;;  %15451 = vmatpush3.msra.mxu1 %v21218_v61  ;;  %v23745_v33 = vld [vmem:[#allocation65_spill] sm:$0xff]  ;;  %v12735_v6 = vsel %vm1714_vm0, 1.0, %v23144_v36  ;;  %v12863_v13 = vsel %vm2266_vm1, 1.0, %v23144_v36 }
 0x3c3   :  { %15409 = vmatprep.subr.mxu0 %v21202_v5  ;;  %15452 = vmatprep.subr.mxu1 %v21231_v24  ;;  %v2941_v60 = vmul.f32 %v23745_v33, %v2813_v35  ;;  %v14974_v35 = vpop.f32.mrf.mxu1  ;;  %v2130_v15 = vmul.f32 %v12735_v6, %v21437_v20  ;;  %v1489_v6 = vpop.permute.xlu1 %1488 }
 0x3c4   :  { %15410 = vmatpush3.msra.mxu0 %v21202_v5  ;;  %15453 = vmatpush3.msra.mxu1 %v21231_v24  ;;  %v12734_v5 = vsel %vm1713_vm14, 1.0, %v23144_v36  ;;  %vm1710_vm7 = vcmp.eq.f32.partialorder %v1489_v6, %v21394_v32  ;;  %vm2262_vm8 = vcmp.eq.f32.partialorder %v1489_v6, %v21407_v44 }
 0x3c5   :  { %15411 = vmatprep.subr.mxu0 %v21213_v11  ;;  %15454 = vmatprep.subr.mxu1 %v21251_v7  ;;  %v2129_v46 = vmul.f32 %v12734_v5, %v21437_v20  ;;  %v21516_v41 = vand.u32 4294901760, %v2941_v60  ;;  %v1494_v5 = vpop.permute.xlu0 %1493 }
 0x3c6   :  { %15412 = vmatpush3.msra.mxu0 %v21213_v11  ;;  %15455 = vmatpush3.msra.mxu1 %v21251_v7  ;;  %v2131_v11 = vmul.f32 %v12736_v62, %v21437_v20  ;;  %v2682_v62 = vmul.f32 %v12863_v13, %v21423_v37  ;;  %vm1711_vm5 = vcmp.eq.f32.partialorder %v1494_v5, %v21394_v32  ;;  %v23747_v13 = vand.u32 4294901760, %v21357_v59 }
 0x3c7   :  { %15413 = vmatprep.subr.mxu0 %v21229_v21  ;;  %15456 = vmatprep.subr.mxu1 %v21264_v12  ;;  %vm2263_vm6 = vcmp.eq.f32.partialorder %v1494_v5, %v21407_v44 }
 0x3c8   :  { %15414 = vmatpush3.msra.mxu0 %v21229_v21  ;;  %15457 = vmatpush3.msra.mxu1 %v21264_v12  ;;  %v2681_v21 = vmul.f32 %v12862_v28, %v21423_v37  ;;  %v2811_v31 = vadd.f32 %v2683_v3, %v2131_v11  ;;  %v21537_v11 = vsub.f32 %v2941_v60, %v21516_v41  ;;  %v12860_v60 = vsel %vm2263_vm6, 1.0, %v23144_v36 }
 0x3c9   :  { %15415 = vmatprep.subr.mxu0 %v21243_v8  ;;  %15458 = vmatprep.subr.mxu1 %v21277_v27  ;;  %v21540_v3 = vsub.f32 %v2940_v1, %v21518_v40  ;;  %v23748_v1 = vld [vmem:[#allocation5_spill] sm:$0xff] }
 0x3ca   :  { %15416 = vmatpush3.msra.mxu0 %v21243_v8  ;;  %15459 = vmatpush3.msra.mxu1 %v21277_v27  ;;  %v2128_v8 = vmul.f32 %v12733_v25, %v21437_v20  ;;  %v2809_v28 = vadd.f32 %v2681_v21, %v2129_v46  ;;  %v9339_v46 = vpop.f32.mrf.mxu1  ;;  %v9346_v21 = vadd.f32 %v14974_v35, %v14939_v38  ;;  %v21555_v38 = vand.u32 4294901760, %v23748_v1 }
 0x3cb   :  { %15417 = vmatprep.subr.mxu0 %v21256_v9  ;;  %15460 = vmatprep.subr.mxu1 %v21290_v57  ;;  %v2810_v25 = vadd.f32 %v2682_v62, %v2130_v15  ;;  %v2939_v17 = vmul.f32 %v23679_v48, %v2811_v31  ;;  %v12731_v15 = vsel %vm1710_vm7, 1.0, %v23144_v36  ;;  %v21569_v5 = vand.u32 4294901760, %v21537_v11 }
 0x3cc   :  { %15418 = vmatpush3.msra.mxu0 %v21256_v9  ;;  %15461 = vmatpush3.msra.mxu1 %v21290_v57  ;;  %v15009_v9 = vpop.f32.mrf.mxu0  ;;  %v2937_v35 = vmul.f32 %v23603_v30, %v2809_v28  ;;  %v15044_v62 = vpop.f32.mrf.mxu1 }
 0x3cd   :  { %15419 = vmatprep.subr.mxu0 %v21275_v0  ;;  %15463 = vmatmul.mubr.f32.vlgmr.msra.gmra.mxu1 %v23747_v13  ;;  %v2938_v28 = vmul.f32 %v23604_v56, %v2810_v25  ;;  %v2679_v13 = vmul.f32 %v12860_v60, %v21423_v37  ;;  %v21579_v6 = vand.u32 4294901760, %v2939_v17  ;;  %v1479_v60 = vpop.permute.xlu1 %1478 }
 0x3ce   :  { %15500 = vmatprep.subr.mxu1 %v20899_v52  ;;  %15420 = vmatpush3.msra.mxu0 %v21275_v0  ;;  %v2808_v0 = vadd.f32 %v2680_v26, %v2128_v8  ;;  %v9449_v31 = vpop.f32.mrf.mxu0  ;;  %v9340_v8 = vadd.f32 %v9339_v46, %v9178_v23  ;;  %v9457_v26 = vadd.f32 %v15009_v9, %v9346_v21  ;;  %v21577_v23 = vand.u32 4294901760, %v21540_v3  ;;  %v1484_v46 = vpop.permute.xlu0 %1483 }
 0x3cf   :  { %15501 = vmatpush3.msra.mxu1 %v20899_v52  ;;  %15532 = vmatprep.mubr.f32.mxu1 %v20865_v39  ;;  %v12732_v52 = vsel %vm1711_vm5, 1.0, %v23144_v36  ;;  %v2126_v9 = vmul.f32 %v12731_v15, %v21437_v20  ;;  %v21585_v25 = vand.u32 4294901760, %v2937_v35  ;;  %vm1709_vm9 = vcmp.eq.f32.partialorder %v1484_v46, %v21394_v32 }
 0x3d0   :  { %15421 = vmatprep.subr.mxu0 %v21287_v10  ;;  %15502 = vmatprep.subr.mxu1 %v20905_v43  ;;  %23749 = vst [vmem:[#allocation14_spill] sm:$0xff] %v21577_v23  ;;  %v9450_v21 = vadd.f32 %v9449_v31, %v9340_v8  ;;  %vm2261_vm10 = vcmp.eq.f32.partialorder %v1484_v46, %v21407_v44  ;;  %v21598_v15 = vand.u32 4294901760, %v2938_v28 }
 0x3d1   :  { %15422 = vmatpush3.msra.mxu0 %v21287_v10  ;;  %15503 = vmatpush3.msra.mxu1 %v20905_v43  ;;  %v12859_v10 = vsel %vm2262_vm8, 1.0, %v23144_v36  ;;  %v2127_v43 = vmul.f32 %v12732_v52, %v21437_v20  ;;  %v9545_v52 = vpop.f32.mrf.mxu1  ;;  %vm1708_vm4 = vcmp.eq.f32.partialorder %v1479_v60, %v21394_v32  ;;  %vm2260_vm11 = vcmp.eq.f32.partialorder %v1479_v60, %v21407_v44 }
 0x3d2   :  { %15423 = vmatprep.subr.mxu0 %v21296_v29  ;;  %15504 = vmatprep.subr.mxu1 %v20960_v34 }
 0x3d3   :  { %15424 = vmatpush3.msra.mxu0 %v21296_v29  ;;  %15505 = vmatpush3.msra.mxu1 %v20960_v34  ;;  %v2936_v29 = vmul.f32 %v23605_v51, %v2808_v0  ;;  %v2678_v34 = vmul.f32 %v12859_v10, %v21423_v37  ;;  %v21594_v0 = vsub.f32 %v23748_v1, %v21555_v38  ;;  %v12730_v10 = vsel %vm1709_vm9, 1.0, %v23144_v36 }
 0x3d4   :  { %15425 = vmatprep.subr.mxu0 %v21312_v54  ;;  %15506 = vmatprep.subr.mxu1 %v20994_v53  ;;  %v2807_v31 = vadd.f32 %v2679_v13, %v2127_v43  ;;  %v11255_v1 = vsub.f32 %v21540_v3, %v21577_v23  ;;  %v21618_v43 = vsub.f32 %v2937_v35, %v21585_v25 }
 0x3d5   :  { %15426 = vmatpush3.msra.mxu0 %v21312_v54  ;;  %15507 = vmatpush3.msra.mxu1 %v20994_v53  ;;  %v9554_v54 = vadd.f32 %v15044_v62, %v9457_v26  ;;  %v15114_v53 = vpop.f32.mrf.mxu1  ;;  %v12858_v62 = vsel %vm2261_vm10, 1.0, %v23144_v36  ;;  %v21615_v26 = vsub.f32 %v2939_v17, %v21579_v6  ;;  %v21620_v13 = vand.u32 4294901760, %v2936_v29 }
 0x3d6   :  { %15428 = vmatmul.mubr.f32.vlgmr.msra.gmra.mxu0 %v21357_v59  ;;  %15465 = vmatprep.subr.mxu0 %v20941_v58  ;;  %v11248_v59 = vsub.f32 %v21537_v11, %v21569_v5  ;;  %v2806_v23 = vadd.f32 %v2678_v34, %v2126_v9  ;;  %v23060_v17 = vand.u32 4294901760, %v21594_v0  ;;  %v2125_v35 = vmul.f32 %v12730_v10, %v21437_v20 }
 0x3d7   :  { %15508 = vmatprep.subr.mxu1 %v20971_v14  ;;  %15466 = vmatpush3.msra.mxu0 %v20941_v58  ;;  %v9546_v58 = vadd.f32 %v9545_v52, %v9450_v21  ;;  %v2677_v52 = vmul.f32 %v12858_v62, %v21423_v37  ;;  %v9765_v9 = vpop.f32.mrf.mxu1  ;;  %v21639_v34 = vmul.f32 %v23684_v22, %v2807_v31 }
 0x3d8   :  { %15497 = vmatprep.mubr.f32.mxu0 %v20865_v39  ;;  %v15079_v8 = vpop.f32.mrf.mxu0  ;;  %15509 = vmatpush3.msra.mxu1 %v20971_v14  ;;  %v21646_v10 = vsub.f32 %v2936_v29, %v21620_v13 }
 0x3d9   :  { %15467 = vmatprep.subr.mxu0 %v20954_v4  ;;  %v9679_v39 = vadd.f32 %v15079_v8, %v9554_v54  ;;  %15510 = vmatprep.subr.mxu1 %v21107_v2  ;;  %v1474_v54 = vpop.permute.xlu0 %1473 }
 0x3da   :  { %15468 = vmatpush3.msra.mxu0 %v20954_v4  ;;  %v9672_v46 = vpop.f32.mrf.mxu0  ;;  %15511 = vmatpush3.msra.mxu1 %v21107_v2  ;;  %v21633_v4 = vand.u32 4294901760, %v11248_v59  ;;  %v21636_v2 = vsub.f32 %v2938_v28, %v21598_v15  ;;  %vm1707_vm12 = vcmp.eq.f32.partialorder %v1474_v54, %v21394_v32  ;;  %vm2259_vm13 = vcmp.eq.f32.partialorder %v1474_v54, %v21407_v44  ;;  %v1469_v28 = vpop.permute.xlu1 %1468  ;;  %v23750_v59 = vld [vmem:[#allocation16_spill] sm:$0xff] }
 0x3db   :  { %15469 = vmatprep.subr.mxu0 %v21066_v49  ;;  %v9772_v14 = vadd.f32 %v15114_v53, %v9679_v39  ;;  %v9673_v21 = vadd.f32 %v9672_v46, %v9546_v58  ;;  %15512 = vmatprep.subr.mxu1 %v21138_v19  ;;  %vm1706_vm14 = vcmp.eq.f32.partialorder %v1469_v28, %v21394_v32  ;;  %v12856_v60 = vsel %vm2259_vm13, 1.0, %v23144_v36 }
 0x3dc   :  { %15470 = vmatpush3.msra.mxu0 %v21066_v49  ;;  %15513 = vmatpush3.msra.mxu1 %v21138_v19  ;;  %v12729_v49 = vsel %vm1708_vm4, 1.0, %v23144_v36  ;;  %v12857_v19 = vsel %vm2260_vm11, 1.0, %v23144_v36  ;;  %v21665_v62 = vmul.f32 %v23750_v59, %v2806_v23  ;;  %v2805_v39 = vadd.f32 %v2677_v52, %v2125_v35  ;;  %v23751_v35 = vld [vmem:[#allocation6_spill] sm:$0xff] }
 0x3dd   :  { %15471 = vmatprep.subr.mxu0 %v21132_v42  ;;  %v21643_v53 = vmul.f32 255.0, %v9772_v14  ;;  %v9766_v8 = vadd.f32 %v9765_v9, %v9673_v21  ;;  %15514 = vmatprep.subr.mxu1 %v21159_v45  ;;  %vm2258_vm15 = vcmp.eq.f32.partialorder %v1469_v28, %v21407_v44  ;;  %v2124_v46 = vmul.f32 %v12729_v49, %v21437_v20  ;;  %v1464_v21 = vpop.permute.xlu0 %1463  ;;  %v23752_v28 = vld [vmem:[#allocation69_spill] sm:$0xff] }
 0x3de   :  { %15472 = vmatpush3.msra.mxu0 %v21132_v42  ;;  %15515 = vmatpush3.msra.mxu1 %v21159_v45  ;;  %v21670_v42 = vand.u32 4294901760, %v11255_v1  ;;  %v12728_v45 = vsel %vm1707_vm12, 1.0, %v23144_v36  ;;  %v12727_v1 = vsel %vm1706_vm14, 1.0, %v23144_v36  ;;  %v2675_v49 = vmul.f32 %v12856_v60, %v21423_v37 }
 0x3df   :  { %15473 = vmatprep.subr.mxu0 %v21135_v50  ;;  %v16013_v29 = vcvt.f32.s32 %v21643_v53  ;;  %v21662_v31 = vmul.f32 255.0, %v9766_v8  ;;  %15516 = vmatprep.subr.mxu1 %v21178_v63  ;;  %v16011_v14 = vand.u32 2147483647, %v21643_v53  ;;  %v16016_v9 = vand.u32 2147483648, %v21643_v53 }
 0x3e0   :  { %15474 = vmatpush3.msra.mxu0 %v21135_v50  ;;  %15517 = vmatpush3.msra.mxu1 %v21178_v63  ;;  %v2676_v50 = vmul.f32 %v12857_v19, %v21423_v37  ;;  %v12855_v63 = vsel %vm2258_vm15, 1.0, %v23144_v36  ;;  %v2123_v8 = vmul.f32 %v12728_v45, %v21437_v20  ;;  %vm1705_vm0 = vcmp.eq.f32.partialorder %v1464_v21, %v21394_v32 }
 0x3e1   :  { %15475 = vmatprep.subr.mxu0 %v21210_v47  ;;  %v16014_v23 = vcvt.s32.f32 %v16013_v29  ;;  %v16005_v58 = vcvt.f32.s32 %v21662_v31  ;;  %15518 = vmatprep.subr.mxu1 %v21204_v55  ;;  %vm2257_vm1 = vcmp.eq.f32.partialorder %v1464_v21, %v21407_v44  ;;  %v16008_v45 = vand.u32 2147483648, %v21662_v31 }
 0x3e2   :  { %15476 = vmatpush3.msra.mxu0 %v21210_v47  ;;  %15519 = vmatpush3.msra.mxu1 %v21204_v55  ;;  %v16003_v47 = vand.u32 2147483647, %v21662_v31  ;;  %v1459_v55 = vpop.permute.xlu1 %1458  ;;  %v2122_v60 = vmul.f32 %v12727_v1, %v21437_v20  ;;  %vm16012_vm3 = vcmp.lt.f32.partialorder %v16011_v14, 8388608.0  ;;  %v12854_v14 = vsel %vm2257_vm1, 1.0, %v23144_v36 }
 0x3e3   :  { %15477 = vmatprep.subr.mxu0 %v23751_v35  ;;  %v16015_v52 = vand.u32 2147483647, %v16014_v23  ;;  %v16006_v54 = vcvt.s32.f32 %v16005_v58  ;;  %15520 = vmatprep.subr.mxu1 %v21218_v61  ;;  %v2674_v23 = vmul.f32 %v12855_v63, %v21423_v37  ;;  %vm1704_vm2 = vcmp.eq.f32.partialorder %v1459_v55, %v21394_v32 }
 0x3e4   :  { %15478 = vmatpush3.msra.mxu0 %v23751_v35  ;;  %15521 = vmatpush3.msra.mxu1 %v21218_v61  ;;  %vm2256_vm5 = vcmp.eq.f32.partialorder %v1459_v55, %v21407_v44  ;;  %v23753_v61 = vld [vmem:[#allocation20_spill] sm:$0xff]  ;;  %v21714_v58 = vand.u32 4294901760, %v21615_v26  ;;  %v12726_v63 = vsel %vm1705_vm0, 1.0, %v23144_v36  ;;  %vm16004_vm6 = vcmp.lt.f32.partialorder %v16003_v47, 8388608.0  ;;  %v23756_v55 = vld [vmem:[#allocation3_spill] sm:$0xff] }
 0x3e5   :  { %15479 = vmatprep.subr.mxu0 %v23752_v28  ;;  %v16017_v19 = vor.u32 %v16016_v9, %v16015_v52  ;;  %v16007_v29 = vand.u32 2147483647, %v16006_v54  ;;  %15522 = vmatprep.subr.mxu1 %v21231_v24  ;;  %v23754_v52 = vld [vmem:[#allocation44_spill] sm:$0xff]  ;;  %v2804_v54 = vadd.f32 %v2676_v50, %v2124_v46  ;;  %v2121_v46 = vmul.f32 %v12726_v63, %v21437_v20 }
 0x3e6   :  { %15480 = vmatpush3.msra.mxu0 %v23752_v28  ;;  %15523 = vmatpush3.msra.mxu1 %v21231_v24  ;;  %v21726_v9 = vmul.f32 %v23754_v52, %v2805_v39  ;;  %v1454_v28 = vpop.permute.xlu0 %1453  ;;  %v21745_v39 = vand.u32 4294901760, %v21639_v34  ;;  %v2673_v50 = vmul.f32 %v12854_v14, %v21423_v37  ;;  %v1449_v47 = vpop.permute.xlu1 %1448  ;;  %v11262_v14 = vsub.f32 %v21615_v26, %v21714_v58 }
 0x3e7   :  { %15481 = vmatprep.subr.mxu0 %v23753_v61  ;;  %v16018_v1 = vsel %vm16012_vm3, %v16017_v19, %v21643_v53  ;;  %v16009_v35 = vor.u32 %v16008_v45, %v16007_v29  ;;  %15524 = vmatprep.subr.mxu1 %v21251_v7  ;;  %v12725_v53 = vsel %vm1704_vm2, 1.0, %v23144_v36  ;;  %v23755_v19 = vld [vmem:[#allocation68_spill] sm:$0xff]  ;;  %v12853_v29 = vsel %vm2256_vm5, 1.0, %v23144_v36 }
 0x3e8   :  { %15482 = vmatpush3.msra.mxu0 %v23753_v61  ;;  %v12550_v24 = vmul.f32 0.003921569, %v16018_v1  ;;  %15525 = vmatpush3.msra.mxu1 %v21251_v7  ;;  %vm1703_vm7 = vcmp.eq.f32.partialorder %v1454_v28, %v21394_v32  ;;  %vm2255_vm8 = vcmp.eq.f32.partialorder %v1454_v28, %v21407_v44  ;;  %v2802_v45 = vadd.f32 %v2674_v23, %v2122_v60  ;;  %v23757_v61 = vld [vmem:[#allocation70_spill] sm:$0xff] }
 0x3e9   :  { %15483 = vmatprep.subr.mxu0 %v23755_v19  ;;  %v16010_v21 = vsel %vm16004_vm6, %v16009_v35, %v21662_v31  ;;  %15526 = vmatprep.subr.mxu1 %v21264_v12  ;;  %v2803_v31 = vadd.f32 %v2675_v49, %v2123_v8  ;;  %vm1702_vm9 = vcmp.eq.f32.partialorder %v1449_v47, %v21394_v32  ;;  %v21756_v8 = vand.u32 4294901760, %v21636_v2  ;;  %v23758_v35 = vld [vmem:[#allocation33_spill] sm:$0xff]  ;;  %v23761_v32 = vld [vmem:[#allocation46_spill] sm:$0xff] }
 0x3ea   :  { %15484 = vmatpush3.msra.mxu0 %v23755_v19  ;;  %12566 = vst [vmem:[%s22686_s2 + $0x38] sm:$0xff] %v12550_v24  ;;  %v12549_v7 = vmul.f32 0.003921569, %v16010_v21  ;;  %15527 = vmatpush3.msra.mxu1 %v21264_v12  ;;  %vm2254_vm10 = vcmp.eq.f32.partialorder %v1449_v47, %v21407_v44  ;;  %v2120_v12 = vmul.f32 %v12725_v53, %v21437_v20  ;;  %v12724_v60 = vsel %vm1703_vm7, 1.0, %v23144_v36  ;;  %v23759_v19 = vld [vmem:[#allocation71_spill] sm:$0xff] }
 0x3eb   :  { %15485 = vmatprep.subr.mxu0 %v23756_v55  ;;  %15528 = vmatprep.subr.mxu1 %v21277_v27  ;;  %v2672_v49 = vmul.f32 %v12853_v29, %v21423_v37  ;;  %v12852_v23 = vsel %vm2255_vm8, 1.0, %v23144_v36  ;;  %v21772_v1 = vand.u32 4294901760, %v21665_v62  ;;  %v2932_v63 = vmul.f32 %v23758_v35, %v2804_v54  ;;  %v23760_v29 = vld [vmem:[#allocation66_spill] sm:$0xff] }
 0x3ec   :  { %15486 = vmatpush3.msra.mxu0 %v23756_v55  ;;  %12565 = vst [vmem:[%s22686_s2 + $0x30] sm:$0xff] %v12549_v7  ;;  %15529 = vmatpush3.msra.mxu1 %v21277_v27  ;;  %v21780_v24 = vand.u32 4294901760, %v21618_v43  ;;  %v21784_v27 = vsub.f32 %v21639_v34, %v21745_v39  ;;  %v2801_v53 = vadd.f32 %v2673_v50, %v2121_v46  ;;  %v12723_v28 = vsel %vm1702_vm9, 1.0, %v23144_v36 }
 0x3ed   :  { %15487 = vmatprep.subr.mxu0 %v23757_v61  ;;  %15530 = vmatprep.subr.mxu1 %v21290_v57  ;;  %v12851_v54 = vsel %vm2254_vm10, 1.0, %v23144_v36  ;;  %v21795_v21 = vand.u32 4294901760, %v21726_v9  ;;  %v2931_v7 = vmul.f32 %v23760_v29, %v2803_v31  ;;  %v2119_v34 = vmul.f32 %v12724_v60, %v21437_v20 }
 0x3ee   :  { %15488 = vmatpush3.msra.mxu0 %v23757_v61  ;;  %15531 = vmatpush3.msra.mxu1 %v21290_v57  ;;  %v2671_v46 = vmul.f32 %v12852_v23, %v21423_v37  ;;  %v2930_v44 = vmul.f32 %v23761_v32, %v2802_v45  ;;  %v2800_v50 = vadd.f32 %v2672_v49, %v2120_v12  ;;  %v21808_v31 = vand.u32 4294901760, %v21646_v10  ;;  %v23762_v12 = vld [vmem:[#allocation72_spill] sm:$0xff] }
 0x3ef   :  { %15489 = vmatprep.subr.mxu0 %v23759_v19  ;;  %15533 = vmatmul.mubr.f32.vlgmr.msra.gmra.mxu1 %v21346_v16  ;;  %v11269_v57 = vsub.f32 %v21636_v2, %v21756_v8  ;;  %v21812_v47 = vsub.f32 %v21665_v62, %v21772_v1  ;;  %v21814_v55 = vand.u32 4294901760, %v2932_v63  ;;  %v2118_v60 = vmul.f32 %v12723_v28, %v21437_v20 }
 0x3f0   :  { %15570 = vmatprep.subr.mxu1 %v21633_v4  ;;  %15490 = vmatpush3.msra.mxu0 %v23759_v19  ;;  %v2670_v45 = vmul.f32 %v12851_v54, %v21423_v37  ;;  %v11263_v23 = vand.u32 4294901760, %v11262_v14  ;;  %v11276_v62 = vsub.f32 %v21618_v43, %v21780_v24  ;;  %v11227_v20 = vsub.f32 %v21594_v0, %v23060_v17  ;;  %v23765_v19 = vld [vmem:[#allocation48_spill] sm:$0xff] }
 0x3f1   :  { %15571 = vmatpush3.msra.mxu1 %v21633_v4  ;;  %15602 = vmatprep.mubr.f32.mxu1 %v21555_v38  ;;  %v23763_v4 = vld [vmem:[#allocation23_spill] sm:$0xff]  ;;  %v21830_v37 = vsub.f32 %v21726_v9, %v21795_v21  ;;  %v21832_v61 = vand.u32 4294901760, %v2931_v7  ;;  %v2799_v28 = vadd.f32 %v2671_v46, %v2119_v34  ;;  %v21837_v14 = vand.u32 4294901760, %v21784_v27  ;;  %v23766_v34 = vld [vmem:[#allocation30_spill] sm:$0xff] }
 0x3f2   :  { %15491 = vmatprep.subr.mxu0 %v23762_v12  ;;  %v2929_v49 = vmul.f32 %v23763_v4, %v2801_v53  ;;  %15572 = vmatprep.subr.mxu1 %v21670_v42  ;;  %v23764_v53 = vld [vmem:[#allocation75_spill] sm:$0xff]  ;;  %v21839_v54 = vand.u32 4294901760, %v2930_v44  ;;  %v11270_v17 = vand.u32 4294901760, %v11269_v57  ;;  %v21844_v9 = vsub.f32 %v2932_v63, %v21814_v55 }
 0x3f3   :  { %15492 = vmatpush3.msra.mxu0 %v23762_v12  ;;  %15573 = vmatpush3.msra.mxu1 %v21670_v42  ;;  %v2928_v12 = vmul.f32 %v23765_v19, %v2800_v50  ;;  %v2798_v4 = vadd.f32 %v2670_v45, %v2118_v60  ;;  %v11283_v42 = vsub.f32 %v21646_v10, %v21808_v31  ;;  %v21850_v46 = vand.u32 4294901760, %v21812_v47  ;;  %v23767_v60 = vld [vmem:[#allocation52_spill] sm:$0xff] }
 0x3f4   :  { %15493 = vmatprep.subr.mxu0 %v23764_v53  ;;  %15574 = vmatprep.subr.mxu1 %v11263_v23  ;;  %v21852_v32 = vand.u32 4294901760, %v2929_v49  ;;  %v11277_v50 = vand.u32 4294901760, %v11276_v62  ;;  %v11228_v57 = vand.u32 4294901760, %v11227_v20  ;;  %v21856_v63 = vsub.f32 %v2931_v7, %v21832_v61  ;;  %v23769_v7 = vld [vmem:[#allocation4_spill] sm:$0xff] }
 0x3f5   :  { %15494 = vmatpush3.msra.mxu0 %v23764_v53  ;;  %15575 = vmatpush3.msra.mxu1 %v11263_v23  ;;  %v2927_v45 = vmul.f32 %v23767_v60, %v2799_v28  ;;  %v11290_v23 = vsub.f32 %v21784_v27, %v21837_v14  ;;  %v21863_v53 = vand.u32 4294901760, %v21830_v37  ;;  %v21866_v19 = vsub.f32 %v2930_v44, %v21839_v54 }
 0x3f6   :  { %15495 = vmatprep.subr.mxu0 %v23766_v34  ;;  %15576 = vmatprep.subr.mxu1 %v11270_v17  ;;  %v2926_v62 = vmul.f32 %v23769_v7, %v2798_v4  ;;  %v21876_v20 = vand.u32 4294901760, %v21844_v9  ;;  %v21879_v44 = vsub.f32 %v2929_v49, %v21852_v32 }
 0x3f7   :  { %15496 = vmatpush3.msra.mxu0 %v23766_v34  ;;  %15577 = vmatpush3.msra.mxu1 %v11270_v17  ;;  %23768 = vst [vmem:[#allocation26_spill] sm:$0xff] %v21863_v53  ;;  %v21868_v34 = vand.u32 4294901760, %v2928_v12  ;;  %v11297_v17 = vsub.f32 %v21812_v47, %v21850_v46  ;;  %v21882_v28 = vand.u32 4294901760, %v2927_v45  ;;  %v11291_v4 = vand.u32 4294901760, %v11290_v23 }
 0x3f8   :  { %15498 = vmatmul.mubr.f32.vlgmr.msra.gmra.mxu0 %v21346_v16  ;;  %15535 = vmatprep.subr.mxu0 %v21516_v41  ;;  %v11284_v16 = vand.u32 4294901760, %v11283_v42  ;;  %23770 = vst [vmem:[#allocation40_spill] sm:$0xff] %v21876_v20  ;;  %v11304_v42 = vsub.f32 %v21830_v37, %v21863_v53  ;;  %v21894_v49 = vand.u32 4294901760, %v2926_v62  ;;  %v11311_v23 = vsub.f32 %v21844_v9, %v21876_v20 }
 0x3f9   :  { %15578 = vmatprep.subr.mxu1 %v11277_v50  ;;  %15536 = vmatpush3.msra.mxu0 %v21516_v41  ;;  %v21891_v7 = vsub.f32 %v2928_v12, %v21868_v34  ;;  %v21900_v60 = vand.u32 4294901760, %v21866_v19  ;;  %v21904_v12 = vsub.f32 %v2927_v45, %v21882_v28 }
 0x3fa   :  { %15567 = vmatprep.mubr.f32.mxu0 %v11228_v57  ;;  %15579 = vmatpush3.msra.mxu1 %v11277_v50  ;;  %v21888_v57 = vand.u32 4294901760, %v21856_v63  ;;  %v11298_v50 = vand.u32 4294901760, %v11297_v17  ;;  %v21910_v17 = vand.u32 4294901760, %v21879_v44  ;;  %v11312_v45 = vand.u32 4294901760, %v11311_v23 }
 0x3fb   :  { %15537 = vmatprep.subr.mxu0 %v21518_v40  ;;  %15580 = vmatprep.subr.mxu1 %v11284_v16  ;;  %23772 = vst [vmem:[#allocation13_spill] sm:$0xff] %v21900_v60  ;;  %v11325_v20 = vsub.f32 %v21866_v19, %v21900_v60 }
 0x3fc   :  { %15538 = vmatpush3.msra.mxu0 %v21518_v40  ;;  %23771 = vst [vmem:[#allocation64_spill] sm:$0xff] %v21888_v57  ;;  %15581 = vmatpush3.msra.mxu1 %v11284_v16  ;;  %v11305_v16 = vand.u32 4294901760, %v11304_v42  ;;  %v11318_v29 = vsub.f32 %v21856_v63, %v21888_v57  ;;  %23773 = vst [vmem:[#allocation78_spill] sm:$0xff] %v21910_v17  ;;  %v21920_v42 = vand.u32 4294901760, %v21891_v7  ;;  %v21927_v57 = vand.u32 4294901760, %v21904_v12 }
 0x3fd   :  { %15539 = vmatprep.subr.mxu0 %v21579_v6  ;;  %15582 = vmatprep.subr.mxu1 %v11291_v4  ;;  %v11326_v23 = vand.u32 4294901760, %v11325_v20 }
 0x3fe   :  { %15540 = vmatpush3.msra.mxu0 %v21579_v6  ;;  %15583 = vmatpush3.msra.mxu1 %v11291_v4  ;;  %v21914_v4 = vsub.f32 %v2926_v62, %v21894_v49  ;;  %23774 = vst [vmem:[#allocation79_spill] sm:$0xff] %v21920_v42  ;;  %v11332_v62 = vsub.f32 %v21879_v44, %v21910_v17  ;;  %23775 = vst [vmem:[#allocation83_spill] sm:$0xff] %v21927_v57 }
 0x3ff   :  { %15541 = vmatprep.subr.mxu0 %v21598_v15  ;;  %15584 = vmatprep.subr.mxu1 %v11298_v50  ;;  %v11346_v53 = vsub.f32 %v21904_v12, %v21927_v57 }
 0x400   :  { %15542 = vmatpush3.msra.mxu0 %v21598_v15  ;;  %15585 = vmatpush3.msra.mxu1 %v11298_v50  ;;  %v11319_v50 = vand.u32 4294901760, %v11318_v29  ;;  %v21934_v60 = vand.u32 4294901760, %v21914_v4  ;;  %v23777_v29 = vld [vmem:[#allocation80_spill] sm:$0xff] }
 0x401   :  { %15543 = vmatprep.subr.mxu0 %v21585_v25  ;;  %15586 = vmatprep.subr.mxu1 %v11305_v16  ;;  %v21938_v17 = vand.u32 4294901760, %v23777_v29 }
 0x402   :  { %15544 = vmatpush3.msra.mxu0 %v21585_v25  ;;  %15587 = vmatpush3.msra.mxu1 %v11305_v16  ;;  %v11339_v16 = vsub.f32 %v21891_v7, %v21920_v42  ;;  %23776 = vst [vmem:[#allocation84_spill] sm:$0xff] %v21934_v60 }
 0x403   :  { %15545 = vmatprep.subr.mxu0 %v21620_v13  ;;  %15588 = vmatprep.subr.mxu1 %v11312_v45  ;;  %23778 = vst [vmem:[#allocation87_spill] sm:$0xff] %v21938_v17  ;;  %v21950_v42 = vsub.f32 %v23777_v29, %v21938_v17 }
 0x404   :  { %15546 = vmatpush3.msra.mxu0 %v21620_v13  ;;  %15589 = vmatpush3.msra.mxu1 %v11312_v45  ;;  %v11333_v45 = vand.u32 4294901760, %v11332_v62  ;;  %v11340_v20 = vand.u32 4294901760, %v11339_v16  ;;  %v11347_v62 = vand.u32 4294901760, %v11346_v53  ;;  %v952_v16 = vpop.permute.xlu0 %951  ;;  %v23779_v53 = vld [vmem:[#allocation2_spill] sm:$0xff] }
 0x405   :  { %15547 = vmatprep.subr.mxu0 %v21745_v39  ;;  %15590 = vmatprep.subr.mxu1 %v11319_v50  ;;  %v957_v29 = vrot.slane %v952_v16, %v23779_v53 }
 0x406   :  { %15548 = vmatpush3.msra.mxu0 %v21745_v39  ;;  %15591 = vmatpush3.msra.mxu1 %v11319_v50  ;;  %v11353_v50 = vsub.f32 %v21914_v4, %v21934_v60  ;;  %v1604_v60 = vpop.permute.xlu1 %1603 }
 0x407   :  { %15549 = vmatprep.subr.mxu0 %v21772_v1  ;;  %15592 = vmatprep.subr.mxu1 %v11326_v23 }
 0x408   :  { %15550 = vmatpush3.msra.mxu0 %v21772_v1  ;;  %15593 = vmatpush3.msra.mxu1 %v11326_v23  ;;  %v11354_v23 = vand.u32 4294901760, %v11353_v50  ;;  %v23780_v50 = vand.u32 4294901760, %v21594_v0 }
 0x409   :  { %15551 = vmatprep.subr.mxu0 %v21795_v21  ;;  %15594 = vmatprep.subr.mxu1 %v11333_v45 }
 0x40a   :  { %15552 = vmatpush3.msra.mxu0 %v21795_v21  ;;  %15595 = vmatpush3.msra.mxu1 %v11333_v45  ;;  %v23075_v45 = vand.u32 4294901760, %v21950_v42 }
 0x40b   :  { %15553 = vmatprep.subr.mxu0 %v21814_v55  ;;  %15596 = vmatprep.subr.mxu1 %v11340_v20 }
 0x40c   :  { %15554 = vmatpush3.msra.mxu0 %v21814_v55  ;;  %15597 = vmatpush3.msra.mxu1 %v11340_v20  ;;  %v11237_v20 = vsub.f32 %v21950_v42, %v23075_v45  ;;  %v23783_v45 = vld [vmem:[#allocation74_spill] sm:$0xff] }
 0x40d   :  { %15555 = vmatprep.subr.mxu0 %v21832_v61  ;;  %15598 = vmatprep.subr.mxu1 %v11347_v62 }
 0x40e   :  { %15556 = vmatpush3.msra.mxu0 %v21832_v61  ;;  %15599 = vmatpush3.msra.mxu1 %v11347_v62  ;;  %v1599_v62 = vpop.permute.xlu1 %1598  ;;  %v11238_v53 = vand.u32 4294901760, %v11237_v20 }
 0x40f   :  { %15557 = vmatprep.subr.mxu0 %v21839_v54  ;;  %15600 = vmatprep.subr.mxu1 %v11354_v23 }
 0x410   :  { %15558 = vmatpush3.msra.mxu0 %v21839_v54  ;;  %15601 = vmatpush3.msra.mxu1 %v11354_v23  ;;  %v23781_v23 = vld [vmem:[#allocation62_spill] sm:$0xff] }
 0x411   :  { %15559 = vmatprep.subr.mxu0 %v21852_v32  ;;  %15603 = vmatmul.mubr.f32.vlgmr.msra.gmra.mxu1 %v21938_v17  ;;  %v21973_v16 = vadd.f32 %v957_v29, %v23781_v23 }
 0x412   :  { %15640 = vmatprep.subr.mxu1 %v21516_v41  ;;  %15560 = vmatpush3.msra.mxu0 %v21852_v32 }
 0x413   :  { %15641 = vmatpush3.msra.mxu1 %v21516_v41  ;;  %15672 = vmatprep.mubr.f32.mxu1 %v23780_v50  ;;  %v21984_v29 = vadd.f32 1.0, %v21973_v16  ;;  %v21987_v50 = vpop.permute.xlu1 %2571  ;;  %vm1733_vm4 = vcmp.eq.f32.partialorder %v1604_v60, %v21973_v16  ;;  %vm1732_vm12 = vcmp.eq.f32.partialorder %v1599_v62, %v21973_v16 }
 0x414   :  { %15561 = vmatprep.subr.mxu0 %v21868_v34  ;;  %15642 = vmatprep.subr.mxu1 %v21518_v40 }
 0x415   :  { %15562 = vmatpush3.msra.mxu0 %v21868_v34  ;;  %15643 = vmatpush3.msra.mxu1 %v21518_v40  ;;  %vm2285_vm11 = vcmp.eq.f32.partialorder %v1604_v60, %v21984_v29  ;;  %vm2284_vm13 = vcmp.eq.f32.partialorder %v1599_v62, %v21984_v29 }
 0x416   :  { %15563 = vmatprep.subr.mxu0 %v21882_v28  ;;  %15644 = vmatprep.subr.mxu1 %v21579_v6  ;;  %v12882_v60 = vsel %vm2285_vm11, 1.0, %v23144_v36  ;;  %v12881_v23 = vsel %vm2284_vm13, 1.0, %v23144_v36 }
 0x417   :  { %15564 = vmatpush3.msra.mxu0 %v21882_v28  ;;  %15645 = vmatpush3.msra.mxu1 %v21579_v6  ;;  %v1594_v20 = vpop.permute.xlu1 %1593 }
 0x418   :  { %15565 = vmatprep.subr.mxu0 %v21894_v49  ;;  %15646 = vmatprep.subr.mxu1 %v21598_v15  ;;  %vm1731_vm14 = vcmp.eq.f32.partialorder %v1594_v20, %v21973_v16  ;;  %vm2283_vm15 = vcmp.eq.f32.partialorder %v1594_v20, %v21984_v29 }
 0x419   :  { %15566 = vmatpush3.msra.mxu0 %v21894_v49  ;;  %15647 = vmatpush3.msra.mxu1 %v21598_v15  ;;  %v12880_v57 = vsel %vm2283_vm15, 1.0, %v23144_v36 }
 0x41a   :  { %15568 = vmatmul.mubr.f32.vlgmr.msra.gmra.mxu0 %v11238_v53  ;;  %15605 = vmatprep.subr.mxu0 %v21537_v11  ;;  %v23782_v53 = vld [vmem:[#allocation8_spill] sm:$0xff] }
 0x41b   :  { %15648 = vmatprep.subr.mxu1 %v21585_v25  ;;  %15606 = vmatpush3.msra.mxu0 %v21537_v11  ;;  %v12754_v11 = vsel %vm1733_vm4, 1.0, %v23144_v36  ;;  %v1584_v62 = vpop.permute.xlu1 %1583 }
 0x41c   :  { %15637 = vmatprep.mubr.f32.mxu0 %v21594_v0  ;;  %15649 = vmatpush3.msra.mxu1 %v21585_v25  ;;  %v22003_v0 = vpop.permute.xlu0 %2019  ;;  %vm1729_vm0 = vcmp.eq.f32.partialorder %v1584_v62, %v21973_v16  ;;  %vm2281_vm1 = vcmp.eq.f32.partialorder %v1584_v62, %v21984_v29 }
 0x41d   :  { %15607 = vmatprep.subr.mxu0 %v21540_v3  ;;  %15650 = vmatprep.subr.mxu1 %v21620_v13  ;;  %v12878_v62 = vsel %vm2281_vm1, 1.0, %v23144_v36 }
 0x41e   :  { %15608 = vmatpush3.msra.mxu0 %v21540_v3  ;;  %15651 = vmatpush3.msra.mxu1 %v21620_v13  ;;  %v12753_v3 = vsel %vm1732_vm12, 1.0, %v23144_v36 }
 0x41f   :  { %15609 = vmatprep.subr.mxu0 %v21615_v26  ;;  %15652 = vmatprep.subr.mxu1 %v21745_v39  ;;  %v2148_v20 = vmul.f32 %v12753_v3, %v22003_v0 }
 0x420   :  { %15610 = vmatpush3.msra.mxu0 %v21615_v26  ;;  %15653 = vmatpush3.msra.mxu1 %v21745_v39  ;;  %v2149_v26 = vmul.f32 %v12754_v11, %v22003_v0  ;;  %v6951_v11 = vadd.f32 %v23783_v45, %v23782_v53  ;;  %v23784_v53 = vld [vmem:[#allocation76_spill] sm:$0xff] }
 0x421   :  { %15611 = vmatprep.subr.mxu0 %v21636_v2  ;;  %15654 = vmatprep.subr.mxu1 %v21772_v1 }
 0x422   :  { %15612 = vmatpush3.msra.mxu0 %v21636_v2  ;;  %15655 = vmatpush3.msra.mxu1 %v21772_v1  ;;  %v2701_v2 = vmul.f32 %v12882_v60, %v21987_v50  ;;  %v2700_v60 = vmul.f32 %v12881_v23, %v21987_v50  ;;  %v7030_v17 = vadd.f32 %v23784_v53, %v6951_v11 }
 0x423   :  { %15613 = vmatprep.subr.mxu0 %v21618_v43  ;;  %15656 = vmatprep.subr.mxu1 %v21795_v21  ;;  %v2699_v23 = vmul.f32 %v12880_v57, %v21987_v50 }
 0x424   :  { %15614 = vmatpush3.msra.mxu0 %v21618_v43  ;;  %15657 = vmatpush3.msra.mxu1 %v21795_v21  ;;  %v12752_v43 = vsel %vm1731_vm14, 1.0, %v23144_v36  ;;  %v2829_v45 = vadd.f32 %v2701_v2, %v2149_v26  ;;  %v2828_v26 = vadd.f32 %v2700_v60, %v2148_v20  ;;  %v12750_v2 = vsel %vm1729_vm0, 1.0, %v23144_v36 }
 0x425   :  { %15615 = vmatprep.subr.mxu0 %v21646_v10  ;;  %15658 = vmatprep.subr.mxu1 %v21814_v55  ;;  %v2147_v3 = vmul.f32 %v12752_v43, %v22003_v0  ;;  %v22061_v20 = vand.u32 4294901760, %v7030_v17  ;;  %v2145_v60 = vmul.f32 %v12750_v2, %v22003_v0 }
 0x426   :  { %15616 = vmatpush3.msra.mxu0 %v21646_v10  ;;  %15659 = vmatpush3.msra.mxu1 %v21814_v55  ;;  %v1589_v10 = vpop.permute.xlu0 %1588 }
 0x427   :  { %15617 = vmatprep.subr.mxu0 %v21784_v27  ;;  %15660 = vmatprep.subr.mxu1 %v21832_v61  ;;  %vm1730_vm2 = vcmp.eq.f32.partialorder %v1589_v10, %v21973_v16  ;;  %vm2282_vm3 = vcmp.eq.f32.partialorder %v1589_v10, %v21984_v29  ;;  %v2827_v57 = vadd.f32 %v2699_v23, %v2147_v3 }
 0x428   :  { %15618 = vmatpush3.msra.mxu0 %v21784_v27  ;;  %15661 = vmatpush3.msra.mxu1 %v21832_v61  ;;  %v1579_v27 = vpop.permute.xlu1 %1578  ;;  %v12751_v11 = vsel %vm1730_vm2, 1.0, %v23144_v36  ;;  %v12879_v43 = vsel %vm2282_vm3, 1.0, %v23144_v36 }
 0x429   :  { %15619 = vmatprep.subr.mxu0 %v21812_v47  ;;  %15662 = vmatprep.subr.mxu1 %v21839_v54  ;;  %vm1728_vm5 = vcmp.eq.f32.partialorder %v1579_v27, %v21973_v16  ;;  %vm2280_vm6 = vcmp.eq.f32.partialorder %v1579_v27, %v21984_v29  ;;  %v2146_v10 = vmul.f32 %v12751_v11, %v22003_v0 }
 0x42a   :  { %15620 = vmatpush3.msra.mxu0 %v21812_v47  ;;  %15663 = vmatpush3.msra.mxu1 %v21839_v54  ;;  %v2957_v47 = vmul.f32 %v23745_v33, %v2829_v45  ;;  %v1574_v33 = vpop.permute.xlu0 %1573  ;;  %v2956_v45 = vmul.f32 %v23746_v18, %v2828_v26  ;;  %v2698_v53 = vmul.f32 %v12879_v43, %v21987_v50  ;;  %v12877_v23 = vsel %vm2280_vm6, 1.0, %v23144_v36 }
 0x42b   :  { %15621 = vmatprep.subr.mxu0 %v21830_v37  ;;  %15664 = vmatprep.subr.mxu1 %v21852_v32  ;;  %vm1727_vm7 = vcmp.eq.f32.partialorder %v1574_v33, %v21973_v16  ;;  %vm2279_vm8 = vcmp.eq.f32.partialorder %v1574_v33, %v21984_v29  ;;  %v2955_v3 = vmul.f32 %v23679_v48, %v2827_v57 }
 0x42c   :  { %15622 = vmatpush3.msra.mxu0 %v21830_v37  ;;  %15665 = vmatpush3.msra.mxu1 %v21852_v32  ;;  %v2697_v37 = vmul.f32 %v12878_v62, %v21987_v50  ;;  %v1569_v18 = vpop.permute.xlu1 %1568  ;;  %v12748_v26 = vsel %vm1727_vm7, 1.0, %v23144_v36  ;;  %v22095_v48 = vsub.f32 %v7030_v17, %v22061_v20  ;;  %v12876_v2 = vsel %vm2279_vm8, 1.0, %v23144_v36 }
 0x42d   :  { %15623 = vmatprep.subr.mxu0 %v21844_v9  ;;  %15666 = vmatprep.subr.mxu1 %v21868_v34  ;;  %vm1726_vm9 = vcmp.eq.f32.partialorder %v1569_v18, %v21973_v16  ;;  %vm2278_vm10 = vcmp.eq.f32.partialorder %v1569_v18, %v21984_v29  ;;  %v22104_v27 = vand.u32 4294901760, %v2956_v45  ;;  %v2826_v11 = vadd.f32 %v2698_v53, %v2146_v10 }
 0x42e   :  { %15624 = vmatpush3.msra.mxu0 %v21844_v9  ;;  %15667 = vmatpush3.msra.mxu1 %v21868_v34  ;;  %v22073_v9 = vand.u32 4294901760, %v2957_v47  ;;  %v2825_v57 = vadd.f32 %v2697_v37, %v2145_v60  ;;  %v12747_v43 = vsel %vm1726_vm9, 1.0, %v23144_v36  ;;  %v12875_v17 = vsel %vm2278_vm10, 1.0, %v23144_v36  ;;  %v1564_v37 = vpop.permute.xlu0 %1563 }
 0x42f   :  { %15625 = vmatprep.subr.mxu0 %v21856_v63  ;;  %15668 = vmatprep.subr.mxu1 %v21882_v28  ;;  %v22114_v33 = vand.u32 4294901760, %v2955_v3  ;;  %v2143_v60 = vmul.f32 %v12748_v26, %v22003_v0  ;;  %v2695_v10 = vmul.f32 %v12876_v2, %v21987_v50  ;;  %vm1725_vm4 = vcmp.eq.f32.partialorder %v1564_v37, %v21973_v16 }
 0x430   :  { %15626 = vmatpush3.msra.mxu0 %v21856_v63  ;;  %15669 = vmatpush3.msra.mxu1 %v21882_v28  ;;  %v12749_v63 = vsel %vm1728_vm5, 1.0, %v23144_v36  ;;  %v22102_v62 = vsub.f32 %v2957_v47, %v22073_v9  ;;  %vm2277_vm11 = vcmp.eq.f32.partialorder %v1564_v37, %v21984_v29  ;;  %v2954_v53 = vmul.f32 %v23604_v56, %v2826_v11 }
 0x431   :  { %15627 = vmatprep.subr.mxu0 %v21866_v19  ;;  %15670 = vmatprep.subr.mxu1 %v21894_v49  ;;  %v2144_v47 = vmul.f32 %v12749_v63, %v22003_v0  ;;  %v11910_v63 = vand.u32 4294901760, %v22095_v48  ;;  %v12746_v26 = vsel %vm1725_vm4, 1.0, %v23144_v36  ;;  %v22145_v56 = vsub.f32 %v2956_v45, %v22104_v27 }
 0x432   :  { %15628 = vmatpush3.msra.mxu0 %v21866_v19  ;;  %15671 = vmatpush3.msra.mxu1 %v21894_v49  ;;  %v23785_v19 = vand.u32 4294901760, %v21950_v42  ;;  %v22134_v18 = vand.u32 4294901760, %v22102_v62  ;;  %v2823_v11 = vadd.f32 %v2695_v10, %v2143_v60  ;;  %v2141_v45 = vmul.f32 %v12746_v26, %v22003_v0 }
 0x433   :  { %15629 = vmatprep.subr.mxu0 %v21879_v44  ;;  %15710 = vmatprep.subr.mxu1 %v21516_v41 }
 0x434   :  { %15673 = vmatmul.mubr.f32.vlgmr.msra.gmra.mxu1 %v23785_v19  ;;  %15630 = vmatpush3.msra.mxu0 %v21879_v44  ;;  %v2696_v19 = vmul.f32 %v12877_v23, %v21987_v50  ;;  %v2694_v44 = vmul.f32 %v12875_v17, %v21987_v50  ;;  %v22138_v23 = vsub.f32 %v2955_v3, %v22114_v33  ;;  %v22153_v17 = vand.u32 4294901760, %v2954_v53 }
 0x435   :  { %15711 = vmatpush3.msra.mxu1 %v21516_v41  ;;  %15742 = vmatprep.mubr.f32.mxu1 %v21555_v38  ;;  %v2142_v41 = vmul.f32 %v12747_v43, %v22003_v0  ;;  %v1559_v43 = vpop.permute.xlu1 %1558  ;;  %v2951_v60 = vmul.f32 %v23684_v22, %v2823_v11 }
 0x436   :  { %15631 = vmatprep.subr.mxu0 %v21891_v7  ;;  %15712 = vmatprep.subr.mxu1 %v21518_v40  ;;  %v2824_v2 = vadd.f32 %v2696_v19, %v2144_v47  ;;  %vm1724_vm12 = vcmp.eq.f32.partialorder %v1559_v43, %v21973_v16  ;;  %vm2276_vm13 = vcmp.eq.f32.partialorder %v1559_v43, %v21984_v29  ;;  %v22179_v37 = vand.u32 4294901760, %v22138_v23 }
 0x437   :  { %15632 = vmatpush3.msra.mxu0 %v21891_v7  ;;  %15713 = vmatpush3.msra.mxu1 %v21518_v40  ;;  %v15149_v7 = vpop.f32.mrf.mxu0  ;;  %v12874_v40 = vsel %vm2277_vm11, 1.0, %v23144_v36  ;;  %v2822_v3 = vadd.f32 %v2694_v44, %v2142_v41  ;;  %v12745_v10 = vsel %vm1724_vm12, 1.0, %v23144_v36  ;;  %v12873_v41 = vsel %vm2276_vm13, 1.0, %v23144_v36 }
 0x438   :  { %15633 = vmatprep.subr.mxu0 %v21904_v12  ;;  %15714 = vmatprep.subr.mxu1 %v21579_v6  ;;  %v2952_v19 = vmul.f32 %v23605_v51, %v2824_v2 }
 0x439   :  { %15634 = vmatpush3.msra.mxu0 %v21904_v12  ;;  %15715 = vmatpush3.msra.mxu1 %v21579_v6  ;;  %v2953_v12 = vmul.f32 %v23603_v30, %v2825_v57  ;;  %v15184_v6 = vpop.f32.mrf.mxu1  ;;  %v2693_v30 = vmul.f32 %v12874_v40, %v21987_v50  ;;  %v22170_v57 = vsub.f32 %v22095_v48, %v11910_v63  ;;  %v1549_v11 = vpop.permute.xlu1 %1548 }
 0x43a   :  { %15635 = vmatprep.subr.mxu0 %v21914_v4  ;;  %15716 = vmatprep.subr.mxu1 %v21598_v15  ;;  %v2950_v44 = vmul.f32 %v23750_v59, %v2822_v3  ;;  %v10030_v40 = vadd.f32 %v15184_v6, %v15149_v7  ;;  %v22214_v7 = vand.u32 4294901760, %v2952_v19  ;;  %v22216_v3 = vand.u32 4294901760, %v2951_v60 }
 0x43b   :  { %15636 = vmatpush3.msra.mxu0 %v21914_v4  ;;  %15717 = vmatpush3.msra.mxu1 %v21598_v15  ;;  %v9862_v4 = vpop.f32.mrf.mxu0  ;;  %v11932_v15 = vsub.f32 %v22102_v62, %v22134_v18  ;;  %v22172_v47 = vand.u32 4294901760, %v2953_v12  ;;  %v10023_v22 = vpop.f32.mrf.mxu1  ;;  %v2821_v26 = vadd.f32 %v2693_v30, %v2141_v45  ;;  %v11946_v30 = vsub.f32 %v22138_v23, %v22179_v37 }
 0x43c   :  { %15638 = vmatmul.mubr.f32.vlgmr.msra.gmra.mxu0 %v21950_v42  ;;  %15675 = vmatprep.subr.mxu0 %v21569_v5  ;;  %v22165_v42 = vand.u32 4294901760, %v22145_v56  ;;  %v10024_v2 = vadd.f32 %v10023_v22, %v9862_v4  ;;  %v22222_v4 = vand.u32 4294901760, %v2950_v44  ;;  %vm1722_vm0 = vcmp.eq.f32.partialorder %v1549_v11, %v21973_v16 }
 0x43d   :  { %15718 = vmatprep.subr.mxu1 %v21585_v25  ;;  %15676 = vmatpush3.msra.mxu0 %v21569_v5  ;;  %v1554_v5 = vpop.permute.xlu0 %1553  ;;  %v15219_v51 = vpop.f32.mrf.mxu0  ;;  %vm2274_vm1 = vcmp.eq.f32.partialorder %v1549_v11, %v21984_v29  ;;  %v22241_v22 = vsub.f32 %v2952_v19, %v22214_v7 }
 0x43e   :  { %15707 = vmatprep.mubr.f32.mxu0 %v21555_v38  ;;  %15719 = vmatpush3.msra.mxu1 %v21585_v25  ;;  %v23786_v38 = vld [vmem:[#allocation14_spill] sm:$0xff]  ;;  %vm1723_vm14 = vcmp.eq.f32.partialorder %v1554_v5, %v21973_v16  ;;  %vm2275_vm15 = vcmp.eq.f32.partialorder %v1554_v5, %v21984_v29  ;;  %v22192_v25 = vsub.f32 %v2954_v53, %v22153_v17  ;;  %v15254_v6 = vpop.f32.mrf.mxu1 }
 0x43f   :  { %15677 = vmatprep.subr.mxu0 %v23786_v38  ;;  %15720 = vmatprep.subr.mxu1 %v21620_v13  ;;  %v11939_v43 = vsub.f32 %v22145_v56, %v22165_v42  ;;  %v2140_v53 = vmul.f32 %v12745_v10, %v22003_v0  ;;  %v12872_v59 = vsel %vm2275_vm15, 1.0, %v23144_v36  ;;  %v10133_v45 = vpop.f32.mrf.mxu0  ;;  %v10141_v5 = vadd.f32 %v15219_v51, %v10030_v40 }
 0x440   :  { %15678 = vmatpush3.msra.mxu0 %v23786_v38  ;;  %15721 = vmatpush3.msra.mxu1 %v21620_v13  ;;  %v2692_v38 = vmul.f32 %v12873_v41, %v21987_v50  ;;  %v12744_v13 = vsel %vm1723_vm14, 1.0, %v23144_v36  ;;  %v2691_v41 = vmul.f32 %v12872_v59, %v21987_v50  ;;  %v22238_v51 = vand.u32 4294901760, %v11932_v15  ;;  %v10229_v40 = vpop.f32.mrf.mxu1 }
 0x441   :  { %15679 = vmatprep.subr.mxu0 %v21714_v58  ;;  %15722 = vmatprep.subr.mxu1 %v21745_v39  ;;  %v2139_v10 = vmul.f32 %v12744_v13, %v22003_v0  ;;  %v12743_v15 = vsel %vm1722_vm0, 1.0, %v23144_v36 }
 0x442   :  { %15680 = vmatpush3.msra.mxu0 %v21714_v58  ;;  %15723 = vmatpush3.msra.mxu1 %v21745_v39  ;;  %v22212_v58 = vsub.f32 %v2953_v12, %v22172_v47  ;;  %v2949_v39 = vmul.f32 %v23754_v52, %v2821_v26  ;;  %v22228_v12 = vand.u32 4294901760, %v22192_v25  ;;  %v1544_v52 = vpop.permute.xlu0 %1543  ;;  %v22244_v26 = vsub.f32 %v2951_v60, %v22216_v3 }
 0x443   :  { %15681 = vmatprep.subr.mxu0 %v21756_v8  ;;  %15724 = vmatprep.subr.mxu1 %v21772_v1  ;;  %vm1721_vm2 = vcmp.eq.f32.partialorder %v1544_v52, %v21973_v16  ;;  %v10238_v60 = vadd.f32 %v15254_v6, %v10141_v5  ;;  %vm2273_vm3 = vcmp.eq.f32.partialorder %v1544_v52, %v21984_v29 }
 0x444   :  { %15682 = vmatpush3.msra.mxu0 %v21756_v8  ;;  %15725 = vmatpush3.msra.mxu1 %v21772_v1  ;;  %v2820_v8 = vadd.f32 %v2692_v38, %v2140_v53  ;;  %v10134_v1 = vadd.f32 %v10133_v45, %v10024_v2  ;;  %v22249_v2 = vand.u32 4294901760, %v11939_v43  ;;  %v11953_v19 = vsub.f32 %v22192_v25, %v22228_v12 }
 0x445   :  { %15683 = vmatprep.subr.mxu0 %v21780_v24  ;;  %15726 = vmatprep.subr.mxu1 %v21795_v21  ;;  %v22261_v53 = vand.u32 4294901760, %v2949_v39  ;;  %v12742_v13 = vsel %vm1721_vm2, 1.0, %v23144_v36  ;;  %v2138_v6 = vmul.f32 %v12743_v15, %v22003_v0 }
 0x446   :  { %15684 = vmatpush3.msra.mxu0 %v21780_v24  ;;  %15727 = vmatpush3.msra.mxu1 %v21795_v21  ;;  %v1539_v24 = vpop.permute.xlu1 %1538  ;;  %v22252_v21 = vsub.f32 %v2950_v44, %v22222_v4  ;;  %v12871_v44 = vsel %vm2274_vm1, 1.0, %v23144_v36  ;;  %v22270_v38 = vmul.f32 %v23758_v35, %v2820_v8  ;;  %v10230_v59 = vadd.f32 %v10229_v40, %v10134_v1  ;;  %v1534_v5 = vpop.permute.xlu0 %1533 }
 0x447   :  { %15685 = vmatprep.subr.mxu0 %v21808_v31  ;;  %15728 = vmatprep.subr.mxu1 %v21814_v55  ;;  %vm1720_vm5 = vcmp.eq.f32.partialorder %v1539_v24, %v21973_v16  ;;  %vm2272_vm6 = vcmp.eq.f32.partialorder %v1539_v24, %v21984_v29  ;;  %v22282_v35 = vand.u32 4294901760, %v11946_v30  ;;  %v2690_v45 = vmul.f32 %v12871_v44, %v21987_v50 }
 0x448   :  { %15686 = vmatpush3.msra.mxu0 %v21808_v31  ;;  %15729 = vmatpush3.msra.mxu1 %v21814_v55  ;;  %v2819_v31 = vadd.f32 %v2691_v41, %v2139_v10  ;;  %v15324_v55 = vpop.f32.mrf.mxu1  ;;  %v23787_v10 = vld [vmem:[#allocation26_spill] sm:$0xff]  ;;  %v22291_v1 = vsub.f32 %v2949_v39, %v22261_v53  ;;  %v2137_v40 = vmul.f32 %v12742_v13, %v22003_v0  ;;  %v12869_v39 = vsel %vm2272_vm6, 1.0, %v23144_v36 }
 0x449   :  { %15687 = vmatprep.subr.mxu0 %v21837_v14  ;;  %15730 = vmatprep.subr.mxu1 %v21832_v61  ;;  %vm1719_vm7 = vcmp.eq.f32.partialorder %v1534_v5, %v21973_v16  ;;  %vm2271_vm8 = vcmp.eq.f32.partialorder %v1534_v5, %v21984_v29  ;;  %v22317_v13 = vand.u32 4294901760, %v11953_v19  ;;  %v2818_v24 = vadd.f32 %v2690_v45, %v2138_v6  ;;  %v23791_v6 = vld [vmem:[#allocation13_spill] sm:$0xff]  ;;  %v23792_v5 = vld [vmem:[#allocation78_spill] sm:$0xff] }
 0x44a   :  { %15688 = vmatpush3.msra.mxu0 %v21837_v14  ;;  %v15289_v43 = vpop.f32.mrf.mxu0  ;;  %15731 = vmatpush3.msra.mxu1 %v21832_v61  ;;  %v12870_v61 = vsel %vm2273_vm3, 1.0, %v23144_v36  ;;  %v1529_v15 = vpop.permute.xlu1 %1528  ;;  %v12868_v19 = vsel %vm2271_vm8, 1.0, %v23144_v36 }
 0x44b   :  { %15689 = vmatprep.subr.mxu0 %v21850_v46  ;;  %v10363_v11 = vadd.f32 %v15289_v43, %v10238_v60  ;;  %15732 = vmatprep.subr.mxu1 %v21839_v54  ;;  %v10449_v52 = vpop.f32.mrf.mxu1  ;;  %v12741_v60 = vsel %vm1720_vm5, 1.0, %v23144_v36  ;;  %v2689_v43 = vmul.f32 %v12870_v61, %v21987_v50  ;;  %vm1718_vm9 = vcmp.eq.f32.partialorder %v1529_v15, %v21973_v16 }
 0x44c   :  { %15690 = vmatpush3.msra.mxu0 %v21850_v46  ;;  %v10356_v14 = vpop.f32.mrf.mxu0  ;;  %15733 = vmatpush3.msra.mxu1 %v21839_v54  ;;  %v23788_v46 = vld [vmem:[#allocation66_spill] sm:$0xff]  ;;  %v22300_v54 = vand.u32 4294901760, %v22212_v58  ;;  %v2136_v61 = vmul.f32 %v12741_v60, %v22003_v0  ;;  %vm2270_vm10 = vcmp.eq.f32.partialorder %v1529_v15, %v21984_v29  ;;  %v22349_v29 = vand.u32 4294901760, %v22241_v22 }
 0x44d   :  { %15691 = vmatprep.subr.mxu0 %v23787_v10  ;;  %v10456_v41 = vadd.f32 %v15324_v55, %v10363_v11  ;;  %v10357_v8 = vadd.f32 %v10356_v14, %v10230_v59  ;;  %v22294_v30 = vmul.f32 %v23788_v46, %v2819_v31  ;;  %15734 = vmatprep.subr.mxu1 %v21852_v32  ;;  %v23789_v31 = vld [vmem:[#allocation40_spill] sm:$0xff]  ;;  %v22326_v14 = vand.u32 4294901760, %v22270_v38  ;;  %v23793_v15 = vld [vmem:[#allocation46_spill] sm:$0xff] }
 0x44e   :  { %15692 = vmatpush3.msra.mxu0 %v23787_v10  ;;  %15735 = vmatpush3.msra.mxu1 %v21852_v32  ;;  %v23790_v32 = vld [vmem:[#allocation64_spill] sm:$0xff]  ;;  %v2688_v10 = vmul.f32 %v12869_v39, %v21987_v50  ;;  %v12739_v46 = vsel %vm1718_vm9, 1.0, %v23144_v36  ;;  %v2946_v39 = vmul.f32 %v23793_v15, %v2818_v24  ;;  %v11967_v15 = vsub.f32 %v22241_v22, %v22349_v29 }
 0x44f   :  { %15693 = vmatprep.subr.mxu0 %v23789_v31  ;;  %v22310_v44 = vmul.f32 255.0, %v10456_v41  ;;  %v10450_v55 = vadd.f32 %v10449_v52, %v10357_v8  ;;  %15736 = vmatprep.subr.mxu1 %v21868_v34  ;;  %v2817_v8 = vadd.f32 %v2689_v43, %v2137_v40  ;;  %v23794_v43 = vld [vmem:[#allocation87_spill] sm:$0xff]  ;;  %v2134_v24 = vmul.f32 %v12739_v46, %v22003_v0 }
 0x450   :  { %15694 = vmatpush3.msra.mxu0 %v23789_v31  ;;  %15737 = vmatpush3.msra.mxu1 %v21868_v34  ;;  %v12740_v34 = vsel %vm1719_vm7, 1.0, %v23144_v36  ;;  %v23797_v46 = vld [vmem:[#allocation83_spill] sm:$0xff] }
 0x451   :  { %15695 = vmatprep.subr.mxu0 %v23790_v32  ;;  %v16029_v11 = vcvt.f32.s32 %v22310_v44  ;;  %v22323_v59 = vmul.f32 255.0, %v10450_v55  ;;  %15738 = vmatprep.subr.mxu1 %v21882_v28  ;;  %v16027_v52 = vand.u32 2147483647, %v22310_v44  ;;  %v16032_v60 = vand.u32 2147483648, %v22310_v44 }
 0x452   :  { %15696 = vmatpush3.msra.mxu0 %v23790_v32  ;;  %15739 = vmatpush3.msra.mxu1 %v21882_v28  ;;  %v12867_v28 = vsel %vm2270_vm10, 1.0, %v23144_v36  ;;  %v2135_v31 = vmul.f32 %v12740_v34, %v22003_v0  ;;  %v2687_v55 = vmul.f32 %v12868_v19, %v21987_v50  ;;  %v2816_v32 = vadd.f32 %v2688_v10, %v2136_v61  ;;  %v23795_v19 = vld [vmem:[#allocation79_spill] sm:$0xff] }
 0x453   :  { %15697 = vmatprep.subr.mxu0 %v23791_v6  ;;  %v16030_v45 = vcvt.s32.f32 %v16029_v11  ;;  %v16021_v41 = vcvt.f32.s32 %v22323_v59  ;;  %15740 = vmatprep.subr.mxu1 %v21894_v49  ;;  %v16019_v36 = vand.u32 2147483647, %v22323_v59  ;;  %v2686_v34 = vmul.f32 %v12867_v28, %v21987_v50 }
 0x454   :  { %15698 = vmatpush3.msra.mxu0 %v23791_v6  ;;  %15741 = vmatpush3.msra.mxu1 %v21894_v49  ;;  %v16024_v6 = vand.u32 2147483648, %v22323_v59  ;;  %vm16028_vm4 = vcmp.lt.f32.partialorder %v16027_v52, 8388608.0  ;;  %v11960_v61 = vsub.f32 %v22212_v58, %v22300_v54  ;;  %v22371_v10 = vand.u32 4294901760, %v22294_v30 }
 0x455   :  { %15699 = vmatprep.subr.mxu0 %v23792_v5  ;;  %v16031_v40 = vand.u32 2147483647, %v16030_v45  ;;  %v16022_v16 = vcvt.s32.f32 %v16021_v41  ;;  %15743 = vmatmul.mubr.f32.vlgmr.msra.gmra.mxu1 %v23794_v43  ;;  %v2815_v41 = vadd.f32 %v2687_v55, %v2135_v31  ;;  %vm16020_vm11 = vcmp.lt.f32.partialorder %v16019_v36, 8388608.0 }
 0x456   :  { %15780 = vmatprep.subr.mxu1 %v22238_v51  ;;  %15700 = vmatpush3.msra.mxu0 %v23792_v5  ;;  %v22380_v28 = vand.u32 4294901760, %v22244_v26  ;;  %v22386_v5 = vand.u32 4294901760, %v2946_v39  ;;  %v22400_v31 = vand.u32 4294901760, %v22252_v21  ;;  %v22409_v36 = vsub.f32 %v22294_v30, %v22371_v10 }
 0x457   :  { %15781 = vmatpush3.msra.mxu1 %v22238_v51  ;;  %v16033_v49 = vor.u32 %v16032_v60, %v16031_v40  ;;  %v16023_v11 = vand.u32 2147483647, %v16022_v16  ;;  %15812 = vmatprep.mubr.f32.mxu1 %v22061_v20  ;;  %v23796_v51 = vld [vmem:[#allocation23_spill] sm:$0xff]  ;;  %v23798_v40 = vld [vmem:[#allocation48_spill] sm:$0xff] }
 0x458   :  { %15701 = vmatprep.subr.mxu0 %v23795_v19  ;;  %v2945_v45 = vmul.f32 %v23796_v51, %v2817_v8  ;;  %15782 = vmatprep.subr.mxu1 %v22249_v2  ;;  %v22384_v8 = vsub.f32 %v22270_v38, %v22326_v14  ;;  %v2944_v60 = vmul.f32 %v23798_v40, %v2816_v32  ;;  %v23799_v16 = vld [vmem:[#allocation84_spill] sm:$0xff] }
 0x459   :  { %15702 = vmatpush3.msra.mxu0 %v23795_v19  ;;  %v16034_v0 = vsel %vm16028_vm4, %v16033_v49, %v22310_v44  ;;  %v16025_v50 = vor.u32 %v16024_v6, %v16023_v11  ;;  %15783 = vmatpush3.msra.mxu1 %v22249_v2  ;;  %v2814_v44 = vadd.f32 %v2686_v34, %v2134_v24  ;;  %v23800_v32 = vld [vmem:[#allocation52_spill] sm:$0xff]  ;;  %v22420_v6 = vand.u32 4294901760, %v22291_v1 }
 0x45a   :  { %15703 = vmatprep.subr.mxu0 %v23797_v46  ;;  %v12552_v52 = vmul.f32 0.003921569, %v16034_v0  ;;  %15784 = vmatprep.subr.mxu1 %v22282_v35  ;;  %v22402_v55 = vand.u32 4294901760, %v2945_v45  ;;  %v2943_v49 = vmul.f32 %v23800_v32, %v2815_v41  ;;  %v11974_v11 = vsub.f32 %v22244_v26, %v22380_v28 }
 0x45b   :  { %15704 = vmatpush3.msra.mxu0 %v23797_v46  ;;  %v16026_v2 = vsel %vm16020_vm11, %v16025_v50, %v22323_v59  ;;  %15785 = vmatpush3.msra.mxu1 %v22282_v35  ;;  %v11961_v35 = vand.u32 4294901760, %v11960_v61  ;;  %v11912_v59 = vand.u32 4294901760, %v22170_v57  ;;  %v22423_v57 = vsub.f32 %v2946_v39, %v22386_v5 }
 0x45c   :  { %15705 = vmatprep.subr.mxu0 %v23799_v16  ;;  %12568 = vst [vmem:[%s22686_s2 + $0x48] sm:$0xff] %v12552_v52  ;;  %v12551_v38 = vmul.f32 0.003921569, %v16026_v2  ;;  %15786 = vmatprep.subr.mxu1 %v22317_v13  ;;  %v22425_v30 = vand.u32 4294901760, %v2944_v60  ;;  %v11968_v24 = vand.u32 4294901760, %v11967_v15  ;;  %v11981_v34 = vsub.f32 %v22252_v21, %v22400_v31 }
 0x45d   :  { %15706 = vmatpush3.msra.mxu0 %v23799_v16  ;;  %15787 = vmatpush3.msra.mxu1 %v22317_v13  ;;  %v23801_v13 = vld [vmem:[#allocation4_spill] sm:$0xff]  ;;  %v22433_v19 = vand.u32 4294901760, %v22384_v8  ;;  %v22436_v39 = vsub.f32 %v2945_v45, %v22402_v55  ;;  %v22439_v61 = vand.u32 4294901760, %v2943_v49  ;;  %v11975_v51 = vand.u32 4294901760, %v11974_v11 }
 0x45e   :  { %15708 = vmatmul.mubr.f32.vlgmr.msra.gmra.mxu0 %v23794_v43  ;;  %12567 = vst [vmem:[%s22686_s2 + $0x40] sm:$0xff] %v12551_v38  ;;  %15745 = vmatprep.subr.mxu0 %v22073_v9  ;;  %v2942_v43 = vmul.f32 %v23801_v13, %v2814_v44  ;;  %v11988_v0 = vsub.f32 %v22291_v1, %v22420_v6  ;;  %v22445_v50 = vand.u32 4294901760, %v22409_v36  ;;  %v11982_v46 = vand.u32 4294901760, %v11981_v34  ;;  %v23802_v34 = vld [vmem:[#allocation82_spill] sm:$0xff] }
 0x45f   :  { %15788 = vmatprep.subr.mxu1 %v11961_v35  ;;  %15746 = vmatpush3.msra.mxu0 %v22073_v9  ;;  %v22448_v41 = vsub.f32 %v2944_v60, %v22425_v30  ;;  %v11995_v52 = vsub.f32 %v22384_v8, %v22433_v19  ;;  %v22457_v40 = vand.u32 4294901760, %v22423_v57  ;;  %v22461_v60 = vsub.f32 %v2943_v49, %v22439_v61 }
 0x460   :  { %15777 = vmatprep.mubr.f32.mxu0 %v11912_v59  ;;  %15789 = vmatpush3.msra.mxu1 %v11961_v35  ;;  %v22451_v45 = vand.u32 4294901760, %v2942_v43  ;;  %v11989_v2 = vand.u32 4294901760, %v11988_v0  ;;  %v12002_v44 = vsub.f32 %v22409_v36, %v22445_v50  ;;  %v22467_v16 = vand.u32 4294901760, %v22436_v39 }
 0x461   :  { %15747 = vmatprep.subr.mxu0 %v22104_v27  ;;  %15790 = vmatprep.subr.mxu1 %v11968_v24  ;;  %v11996_v15 = vand.u32 4294901760, %v11995_v52  ;;  %v12009_v35 = vsub.f32 %v22423_v57, %v22457_v40  ;;  %v22477_v59 = vand.u32 4294901760, %v22448_v41  ;;  %v22484_v11 = vand.u32 4294901760, %v22461_v60 }
 0x462   :  { %15748 = vmatpush3.msra.mxu0 %v22104_v27  ;;  %15791 = vmatpush3.msra.mxu1 %v11968_v24  ;;  %v22471_v38 = vsub.f32 %v2942_v43, %v22451_v45  ;;  %v12003_v32 = vand.u32 4294901760, %v12002_v44  ;;  %v12016_v49 = vsub.f32 %v22436_v39, %v22467_v16 }
 0x463   :  { %15749 = vmatprep.subr.mxu0 %v22114_v33  ;;  %15792 = vmatprep.subr.mxu1 %v11975_v51  ;;  %v12010_v13 = vand.u32 4294901760, %v12009_v35  ;;  %v12023_v43 = vsub.f32 %v22448_v41, %v22477_v59 }
 0x464   :  { %15750 = vmatpush3.msra.mxu0 %v22114_v33  ;;  %15793 = vmatpush3.msra.mxu1 %v11975_v51  ;;  %v22491_v24 = vand.u32 4294901760, %v22471_v38  ;;  %v22495_v51 = vand.u32 4294901760, %v23802_v34  ;;  %v12017_v0 = vand.u32 4294901760, %v12016_v49 }
 0x465   :  { %15751 = vmatprep.subr.mxu0 %v22153_v17  ;;  %15794 = vmatprep.subr.mxu1 %v11982_v46  ;;  %v12024_v52 = vand.u32 4294901760, %v12023_v43 }
 0x466   :  { %15752 = vmatpush3.msra.mxu0 %v22153_v17  ;;  %15795 = vmatpush3.msra.mxu1 %v11982_v46  ;;  %v12030_v46 = vsub.f32 %v22461_v60, %v22484_v11  ;;  %v22507_v44 = vsub.f32 %v23802_v34, %v22495_v51 }
 0x467   :  { %15753 = vmatprep.subr.mxu0 %v22172_v47  ;;  %15796 = vmatprep.subr.mxu1 %v11989_v2 }
 0x468   :  { %15754 = vmatpush3.msra.mxu0 %v22172_v47  ;;  %15797 = vmatpush3.msra.mxu1 %v11989_v2  ;;  %v12037_v2 = vsub.f32 %v22471_v38, %v22491_v24 }
 0x469   :  { %15755 = vmatprep.subr.mxu0 %v22214_v7  ;;  %15798 = vmatprep.subr.mxu1 %v11996_v15 }
 0x46a   :  { %15756 = vmatpush3.msra.mxu0 %v22214_v7  ;;  %15799 = vmatpush3.msra.mxu1 %v11996_v15  ;;  %v12031_v15 = vand.u32 4294901760, %v12030_v46  ;;  %v12038_v35 = vand.u32 4294901760, %v12037_v2 }
 0x46b   :  { %15757 = vmatprep.subr.mxu0 %v22216_v3  ;;  %15800 = vmatprep.subr.mxu1 %v12003_v32 }
 0x46c   :  { %15758 = vmatpush3.msra.mxu0 %v22216_v3  ;;  %15801 = vmatpush3.msra.mxu1 %v12003_v32  ;;  %v11920_v32 = vand.u32 4294901760, %v22507_v44 }
 0x46d   :  { %15759 = vmatprep.subr.mxu0 %v22222_v4  ;;  %15802 = vmatprep.subr.mxu1 %v12010_v13 }
 0x46e   :  { %15760 = vmatpush3.msra.mxu0 %v22222_v4  ;;  %15803 = vmatpush3.msra.mxu1 %v12010_v13  ;;  %v11921_v49 = vsub.f32 %v22507_v44, %v11920_v32 }
 0x46f   :  { %15761 = vmatprep.subr.mxu0 %v22261_v53  ;;  %15804 = vmatprep.subr.mxu1 %v12017_v0 }
 0x470   :  { %15762 = vmatpush3.msra.mxu0 %v22261_v53  ;;  %15805 = vmatpush3.msra.mxu1 %v12017_v0  ;;  %v11922_v13 = vand.u32 4294901760, %v11921_v49 }
 0x471   :  { %15763 = vmatprep.subr.mxu0 %v22326_v14  ;;  %15806 = vmatprep.subr.mxu1 %v12024_v52 }
 0x472   :  { %15764 = vmatpush3.msra.mxu0 %v22326_v14  ;;  %15807 = vmatpush3.msra.mxu1 %v12024_v52 }
 0x473   :  { %15765 = vmatprep.subr.mxu0 %v22371_v10  ;;  %15808 = vmatprep.subr.mxu1 %v12031_v15 }
 0x474   :  { %15766 = vmatpush3.msra.mxu0 %v22371_v10  ;;  %15809 = vmatpush3.msra.mxu1 %v12031_v15 }
 0x475   :  { %15767 = vmatprep.subr.mxu0 %v22386_v5  ;;  %15810 = vmatprep.subr.mxu1 %v12038_v35 }
 0x476   :  { %15768 = vmatpush3.msra.mxu0 %v22386_v5  ;;  %15811 = vmatpush3.msra.mxu1 %v12038_v35 }
 0x477   :  { %15769 = vmatprep.subr.mxu0 %v22402_v55  ;;  %15813 = vmatmul.mubr.f32.vlgmr.msra.gmra.mxu1 %v22495_v51 }
 0x478   :  { %15850 = vmatprep.subr.mxu1 %v22073_v9  ;;  %15770 = vmatpush3.msra.mxu0 %v22402_v55 }
 0x479   :  { %15851 = vmatpush3.msra.mxu1 %v22073_v9  ;;  %15882 = vmatprep.mubr.f32.mxu1 %v11910_v63 }
 0x47a   :  { %15771 = vmatprep.subr.mxu0 %v22425_v30  ;;  %15852 = vmatprep.subr.mxu1 %v22104_v27 }
 0x47b   :  { %15772 = vmatpush3.msra.mxu0 %v22425_v30  ;;  %15853 = vmatpush3.msra.mxu1 %v22104_v27 }
 0x47c   :  { %15773 = vmatprep.subr.mxu0 %v22439_v61  ;;  %15854 = vmatprep.subr.mxu1 %v22114_v33 }
 0x47d   :  { %15774 = vmatpush3.msra.mxu0 %v22439_v61  ;;  %15855 = vmatpush3.msra.mxu1 %v22114_v33 }
 0x47e   :  { %15775 = vmatprep.subr.mxu0 %v22451_v45  ;;  %15856 = vmatprep.subr.mxu1 %v22153_v17 }
 0x47f   :  { %15776 = vmatpush3.msra.mxu0 %v22451_v45  ;;  %15857 = vmatpush3.msra.mxu1 %v22153_v17 }
 0x480   :  { %15778 = vmatmul.mubr.f32.vlgmr.msra.gmra.mxu0 %v11922_v13  ;;  %15815 = vmatprep.subr.mxu0 %v22102_v62 }
 0x481   :  { %15858 = vmatprep.subr.mxu1 %v22172_v47  ;;  %15816 = vmatpush3.msra.mxu0 %v22102_v62 }
 0x482   :  { %15847 = vmatprep.mubr.f32.mxu0 %v22095_v48  ;;  %15859 = vmatpush3.msra.mxu1 %v22172_v47 }
 0x483   :  { %15817 = vmatprep.subr.mxu0 %v22145_v56  ;;  %15860 = vmatprep.subr.mxu1 %v22214_v7 }
 0x484   :  { %15818 = vmatpush3.msra.mxu0 %v22145_v56  ;;  %15861 = vmatpush3.msra.mxu1 %v22214_v7 }
 0x485   :  { %15819 = vmatprep.subr.mxu0 %v22138_v23  ;;  %15862 = vmatprep.subr.mxu1 %v22216_v3 }
 0x486   :  { %15820 = vmatpush3.msra.mxu0 %v22138_v23  ;;  %15863 = vmatpush3.msra.mxu1 %v22216_v3 }
 0x487   :  { %15821 = vmatprep.subr.mxu0 %v22192_v25  ;;  %15864 = vmatprep.subr.mxu1 %v22222_v4 }
 0x488   :  { %15822 = vmatpush3.msra.mxu0 %v22192_v25  ;;  %15865 = vmatpush3.msra.mxu1 %v22222_v4 }
 0x489   :  { %15823 = vmatprep.subr.mxu0 %v22212_v58  ;;  %15866 = vmatprep.subr.mxu1 %v22261_v53 }
 0x48a   :  { %15824 = vmatpush3.msra.mxu0 %v22212_v58  ;;  %15867 = vmatpush3.msra.mxu1 %v22261_v53 }
 0x48b   :  { %15825 = vmatprep.subr.mxu0 %v22241_v22  ;;  %15868 = vmatprep.subr.mxu1 %v22326_v14 }
 0x48c   :  { %15826 = vmatpush3.msra.mxu0 %v22241_v22  ;;  %15869 = vmatpush3.msra.mxu1 %v22326_v14 }
 0x48d   :  { %15827 = vmatprep.subr.mxu0 %v22244_v26  ;;  %15870 = vmatprep.subr.mxu1 %v22371_v10 }
 0x48e   :  { %15828 = vmatpush3.msra.mxu0 %v22244_v26  ;;  %15871 = vmatpush3.msra.mxu1 %v22371_v10 }
 0x48f   :  { %15829 = vmatprep.subr.mxu0 %v22252_v21  ;;  %15872 = vmatprep.subr.mxu1 %v22386_v5 }
 0x490   :  { %15830 = vmatpush3.msra.mxu0 %v22252_v21  ;;  %15873 = vmatpush3.msra.mxu1 %v22386_v5 }
 0x491   :  { %15831 = vmatprep.subr.mxu0 %v22291_v1  ;;  %15874 = vmatprep.subr.mxu1 %v22402_v55 }
 0x492   :  { %15832 = vmatpush3.msra.mxu0 %v22291_v1  ;;  %15875 = vmatpush3.msra.mxu1 %v22402_v55 }
 0x493   :  { %15833 = vmatprep.subr.mxu0 %v22384_v8  ;;  %15876 = vmatprep.subr.mxu1 %v22425_v30 }
 0x494   :  { %15834 = vmatpush3.msra.mxu0 %v22384_v8  ;;  %15877 = vmatpush3.msra.mxu1 %v22425_v30 }
 0x495   :  { %15835 = vmatprep.subr.mxu0 %v22409_v36  ;;  %15878 = vmatprep.subr.mxu1 %v22439_v61 }
 0x496   :  { %15836 = vmatpush3.msra.mxu0 %v22409_v36  ;;  %15879 = vmatpush3.msra.mxu1 %v22439_v61 }
 0x497   :  { %15837 = vmatprep.subr.mxu0 %v22423_v57  ;;  %15880 = vmatprep.subr.mxu1 %v22451_v45 }
 0x498   :  { %15838 = vmatpush3.msra.mxu0 %v22423_v57  ;;  %15881 = vmatpush3.msra.mxu1 %v22451_v45 }
 0x499   :  { %15839 = vmatprep.subr.mxu0 %v22436_v39  ;;  %15883 = vmatmul.mubr.f32.vlgmr.msra.gmra.mxu1 %v11920_v32 }
 0x49a   :  { %15920 = vmatprep.subr.mxu1 %v22073_v9  ;;  %15840 = vmatpush3.msra.mxu0 %v22436_v39 }
 0x49b   :  { %15921 = vmatpush3.msra.mxu1 %v22073_v9  ;;  %15952 = vmatprep.mubr.f32.mxu1 %v22061_v20  ;;  %v15359_v9 = vpop.f32.mrf.mxu0 }
 0x49c   :  { %15841 = vmatprep.subr.mxu0 %v22448_v41  ;;  %15922 = vmatprep.subr.mxu1 %v22104_v27 }
 0x49d   :  { %15842 = vmatpush3.msra.mxu0 %v22448_v41  ;;  %15923 = vmatpush3.msra.mxu1 %v22104_v27  ;;  %v10546_v48 = vpop.f32.mrf.mxu0 }
 0x49e   :  { %15843 = vmatprep.subr.mxu0 %v22461_v60  ;;  %15924 = vmatprep.subr.mxu1 %v22114_v33 }
 0x49f   :  { %15844 = vmatpush3.msra.mxu0 %v22461_v60  ;;  %15925 = vmatpush3.msra.mxu1 %v22114_v33  ;;  %v15429_v62 = vpop.f32.mrf.mxu0 }
 0x4a0   :  { %15845 = vmatprep.subr.mxu0 %v22471_v38  ;;  %15926 = vmatprep.subr.mxu1 %v22153_v17 }
 0x4a1   :  { %15846 = vmatpush3.msra.mxu0 %v22471_v38  ;;  %15927 = vmatpush3.msra.mxu1 %v22153_v17  ;;  %v10817_v63 = vpop.f32.mrf.mxu0 }
 0x4a2   :  { %15848 = vmatmul.mubr.f32.vlgmr.msra.gmra.mxu0 %v22507_v44  ;;  %15885 = vmatprep.subr.mxu0 %v22134_v18 }
 0x4a3   :  { %15928 = vmatprep.subr.mxu1 %v22172_v47  ;;  %15886 = vmatpush3.msra.mxu0 %v22134_v18 }
 0x4a4   :  { %15917 = vmatprep.mubr.f32.mxu0 %v22061_v20  ;;  %15929 = vmatpush3.msra.mxu1 %v22172_v47  ;;  %v15394_v20 = vpop.f32.mrf.mxu1 }
 0x4a5   :  { %15887 = vmatprep.subr.mxu0 %v22165_v42  ;;  %15930 = vmatprep.subr.mxu1 %v22214_v7  ;;  %v10714_v33 = vadd.f32 %v15394_v20, %v15359_v9 }
 0x4a6   :  { %15888 = vmatpush3.msra.mxu0 %v22165_v42  ;;  %15931 = vmatpush3.msra.mxu1 %v22214_v7  ;;  %v10707_v27 = vpop.f32.mrf.mxu1 }
 0x4a7   :  { %15889 = vmatprep.subr.mxu0 %v22179_v37  ;;  %15932 = vmatprep.subr.mxu1 %v22216_v3  ;;  %v10708_v23 = vadd.f32 %v10707_v27, %v10546_v48  ;;  %v10825_v56 = vadd.f32 %v15429_v62, %v10714_v33 }
 0x4a8   :  { %15890 = vmatpush3.msra.mxu0 %v22179_v37  ;;  %15933 = vmatpush3.msra.mxu1 %v22216_v3  ;;  %v15464_v18 = vpop.f32.mrf.mxu1 }
 0x4a9   :  { %15891 = vmatprep.subr.mxu0 %v22228_v12  ;;  %15934 = vmatprep.subr.mxu1 %v22222_v4  ;;  %v10818_v17 = vadd.f32 %v10817_v63, %v10708_v23  ;;  %v10922_v47 = vadd.f32 %v15464_v18, %v10825_v56 }
 0x4aa   :  { %15892 = vmatpush3.msra.mxu0 %v22228_v12  ;;  %15935 = vmatpush3.msra.mxu1 %v22222_v4  ;;  %v10913_v42 = vpop.f32.mrf.mxu1 }
 0x4ab   :  { %15893 = vmatprep.subr.mxu0 %v22300_v54  ;;  %15936 = vmatprep.subr.mxu1 %v22261_v53  ;;  %v10914_v7 = vadd.f32 %v10913_v42, %v10818_v17 }
 0x4ac   :  { %15894 = vmatpush3.msra.mxu0 %v22300_v54  ;;  %15937 = vmatpush3.msra.mxu1 %v22261_v53  ;;  %v23803_v53 = vmov 5  }
 0x4ad   :  { %15895 = vmatprep.subr.mxu0 %v22349_v29  ;;  %15938 = vmatprep.subr.mxu1 %v22326_v14 }
 0x4ae   :  { %15896 = vmatpush3.msra.mxu0 %v22349_v29  ;;  %15939 = vmatpush3.msra.mxu1 %v22326_v14 }
 0x4af   :  { %15897 = vmatprep.subr.mxu0 %v22380_v28  ;;  %15940 = vmatprep.subr.mxu1 %v22371_v10  ;;  %v15534_v37 = vpop.f32.mrf.mxu1 }
 0x4b0   :  { %15898 = vmatpush3.msra.mxu0 %v22380_v28  ;;  %15941 = vmatpush3.msra.mxu1 %v22371_v10 }
 0x4b1   :  { %15899 = vmatprep.subr.mxu0 %v22400_v31  ;;  %15942 = vmatprep.subr.mxu1 %v22386_v5  ;;  %v11133_v22 = vpop.f32.mrf.mxu1 }
 0x4b2   :  { %15900 = vmatpush3.msra.mxu0 %v22400_v31  ;;  %15943 = vmatpush3.msra.mxu1 %v22386_v5 }
 0x4b3   :  { %15901 = vmatprep.subr.mxu0 %v22420_v6  ;;  %15944 = vmatprep.subr.mxu1 %v22402_v55 }
 0x4b4   :  { %15902 = vmatpush3.msra.mxu0 %v22420_v6  ;;  %15945 = vmatpush3.msra.mxu1 %v22402_v55 }
 0x4b5   :  { %15903 = vmatprep.subr.mxu0 %v22433_v19  ;;  %15946 = vmatprep.subr.mxu1 %v22425_v30 }
 0x4b6   :  { %15904 = vmatpush3.msra.mxu0 %v22433_v19  ;;  %15947 = vmatpush3.msra.mxu1 %v22425_v30 }
 0x4b7   :  { %15905 = vmatprep.subr.mxu0 %v22445_v50  ;;  %15948 = vmatprep.subr.mxu1 %v22439_v61 }
 0x4b8   :  { %15906 = vmatpush3.msra.mxu0 %v22445_v50  ;;  %v15499_v25 = vpop.f32.mrf.mxu0  ;;  %15949 = vmatpush3.msra.mxu1 %v22439_v61 }
 0x4b9   :  { %15907 = vmatprep.subr.mxu0 %v22457_v40  ;;  %v11047_v58 = vadd.f32 %v15499_v25, %v10922_v47  ;;  %15950 = vmatprep.subr.mxu1 %v22451_v45 }
 0x4ba   :  { %15908 = vmatpush3.msra.mxu0 %v22457_v40  ;;  %v11040_v3 = vpop.f32.mrf.mxu0  ;;  %15951 = vmatpush3.msra.mxu1 %v22451_v45 }
 0x4bb   :  { %15909 = vmatprep.subr.mxu0 %v22467_v16  ;;  %v11140_v4 = vadd.f32 %v15534_v37, %v11047_v58  ;;  %v11041_v12 = vadd.f32 %v11040_v3, %v10914_v7  ;;  %15953 = vmatmul.mubr.f32.vlgmr.msra.gmra.mxu1 %v22495_v51 }
 0x4bc   :  { %15910 = vmatpush3.msra.mxu0 %v22467_v16  ;;  %16157 = vset.pattern.permute.xlu0 %v23803_v53 }
 0x4bd   :  { %15911 = vmatprep.subr.mxu0 %v22477_v59  ;;  %v12522_v26 = vmul.f32 255.0, %v11140_v4  ;;  %v11134_v21 = vadd.f32 %v11133_v22, %v11041_v12 }
 0x4be   :  { %15912 = vmatpush3.msra.mxu0 %v22477_v59 }
 0x4bf   :  { %15913 = vmatprep.subr.mxu0 %v22484_v11  ;;  %v16045_v1 = vcvt.f32.s32 %v12522_v26  ;;  %v12521_v54 = vmul.f32 255.0, %v11134_v21  ;;  %v16043_v10 = vand.u32 2147483647, %v12522_v26  ;;  %v16048_v8 = vand.u32 2147483648, %v12522_v26 }
 0x4c0   :  { %15914 = vmatpush3.msra.mxu0 %v22484_v11 }
 0x4c1   :  { %15915 = vmatprep.subr.mxu0 %v22491_v24  ;;  %v16046_v14 = vcvt.s32.f32 %v16045_v1  ;;  %v16037_v29 = vcvt.f32.s32 %v12521_v54  ;;  %v16035_v31 = vand.u32 2147483647, %v12521_v54  ;;  %v16040_v6 = vand.u32 2147483648, %v12521_v54 }
 0x4c2   :  { %15916 = vmatpush3.msra.mxu0 %v22491_v24  ;;  %vm16044_vm12 = vcmp.lt.f32.partialorder %v16043_v10, 8388608.0 }
 0x4c3   :  { %v16047_v28 = vand.u32 2147483647, %v16046_v14  ;;  %15918 = vmatmul.mubr.f32.vlgmr.msra.gmra.mxu0 %v22495_v51  ;;  %v16038_v5 = vcvt.s32.f32 %v16037_v29  ;;  %vm16036_vm13 = vcmp.lt.f32.partialorder %v16035_v31, 8388608.0 }
 0x4c5   :  { %v16049_v55 = vor.u32 %v16048_v8, %v16047_v28  ;;  %v16039_v36 = vand.u32 2147483647, %v16038_v5 }
 0x4c7   :  { %v16050_v57 = vsel %vm16044_vm12, %v16049_v55, %v12522_v26  ;;  %v16041_v30 = vor.u32 %v16040_v6, %v16039_v36 }
 0x4c8   :  { %v12554_v19 = vmul.f32 0.003921569, %v16050_v57 }
 0x4c9   :  { %v16042_v39 = vsel %vm16036_vm13, %v16041_v30, %v12521_v54 }
 0x4ca   :  { %12570 = vst [vmem:[%s22686_s2 + $0x58] sm:$0xff] %v12554_v19  ;;  %v12553_v61 = vmul.f32 0.003921569, %v16042_v39 }
 0x4cc   :  { %12569 = vst [vmem:[%s22686_s2 + $0x50] sm:$0xff] %v12553_v61 }
 0x4d1   :  { %v15604_v41 = vpop.f32.mrf.mxu1 }
 0x4d3   :  { %v11391_v60 = vpop.f32.mrf.mxu1 }
 0x4da   :  { %v15569_v50 = vpop.f32.mrf.mxu0 }
 0x4db   :  { %v11398_v16 = vadd.f32 %v15604_v41, %v15569_v50 }
 0x4dc   :  { %v11230_v45 = vpop.f32.mrf.mxu0 }
 0x4dd   :  { %v11392_v11 = vadd.f32 %v11391_v60, %v11230_v45 }
 0x4f4   :  { %v15674_v38 = vpop.f32.mrf.mxu1 }
 0x4f6   :  { %v11597_v34 = vpop.f32.mrf.mxu1 }
 0x4fc   :  { %v15639_v40 = vpop.f32.mrf.mxu0 }
 0x4fd   :  { %v11509_v43 = vadd.f32 %v15639_v40, %v11398_v16 }
 0x4fe   :  { %v11501_v59 = vpop.f32.mrf.mxu0 }
 0x4ff   :  { %v11502_v24 = vadd.f32 %v11501_v59, %v11392_v11  ;;  %v11606_v51 = vadd.f32 %v15674_v38, %v11509_v43 }
 0x501   :  { %v11598_v2 = vadd.f32 %v11597_v34, %v11502_v24 }
 0x515   :  { %v15744_v0 = vpop.f32.mrf.mxu1 }
 0x517   :  { %v11817_v32 = vpop.f32.mrf.mxu1 }
 0x51e   :  { %v15709_v46 = vpop.f32.mrf.mxu0 }
 0x51f   :  { %v11731_v52 = vadd.f32 %v15709_v46, %v11606_v51 }
 0x520   :  { %v11724_v44 = vpop.f32.mrf.mxu0 }
 0x521   :  { %v11824_v15 = vadd.f32 %v15744_v0, %v11731_v52  ;;  %v11725_v35 = vadd.f32 %v11724_v44, %v11598_v2 }
 0x523   :  { %v12524_v49 = vmul.f32 255.0, %v11824_v15  ;;  %v11818_v13 = vadd.f32 %v11817_v32, %v11725_v35 }
 0x525   :  { %v16061_v9 = vcvt.f32.s32 %v12524_v49  ;;  %v12523_v20 = vmul.f32 255.0, %v11818_v13  ;;  %v16059_v27 = vand.u32 2147483647, %v12524_v49  ;;  %v16064_v18 = vand.u32 2147483648, %v12524_v49 }
 0x527   :  { %v16062_v48 = vcvt.s32.f32 %v16061_v9  ;;  %v16053_v62 = vcvt.f32.s32 %v12523_v20  ;;  %v16051_v23 = vand.u32 2147483647, %v12523_v20  ;;  %v16056_v42 = vand.u32 2147483648, %v12523_v20 }
 0x528   :  { %vm16060_vm14 = vcmp.lt.f32.partialorder %v16059_v27, 8388608.0 }
 0x529   :  { %v16063_v33 = vand.u32 2147483647, %v16062_v48  ;;  %v16054_v63 = vcvt.s32.f32 %v16053_v62  ;;  %vm16052_vm15 = vcmp.lt.f32.partialorder %v16051_v23, 8388608.0 }
 0x52b   :  { %v16065_v56 = vor.u32 %v16064_v18, %v16063_v33  ;;  %v16055_v17 = vand.u32 2147483647, %v16054_v63 }
 0x52d   :  { %v16066_v47 = vsel %vm16060_vm14, %v16065_v56, %v12524_v49  ;;  %v16057_v37 = vor.u32 %v16056_v42, %v16055_v17 }
 0x52e   :  { %v12556_v25 = vmul.f32 0.003921569, %v16066_v47 }
 0x52f   :  { %v16058_v58 = vsel %vm16052_vm15, %v16057_v37, %v12523_v20 }
 0x530   :  { %12572 = vst [vmem:[%s22686_s2 + $0x68] sm:$0xff] %v12556_v25  ;;  %v12555_v7 = vmul.f32 0.003921569, %v16058_v58 }
 0x532   :  { %12571 = vst [vmem:[%s22686_s2 + $0x60] sm:$0xff] %v12555_v7 }
 0x537   :  { %v15814_v4 = vpop.f32.mrf.mxu1 }
 0x539   :  { %v12075_v26 = vpop.f32.mrf.mxu1 }
 0x540   :  { %v15779_v3 = vpop.f32.mrf.mxu0 }
 0x541   :  { %v12082_v21 = vadd.f32 %v15814_v4, %v15779_v3 }
 0x542   :  { %v11914_v12 = vpop.f32.mrf.mxu0 }
 0x543   :  { %v12076_v54 = vadd.f32 %v12075_v26, %v11914_v12 }
 0x559   :  { %v15884_v53 = vpop.f32.mrf.mxu1 }
 0x55b   :  { %v12281_v10 = vpop.f32.mrf.mxu1 }
 0x562   :  { %v15849_v22 = vpop.f32.mrf.mxu0 }
 0x563   :  { %v12193_v14 = vadd.f32 %v15849_v22, %v12082_v21 }
 0x564   :  { %v12185_v1 = vpop.f32.mrf.mxu0 }
 0x565   :  { %v12186_v29 = vadd.f32 %v12185_v1, %v12076_v54  ;;  %v12290_v28 = vadd.f32 %v15884_v53, %v12193_v14 }
 0x567   :  { %v12282_v55 = vadd.f32 %v12281_v10, %v12186_v29 }
 0x57b   :  { %v15954_v8 = vpop.f32.mrf.mxu1 }
 0x57d   :  { %v12501_v30 = vpop.f32.mrf.mxu1 }
 0x583   :  { %v15919_v5 = vpop.f32.mrf.mxu0 }
 0x584   :  { %v12415_v31 = vadd.f32 %v15919_v5, %v12290_v28 }
 0x585   :  { %v12408_v36 = vpop.f32.mrf.mxu0 }
 0x586   :  { %v12508_v6 = vadd.f32 %v15954_v8, %v12415_v31  ;;  %v12409_v57 = vadd.f32 %v12408_v36, %v12282_v55 }
 0x588   :  { %v12526_v19 = vmul.f32 255.0, %v12508_v6  ;;  %v12502_v39 = vadd.f32 %v12501_v30, %v12409_v57 }
 0x58a   :  { %v16077_v61 = vcvt.f32.s32 %v12526_v19  ;;  %v12525_v50 = vmul.f32 255.0, %v12502_v39  ;;  %v16075_v40 = vand.u32 2147483647, %v12526_v19  ;;  %v16080_v16 = vand.u32 2147483648, %v12526_v19 }
 0x58c   :  { %v16078_v41 = vcvt.s32.f32 %v16077_v61  ;;  %v16069_v45 = vcvt.f32.s32 %v12525_v50  ;;  %v16067_v59 = vand.u32 2147483647, %v12525_v50  ;;  %v16072_v24 = vand.u32 2147483648, %v12525_v50 }
 0x58d   :  { %vm16076_vm0 = vcmp.lt.f32.partialorder %v16075_v40, 8388608.0 }
 0x58e   :  { %v16079_v60 = vand.u32 2147483647, %v16078_v41  ;;  %v16070_v38 = vcvt.s32.f32 %v16069_v45  ;;  %vm16068_vm1 = vcmp.lt.f32.partialorder %v16067_v59, 8388608.0 }
 0x590   :  { %v16081_v11 = vor.u32 %v16080_v16, %v16079_v60  ;;  %v16071_v43 = vand.u32 2147483647, %v16070_v38 }
 0x592   :  { %v16082_v34 = vsel %vm16076_vm0, %v16081_v11, %v12526_v19  ;;  %v16073_v51 = vor.u32 %v16072_v24, %v16071_v43 }
 0x593   :  { %v12558_v0 = vmul.f32 0.003921569, %v16082_v34 }
 0x594   :  { %v16074_v46 = vsel %vm16068_vm1, %v16073_v51, %v12525_v50 }
 0x595   :  { %12574 = vst [vmem:[%s22686_s2 + $0x78] sm:$0xff] %v12558_v0  ;;  %v12557_v52 = vmul.f32 0.003921569, %v16074_v46 }
 0x597   :  { %12573 = vst [vmem:[%s22686_s2 + $0x70] sm:$0xff] %v12557_v52 }

</bundles_post_ra>
